<compile_context>
chip_gen: v7x
topology: tpu7x:2x2x1
jax: 0.10.0
libtpu: 0.0.40
codegen_flags: <defaults>
</compile_context>

<pallas_src>
import functools

import jax
import jax.numpy as jnp
from jax import lax
from jax.experimental import pallas as pl
from jax.experimental.pallas import tpu as pltpu

EPS = 1e-5


# ------------------------------ kernel helpers ------------------------------

def _mx(a, b):
    """MXU matmul: bf16 operands, f32 accumulation."""
    return jnp.dot(a.astype(jnp.bfloat16), b.astype(jnp.bfloat16),
                   preferred_element_type=jnp.float32)


def _mx_t(a, b):
    """a @ b.T on the MXU (rhs-transposed dot_general), bf16 in / f32 out."""
    return lax.dot_general(
        a.astype(jnp.bfloat16), b.astype(jnp.bfloat16),
        dimension_numbers=(((1,), (1,)), ((), ())),
        preferred_element_type=jnp.float32)


def _sel(cond):
    """Exact 0/1 selection matrix (bf16) from a boolean condition."""
    return jnp.where(cond, 1.0, 0.0).astype(jnp.bfloat16)


def _inst_norm_relu(v):
    """InstanceNorm2d(affine=False) + ReLU on a (C, HW) tile, f32 statistics."""
    mu = jnp.mean(v, axis=-1, keepdims=True)
    vc = v - mu
    var = jnp.mean(vc * vc, axis=-1, keepdims=True)
    return jnp.maximum(vc * lax.rsqrt(var + EPS), 0.0)


# ------------------------------- fused kernel -------------------------------

def _fused_kernel(x1_ref, x2_ref,
                  w_up_ref, b_up_ref,
                  w_p2_ref, w_p1_ref, b_p_ref,
                  w_th_ref, b_th_ref, w_ph_ref, b_ph_ref, w_g_ref, b_g_ref,
                  w_z_ref, b_z_ref,
                  w_b1_ref, b_b1_ref, w_b3_ref, b_b3_ref, w_b5_ref, b_b5_ref,
                  o_ref, *, W1, H2, W2):
    HW1 = x1_ref.shape[-1]
    HW2 = H2 * W2
    c1h = w_up_ref.shape[1]
    lat = w_th_ref.shape[0]
    l1 = W1.bit_length() - 1
    l2 = W2.bit_length() - 1

    x1 = x1_ref[0].astype(jnp.bfloat16)            # (C1, H1*W1)
    x2 = x2_ref[0].astype(jnp.bfloat16)            # (C2, H2*W2)

    # ---- upsample: ConvTranspose2d(k=4, s=2, p=1).  16 taps; each tap is a
    #      tiny (out,in) matmul followed by a 0/1 scatter matmul to full res.
    #      output[o, oy, ox] += W_t[i, o, ky, kx] * x1[i, iy, ix]
    #      with oy = 2*iy - 1 + ky, ox = 2*ix - 1 + kx (boundary handled by
    #      the scatter condition never matching out-of-range targets).
    qi = lax.broadcasted_iota(jnp.int32, (HW1, HW2), 0)
    pi = lax.broadcasted_iota(jnp.int32, (HW1, HW2), 1)
    iy, ix = qi >> l1, qi & (W1 - 1)
    oy, ox = pi >> l2, pi & (W2 - 1)
    up = jnp.zeros((c1h, HW2), jnp.float32)
    for ky in range(4):
        for kx in range(4):
            scat = _sel((oy == 2 * iy - 1 + ky) & (ox == 2 * ix - 1 + kx))
            up = up + _mx(_mx(w_up_ref[ky * 4 + kx], x1), scat)
    up = up + b_up_ref[...]

    # ---- projection of cat([x2, upsample(x1)]) with source-split weights
    x_ = _mx(w_p2_ref[...], x2) + _mx(w_p1_ref[...], up) + b_p_ref[...]

    # ---- region non-local block (2x2 region grid, embedded Gaussian)
    xb = x_.astype(jnp.bfloat16)
    th = _mx(w_th_ref[...], xb) + b_th_ref[...]     # (L, HW2)
    ph = _mx(w_ph_ref[...], xb) + b_ph_ref[...]
    g = _mx(w_g_ref[...], xb) + b_g_ref[...]

    rh, rw = H2 // 2, W2 // 2
    rs = rh * rw
    lr = rw.bit_length() - 1
    gq = lax.broadcasted_iota(jnp.int32, (rs, HW2), 0)
    gp = lax.broadcasted_iota(jnp.int32, (rs, HW2), 1)
    q_h, q_w = gq >> lr, gq & (rw - 1)
    p_h, p_w = gp >> l2, gp & (W2 - 1)

    y = jnp.zeros((lat, HW2), jnp.float32)
    for ry in range(2):
        for rx in range(2):
            sel = _sel((p_h == q_h + ry * rh) & (p_w == q_w + rx * rw))
            th_rt = _mx_t(sel, th)                  # (rs, L)  = theta_r^T
            ph_r = _mx_t(ph, sel)                   # (L, rs)
            g_r = _mx_t(g, sel)                     # (L, rs)
            s = _mx(th_rt, ph_r)                    # (rs, rs) attention logits
            s = s - jnp.max(s, axis=-1, keepdims=True)
            e = jnp.exp(s)
            attn = e * pl.reciprocal(jnp.sum(e, axis=-1, keepdims=True),
                                     approx=True)
            y_r = _mx_t(g_r, attn)                  # (L, rs)
            y = y + _mx(y_r, sel)                   # scatter back to (L, HW2)
    x_ = _mx(w_z_ref[...], y) + b_z_ref[...] + x_   # z = W_z(y) + x

    # ---- bottleneck: 1x1 -> IN+ReLU -> 3x3 -> IN+ReLU -> 1x1
    b1 = _inst_norm_relu(_mx(w_b1_ref[...], x_) + b_b1_ref[...])

    # 3x3 conv (pad=1) via separable column/row shift matmuls:
    #   y3 = sum_dy ( sum_dx W[dy,dx] @ (b1 @ Dcol_dx) ) @ Drow_dy
    si = lax.broadcasted_iota(jnp.int32, (HW2, HW2), 0)
    di = lax.broadcasted_iota(jnp.int32, (HW2, HW2), 1)
    s_h, s_w = si >> l2, si & (W2 - 1)
    d_h, d_w = di >> l2, di & (W2 - 1)
    xc = {0: b1}
    for dx in (-1, 1):
        xc[dx] = _mx(b1, _sel((s_h == d_h) & (s_w == d_w + dx)))
    y3 = jnp.zeros_like(b1)
    for dy in (-1, 0, 1):
        z = jnp.zeros_like(b1)
        for dx in (-1, 0, 1):
            z = z + _mx(w_b3_ref[(dy + 1) * 3 + (dx + 1)], xc[dx])
        if dy == 0:
            y3 = y3 + z
        else:
            y3 = y3 + _mx(z, _sel((s_w == d_w) & (s_h == d_h + dy)))
    b3 = _inst_norm_relu(y3 + b_b3_ref[...])
    b5 = _mx(w_b5_ref[...], b3) + b_b5_ref[...]

    # ---- out_block: IN + ReLU on (x_ + bottleneck(x_))   (use_dropout=False)
    o_ref[0] = _inst_norm_relu(x_ + b5)


# --------------------------------- wrapper ----------------------------------

def _forward(params, x1, x2):
    """x1: (B, C1, H1, W1), x2: (B, C2, 2*H1, 2*W1) - NCHW like PyTorch."""
    B, C1, H1, W1 = x1.shape
    _, C2, H2, W2 = x2.shape
    assert H2 == 2 * H1 and W2 == 2 * W1
    assert (W1 & (W1 - 1)) == 0 and (W2 & (W2 - 1)) == 0  # pow2 index decode
    c1h = C1 // 2
    out_c = params["proj_w"].shape[0]
    lat = params["theta_w"].shape[0]
    HW1, HW2 = H1 * W1, H2 * W2
    bf = jnp.bfloat16

    # activations flattened to (B, C, H*W): channels -> sublanes, HW -> lanes
    x1f = x1.reshape(B, C1, HW1)
    x2f = x2.reshape(B, C2, HW2)

    def col(b):  # bias -> (C, 1) f32 column (broadcast over lanes in-kernel)
        return b.reshape(-1, 1).astype(jnp.float32)

    # ConvTranspose2d weight (in, out, kH, kW) -> (kH*kW, out, in)
    w_up = jnp.transpose(params["up_w"], (2, 3, 1, 0)).reshape(16, c1h, C1).astype(bf)
    # projection Conv2d weight (out, C2 + c1h, 1, 1); cat order is [x2, up]
    wp = params["proj_w"].reshape(out_c, C2 + c1h)
    w_p2 = wp[:, :C2].astype(bf)
    w_p1 = wp[:, C2:].astype(bf)
    w_th = params["theta_w"].reshape(lat, out_c).astype(bf)
    w_ph = params["phi_w"].reshape(lat, out_c).astype(bf)
    w_g = params["g_w"].reshape(lat, out_c).astype(bf)
    w_z = params["wz_w"].reshape(out_c, lat).astype(bf)
    w_b1 = params["bn1_w"].reshape(out_c, out_c).astype(bf)
    # 3x3 Conv2d weight (out, in, kH, kW) -> (kH*kW, out, in)
    w_b3 = jnp.transpose(params["bn3_w"], (2, 3, 0, 1)).reshape(9, out_c, out_c).astype(bf)
    w_b5 = params["bn5_w"].reshape(out_c, out_c).astype(bf)

    operands = (
        x1f, x2f,
        w_up, col(params["up_b"]),
        w_p2, w_p1, col(params["proj_b"]),
        w_th, col(params["theta_b"]), w_ph, col(params["phi_b"]),
        w_g, col(params["g_b"]),
        w_z, col(params["wz_b"]),
        w_b1, col(params["bn1_b"]), w_b3, col(params["bn3_b"]),
        w_b5, col(params["bn5_b"]),
    )

    def batch_spec(a):
        return pl.BlockSpec((1,) + a.shape[1:], lambda b: (b, 0, 0))

    def bcast_spec(a):
        if a.ndim == 2:
            return pl.BlockSpec(a.shape, lambda b: (0, 0))
        return pl.BlockSpec(a.shape, lambda b: (0, 0, 0))

    in_specs = [batch_spec(x1f), batch_spec(x2f)]
    in_specs += [bcast_spec(w) for w in operands[2:]]

    kernel = functools.partial(_fused_kernel, W1=W1, H2=H2, W2=W2)
    out = pl.pallas_call(
        kernel,
        grid=(B,),
        in_specs=in_specs,
        out_specs=pl.BlockSpec((1, out_c, HW2), lambda b: (b, 0, 0)),
        out_shape=jax.ShapeDtypeStruct((B, out_c, HW2), jnp.float32),
        compiler_params=pltpu.CompilerParams(dimension_semantics=("parallel",)),
    )(*operands)
    return out.reshape(B, out_c, H2, W2)


forward = jax.jit(_forward)


# ------------------------------ parameter init ------------------------------

def init_params(key, in_c1, in_c2, out_c, latent_dim):
    ks = jax.random.split(key, 18)

    def nrm(k, shape, scale=0.1):
        return scale * jax.random.normal(k, shape, dtype=jnp.float32)

    c1h = in_c1 // 2
    return {
        # ConvTranspose2d weight layout: (in, out, kH, kW)
        "up_w": nrm(ks[0], (in_c1, c1h, 4, 4)), "up_b": nrm(ks[1], (c1h,)),
        # Conv2d weight layout: (out, in, kH, kW); proj in-channels = [x2 | up]
        "proj_w": nrm(ks[2], (out_c, in_c2 + c1h, 1, 1)), "proj_b": nrm(ks[3], (out_c,)),
        "theta_w": nrm(ks[4], (latent_dim, out_c, 1, 1)), "theta_b": nrm(ks[5], (latent_dim,)),
        "phi_w": nrm(ks[6], (latent_dim, out_c, 1, 1)), "phi_b": nrm(ks[7], (latent_dim,)),
        "g_w": nrm(ks[8], (latent_dim, out_c, 1, 1)), "g_b": nrm(ks[9], (latent_dim,)),
        "wz_w": nrm(ks[10], (out_c, latent_dim, 1, 1)), "wz_b": nrm(ks[11], (out_c,)),
        "bn1_w": nrm(ks[12], (out_c, out_c, 1, 1)), "bn1_b": nrm(ks[13], (out_c,)),
        "bn3_w": nrm(ks[14], (out_c, out_c, 3, 3)), "bn3_b": nrm(ks[15], (out_c,)),
        "bn5_w": nrm(ks[16], (out_c, out_c, 1, 1)), "bn5_b": nrm(ks[17], (out_c,)),
    }


if __name__ == "__main__":
    in_channel1, in_channel2, out_channel, latent_dim = 8, 4, 8, 4
    B, H1, W1 = 2, 8, 8          # x1 spatial; x2 spatial is 2x (16x16)

    key = jax.random.PRNGKey(0)
    kp, kx1, kx2 = jax.random.split(key, 3)
    params = init_params(kp, in_channel1, in_channel2, out_channel, latent_dim)

    # NCHW inputs, exactly as the PyTorch module expects.
    x1 = jax.random.normal(kx1, (B, in_channel1, H1, W1), dtype=jnp.float32)
    x2 = jax.random.normal(kx2, (B, in_channel2, 2 * H1, 2 * W1), dtype=jnp.float32)

    out = forward(params, x1, x2)
    out = jax.block_until_ready(out)
    assert out.shape == (B, out_channel, 2 * H1, 2 * W1)
    assert bool(jnp.all(jnp.isfinite(out)))
    print("KERNEL_OK")
</pallas_src>

<mosaic_0001>
module attributes {stable_mosaic.version = 11 : i64} {
  func.func @_fused_kernel(%arg0: i32, %arg1: memref<1x8x64xf32, #tpu.memory_space<vmem>>, %arg2: memref<1x4x256xf32, #tpu.memory_space<vmem>>, %arg3: memref<16x4x8xbf16, #tpu.memory_space<vmem>>, %arg4: memref<4x1xf32, #tpu.memory_space<vmem>>, %arg5: memref<8x4xbf16, #tpu.memory_space<vmem>>, %arg6: memref<8x4xbf16, #tpu.memory_space<vmem>>, %arg7: memref<8x1xf32, #tpu.memory_space<vmem>>, %arg8: memref<4x8xbf16, #tpu.memory_space<vmem>>, %arg9: memref<4x1xf32, #tpu.memory_space<vmem>>, %arg10: memref<4x8xbf16, #tpu.memory_space<vmem>>, %arg11: memref<4x1xf32, #tpu.memory_space<vmem>>, %arg12: memref<4x8xbf16, #tpu.memory_space<vmem>>, %arg13: memref<4x1xf32, #tpu.memory_space<vmem>>, %arg14: memref<8x4xbf16, #tpu.memory_space<vmem>>, %arg15: memref<8x1xf32, #tpu.memory_space<vmem>>, %arg16: memref<8x8xbf16, #tpu.memory_space<vmem>>, %arg17: memref<8x1xf32, #tpu.memory_space<vmem>>, %arg18: memref<9x8x8xbf16, #tpu.memory_space<vmem>>, %arg19: memref<8x1xf32, #tpu.memory_space<vmem>>, %arg20: memref<8x8xbf16, #tpu.memory_space<vmem>>, %arg21: memref<8x1xf32, #tpu.memory_space<vmem>>, %arg22: memref<1x8x256xf32, #tpu.memory_space<vmem>>) attributes {dimension_semantics = [#tpu.dimension_semantics<parallel>], iteration_bounds = array<i64: 2>, scalar_prefetch = 0 : i64, scratch_operands = 0 : i64, tpu.core_type = #tpu.core_type<tc>, window_params = [{transform_indices = @transform_0, window_bounds = array<i64: 1, 8, 64>}, {transform_indices = @transform_1, window_bounds = array<i64: 1, 4, 256>}, {pipeline_mode = #tpu.pipeline_mode<synchronous>, transform_indices = @transform_2, window_bounds = array<i64: 16, 4, 8>}, {pipeline_mode = #tpu.pipeline_mode<synchronous>, transform_indices = @transform_3, window_bounds = array<i64: 4, 1>}, {pipeline_mode = #tpu.pipeline_mode<synchronous>, transform_indices = @transform_4, window_bounds = array<i64: 8, 4>}, {pipeline_mode = #tpu.pipeline_mode<synchronous>, transform_indices = @transform_5, window_bounds = array<i64: 8, 4>}, {pipeline_mode = #tpu.pipeline_mode<synchronous>, transform_indices = @transform_6, window_bounds = array<i64: 8, 1>}, {pipeline_mode = #tpu.pipeline_mode<synchronous>, transform_indices = @transform_7, window_bounds = array<i64: 4, 8>}, {pipeline_mode = #tpu.pipeline_mode<synchronous>, transform_indices = @transform_8, window_bounds = array<i64: 4, 1>}, {pipeline_mode = #tpu.pipeline_mode<synchronous>, transform_indices = @transform_9, window_bounds = array<i64: 4, 8>}, {pipeline_mode = #tpu.pipeline_mode<synchronous>, transform_indices = @transform_10, window_bounds = array<i64: 4, 1>}, {pipeline_mode = #tpu.pipeline_mode<synchronous>, transform_indices = @transform_11, window_bounds = array<i64: 4, 8>}, {pipeline_mode = #tpu.pipeline_mode<synchronous>, transform_indices = @transform_12, window_bounds = array<i64: 4, 1>}, {pipeline_mode = #tpu.pipeline_mode<synchronous>, transform_indices = @transform_13, window_bounds = array<i64: 8, 4>}, {pipeline_mode = #tpu.pipeline_mode<synchronous>, transform_indices = @transform_14, window_bounds = array<i64: 8, 1>}, {pipeline_mode = #tpu.pipeline_mode<synchronous>, transform_indices = @transform_15, window_bounds = array<i64: 8, 8>}, {pipeline_mode = #tpu.pipeline_mode<synchronous>, transform_indices = @transform_16, window_bounds = array<i64: 8, 1>}, {pipeline_mode = #tpu.pipeline_mode<synchronous>, transform_indices = @transform_17, window_bounds = array<i64: 9, 8, 8>}, {pipeline_mode = #tpu.pipeline_mode<synchronous>, transform_indices = @transform_18, window_bounds = array<i64: 8, 1>}, {pipeline_mode = #tpu.pipeline_mode<synchronous>, transform_indices = @transform_19, window_bounds = array<i64: 8, 8>}, {pipeline_mode = #tpu.pipeline_mode<synchronous>, transform_indices = @transform_20, window_bounds = array<i64: 8, 1>}, {transform_indices = @transform_21, window_bounds = array<i64: 1, 8, 256>}]} {
    %c0 = arith.constant 0 : index
    %c0_0 = arith.constant 0 : index
    %c0_1 = arith.constant 0 : index
    %0 = vector.load %arg1[%c0, %c0_0, %c0_1] : memref<1x8x64xf32, #tpu.memory_space<vmem>>, vector<1x8x64xf32>
    %1 = vector.shape_cast %0 : vector<1x8x64xf32> to vector<8x64xf32>
    %2 = arith.truncf %1 : vector<8x64xf32> to vector<8x64xbf16>
    %c0_2 = arith.constant 0 : index
    %c0_3 = arith.constant 0 : index
    %c0_4 = arith.constant 0 : index
    %3 = vector.load %arg2[%c0_2, %c0_3, %c0_4] : memref<1x4x256xf32, #tpu.memory_space<vmem>>, vector<1x4x256xf32>
    %4 = vector.shape_cast %3 : vector<1x4x256xf32> to vector<4x256xf32>
    %5 = arith.truncf %4 : vector<4x256xf32> to vector<4x256xbf16>
    %6 = tpu.iota {dimensions = array<i32: 0>} : vector<64x256xi32>
    %7 = tpu.iota {dimensions = array<i32: 1>} : vector<64x256xi32>
    %c3_i32 = arith.constant 3 : i32
    %8 = vector.broadcast %c3_i32 : i32 to vector<64x256xi32>
    %9 = arith.shrsi %6, %8 : vector<64x256xi32>
    %c7_i32 = arith.constant 7 : i32
    %10 = vector.broadcast %c7_i32 : i32 to vector<64x256xi32>
    %11 = arith.andi %6, %10 : vector<64x256xi32>
    %c4_i32 = arith.constant 4 : i32
    %12 = vector.broadcast %c4_i32 : i32 to vector<64x256xi32>
    %13 = arith.shrsi %7, %12 : vector<64x256xi32>
    %c15_i32 = arith.constant 15 : i32
    %14 = vector.broadcast %c15_i32 : i32 to vector<64x256xi32>
    %15 = arith.andi %7, %14 : vector<64x256xi32>
    %cst = arith.constant 0.000000e+00 : f32
    %16 = vector.broadcast %cst : f32 to vector<4x256xf32>
    %c2_i32 = arith.constant 2 : i32
    %17 = vector.broadcast %c2_i32 : i32 to vector<64x256xi32>
    %18 = arith.muli %17, %9 : vector<64x256xi32>
    %c1_i32 = arith.constant 1 : i32
    %19 = vector.broadcast %c1_i32 : i32 to vector<64x256xi32>
    %20 = arith.subi %18, %19 : vector<64x256xi32>
    %c0_i32 = arith.constant 0 : i32
    %21 = vector.broadcast %c0_i32 : i32 to vector<64x256xi32>
    %22 = arith.addi %20, %21 : vector<64x256xi32>
    %23 = arith.cmpi eq, %13, %22 : vector<64x256xi32>
    %c2_i32_5 = arith.constant 2 : i32
    %24 = vector.broadcast %c2_i32_5 : i32 to vector<64x256xi32>
    %25 = arith.muli %24, %11 : vector<64x256xi32>
    %c1_i32_6 = arith.constant 1 : i32
    %26 = vector.broadcast %c1_i32_6 : i32 to vector<64x256xi32>
    %27 = arith.subi %25, %26 : vector<64x256xi32>
    %c0_i32_7 = arith.constant 0 : i32
    %28 = vector.broadcast %c0_i32_7 : i32 to vector<64x256xi32>
    %29 = arith.addi %27, %28 : vector<64x256xi32>
    %30 = arith.cmpi eq, %15, %29 : vector<64x256xi32>
    %31 = arith.andi %23, %30 : vector<64x256xi1>
    %cst_8 = arith.constant 1.000000e+00 : f32
    %cst_9 = arith.constant 0.000000e+00 : f32
    %32 = vector.broadcast %cst_8 : f32 to vector<64x256xf32>
    %33 = vector.broadcast %cst_9 : f32 to vector<64x256xf32>
    %34 = arith.select %31, %32, %33 : vector<64x256xi1>, vector<64x256xf32>
    %35 = arith.truncf %34 : vector<64x256xf32> to vector<64x256xbf16>
    %c0_10 = arith.constant 0 : index
    %c0_11 = arith.constant 0 : index
    %c0_12 = arith.constant 0 : index
    %36 = vector.load %arg3[%c0_10, %c0_11, %c0_12] : memref<16x4x8xbf16, #tpu.memory_space<vmem>>, vector<1x4x8xbf16>
    %37 = vector.shape_cast %36 : vector<1x4x8xbf16> to vector<4x8xbf16>
    %cst_13 = arith.constant dense<0.000000e+00> : vector<4x64xf32>
    %38 = tpu.matmul %37, %2, %cst_13 {dimension_numbers = #tpu.dot_dimension_numbers<[1], [0], [0], [1], [0, 0, 1, 1], [], []>} : vector<4x8xbf16>, vector<8x64xbf16>, vector<4x64xf32> -> vector<4x64xf32>
    %39 = arith.truncf %38 : vector<4x64xf32> to vector<4x64xbf16>
    %cst_14 = arith.constant dense<0.000000e+00> : vector<4x256xf32>
    %40 = tpu.matmul %39, %35, %cst_14 {dimension_numbers = #tpu.dot_dimension_numbers<[1], [0], [0], [1], [0, 0, 1, 1], [], []>} : vector<4x64xbf16>, vector<64x256xbf16>, vector<4x256xf32> -> vector<4x256xf32>
    %41 = arith.addf %16, %40 : vector<4x256xf32>
    %c2_i32_15 = arith.constant 2 : i32
    %42 = vector.broadcast %c2_i32_15 : i32 to vector<64x256xi32>
    %43 = arith.muli %42, %9 : vector<64x256xi32>
    %c1_i32_16 = arith.constant 1 : i32
    %44 = vector.broadcast %c1_i32_16 : i32 to vector<64x256xi32>
    %45 = arith.subi %43, %44 : vector<64x256xi32>
    %c0_i32_17 = arith.constant 0 : i32
    %46 = vector.broadcast %c0_i32_17 : i32 to vector<64x256xi32>
    %47 = arith.addi %45, %46 : vector<64x256xi32>
    %48 = arith.cmpi eq, %13, %47 : vector<64x256xi32>
    %c2_i32_18 = arith.constant 2 : i32
    %49 = vector.broadcast %c2_i32_18 : i32 to vector<64x256xi32>
    %50 = arith.muli %49, %11 : vector<64x256xi32>
    %c1_i32_19 = arith.constant 1 : i32
    %51 = vector.broadcast %c1_i32_19 : i32 to vector<64x256xi32>
    %52 = arith.subi %50, %51 : vector<64x256xi32>
    %c1_i32_20 = arith.constant 1 : i32
    %53 = vector.broadcast %c1_i32_20 : i32 to vector<64x256xi32>
    %54 = arith.addi %52, %53 : vector<64x256xi32>
    %55 = arith.cmpi eq, %15, %54 : vector<64x256xi32>
    %56 = arith.andi %48, %55 : vector<64x256xi1>
    %cst_21 = arith.constant 1.000000e+00 : f32
    %cst_22 = arith.constant 0.000000e+00 : f32
    %57 = vector.broadcast %cst_21 : f32 to vector<64x256xf32>
    %58 = vector.broadcast %cst_22 : f32 to vector<64x256xf32>
    %59 = arith.select %56, %57, %58 : vector<64x256xi1>, vector<64x256xf32>
    %60 = arith.truncf %59 : vector<64x256xf32> to vector<64x256xbf16>
    %c1 = arith.constant 1 : index
    %c0_23 = arith.constant 0 : index
    %c0_24 = arith.constant 0 : index
    %61 = vector.load %arg3[%c1, %c0_23, %c0_24] : memref<16x4x8xbf16, #tpu.memory_space<vmem>>, vector<1x4x8xbf16>
    %62 = vector.shape_cast %61 : vector<1x4x8xbf16> to vector<4x8xbf16>
    %cst_25 = arith.constant dense<0.000000e+00> : vector<4x64xf32>
    %63 = tpu.matmul %62, %2, %cst_25 {dimension_numbers = #tpu.dot_dimension_numbers<[1], [0], [0], [1], [0, 0, 1, 1], [], []>} : vector<4x8xbf16>, vector<8x64xbf16>, vector<4x64xf32> -> vector<4x64xf32>
    %64 = arith.truncf %63 : vector<4x64xf32> to vector<4x64xbf16>
    %cst_26 = arith.constant dense<0.000000e+00> : vector<4x256xf32>
    %65 = tpu.matmul %64, %60, %cst_26 {dimension_numbers = #tpu.dot_dimension_numbers<[1], [0], [0], [1], [0, 0, 1, 1], [], []>} : vector<4x64xbf16>, vector<64x256xbf16>, vector<4x256xf32> -> vector<4x256xf32>
    %66 = arith.addf %41, %65 : vector<4x256xf32>
    %c2_i32_27 = arith.constant 2 : i32
    %67 = vector.broadcast %c2_i32_27 : i32 to vector<64x256xi32>
    %68 = arith.muli %67, %9 : vector<64x256xi32>
    %c1_i32_28 = arith.constant 1 : i32
    %69 = vector.broadcast %c1_i32_28 : i32 to vector<64x256xi32>
    %70 = arith.subi %68, %69 : vector<64x256xi32>
    %c0_i32_29 = arith.constant 0 : i32
    %71 = vector.broadcast %c0_i32_29 : i32 to vector<64x256xi32>
    %72 = arith.addi %70, %71 : vector<64x256xi32>
    %73 = arith.cmpi eq, %13, %72 : vector<64x256xi32>
    %c2_i32_30 = arith.constant 2 : i32
    %74 = vector.broadcast %c2_i32_30 : i32 to vector<64x256xi32>
    %75 = arith.muli %74, %11 : vector<64x256xi32>
    %c1_i32_31 = arith.constant 1 : i32
    %76 = vector.broadcast %c1_i32_31 : i32 to vector<64x256xi32>
    %77 = arith.subi %75, %76 : vector<64x256xi32>
    %c2_i32_32 = arith.constant 2 : i32
    %78 = vector.broadcast %c2_i32_32 : i32 to vector<64x256xi32>
    %79 = arith.addi %77, %78 : vector<64x256xi32>
    %80 = arith.cmpi eq, %15, %79 : vector<64x256xi32>
    %81 = arith.andi %73, %80 : vector<64x256xi1>
    %cst_33 = arith.constant 1.000000e+00 : f32
    %cst_34 = arith.constant 0.000000e+00 : f32
    %82 = vector.broadcast %cst_33 : f32 to vector<64x256xf32>
    %83 = vector.broadcast %cst_34 : f32 to vector<64x256xf32>
    %84 = arith.select %81, %82, %83 : vector<64x256xi1>, vector<64x256xf32>
    %85 = arith.truncf %84 : vector<64x256xf32> to vector<64x256xbf16>
    %c2 = arith.constant 2 : index
    %c0_35 = arith.constant 0 : index
    %c0_36 = arith.constant 0 : index
    %86 = vector.load %arg3[%c2, %c0_35, %c0_36] : memref<16x4x8xbf16, #tpu.memory_space<vmem>>, vector<1x4x8xbf16>
    %87 = vector.shape_cast %86 : vector<1x4x8xbf16> to vector<4x8xbf16>
    %cst_37 = arith.constant dense<0.000000e+00> : vector<4x64xf32>
    %88 = tpu.matmul %87, %2, %cst_37 {dimension_numbers = #tpu.dot_dimension_numbers<[1], [0], [0], [1], [0, 0, 1, 1], [], []>} : vector<4x8xbf16>, vector<8x64xbf16>, vector<4x64xf32> -> vector<4x64xf32>
    %89 = arith.truncf %88 : vector<4x64xf32> to vector<4x64xbf16>
    %cst_38 = arith.constant dense<0.000000e+00> : vector<4x256xf32>
    %90 = tpu.matmul %89, %85, %cst_38 {dimension_numbers = #tpu.dot_dimension_numbers<[1], [0], [0], [1], [0, 0, 1, 1], [], []>} : vector<4x64xbf16>, vector<64x256xbf16>, vector<4x256xf32> -> vector<4x256xf32>
    %91 = arith.addf %66, %90 : vector<4x256xf32>
    %c2_i32_39 = arith.constant 2 : i32
    %92 = vector.broadcast %c2_i32_39 : i32 to vector<64x256xi32>
    %93 = arith.muli %92, %9 : vector<64x256xi32>
    %c1_i32_40 = arith.constant 1 : i32
    %94 = vector.broadcast %c1_i32_40 : i32 to vector<64x256xi32>
    %95 = arith.subi %93, %94 : vector<64x256xi32>
    %c0_i32_41 = arith.constant 0 : i32
    %96 = vector.broadcast %c0_i32_41 : i32 to vector<64x256xi32>
    %97 = arith.addi %95, %96 : vector<64x256xi32>
    %98 = arith.cmpi eq, %13, %97 : vector<64x256xi32>
    %c2_i32_42 = arith.constant 2 : i32
    %99 = vector.broadcast %c2_i32_42 : i32 to vector<64x256xi32>
    %100 = arith.muli %99, %11 : vector<64x256xi32>
    %c1_i32_43 = arith.constant 1 : i32
    %101 = vector.broadcast %c1_i32_43 : i32 to vector<64x256xi32>
    %102 = arith.subi %100, %101 : vector<64x256xi32>
    %c3_i32_44 = arith.constant 3 : i32
    %103 = vector.broadcast %c3_i32_44 : i32 to vector<64x256xi32>
    %104 = arith.addi %102, %103 : vector<64x256xi32>
    %105 = arith.cmpi eq, %15, %104 : vector<64x256xi32>
    %106 = arith.andi %98, %105 : vector<64x256xi1>
    %cst_45 = arith.constant 1.000000e+00 : f32
    %cst_46 = arith.constant 0.000000e+00 : f32
    %107 = vector.broadcast %cst_45 : f32 to vector<64x256xf32>
    %108 = vector.broadcast %cst_46 : f32 to vector<64x256xf32>
    %109 = arith.select %106, %107, %108 : vector<64x256xi1>, vector<64x256xf32>
    %110 = arith.truncf %109 : vector<64x256xf32> to vector<64x256xbf16>
    %c3 = arith.constant 3 : index
    %c0_47 = arith.constant 0 : index
    %c0_48 = arith.constant 0 : index
    %111 = vector.load %arg3[%c3, %c0_47, %c0_48] : memref<16x4x8xbf16, #tpu.memory_space<vmem>>, vector<1x4x8xbf16>
    %112 = vector.shape_cast %111 : vector<1x4x8xbf16> to vector<4x8xbf16>
    %cst_49 = arith.constant dense<0.000000e+00> : vector<4x64xf32>
    %113 = tpu.matmul %112, %2, %cst_49 {dimension_numbers = #tpu.dot_dimension_numbers<[1], [0], [0], [1], [0, 0, 1, 1], [], []>} : vector<4x8xbf16>, vector<8x64xbf16>, vector<4x64xf32> -> vector<4x64xf32>
    %114 = arith.truncf %113 : vector<4x64xf32> to vector<4x64xbf16>
    %cst_50 = arith.constant dense<0.000000e+00> : vector<4x256xf32>
    %115 = tpu.matmul %114, %110, %cst_50 {dimension_numbers = #tpu.dot_dimension_numbers<[1], [0], [0], [1], [0, 0, 1, 1], [], []>} : vector<4x64xbf16>, vector<64x256xbf16>, vector<4x256xf32> -> vector<4x256xf32>
    %116 = arith.addf %91, %115 : vector<4x256xf32>
    %c2_i32_51 = arith.constant 2 : i32
    %117 = vector.broadcast %c2_i32_51 : i32 to vector<64x256xi32>
    %118 = arith.muli %117, %9 : vector<64x256xi32>
    %c1_i32_52 = arith.constant 1 : i32
    %119 = vector.broadcast %c1_i32_52 : i32 to vector<64x256xi32>
    %120 = arith.subi %118, %119 : vector<64x256xi32>
    %c1_i32_53 = arith.constant 1 : i32
    %121 = vector.broadcast %c1_i32_53 : i32 to vector<64x256xi32>
    %122 = arith.addi %120, %121 : vector<64x256xi32>
    %123 = arith.cmpi eq, %13, %122 : vector<64x256xi32>
    %c2_i32_54 = arith.constant 2 : i32
    %124 = vector.broadcast %c2_i32_54 : i32 to vector<64x256xi32>
    %125 = arith.muli %124, %11 : vector<64x256xi32>
    %c1_i32_55 = arith.constant 1 : i32
    %126 = vector.broadcast %c1_i32_55 : i32 to vector<64x256xi32>
    %127 = arith.subi %125, %126 : vector<64x256xi32>
    %c0_i32_56 = arith.constant 0 : i32
    %128 = vector.broadcast %c0_i32_56 : i32 to vector<64x256xi32>
    %129 = arith.addi %127, %128 : vector<64x256xi32>
    %130 = arith.cmpi eq, %15, %129 : vector<64x256xi32>
    %131 = arith.andi %123, %130 : vector<64x256xi1>
    %cst_57 = arith.constant 1.000000e+00 : f32
    %cst_58 = arith.constant 0.000000e+00 : f32
    %132 = vector.broadcast %cst_57 : f32 to vector<64x256xf32>
    %133 = vector.broadcast %cst_58 : f32 to vector<64x256xf32>
    %134 = arith.select %131, %132, %133 : vector<64x256xi1>, vector<64x256xf32>
    %135 = arith.truncf %134 : vector<64x256xf32> to vector<64x256xbf16>
    %c4 = arith.constant 4 : index
    %c0_59 = arith.constant 0 : index
    %c0_60 = arith.constant 0 : index
    %136 = vector.load %arg3[%c4, %c0_59, %c0_60] : memref<16x4x8xbf16, #tpu.memory_space<vmem>>, vector<1x4x8xbf16>
    %137 = vector.shape_cast %136 : vector<1x4x8xbf16> to vector<4x8xbf16>
    %cst_61 = arith.constant dense<0.000000e+00> : vector<4x64xf32>
    %138 = tpu.matmul %137, %2, %cst_61 {dimension_numbers = #tpu.dot_dimension_numbers<[1], [0], [0], [1], [0, 0, 1, 1], [], []>} : vector<4x8xbf16>, vector<8x64xbf16>, vector<4x64xf32> -> vector<4x64xf32>
    %139 = arith.truncf %138 : vector<4x64xf32> to vector<4x64xbf16>
    %cst_62 = arith.constant dense<0.000000e+00> : vector<4x256xf32>
    %140 = tpu.matmul %139, %135, %cst_62 {dimension_numbers = #tpu.dot_dimension_numbers<[1], [0], [0], [1], [0, 0, 1, 1], [], []>} : vector<4x64xbf16>, vector<64x256xbf16>, vector<4x256xf32> -> vector<4x256xf32>
    %141 = arith.addf %116, %140 : vector<4x256xf32>
    %c2_i32_63 = arith.constant 2 : i32
    %142 = vector.broadcast %c2_i32_63 : i32 to vector<64x256xi32>
    %143 = arith.muli %142, %9 : vector<64x256xi32>
    %c1_i32_64 = arith.constant 1 : i32
    %144 = vector.broadcast %c1_i32_64 : i32 to vector<64x256xi32>
    %145 = arith.subi %143, %144 : vector<64x256xi32>
    %c1_i32_65 = arith.constant 1 : i32
    %146 = vector.broadcast %c1_i32_65 : i32 to vector<64x256xi32>
    %147 = arith.addi %145, %146 : vector<64x256xi32>
    %148 = arith.cmpi eq, %13, %147 : vector<64x256xi32>
    %c2_i32_66 = arith.constant 2 : i32
    %149 = vector.broadcast %c2_i32_66 : i32 to vector<64x256xi32>
    %150 = arith.muli %149, %11 : vector<64x256xi32>
    %c1_i32_67 = arith.constant 1 : i32
    %151 = vector.broadcast %c1_i32_67 : i32 to vector<64x256xi32>
    %152 = arith.subi %150, %151 : vector<64x256xi32>
    %c1_i32_68 = arith.constant 1 : i32
    %153 = vector.broadcast %c1_i32_68 : i32 to vector<64x256xi32>
    %154 = arith.addi %152, %153 : vector<64x256xi32>
    %155 = arith.cmpi eq, %15, %154 : vector<64x256xi32>
    %156 = arith.andi %148, %155 : vector<64x256xi1>
    %cst_69 = arith.constant 1.000000e+00 : f32
    %cst_70 = arith.constant 0.000000e+00 : f32
    %157 = vector.broadcast %cst_69 : f32 to vector<64x256xf32>
    %158 = vector.broadcast %cst_70 : f32 to vector<64x256xf32>
    %159 = arith.select %156, %157, %158 : vector<64x256xi1>, vector<64x256xf32>
    %160 = arith.truncf %159 : vector<64x256xf32> to vector<64x256xbf16>
    %c5 = arith.constant 5 : index
    %c0_71 = arith.constant 0 : index
    %c0_72 = arith.constant 0 : index
    %161 = vector.load %arg3[%c5, %c0_71, %c0_72] : memref<16x4x8xbf16, #tpu.memory_space<vmem>>, vector<1x4x8xbf16>
    %162 = vector.shape_cast %161 : vector<1x4x8xbf16> to vector<4x8xbf16>
    %cst_73 = arith.constant dense<0.000000e+00> : vector<4x64xf32>
    %163 = tpu.matmul %162, %2, %cst_73 {dimension_numbers = #tpu.dot_dimension_numbers<[1], [0], [0], [1], [0, 0, 1, 1], [], []>} : vector<4x8xbf16>, vector<8x64xbf16>, vector<4x64xf32> -> vector<4x64xf32>
    %164 = arith.truncf %163 : vector<4x64xf32> to vector<4x64xbf16>
    %cst_74 = arith.constant dense<0.000000e+00> : vector<4x256xf32>
    %165 = tpu.matmul %164, %160, %cst_74 {dimension_numbers = #tpu.dot_dimension_numbers<[1], [0], [0], [1], [0, 0, 1, 1], [], []>} : vector<4x64xbf16>, vector<64x256xbf16>, vector<4x256xf32> -> vector<4x256xf32>
    %166 = arith.addf %141, %165 : vector<4x256xf32>
    %c2_i32_75 = arith.constant 2 : i32
    %167 = vector.broadcast %c2_i32_75 : i32 to vector<64x256xi32>
    %168 = arith.muli %167, %9 : vector<64x256xi32>
    %c1_i32_76 = arith.constant 1 : i32
    %169 = vector.broadcast %c1_i32_76 : i32 to vector<64x256xi32>
    %170 = arith.subi %168, %169 : vector<64x256xi32>
    %c1_i32_77 = arith.constant 1 : i32
    %171 = vector.broadcast %c1_i32_77 : i32 to vector<64x256xi32>
    %172 = arith.addi %170, %171 : vector<64x256xi32>
    %173 = arith.cmpi eq, %13, %172 : vector<64x256xi32>
    %c2_i32_78 = arith.constant 2 : i32
    %174 = vector.broadcast %c2_i32_78 : i32 to vector<64x256xi32>
    %175 = arith.muli %174, %11 : vector<64x256xi32>
    %c1_i32_79 = arith.constant 1 : i32
    %176 = vector.broadcast %c1_i32_79 : i32 to vector<64x256xi32>
    %177 = arith.subi %175, %176 : vector<64x256xi32>
    %c2_i32_80 = arith.constant 2 : i32
    %178 = vector.broadcast %c2_i32_80 : i32 to vector<64x256xi32>
    %179 = arith.addi %177, %178 : vector<64x256xi32>
    %180 = arith.cmpi eq, %15, %179 : vector<64x256xi32>
    %181 = arith.andi %173, %180 : vector<64x256xi1>
    %cst_81 = arith.constant 1.000000e+00 : f32
    %cst_82 = arith.constant 0.000000e+00 : f32
    %182 = vector.broadcast %cst_81 : f32 to vector<64x256xf32>
    %183 = vector.broadcast %cst_82 : f32 to vector<64x256xf32>
    %184 = arith.select %181, %182, %183 : vector<64x256xi1>, vector<64x256xf32>
    %185 = arith.truncf %184 : vector<64x256xf32> to vector<64x256xbf16>
    %c6 = arith.constant 6 : index
    %c0_83 = arith.constant 0 : index
    %c0_84 = arith.constant 0 : index
    %186 = vector.load %arg3[%c6, %c0_83, %c0_84] : memref<16x4x8xbf16, #tpu.memory_space<vmem>>, vector<1x4x8xbf16>
    %187 = vector.shape_cast %186 : vector<1x4x8xbf16> to vector<4x8xbf16>
    %cst_85 = arith.constant dense<0.000000e+00> : vector<4x64xf32>
    %188 = tpu.matmul %187, %2, %cst_85 {dimension_numbers = #tpu.dot_dimension_numbers<[1], [0], [0], [1], [0, 0, 1, 1], [], []>} : vector<4x8xbf16>, vector<8x64xbf16>, vector<4x64xf32> -> vector<4x64xf32>
    %189 = arith.truncf %188 : vector<4x64xf32> to vector<4x64xbf16>
    %cst_86 = arith.constant dense<0.000000e+00> : vector<4x256xf32>
    %190 = tpu.matmul %189, %185, %cst_86 {dimension_numbers = #tpu.dot_dimension_numbers<[1], [0], [0], [1], [0, 0, 1, 1], [], []>} : vector<4x64xbf16>, vector<64x256xbf16>, vector<4x256xf32> -> vector<4x256xf32>
    %191 = arith.addf %166, %190 : vector<4x256xf32>
    %c2_i32_87 = arith.constant 2 : i32
    %192 = vector.broadcast %c2_i32_87 : i32 to vector<64x256xi32>
    %193 = arith.muli %192, %9 : vector<64x256xi32>
    %c1_i32_88 = arith.constant 1 : i32
    %194 = vector.broadcast %c1_i32_88 : i32 to vector<64x256xi32>
    %195 = arith.subi %193, %194 : vector<64x256xi32>
    %c1_i32_89 = arith.constant 1 : i32
    %196 = vector.broadcast %c1_i32_89 : i32 to vector<64x256xi32>
    %197 = arith.addi %195, %196 : vector<64x256xi32>
    %198 = arith.cmpi eq, %13, %197 : vector<64x256xi32>
    %c2_i32_90 = arith.constant 2 : i32
    %199 = vector.broadcast %c2_i32_90 : i32 to vector<64x256xi32>
    %200 = arith.muli %199, %11 : vector<64x256xi32>
    %c1_i32_91 = arith.constant 1 : i32
    %201 = vector.broadcast %c1_i32_91 : i32 to vector<64x256xi32>
    %202 = arith.subi %200, %201 : vector<64x256xi32>
    %c3_i32_92 = arith.constant 3 : i32
    %203 = vector.broadcast %c3_i32_92 : i32 to vector<64x256xi32>
    %204 = arith.addi %202, %203 : vector<64x256xi32>
    %205 = arith.cmpi eq, %15, %204 : vector<64x256xi32>
    %206 = arith.andi %198, %205 : vector<64x256xi1>
    %cst_93 = arith.constant 1.000000e+00 : f32
    %cst_94 = arith.constant 0.000000e+00 : f32
    %207 = vector.broadcast %cst_93 : f32 to vector<64x256xf32>
    %208 = vector.broadcast %cst_94 : f32 to vector<64x256xf32>
    %209 = arith.select %206, %207, %208 : vector<64x256xi1>, vector<64x256xf32>
    %210 = arith.truncf %209 : vector<64x256xf32> to vector<64x256xbf16>
    %c7 = arith.constant 7 : index
    %c0_95 = arith.constant 0 : index
    %c0_96 = arith.constant 0 : index
    %211 = vector.load %arg3[%c7, %c0_95, %c0_96] : memref<16x4x8xbf16, #tpu.memory_space<vmem>>, vector<1x4x8xbf16>
    %212 = vector.shape_cast %211 : vector<1x4x8xbf16> to vector<4x8xbf16>
    %cst_97 = arith.constant dense<0.000000e+00> : vector<4x64xf32>
    %213 = tpu.matmul %212, %2, %cst_97 {dimension_numbers = #tpu.dot_dimension_numbers<[1], [0], [0], [1], [0, 0, 1, 1], [], []>} : vector<4x8xbf16>, vector<8x64xbf16>, vector<4x64xf32> -> vector<4x64xf32>
    %214 = arith.truncf %213 : vector<4x64xf32> to vector<4x64xbf16>
    %cst_98 = arith.constant dense<0.000000e+00> : vector<4x256xf32>
    %215 = tpu.matmul %214, %210, %cst_98 {dimension_numbers = #tpu.dot_dimension_numbers<[1], [0], [0], [1], [0, 0, 1, 1], [], []>} : vector<4x64xbf16>, vector<64x256xbf16>, vector<4x256xf32> -> vector<4x256xf32>
    %216 = arith.addf %191, %215 : vector<4x256xf32>
    %c2_i32_99 = arith.constant 2 : i32
    %217 = vector.broadcast %c2_i32_99 : i32 to vector<64x256xi32>
    %218 = arith.muli %217, %9 : vector<64x256xi32>
    %c1_i32_100 = arith.constant 1 : i32
    %219 = vector.broadcast %c1_i32_100 : i32 to vector<64x256xi32>
    %220 = arith.subi %218, %219 : vector<64x256xi32>
    %c2_i32_101 = arith.constant 2 : i32
    %221 = vector.broadcast %c2_i32_101 : i32 to vector<64x256xi32>
    %222 = arith.addi %220, %221 : vector<64x256xi32>
    %223 = arith.cmpi eq, %13, %222 : vector<64x256xi32>
    %c2_i32_102 = arith.constant 2 : i32
    %224 = vector.broadcast %c2_i32_102 : i32 to vector<64x256xi32>
    %225 = arith.muli %224, %11 : vector<64x256xi32>
    %c1_i32_103 = arith.constant 1 : i32
    %226 = vector.broadcast %c1_i32_103 : i32 to vector<64x256xi32>
    %227 = arith.subi %225, %226 : vector<64x256xi32>
    %c0_i32_104 = arith.constant 0 : i32
    %228 = vector.broadcast %c0_i32_104 : i32 to vector<64x256xi32>
    %229 = arith.addi %227, %228 : vector<64x256xi32>
    %230 = arith.cmpi eq, %15, %229 : vector<64x256xi32>
    %231 = arith.andi %223, %230 : vector<64x256xi1>
    %cst_105 = arith.constant 1.000000e+00 : f32
    %cst_106 = arith.constant 0.000000e+00 : f32
    %232 = vector.broadcast %cst_105 : f32 to vector<64x256xf32>
    %233 = vector.broadcast %cst_106 : f32 to vector<64x256xf32>
    %234 = arith.select %231, %232, %233 : vector<64x256xi1>, vector<64x256xf32>
    %235 = arith.truncf %234 : vector<64x256xf32> to vector<64x256xbf16>
    %c8 = arith.constant 8 : index
    %c0_107 = arith.constant 0 : index
    %c0_108 = arith.constant 0 : index
    %236 = vector.load %arg3[%c8, %c0_107, %c0_108] : memref<16x4x8xbf16, #tpu.memory_space<vmem>>, vector<1x4x8xbf16>
    %237 = vector.shape_cast %236 : vector<1x4x8xbf16> to vector<4x8xbf16>
    %cst_109 = arith.constant dense<0.000000e+00> : vector<4x64xf32>
    %238 = tpu.matmul %237, %2, %cst_109 {dimension_numbers = #tpu.dot_dimension_numbers<[1], [0], [0], [1], [0, 0, 1, 1], [], []>} : vector<4x8xbf16>, vector<8x64xbf16>, vector<4x64xf32> -> vector<4x64xf32>
    %239 = arith.truncf %238 : vector<4x64xf32> to vector<4x64xbf16>
    %cst_110 = arith.constant dense<0.000000e+00> : vector<4x256xf32>
    %240 = tpu.matmul %239, %235, %cst_110 {dimension_numbers = #tpu.dot_dimension_numbers<[1], [0], [0], [1], [0, 0, 1, 1], [], []>} : vector<4x64xbf16>, vector<64x256xbf16>, vector<4x256xf32> -> vector<4x256xf32>
    %241 = arith.addf %216, %240 : vector<4x256xf32>
    %c2_i32_111 = arith.constant 2 : i32
    %242 = vector.broadcast %c2_i32_111 : i32 to vector<64x256xi32>
    %243 = arith.muli %242, %9 : vector<64x256xi32>
    %c1_i32_112 = arith.constant 1 : i32
    %244 = vector.broadcast %c1_i32_112 : i32 to vector<64x256xi32>
    %245 = arith.subi %243, %244 : vector<64x256xi32>
    %c2_i32_113 = arith.constant 2 : i32
    %246 = vector.broadcast %c2_i32_113 : i32 to vector<64x256xi32>
    %247 = arith.addi %245, %246 : vector<64x256xi32>
    %248 = arith.cmpi eq, %13, %247 : vector<64x256xi32>
    %c2_i32_114 = arith.constant 2 : i32
    %249 = vector.broadcast %c2_i32_114 : i32 to vector<64x256xi32>
    %250 = arith.muli %249, %11 : vector<64x256xi32>
    %c1_i32_115 = arith.constant 1 : i32
    %251 = vector.broadcast %c1_i32_115 : i32 to vector<64x256xi32>
    %252 = arith.subi %250, %251 : vector<64x256xi32>
    %c1_i32_116 = arith.constant 1 : i32
    %253 = vector.broadcast %c1_i32_116 : i32 to vector<64x256xi32>
    %254 = arith.addi %252, %253 : vector<64x256xi32>
    %255 = arith.cmpi eq, %15, %254 : vector<64x256xi32>
    %256 = arith.andi %248, %255 : vector<64x256xi1>
    %cst_117 = arith.constant 1.000000e+00 : f32
    %cst_118 = arith.constant 0.000000e+00 : f32
    %257 = vector.broadcast %cst_117 : f32 to vector<64x256xf32>
    %258 = vector.broadcast %cst_118 : f32 to vector<64x256xf32>
    %259 = arith.select %256, %257, %258 : vector<64x256xi1>, vector<64x256xf32>
    %260 = arith.truncf %259 : vector<64x256xf32> to vector<64x256xbf16>
    %c9 = arith.constant 9 : index
    %c0_119 = arith.constant 0 : index
    %c0_120 = arith.constant 0 : index
    %261 = vector.load %arg3[%c9, %c0_119, %c0_120] : memref<16x4x8xbf16, #tpu.memory_space<vmem>>, vector<1x4x8xbf16>
    %262 = vector.shape_cast %261 : vector<1x4x8xbf16> to vector<4x8xbf16>
    %cst_121 = arith.constant dense<0.000000e+00> : vector<4x64xf32>
    %263 = tpu.matmul %262, %2, %cst_121 {dimension_numbers = #tpu.dot_dimension_numbers<[1], [0], [0], [1], [0, 0, 1, 1], [], []>} : vector<4x8xbf16>, vector<8x64xbf16>, vector<4x64xf32> -> vector<4x64xf32>
    %264 = arith.truncf %263 : vector<4x64xf32> to vector<4x64xbf16>
    %cst_122 = arith.constant dense<0.000000e+00> : vector<4x256xf32>
    %265 = tpu.matmul %264, %260, %cst_122 {dimension_numbers = #tpu.dot_dimension_numbers<[1], [0], [0], [1], [0, 0, 1, 1], [], []>} : vector<4x64xbf16>, vector<64x256xbf16>, vector<4x256xf32> -> vector<4x256xf32>
    %266 = arith.addf %241, %265 : vector<4x256xf32>
    %c2_i32_123 = arith.constant 2 : i32
    %267 = vector.broadcast %c2_i32_123 : i32 to vector<64x256xi32>
    %268 = arith.muli %267, %9 : vector<64x256xi32>
    %c1_i32_124 = arith.constant 1 : i32
    %269 = vector.broadcast %c1_i32_124 : i32 to vector<64x256xi32>
    %270 = arith.subi %268, %269 : vector<64x256xi32>
    %c2_i32_125 = arith.constant 2 : i32
    %271 = vector.broadcast %c2_i32_125 : i32 to vector<64x256xi32>
    %272 = arith.addi %270, %271 : vector<64x256xi32>
    %273 = arith.cmpi eq, %13, %272 : vector<64x256xi32>
    %c2_i32_126 = arith.constant 2 : i32
    %274 = vector.broadcast %c2_i32_126 : i32 to vector<64x256xi32>
    %275 = arith.muli %274, %11 : vector<64x256xi32>
    %c1_i32_127 = arith.constant 1 : i32
    %276 = vector.broadcast %c1_i32_127 : i32 to vector<64x256xi32>
    %277 = arith.subi %275, %276 : vector<64x256xi32>
    %c2_i32_128 = arith.constant 2 : i32
    %278 = vector.broadcast %c2_i32_128 : i32 to vector<64x256xi32>
    %279 = arith.addi %277, %278 : vector<64x256xi32>
    %280 = arith.cmpi eq, %15, %279 : vector<64x256xi32>
    %281 = arith.andi %273, %280 : vector<64x256xi1>
    %cst_129 = arith.constant 1.000000e+00 : f32
    %cst_130 = arith.constant 0.000000e+00 : f32
    %282 = vector.broadcast %cst_129 : f32 to vector<64x256xf32>
    %283 = vector.broadcast %cst_130 : f32 to vector<64x256xf32>
    %284 = arith.select %281, %282, %283 : vector<64x256xi1>, vector<64x256xf32>
    %285 = arith.truncf %284 : vector<64x256xf32> to vector<64x256xbf16>
    %c10 = arith.constant 10 : index
    %c0_131 = arith.constant 0 : index
    %c0_132 = arith.constant 0 : index
    %286 = vector.load %arg3[%c10, %c0_131, %c0_132] : memref<16x4x8xbf16, #tpu.memory_space<vmem>>, vector<1x4x8xbf16>
    %287 = vector.shape_cast %286 : vector<1x4x8xbf16> to vector<4x8xbf16>
    %cst_133 = arith.constant dense<0.000000e+00> : vector<4x64xf32>
    %288 = tpu.matmul %287, %2, %cst_133 {dimension_numbers = #tpu.dot_dimension_numbers<[1], [0], [0], [1], [0, 0, 1, 1], [], []>} : vector<4x8xbf16>, vector<8x64xbf16>, vector<4x64xf32> -> vector<4x64xf32>
    %289 = arith.truncf %288 : vector<4x64xf32> to vector<4x64xbf16>
    %cst_134 = arith.constant dense<0.000000e+00> : vector<4x256xf32>
    %290 = tpu.matmul %289, %285, %cst_134 {dimension_numbers = #tpu.dot_dimension_numbers<[1], [0], [0], [1], [0, 0, 1, 1], [], []>} : vector<4x64xbf16>, vector<64x256xbf16>, vector<4x256xf32> -> vector<4x256xf32>
    %291 = arith.addf %266, %290 : vector<4x256xf32>
    %c2_i32_135 = arith.constant 2 : i32
    %292 = vector.broadcast %c2_i32_135 : i32 to vector<64x256xi32>
    %293 = arith.muli %292, %9 : vector<64x256xi32>
    %c1_i32_136 = arith.constant 1 : i32
    %294 = vector.broadcast %c1_i32_136 : i32 to vector<64x256xi32>
    %295 = arith.subi %293, %294 : vector<64x256xi32>
    %c2_i32_137 = arith.constant 2 : i32
    %296 = vector.broadcast %c2_i32_137 : i32 to vector<64x256xi32>
    %297 = arith.addi %295, %296 : vector<64x256xi32>
    %298 = arith.cmpi eq, %13, %297 : vector<64x256xi32>
    %c2_i32_138 = arith.constant 2 : i32
    %299 = vector.broadcast %c2_i32_138 : i32 to vector<64x256xi32>
    %300 = arith.muli %299, %11 : vector<64x256xi32>
    %c1_i32_139 = arith.constant 1 : i32
    %301 = vector.broadcast %c1_i32_139 : i32 to vector<64x256xi32>
    %302 = arith.subi %300, %301 : vector<64x256xi32>
    %c3_i32_140 = arith.constant 3 : i32
    %303 = vector.broadcast %c3_i32_140 : i32 to vector<64x256xi32>
    %304 = arith.addi %302, %303 : vector<64x256xi32>
    %305 = arith.cmpi eq, %15, %304 : vector<64x256xi32>
    %306 = arith.andi %298, %305 : vector<64x256xi1>
    %cst_141 = arith.constant 1.000000e+00 : f32
    %cst_142 = arith.constant 0.000000e+00 : f32
    %307 = vector.broadcast %cst_141 : f32 to vector<64x256xf32>
    %308 = vector.broadcast %cst_142 : f32 to vector<64x256xf32>
    %309 = arith.select %306, %307, %308 : vector<64x256xi1>, vector<64x256xf32>
    %310 = arith.truncf %309 : vector<64x256xf32> to vector<64x256xbf16>
    %c11 = arith.constant 11 : index
    %c0_143 = arith.constant 0 : index
    %c0_144 = arith.constant 0 : index
    %311 = vector.load %arg3[%c11, %c0_143, %c0_144] : memref<16x4x8xbf16, #tpu.memory_space<vmem>>, vector<1x4x8xbf16>
    %312 = vector.shape_cast %311 : vector<1x4x8xbf16> to vector<4x8xbf16>
    %cst_145 = arith.constant dense<0.000000e+00> : vector<4x64xf32>
    %313 = tpu.matmul %312, %2, %cst_145 {dimension_numbers = #tpu.dot_dimension_numbers<[1], [0], [0], [1], [0, 0, 1, 1], [], []>} : vector<4x8xbf16>, vector<8x64xbf16>, vector<4x64xf32> -> vector<4x64xf32>
    %314 = arith.truncf %313 : vector<4x64xf32> to vector<4x64xbf16>
    %cst_146 = arith.constant dense<0.000000e+00> : vector<4x256xf32>
    %315 = tpu.matmul %314, %310, %cst_146 {dimension_numbers = #tpu.dot_dimension_numbers<[1], [0], [0], [1], [0, 0, 1, 1], [], []>} : vector<4x64xbf16>, vector<64x256xbf16>, vector<4x256xf32> -> vector<4x256xf32>
    %316 = arith.addf %291, %315 : vector<4x256xf32>
    %c2_i32_147 = arith.constant 2 : i32
    %317 = vector.broadcast %c2_i32_147 : i32 to vector<64x256xi32>
    %318 = arith.muli %317, %9 : vector<64x256xi32>
    %c1_i32_148 = arith.constant 1 : i32
    %319 = vector.broadcast %c1_i32_148 : i32 to vector<64x256xi32>
    %320 = arith.subi %318, %319 : vector<64x256xi32>
    %c3_i32_149 = arith.constant 3 : i32
    %321 = vector.broadcast %c3_i32_149 : i32 to vector<64x256xi32>
    %322 = arith.addi %320, %321 : vector<64x256xi32>
    %323 = arith.cmpi eq, %13, %322 : vector<64x256xi32>
    %c2_i32_150 = arith.constant 2 : i32
    %324 = vector.broadcast %c2_i32_150 : i32 to vector<64x256xi32>
    %325 = arith.muli %324, %11 : vector<64x256xi32>
    %c1_i32_151 = arith.constant 1 : i32
    %326 = vector.broadcast %c1_i32_151 : i32 to vector<64x256xi32>
    %327 = arith.subi %325, %326 : vector<64x256xi32>
    %c0_i32_152 = arith.constant 0 : i32
    %328 = vector.broadcast %c0_i32_152 : i32 to vector<64x256xi32>
    %329 = arith.addi %327, %328 : vector<64x256xi32>
    %330 = arith.cmpi eq, %15, %329 : vector<64x256xi32>
    %331 = arith.andi %323, %330 : vector<64x256xi1>
    %cst_153 = arith.constant 1.000000e+00 : f32
    %cst_154 = arith.constant 0.000000e+00 : f32
    %332 = vector.broadcast %cst_153 : f32 to vector<64x256xf32>
    %333 = vector.broadcast %cst_154 : f32 to vector<64x256xf32>
    %334 = arith.select %331, %332, %333 : vector<64x256xi1>, vector<64x256xf32>
    %335 = arith.truncf %334 : vector<64x256xf32> to vector<64x256xbf16>
    %c12 = arith.constant 12 : index
    %c0_155 = arith.constant 0 : index
    %c0_156 = arith.constant 0 : index
    %336 = vector.load %arg3[%c12, %c0_155, %c0_156] : memref<16x4x8xbf16, #tpu.memory_space<vmem>>, vector<1x4x8xbf16>
    %337 = vector.shape_cast %336 : vector<1x4x8xbf16> to vector<4x8xbf16>
    %cst_157 = arith.constant dense<0.000000e+00> : vector<4x64xf32>
    %338 = tpu.matmul %337, %2, %cst_157 {dimension_numbers = #tpu.dot_dimension_numbers<[1], [0], [0], [1], [0, 0, 1, 1], [], []>} : vector<4x8xbf16>, vector<8x64xbf16>, vector<4x64xf32> -> vector<4x64xf32>
    %339 = arith.truncf %338 : vector<4x64xf32> to vector<4x64xbf16>
    %cst_158 = arith.constant dense<0.000000e+00> : vector<4x256xf32>
    %340 = tpu.matmul %339, %335, %cst_158 {dimension_numbers = #tpu.dot_dimension_numbers<[1], [0], [0], [1], [0, 0, 1, 1], [], []>} : vector<4x64xbf16>, vector<64x256xbf16>, vector<4x256xf32> -> vector<4x256xf32>
    %341 = arith.addf %316, %340 : vector<4x256xf32>
    %c2_i32_159 = arith.constant 2 : i32
    %342 = vector.broadcast %c2_i32_159 : i32 to vector<64x256xi32>
    %343 = arith.muli %342, %9 : vector<64x256xi32>
    %c1_i32_160 = arith.constant 1 : i32
    %344 = vector.broadcast %c1_i32_160 : i32 to vector<64x256xi32>
    %345 = arith.subi %343, %344 : vector<64x256xi32>
    %c3_i32_161 = arith.constant 3 : i32
    %346 = vector.broadcast %c3_i32_161 : i32 to vector<64x256xi32>
    %347 = arith.addi %345, %346 : vector<64x256xi32>
    %348 = arith.cmpi eq, %13, %347 : vector<64x256xi32>
    %c2_i32_162 = arith.constant 2 : i32
    %349 = vector.broadcast %c2_i32_162 : i32 to vector<64x256xi32>
    %350 = arith.muli %349, %11 : vector<64x256xi32>
    %c1_i32_163 = arith.constant 1 : i32
    %351 = vector.broadcast %c1_i32_163 : i32 to vector<64x256xi32>
    %352 = arith.subi %350, %351 : vector<64x256xi32>
    %c1_i32_164 = arith.constant 1 : i32
    %353 = vector.broadcast %c1_i32_164 : i32 to vector<64x256xi32>
    %354 = arith.addi %352, %353 : vector<64x256xi32>
    %355 = arith.cmpi eq, %15, %354 : vector<64x256xi32>
    %356 = arith.andi %348, %355 : vector<64x256xi1>
    %cst_165 = arith.constant 1.000000e+00 : f32
    %cst_166 = arith.constant 0.000000e+00 : f32
    %357 = vector.broadcast %cst_165 : f32 to vector<64x256xf32>
    %358 = vector.broadcast %cst_166 : f32 to vector<64x256xf32>
    %359 = arith.select %356, %357, %358 : vector<64x256xi1>, vector<64x256xf32>
    %360 = arith.truncf %359 : vector<64x256xf32> to vector<64x256xbf16>
    %c13 = arith.constant 13 : index
    %c0_167 = arith.constant 0 : index
    %c0_168 = arith.constant 0 : index
    %361 = vector.load %arg3[%c13, %c0_167, %c0_168] : memref<16x4x8xbf16, #tpu.memory_space<vmem>>, vector<1x4x8xbf16>
    %362 = vector.shape_cast %361 : vector<1x4x8xbf16> to vector<4x8xbf16>
    %cst_169 = arith.constant dense<0.000000e+00> : vector<4x64xf32>
    %363 = tpu.matmul %362, %2, %cst_169 {dimension_numbers = #tpu.dot_dimension_numbers<[1], [0], [0], [1], [0, 0, 1, 1], [], []>} : vector<4x8xbf16>, vector<8x64xbf16>, vector<4x64xf32> -> vector<4x64xf32>
    %364 = arith.truncf %363 : vector<4x64xf32> to vector<4x64xbf16>
    %cst_170 = arith.constant dense<0.000000e+00> : vector<4x256xf32>
    %365 = tpu.matmul %364, %360, %cst_170 {dimension_numbers = #tpu.dot_dimension_numbers<[1], [0], [0], [1], [0, 0, 1, 1], [], []>} : vector<4x64xbf16>, vector<64x256xbf16>, vector<4x256xf32> -> vector<4x256xf32>
    %366 = arith.addf %341, %365 : vector<4x256xf32>
    %c2_i32_171 = arith.constant 2 : i32
    %367 = vector.broadcast %c2_i32_171 : i32 to vector<64x256xi32>
    %368 = arith.muli %367, %9 : vector<64x256xi32>
    %c1_i32_172 = arith.constant 1 : i32
    %369 = vector.broadcast %c1_i32_172 : i32 to vector<64x256xi32>
    %370 = arith.subi %368, %369 : vector<64x256xi32>
    %c3_i32_173 = arith.constant 3 : i32
    %371 = vector.broadcast %c3_i32_173 : i32 to vector<64x256xi32>
    %372 = arith.addi %370, %371 : vector<64x256xi32>
    %373 = arith.cmpi eq, %13, %372 : vector<64x256xi32>
    %c2_i32_174 = arith.constant 2 : i32
    %374 = vector.broadcast %c2_i32_174 : i32 to vector<64x256xi32>
    %375 = arith.muli %374, %11 : vector<64x256xi32>
    %c1_i32_175 = arith.constant 1 : i32
    %376 = vector.broadcast %c1_i32_175 : i32 to vector<64x256xi32>
    %377 = arith.subi %375, %376 : vector<64x256xi32>
    %c2_i32_176 = arith.constant 2 : i32
    %378 = vector.broadcast %c2_i32_176 : i32 to vector<64x256xi32>
    %379 = arith.addi %377, %378 : vector<64x256xi32>
    %380 = arith.cmpi eq, %15, %379 : vector<64x256xi32>
    %381 = arith.andi %373, %380 : vector<64x256xi1>
    %cst_177 = arith.constant 1.000000e+00 : f32
    %cst_178 = arith.constant 0.000000e+00 : f32
    %382 = vector.broadcast %cst_177 : f32 to vector<64x256xf32>
    %383 = vector.broadcast %cst_178 : f32 to vector<64x256xf32>
    %384 = arith.select %381, %382, %383 : vector<64x256xi1>, vector<64x256xf32>
    %385 = arith.truncf %384 : vector<64x256xf32> to vector<64x256xbf16>
    %c14 = arith.constant 14 : index
    %c0_179 = arith.constant 0 : index
    %c0_180 = arith.constant 0 : index
    %386 = vector.load %arg3[%c14, %c0_179, %c0_180] : memref<16x4x8xbf16, #tpu.memory_space<vmem>>, vector<1x4x8xbf16>
    %387 = vector.shape_cast %386 : vector<1x4x8xbf16> to vector<4x8xbf16>
    %cst_181 = arith.constant dense<0.000000e+00> : vector<4x64xf32>
    %388 = tpu.matmul %387, %2, %cst_181 {dimension_numbers = #tpu.dot_dimension_numbers<[1], [0], [0], [1], [0, 0, 1, 1], [], []>} : vector<4x8xbf16>, vector<8x64xbf16>, vector<4x64xf32> -> vector<4x64xf32>
    %389 = arith.truncf %388 : vector<4x64xf32> to vector<4x64xbf16>
    %cst_182 = arith.constant dense<0.000000e+00> : vector<4x256xf32>
    %390 = tpu.matmul %389, %385, %cst_182 {dimension_numbers = #tpu.dot_dimension_numbers<[1], [0], [0], [1], [0, 0, 1, 1], [], []>} : vector<4x64xbf16>, vector<64x256xbf16>, vector<4x256xf32> -> vector<4x256xf32>
    %391 = arith.addf %366, %390 : vector<4x256xf32>
    %c2_i32_183 = arith.constant 2 : i32
    %392 = vector.broadcast %c2_i32_183 : i32 to vector<64x256xi32>
    %393 = arith.muli %392, %9 : vector<64x256xi32>
    %c1_i32_184 = arith.constant 1 : i32
    %394 = vector.broadcast %c1_i32_184 : i32 to vector<64x256xi32>
    %395 = arith.subi %393, %394 : vector<64x256xi32>
    %c3_i32_185 = arith.constant 3 : i32
    %396 = vector.broadcast %c3_i32_185 : i32 to vector<64x256xi32>
    %397 = arith.addi %395, %396 : vector<64x256xi32>
    %398 = arith.cmpi eq, %13, %397 : vector<64x256xi32>
    %c2_i32_186 = arith.constant 2 : i32
    %399 = vector.broadcast %c2_i32_186 : i32 to vector<64x256xi32>
    %400 = arith.muli %399, %11 : vector<64x256xi32>
    %c1_i32_187 = arith.constant 1 : i32
    %401 = vector.broadcast %c1_i32_187 : i32 to vector<64x256xi32>
    %402 = arith.subi %400, %401 : vector<64x256xi32>
    %c3_i32_188 = arith.constant 3 : i32
    %403 = vector.broadcast %c3_i32_188 : i32 to vector<64x256xi32>
    %404 = arith.addi %402, %403 : vector<64x256xi32>
    %405 = arith.cmpi eq, %15, %404 : vector<64x256xi32>
    %406 = arith.andi %398, %405 : vector<64x256xi1>
    %cst_189 = arith.constant 1.000000e+00 : f32
    %cst_190 = arith.constant 0.000000e+00 : f32
    %407 = vector.broadcast %cst_189 : f32 to vector<64x256xf32>
    %408 = vector.broadcast %cst_190 : f32 to vector<64x256xf32>
    %409 = arith.select %406, %407, %408 : vector<64x256xi1>, vector<64x256xf32>
    %410 = arith.truncf %409 : vector<64x256xf32> to vector<64x256xbf16>
    %c15 = arith.constant 15 : index
    %c0_191 = arith.constant 0 : index
    %c0_192 = arith.constant 0 : index
    %411 = vector.load %arg3[%c15, %c0_191, %c0_192] : memref<16x4x8xbf16, #tpu.memory_space<vmem>>, vector<1x4x8xbf16>
    %412 = vector.shape_cast %411 : vector<1x4x8xbf16> to vector<4x8xbf16>
    %cst_193 = arith.constant dense<0.000000e+00> : vector<4x64xf32>
    %413 = tpu.matmul %412, %2, %cst_193 {dimension_numbers = #tpu.dot_dimension_numbers<[1], [0], [0], [1], [0, 0, 1, 1], [], []>} : vector<4x8xbf16>, vector<8x64xbf16>, vector<4x64xf32> -> vector<4x64xf32>
    %414 = arith.truncf %413 : vector<4x64xf32> to vector<4x64xbf16>
    %cst_194 = arith.constant dense<0.000000e+00> : vector<4x256xf32>
    %415 = tpu.matmul %414, %410, %cst_194 {dimension_numbers = #tpu.dot_dimension_numbers<[1], [0], [0], [1], [0, 0, 1, 1], [], []>} : vector<4x64xbf16>, vector<64x256xbf16>, vector<4x256xf32> -> vector<4x256xf32>
    %416 = arith.addf %391, %415 : vector<4x256xf32>
    %c0_195 = arith.constant 0 : index
    %c0_196 = arith.constant 0 : index
    %417 = vector.load %arg4[%c0_195, %c0_196] : memref<4x1xf32, #tpu.memory_space<vmem>>, vector<4x1xf32>
    %418 = vector.broadcast %417 : vector<4x1xf32> to vector<4x256xf32>
    %419 = arith.addf %416, %418 : vector<4x256xf32>
    %c0_197 = arith.constant 0 : index
    %c0_198 = arith.constant 0 : index
    %420 = vector.load %arg5[%c0_197, %c0_198] : memref<8x4xbf16, #tpu.memory_space<vmem>>, vector<8x4xbf16>
    %cst_199 = arith.constant dense<0.000000e+00> : vector<8x256xf32>
    %421 = tpu.matmul %420, %5, %cst_199 {dimension_numbers = #tpu.dot_dimension_numbers<[1], [0], [0], [1], [0, 0, 1, 1], [], []>} : vector<8x4xbf16>, vector<4x256xbf16>, vector<8x256xf32> -> vector<8x256xf32>
    %c0_200 = arith.constant 0 : index
    %c0_201 = arith.constant 0 : index
    %422 = vector.load %arg6[%c0_200, %c0_201] : memref<8x4xbf16, #tpu.memory_space<vmem>>, vector<8x4xbf16>
    %423 = arith.truncf %419 : vector<4x256xf32> to vector<4x256xbf16>
    %cst_202 = arith.constant dense<0.000000e+00> : vector<8x256xf32>
    %424 = tpu.matmul %422, %423, %cst_202 {dimension_numbers = #tpu.dot_dimension_numbers<[1], [0], [0], [1], [0, 0, 1, 1], [], []>} : vector<8x4xbf16>, vector<4x256xbf16>, vector<8x256xf32> -> vector<8x256xf32>
    %425 = arith.addf %421, %424 : vector<8x256xf32>
    %c0_203 = arith.constant 0 : index
    %c0_204 = arith.constant 0 : index
    %426 = vector.load %arg7[%c0_203, %c0_204] : memref<8x1xf32, #tpu.memory_space<vmem>>, vector<8x1xf32>
    %427 = vector.broadcast %426 : vector<8x1xf32> to vector<8x256xf32>
    %428 = arith.addf %425, %427 : vector<8x256xf32>
    %429 = arith.truncf %428 : vector<8x256xf32> to vector<8x256xbf16>
    %c0_205 = arith.constant 0 : index
    %c0_206 = arith.constant 0 : index
    %430 = vector.load %arg8[%c0_205, %c0_206] : memref<4x8xbf16, #tpu.memory_space<vmem>>, vector<4x8xbf16>
    %cst_207 = arith.constant dense<0.000000e+00> : vector<4x256xf32>
    %431 = tpu.matmul %430, %429, %cst_207 {dimension_numbers = #tpu.dot_dimension_numbers<[1], [0], [0], [1], [0, 0, 1, 1], [], []>} : vector<4x8xbf16>, vector<8x256xbf16>, vector<4x256xf32> -> vector<4x256xf32>
    %c0_208 = arith.constant 0 : index
    %c0_209 = arith.constant 0 : index
    %432 = vector.load %arg9[%c0_208, %c0_209] : memref<4x1xf32, #tpu.memory_space<vmem>>, vector<4x1xf32>
    %433 = vector.broadcast %432 : vector<4x1xf32> to vector<4x256xf32>
    %434 = arith.addf %431, %433 : vector<4x256xf32>
    %c0_210 = arith.constant 0 : index
    %c0_211 = arith.constant 0 : index
    %435 = vector.load %arg10[%c0_210, %c0_211] : memref<4x8xbf16, #tpu.memory_space<vmem>>, vector<4x8xbf16>
    %cst_212 = arith.constant dense<0.000000e+00> : vector<4x256xf32>
    %436 = tpu.matmul %435, %429, %cst_212 {dimension_numbers = #tpu.dot_dimension_numbers<[1], [0], [0], [1], [0, 0, 1, 1], [], []>} : vector<4x8xbf16>, vector<8x256xbf16>, vector<4x256xf32> -> vector<4x256xf32>
    %c0_213 = arith.constant 0 : index
    %c0_214 = arith.constant 0 : index
    %437 = vector.load %arg11[%c0_213, %c0_214] : memref<4x1xf32, #tpu.memory_space<vmem>>, vector<4x1xf32>
    %438 = vector.broadcast %437 : vector<4x1xf32> to vector<4x256xf32>
    %439 = arith.addf %436, %438 : vector<4x256xf32>
    %c0_215 = arith.constant 0 : index
    %c0_216 = arith.constant 0 : index
    %440 = vector.load %arg12[%c0_215, %c0_216] : memref<4x8xbf16, #tpu.memory_space<vmem>>, vector<4x8xbf16>
    %cst_217 = arith.constant dense<0.000000e+00> : vector<4x256xf32>
    %441 = tpu.matmul %440, %429, %cst_217 {dimension_numbers = #tpu.dot_dimension_numbers<[1], [0], [0], [1], [0, 0, 1, 1], [], []>} : vector<4x8xbf16>, vector<8x256xbf16>, vector<4x256xf32> -> vector<4x256xf32>
    %c0_218 = arith.constant 0 : index
    %c0_219 = arith.constant 0 : index
    %442 = vector.load %arg13[%c0_218, %c0_219] : memref<4x1xf32, #tpu.memory_space<vmem>>, vector<4x1xf32>
    %443 = vector.broadcast %442 : vector<4x1xf32> to vector<4x256xf32>
    %444 = arith.addf %441, %443 : vector<4x256xf32>
    %445 = tpu.iota {dimensions = array<i32: 0>} : vector<64x256xi32>
    %446 = tpu.iota {dimensions = array<i32: 1>} : vector<64x256xi32>
    %c3_i32_220 = arith.constant 3 : i32
    %447 = vector.broadcast %c3_i32_220 : i32 to vector<64x256xi32>
    %448 = arith.shrsi %445, %447 : vector<64x256xi32>
    %c7_i32_221 = arith.constant 7 : i32
    %449 = vector.broadcast %c7_i32_221 : i32 to vector<64x256xi32>
    %450 = arith.andi %445, %449 : vector<64x256xi32>
    %c4_i32_222 = arith.constant 4 : i32
    %451 = vector.broadcast %c4_i32_222 : i32 to vector<64x256xi32>
    %452 = arith.shrsi %446, %451 : vector<64x256xi32>
    %c15_i32_223 = arith.constant 15 : i32
    %453 = vector.broadcast %c15_i32_223 : i32 to vector<64x256xi32>
    %454 = arith.andi %446, %453 : vector<64x256xi32>
    %cst_224 = arith.constant 0.000000e+00 : f32
    %455 = vector.broadcast %cst_224 : f32 to vector<4x256xf32>
    %c0_i32_225 = arith.constant 0 : i32
    %456 = vector.broadcast %c0_i32_225 : i32 to vector<64x256xi32>
    %457 = arith.addi %448, %456 : vector<64x256xi32>
    %458 = arith.cmpi eq, %452, %457 : vector<64x256xi32>
    %c0_i32_226 = arith.constant 0 : i32
    %459 = vector.broadcast %c0_i32_226 : i32 to vector<64x256xi32>
    %460 = arith.addi %450, %459 : vector<64x256xi32>
    %461 = arith.cmpi eq, %454, %460 : vector<64x256xi32>
    %462 = arith.andi %458, %461 : vector<64x256xi1>
    %cst_227 = arith.constant 1.000000e+00 : f32
    %cst_228 = arith.constant 0.000000e+00 : f32
    %463 = vector.broadcast %cst_227 : f32 to vector<64x256xf32>
    %464 = vector.broadcast %cst_228 : f32 to vector<64x256xf32>
    %465 = arith.select %462, %463, %464 : vector<64x256xi1>, vector<64x256xf32>
    %466 = arith.truncf %465 : vector<64x256xf32> to vector<64x256xbf16>
    %467 = arith.truncf %434 : vector<4x256xf32> to vector<4x256xbf16>
    %cst_229 = arith.constant dense<0.000000e+00> : vector<64x4xf32>
    %468 = tpu.matmul %466, %467, %cst_229 {dimension_numbers = #tpu.dot_dimension_numbers<[1], [1], [0], [0], [0, 0, 1, 0], [], []>} : vector<64x256xbf16>, vector<4x256xbf16>, vector<64x4xf32> -> vector<64x4xf32>
    %469 = arith.truncf %439 : vector<4x256xf32> to vector<4x256xbf16>
    %cst_230 = arith.constant dense<0.000000e+00> : vector<4x64xf32>
    %470 = tpu.matmul %469, %466, %cst_230 {dimension_numbers = #tpu.dot_dimension_numbers<[1], [1], [0], [0], [0, 0, 1, 0], [], []>} : vector<4x256xbf16>, vector<64x256xbf16>, vector<4x64xf32> -> vector<4x64xf32>
    %471 = arith.truncf %444 : vector<4x256xf32> to vector<4x256xbf16>
    %cst_231 = arith.constant dense<0.000000e+00> : vector<4x64xf32>
    %472 = tpu.matmul %471, %466, %cst_231 {dimension_numbers = #tpu.dot_dimension_numbers<[1], [1], [0], [0], [0, 0, 1, 0], [], []>} : vector<4x256xbf16>, vector<64x256xbf16>, vector<4x64xf32> -> vector<4x64xf32>
    %473 = arith.truncf %468 : vector<64x4xf32> to vector<64x4xbf16>
    %474 = arith.truncf %470 : vector<4x64xf32> to vector<4x64xbf16>
    %cst_232 = arith.constant dense<0.000000e+00> : vector<64x64xf32>
    %475 = tpu.matmul %473, %474, %cst_232 {dimension_numbers = #tpu.dot_dimension_numbers<[1], [0], [0], [1], [0, 0, 1, 1], [], []>} : vector<64x4xbf16>, vector<4x64xbf16>, vector<64x64xf32> -> vector<64x64xf32>
    %cst_233 = arith.constant dense<0xFF800000> : vector<64xf32>
    %476 = vector.multi_reduction <maximumf>, %475, %cst_233 [1] : vector<64x64xf32> to vector<64xf32>
    %477 = vector.shape_cast %476 : vector<64xf32> to vector<64x1xf32>
    %478 = vector.broadcast %477 : vector<64x1xf32> to vector<64x64xf32>
    %479 = arith.subf %475, %478 : vector<64x64xf32>
    %480 = math.exp %479 : vector<64x64xf32>
    %cst_234 = arith.constant dense<0.000000e+00> : vector<64xf32>
    %481 = vector.multi_reduction <add>, %480, %cst_234 [1] : vector<64x64xf32> to vector<64xf32>
    %482 = vector.shape_cast %481 : vector<64xf32> to vector<64x1xf32>
    %483 = tpu.reciprocal %482 {approx = true} : vector<64x1xf32> -> vector<64x1xf32>
    %484 = vector.broadcast %483 : vector<64x1xf32> to vector<64x64xf32>
    %485 = arith.mulf %480, %484 : vector<64x64xf32>
    %486 = arith.truncf %472 : vector<4x64xf32> to vector<4x64xbf16>
    %487 = arith.truncf %485 : vector<64x64xf32> to vector<64x64xbf16>
    %cst_235 = arith.constant dense<0.000000e+00> : vector<4x64xf32>
    %488 = tpu.matmul %486, %487, %cst_235 {dimension_numbers = #tpu.dot_dimension_numbers<[1], [1], [0], [0], [0, 0, 1, 0], [], []>} : vector<4x64xbf16>, vector<64x64xbf16>, vector<4x64xf32> -> vector<4x64xf32>
    %489 = arith.truncf %488 : vector<4x64xf32> to vector<4x64xbf16>
    %cst_236 = arith.constant dense<0.000000e+00> : vector<4x256xf32>
    %490 = tpu.matmul %489, %466, %cst_236 {dimension_numbers = #tpu.dot_dimension_numbers<[1], [0], [0], [1], [0, 0, 1, 1], [], []>} : vector<4x64xbf16>, vector<64x256xbf16>, vector<4x256xf32> -> vector<4x256xf32>
    %491 = arith.addf %455, %490 : vector<4x256xf32>
    %c0_i32_237 = arith.constant 0 : i32
    %492 = vector.broadcast %c0_i32_237 : i32 to vector<64x256xi32>
    %493 = arith.addi %448, %492 : vector<64x256xi32>
    %494 = arith.cmpi eq, %452, %493 : vector<64x256xi32>
    %c8_i32 = arith.constant 8 : i32
    %495 = vector.broadcast %c8_i32 : i32 to vector<64x256xi32>
    %496 = arith.addi %450, %495 : vector<64x256xi32>
    %497 = arith.cmpi eq, %454, %496 : vector<64x256xi32>
    %498 = arith.andi %494, %497 : vector<64x256xi1>
    %cst_238 = arith.constant 1.000000e+00 : f32
    %cst_239 = arith.constant 0.000000e+00 : f32
    %499 = vector.broadcast %cst_238 : f32 to vector<64x256xf32>
    %500 = vector.broadcast %cst_239 : f32 to vector<64x256xf32>
    %501 = arith.select %498, %499, %500 : vector<64x256xi1>, vector<64x256xf32>
    %502 = arith.truncf %501 : vector<64x256xf32> to vector<64x256xbf16>
    %503 = arith.truncf %434 : vector<4x256xf32> to vector<4x256xbf16>
    %cst_240 = arith.constant dense<0.000000e+00> : vector<64x4xf32>
    %504 = tpu.matmul %502, %503, %cst_240 {dimension_numbers = #tpu.dot_dimension_numbers<[1], [1], [0], [0], [0, 0, 1, 0], [], []>} : vector<64x256xbf16>, vector<4x256xbf16>, vector<64x4xf32> -> vector<64x4xf32>
    %505 = arith.truncf %439 : vector<4x256xf32> to vector<4x256xbf16>
    %cst_241 = arith.constant dense<0.000000e+00> : vector<4x64xf32>
    %506 = tpu.matmul %505, %502, %cst_241 {dimension_numbers = #tpu.dot_dimension_numbers<[1], [1], [0], [0], [0, 0, 1, 0], [], []>} : vector<4x256xbf16>, vector<64x256xbf16>, vector<4x64xf32> -> vector<4x64xf32>
    %507 = arith.truncf %444 : vector<4x256xf32> to vector<4x256xbf16>
    %cst_242 = arith.constant dense<0.000000e+00> : vector<4x64xf32>
    %508 = tpu.matmul %507, %502, %cst_242 {dimension_numbers = #tpu.dot_dimension_numbers<[1], [1], [0], [0], [0, 0, 1, 0], [], []>} : vector<4x256xbf16>, vector<64x256xbf16>, vector<4x64xf32> -> vector<4x64xf32>
    %509 = arith.truncf %504 : vector<64x4xf32> to vector<64x4xbf16>
    %510 = arith.truncf %506 : vector<4x64xf32> to vector<4x64xbf16>
    %cst_243 = arith.constant dense<0.000000e+00> : vector<64x64xf32>
    %511 = tpu.matmul %509, %510, %cst_243 {dimension_numbers = #tpu.dot_dimension_numbers<[1], [0], [0], [1], [0, 0, 1, 1], [], []>} : vector<64x4xbf16>, vector<4x64xbf16>, vector<64x64xf32> -> vector<64x64xf32>
    %cst_244 = arith.constant dense<0xFF800000> : vector<64xf32>
    %512 = vector.multi_reduction <maximumf>, %511, %cst_244 [1] : vector<64x64xf32> to vector<64xf32>
    %513 = vector.shape_cast %512 : vector<64xf32> to vector<64x1xf32>
    %514 = vector.broadcast %513 : vector<64x1xf32> to vector<64x64xf32>
    %515 = arith.subf %511, %514 : vector<64x64xf32>
    %516 = math.exp %515 : vector<64x64xf32>
    %cst_245 = arith.constant dense<0.000000e+00> : vector<64xf32>
    %517 = vector.multi_reduction <add>, %516, %cst_245 [1] : vector<64x64xf32> to vector<64xf32>
    %518 = vector.shape_cast %517 : vector<64xf32> to vector<64x1xf32>
    %519 = tpu.reciprocal %518 {approx = true} : vector<64x1xf32> -> vector<64x1xf32>
    %520 = vector.broadcast %519 : vector<64x1xf32> to vector<64x64xf32>
    %521 = arith.mulf %516, %520 : vector<64x64xf32>
    %522 = arith.truncf %508 : vector<4x64xf32> to vector<4x64xbf16>
    %523 = arith.truncf %521 : vector<64x64xf32> to vector<64x64xbf16>
    %cst_246 = arith.constant dense<0.000000e+00> : vector<4x64xf32>
    %524 = tpu.matmul %522, %523, %cst_246 {dimension_numbers = #tpu.dot_dimension_numbers<[1], [1], [0], [0], [0, 0, 1, 0], [], []>} : vector<4x64xbf16>, vector<64x64xbf16>, vector<4x64xf32> -> vector<4x64xf32>
    %525 = arith.truncf %524 : vector<4x64xf32> to vector<4x64xbf16>
    %cst_247 = arith.constant dense<0.000000e+00> : vector<4x256xf32>
    %526 = tpu.matmul %525, %502, %cst_247 {dimension_numbers = #tpu.dot_dimension_numbers<[1], [0], [0], [1], [0, 0, 1, 1], [], []>} : vector<4x64xbf16>, vector<64x256xbf16>, vector<4x256xf32> -> vector<4x256xf32>
    %527 = arith.addf %491, %526 : vector<4x256xf32>
    %c8_i32_248 = arith.constant 8 : i32
    %528 = vector.broadcast %c8_i32_248 : i32 to vector<64x256xi32>
    %529 = arith.addi %448, %528 : vector<64x256xi32>
    %530 = arith.cmpi eq, %452, %529 : vector<64x256xi32>
    %c0_i32_249 = arith.constant 0 : i32
    %531 = vector.broadcast %c0_i32_249 : i32 to vector<64x256xi32>
    %532 = arith.addi %450, %531 : vector<64x256xi32>
    %533 = arith.cmpi eq, %454, %532 : vector<64x256xi32>
    %534 = arith.andi %530, %533 : vector<64x256xi1>
    %cst_250 = arith.constant 1.000000e+00 : f32
    %cst_251 = arith.constant 0.000000e+00 : f32
    %535 = vector.broadcast %cst_250 : f32 to vector<64x256xf32>
    %536 = vector.broadcast %cst_251 : f32 to vector<64x256xf32>
    %537 = arith.select %534, %535, %536 : vector<64x256xi1>, vector<64x256xf32>
    %538 = arith.truncf %537 : vector<64x256xf32> to vector<64x256xbf16>
    %539 = arith.truncf %434 : vector<4x256xf32> to vector<4x256xbf16>
    %cst_252 = arith.constant dense<0.000000e+00> : vector<64x4xf32>
    %540 = tpu.matmul %538, %539, %cst_252 {dimension_numbers = #tpu.dot_dimension_numbers<[1], [1], [0], [0], [0, 0, 1, 0], [], []>} : vector<64x256xbf16>, vector<4x256xbf16>, vector<64x4xf32> -> vector<64x4xf32>
    %541 = arith.truncf %439 : vector<4x256xf32> to vector<4x256xbf16>
    %cst_253 = arith.constant dense<0.000000e+00> : vector<4x64xf32>
    %542 = tpu.matmul %541, %538, %cst_253 {dimension_numbers = #tpu.dot_dimension_numbers<[1], [1], [0], [0], [0, 0, 1, 0], [], []>} : vector<4x256xbf16>, vector<64x256xbf16>, vector<4x64xf32> -> vector<4x64xf32>
    %543 = arith.truncf %444 : vector<4x256xf32> to vector<4x256xbf16>
    %cst_254 = arith.constant dense<0.000000e+00> : vector<4x64xf32>
    %544 = tpu.matmul %543, %538, %cst_254 {dimension_numbers = #tpu.dot_dimension_numbers<[1], [1], [0], [0], [0, 0, 1, 0], [], []>} : vector<4x256xbf16>, vector<64x256xbf16>, vector<4x64xf32> -> vector<4x64xf32>
    %545 = arith.truncf %540 : vector<64x4xf32> to vector<64x4xbf16>
    %546 = arith.truncf %542 : vector<4x64xf32> to vector<4x64xbf16>
    %cst_255 = arith.constant dense<0.000000e+00> : vector<64x64xf32>
    %547 = tpu.matmul %545, %546, %cst_255 {dimension_numbers = #tpu.dot_dimension_numbers<[1], [0], [0], [1], [0, 0, 1, 1], [], []>} : vector<64x4xbf16>, vector<4x64xbf16>, vector<64x64xf32> -> vector<64x64xf32>
    %cst_256 = arith.constant dense<0xFF800000> : vector<64xf32>
    %548 = vector.multi_reduction <maximumf>, %547, %cst_256 [1] : vector<64x64xf32> to vector<64xf32>
    %549 = vector.shape_cast %548 : vector<64xf32> to vector<64x1xf32>
    %550 = vector.broadcast %549 : vector<64x1xf32> to vector<64x64xf32>
    %551 = arith.subf %547, %550 : vector<64x64xf32>
    %552 = math.exp %551 : vector<64x64xf32>
    %cst_257 = arith.constant dense<0.000000e+00> : vector<64xf32>
    %553 = vector.multi_reduction <add>, %552, %cst_257 [1] : vector<64x64xf32> to vector<64xf32>
    %554 = vector.shape_cast %553 : vector<64xf32> to vector<64x1xf32>
    %555 = tpu.reciprocal %554 {approx = true} : vector<64x1xf32> -> vector<64x1xf32>
    %556 = vector.broadcast %555 : vector<64x1xf32> to vector<64x64xf32>
    %557 = arith.mulf %552, %556 : vector<64x64xf32>
    %558 = arith.truncf %544 : vector<4x64xf32> to vector<4x64xbf16>
    %559 = arith.truncf %557 : vector<64x64xf32> to vector<64x64xbf16>
    %cst_258 = arith.constant dense<0.000000e+00> : vector<4x64xf32>
    %560 = tpu.matmul %558, %559, %cst_258 {dimension_numbers = #tpu.dot_dimension_numbers<[1], [1], [0], [0], [0, 0, 1, 0], [], []>} : vector<4x64xbf16>, vector<64x64xbf16>, vector<4x64xf32> -> vector<4x64xf32>
    %561 = arith.truncf %560 : vector<4x64xf32> to vector<4x64xbf16>
    %cst_259 = arith.constant dense<0.000000e+00> : vector<4x256xf32>
    %562 = tpu.matmul %561, %538, %cst_259 {dimension_numbers = #tpu.dot_dimension_numbers<[1], [0], [0], [1], [0, 0, 1, 1], [], []>} : vector<4x64xbf16>, vector<64x256xbf16>, vector<4x256xf32> -> vector<4x256xf32>
    %563 = arith.addf %527, %562 : vector<4x256xf32>
    %c8_i32_260 = arith.constant 8 : i32
    %564 = vector.broadcast %c8_i32_260 : i32 to vector<64x256xi32>
    %565 = arith.addi %448, %564 : vector<64x256xi32>
    %566 = arith.cmpi eq, %452, %565 : vector<64x256xi32>
    %c8_i32_261 = arith.constant 8 : i32
    %567 = vector.broadcast %c8_i32_261 : i32 to vector<64x256xi32>
    %568 = arith.addi %450, %567 : vector<64x256xi32>
    %569 = arith.cmpi eq, %454, %568 : vector<64x256xi32>
    %570 = arith.andi %566, %569 : vector<64x256xi1>
    %cst_262 = arith.constant 1.000000e+00 : f32
    %cst_263 = arith.constant 0.000000e+00 : f32
    %571 = vector.broadcast %cst_262 : f32 to vector<64x256xf32>
    %572 = vector.broadcast %cst_263 : f32 to vector<64x256xf32>
    %573 = arith.select %570, %571, %572 : vector<64x256xi1>, vector<64x256xf32>
    %574 = arith.truncf %573 : vector<64x256xf32> to vector<64x256xbf16>
    %575 = arith.truncf %434 : vector<4x256xf32> to vector<4x256xbf16>
    %cst_264 = arith.constant dense<0.000000e+00> : vector<64x4xf32>
    %576 = tpu.matmul %574, %575, %cst_264 {dimension_numbers = #tpu.dot_dimension_numbers<[1], [1], [0], [0], [0, 0, 1, 0], [], []>} : vector<64x256xbf16>, vector<4x256xbf16>, vector<64x4xf32> -> vector<64x4xf32>
    %577 = arith.truncf %439 : vector<4x256xf32> to vector<4x256xbf16>
    %cst_265 = arith.constant dense<0.000000e+00> : vector<4x64xf32>
    %578 = tpu.matmul %577, %574, %cst_265 {dimension_numbers = #tpu.dot_dimension_numbers<[1], [1], [0], [0], [0, 0, 1, 0], [], []>} : vector<4x256xbf16>, vector<64x256xbf16>, vector<4x64xf32> -> vector<4x64xf32>
    %579 = arith.truncf %444 : vector<4x256xf32> to vector<4x256xbf16>
    %cst_266 = arith.constant dense<0.000000e+00> : vector<4x64xf32>
    %580 = tpu.matmul %579, %574, %cst_266 {dimension_numbers = #tpu.dot_dimension_numbers<[1], [1], [0], [0], [0, 0, 1, 0], [], []>} : vector<4x256xbf16>, vector<64x256xbf16>, vector<4x64xf32> -> vector<4x64xf32>
    %581 = arith.truncf %576 : vector<64x4xf32> to vector<64x4xbf16>
    %582 = arith.truncf %578 : vector<4x64xf32> to vector<4x64xbf16>
    %cst_267 = arith.constant dense<0.000000e+00> : vector<64x64xf32>
    %583 = tpu.matmul %581, %582, %cst_267 {dimension_numbers = #tpu.dot_dimension_numbers<[1], [0], [0], [1], [0, 0, 1, 1], [], []>} : vector<64x4xbf16>, vector<4x64xbf16>, vector<64x64xf32> -> vector<64x64xf32>
    %cst_268 = arith.constant dense<0xFF800000> : vector<64xf32>
    %584 = vector.multi_reduction <maximumf>, %583, %cst_268 [1] : vector<64x64xf32> to vector<64xf32>
    %585 = vector.shape_cast %584 : vector<64xf32> to vector<64x1xf32>
    %586 = vector.broadcast %585 : vector<64x1xf32> to vector<64x64xf32>
    %587 = arith.subf %583, %586 : vector<64x64xf32>
    %588 = math.exp %587 : vector<64x64xf32>
    %cst_269 = arith.constant dense<0.000000e+00> : vector<64xf32>
    %589 = vector.multi_reduction <add>, %588, %cst_269 [1] : vector<64x64xf32> to vector<64xf32>
    %590 = vector.shape_cast %589 : vector<64xf32> to vector<64x1xf32>
    %591 = tpu.reciprocal %590 {approx = true} : vector<64x1xf32> -> vector<64x1xf32>
    %592 = vector.broadcast %591 : vector<64x1xf32> to vector<64x64xf32>
    %593 = arith.mulf %588, %592 : vector<64x64xf32>
    %594 = arith.truncf %580 : vector<4x64xf32> to vector<4x64xbf16>
    %595 = arith.truncf %593 : vector<64x64xf32> to vector<64x64xbf16>
    %cst_270 = arith.constant dense<0.000000e+00> : vector<4x64xf32>
    %596 = tpu.matmul %594, %595, %cst_270 {dimension_numbers = #tpu.dot_dimension_numbers<[1], [1], [0], [0], [0, 0, 1, 0], [], []>} : vector<4x64xbf16>, vector<64x64xbf16>, vector<4x64xf32> -> vector<4x64xf32>
    %597 = arith.truncf %596 : vector<4x64xf32> to vector<4x64xbf16>
    %cst_271 = arith.constant dense<0.000000e+00> : vector<4x256xf32>
    %598 = tpu.matmul %597, %574, %cst_271 {dimension_numbers = #tpu.dot_dimension_numbers<[1], [0], [0], [1], [0, 0, 1, 1], [], []>} : vector<4x64xbf16>, vector<64x256xbf16>, vector<4x256xf32> -> vector<4x256xf32>
    %599 = arith.addf %563, %598 : vector<4x256xf32>
    %c0_272 = arith.constant 0 : index
    %c0_273 = arith.constant 0 : index
    %600 = vector.load %arg14[%c0_272, %c0_273] : memref<8x4xbf16, #tpu.memory_space<vmem>>, vector<8x4xbf16>
    %601 = arith.truncf %599 : vector<4x256xf32> to vector<4x256xbf16>
    %cst_274 = arith.constant dense<0.000000e+00> : vector<8x256xf32>
    %602 = tpu.matmul %600, %601, %cst_274 {dimension_numbers = #tpu.dot_dimension_numbers<[1], [0], [0], [1], [0, 0, 1, 1], [], []>} : vector<8x4xbf16>, vector<4x256xbf16>, vector<8x256xf32> -> vector<8x256xf32>
    %c0_275 = arith.constant 0 : index
    %c0_276 = arith.constant 0 : index
    %603 = vector.load %arg15[%c0_275, %c0_276] : memref<8x1xf32, #tpu.memory_space<vmem>>, vector<8x1xf32>
    %604 = vector.broadcast %603 : vector<8x1xf32> to vector<8x256xf32>
    %605 = arith.addf %602, %604 : vector<8x256xf32>
    %606 = arith.addf %605, %428 : vector<8x256xf32>
    %c0_277 = arith.constant 0 : index
    %c0_278 = arith.constant 0 : index
    %607 = vector.load %arg16[%c0_277, %c0_278] : memref<8x8xbf16, #tpu.memory_space<vmem>>, vector<8x8xbf16>
    %608 = arith.truncf %606 : vector<8x256xf32> to vector<8x256xbf16>
    %cst_279 = arith.constant dense<0.000000e+00> : vector<8x256xf32>
    %609 = tpu.matmul %607, %608, %cst_279 {dimension_numbers = #tpu.dot_dimension_numbers<[1], [0], [0], [1], [0, 0, 1, 1], [], []>} : vector<8x8xbf16>, vector<8x256xbf16>, vector<8x256xf32> -> vector<8x256xf32>
    %c0_280 = arith.constant 0 : index
    %c0_281 = arith.constant 0 : index
    %610 = vector.load %arg17[%c0_280, %c0_281] : memref<8x1xf32, #tpu.memory_space<vmem>>, vector<8x1xf32>
    %611 = vector.broadcast %610 : vector<8x1xf32> to vector<8x256xf32>
    %612 = arith.addf %609, %611 : vector<8x256xf32>
    %cst_282 = arith.constant dense<0.000000e+00> : vector<8xf32>
    %613 = vector.multi_reduction <add>, %612, %cst_282 [1] : vector<8x256xf32> to vector<8xf32>
    %614 = vector.shape_cast %613 : vector<8xf32> to vector<8x1xf32>
    %cst_283 = arith.constant 2.560000e+02 : f32
    %615 = vector.broadcast %cst_283 : f32 to vector<8x1xf32>
    %616 = arith.divf %614, %615 : vector<8x1xf32>
    %617 = vector.broadcast %616 : vector<8x1xf32> to vector<8x256xf32>
    %618 = arith.subf %612, %617 : vector<8x256xf32>
    %619 = arith.mulf %618, %618 : vector<8x256xf32>
    %cst_284 = arith.constant dense<0.000000e+00> : vector<8xf32>
    %620 = vector.multi_reduction <add>, %619, %cst_284 [1] : vector<8x256xf32> to vector<8xf32>
    %621 = vector.shape_cast %620 : vector<8xf32> to vector<8x1xf32>
    %cst_285 = arith.constant 2.560000e+02 : f32
    %622 = vector.broadcast %cst_285 : f32 to vector<8x1xf32>
    %623 = arith.divf %621, %622 : vector<8x1xf32>
    %cst_286 = arith.constant 9.99999974E-6 : f32
    %624 = vector.broadcast %cst_286 : f32 to vector<8x1xf32>
    %625 = arith.addf %623, %624 : vector<8x1xf32>
    %626 = math.rsqrt %625 : vector<8x1xf32>
    %627 = vector.broadcast %626 : vector<8x1xf32> to vector<8x256xf32>
    %628 = arith.mulf %618, %627 : vector<8x256xf32>
    %cst_287 = arith.constant 0.000000e+00 : f32
    %629 = vector.broadcast %cst_287 : f32 to vector<8x256xf32>
    %630 = arith.maximumf %628, %629 : vector<8x256xf32>
    %631 = tpu.iota {dimensions = array<i32: 0>} : vector<256x256xi32>
    %632 = tpu.iota {dimensions = array<i32: 1>} : vector<256x256xi32>
    %c4_i32_288 = arith.constant 4 : i32
    %633 = vector.broadcast %c4_i32_288 : i32 to vector<256x256xi32>
    %634 = arith.shrsi %631, %633 : vector<256x256xi32>
    %c15_i32_289 = arith.constant 15 : i32
    %635 = vector.broadcast %c15_i32_289 : i32 to vector<256x256xi32>
    %636 = arith.andi %631, %635 : vector<256x256xi32>
    %c4_i32_290 = arith.constant 4 : i32
    %637 = vector.broadcast %c4_i32_290 : i32 to vector<256x256xi32>
    %638 = arith.shrsi %632, %637 : vector<256x256xi32>
    %c15_i32_291 = arith.constant 15 : i32
    %639 = vector.broadcast %c15_i32_291 : i32 to vector<256x256xi32>
    %640 = arith.andi %632, %639 : vector<256x256xi32>
    %641 = arith.cmpi eq, %634, %638 : vector<256x256xi32>
    %c-1_i32 = arith.constant -1 : i32
    %642 = vector.broadcast %c-1_i32 : i32 to vector<256x256xi32>
    %643 = arith.addi %640, %642 : vector<256x256xi32>
    %644 = arith.cmpi eq, %636, %643 : vector<256x256xi32>
    %645 = arith.andi %641, %644 : vector<256x256xi1>
    %cst_292 = arith.constant 1.000000e+00 : f32
    %cst_293 = arith.constant 0.000000e+00 : f32
    %646 = vector.broadcast %cst_292 : f32 to vector<256x256xf32>
    %647 = vector.broadcast %cst_293 : f32 to vector<256x256xf32>
    %648 = arith.select %645, %646, %647 : vector<256x256xi1>, vector<256x256xf32>
    %649 = arith.truncf %648 : vector<256x256xf32> to vector<256x256xbf16>
    %650 = arith.truncf %630 : vector<8x256xf32> to vector<8x256xbf16>
    %cst_294 = arith.constant dense<0.000000e+00> : vector<8x256xf32>
    %651 = tpu.matmul %650, %649, %cst_294 {dimension_numbers = #tpu.dot_dimension_numbers<[1], [0], [0], [1], [0, 0, 1, 1], [], []>} : vector<8x256xbf16>, vector<256x256xbf16>, vector<8x256xf32> -> vector<8x256xf32>
    %652 = arith.cmpi eq, %634, %638 : vector<256x256xi32>
    %c1_i32_295 = arith.constant 1 : i32
    %653 = vector.broadcast %c1_i32_295 : i32 to vector<256x256xi32>
    %654 = arith.addi %640, %653 : vector<256x256xi32>
    %655 = arith.cmpi eq, %636, %654 : vector<256x256xi32>
    %656 = arith.andi %652, %655 : vector<256x256xi1>
    %cst_296 = arith.constant 1.000000e+00 : f32
    %cst_297 = arith.constant 0.000000e+00 : f32
    %657 = vector.broadcast %cst_296 : f32 to vector<256x256xf32>
    %658 = vector.broadcast %cst_297 : f32 to vector<256x256xf32>
    %659 = arith.select %656, %657, %658 : vector<256x256xi1>, vector<256x256xf32>
    %660 = arith.truncf %659 : vector<256x256xf32> to vector<256x256xbf16>
    %661 = arith.truncf %630 : vector<8x256xf32> to vector<8x256xbf16>
    %cst_298 = arith.constant dense<0.000000e+00> : vector<8x256xf32>
    %662 = tpu.matmul %661, %660, %cst_298 {dimension_numbers = #tpu.dot_dimension_numbers<[1], [0], [0], [1], [0, 0, 1, 1], [], []>} : vector<8x256xbf16>, vector<256x256xbf16>, vector<8x256xf32> -> vector<8x256xf32>
    %cst_299 = arith.constant 0.000000e+00 : f32
    %663 = vector.broadcast %cst_299 : f32 to vector<8x256xf32>
    %cst_300 = arith.constant 0.000000e+00 : f32
    %664 = vector.broadcast %cst_300 : f32 to vector<8x256xf32>
    %c0_301 = arith.constant 0 : index
    %c0_302 = arith.constant 0 : index
    %c0_303 = arith.constant 0 : index
    %665 = vector.load %arg18[%c0_301, %c0_302, %c0_303] : memref<9x8x8xbf16, #tpu.memory_space<vmem>>, vector<1x8x8xbf16>
    %666 = vector.shape_cast %665 : vector<1x8x8xbf16> to vector<8x8xbf16>
    %667 = arith.truncf %651 : vector<8x256xf32> to vector<8x256xbf16>
    %cst_304 = arith.constant dense<0.000000e+00> : vector<8x256xf32>
    %668 = tpu.matmul %666, %667, %cst_304 {dimension_numbers = #tpu.dot_dimension_numbers<[1], [0], [0], [1], [0, 0, 1, 1], [], []>} : vector<8x8xbf16>, vector<8x256xbf16>, vector<8x256xf32> -> vector<8x256xf32>
    %669 = arith.addf %664, %668 : vector<8x256xf32>
    %c1_305 = arith.constant 1 : index
    %c0_306 = arith.constant 0 : index
    %c0_307 = arith.constant 0 : index
    %670 = vector.load %arg18[%c1_305, %c0_306, %c0_307] : memref<9x8x8xbf16, #tpu.memory_space<vmem>>, vector<1x8x8xbf16>
    %671 = vector.shape_cast %670 : vector<1x8x8xbf16> to vector<8x8xbf16>
    %672 = arith.truncf %630 : vector<8x256xf32> to vector<8x256xbf16>
    %cst_308 = arith.constant dense<0.000000e+00> : vector<8x256xf32>
    %673 = tpu.matmul %671, %672, %cst_308 {dimension_numbers = #tpu.dot_dimension_numbers<[1], [0], [0], [1], [0, 0, 1, 1], [], []>} : vector<8x8xbf16>, vector<8x256xbf16>, vector<8x256xf32> -> vector<8x256xf32>
    %674 = arith.addf %669, %673 : vector<8x256xf32>
    %c2_309 = arith.constant 2 : index
    %c0_310 = arith.constant 0 : index
    %c0_311 = arith.constant 0 : index
    %675 = vector.load %arg18[%c2_309, %c0_310, %c0_311] : memref<9x8x8xbf16, #tpu.memory_space<vmem>>, vector<1x8x8xbf16>
    %676 = vector.shape_cast %675 : vector<1x8x8xbf16> to vector<8x8xbf16>
    %677 = arith.truncf %662 : vector<8x256xf32> to vector<8x256xbf16>
    %cst_312 = arith.constant dense<0.000000e+00> : vector<8x256xf32>
    %678 = tpu.matmul %676, %677, %cst_312 {dimension_numbers = #tpu.dot_dimension_numbers<[1], [0], [0], [1], [0, 0, 1, 1], [], []>} : vector<8x8xbf16>, vector<8x256xbf16>, vector<8x256xf32> -> vector<8x256xf32>
    %679 = arith.addf %674, %678 : vector<8x256xf32>
    %680 = arith.cmpi eq, %636, %640 : vector<256x256xi32>
    %c-1_i32_313 = arith.constant -1 : i32
    %681 = vector.broadcast %c-1_i32_313 : i32 to vector<256x256xi32>
    %682 = arith.addi %638, %681 : vector<256x256xi32>
    %683 = arith.cmpi eq, %634, %682 : vector<256x256xi32>
    %684 = arith.andi %680, %683 : vector<256x256xi1>
    %cst_314 = arith.constant 1.000000e+00 : f32
    %cst_315 = arith.constant 0.000000e+00 : f32
    %685 = vector.broadcast %cst_314 : f32 to vector<256x256xf32>
    %686 = vector.broadcast %cst_315 : f32 to vector<256x256xf32>
    %687 = arith.select %684, %685, %686 : vector<256x256xi1>, vector<256x256xf32>
    %688 = arith.truncf %687 : vector<256x256xf32> to vector<256x256xbf16>
    %689 = arith.truncf %679 : vector<8x256xf32> to vector<8x256xbf16>
    %cst_316 = arith.constant dense<0.000000e+00> : vector<8x256xf32>
    %690 = tpu.matmul %689, %688, %cst_316 {dimension_numbers = #tpu.dot_dimension_numbers<[1], [0], [0], [1], [0, 0, 1, 1], [], []>} : vector<8x256xbf16>, vector<256x256xbf16>, vector<8x256xf32> -> vector<8x256xf32>
    %691 = arith.addf %663, %690 : vector<8x256xf32>
    %cst_317 = arith.constant 0.000000e+00 : f32
    %692 = vector.broadcast %cst_317 : f32 to vector<8x256xf32>
    %c3_318 = arith.constant 3 : index
    %c0_319 = arith.constant 0 : index
    %c0_320 = arith.constant 0 : index
    %693 = vector.load %arg18[%c3_318, %c0_319, %c0_320] : memref<9x8x8xbf16, #tpu.memory_space<vmem>>, vector<1x8x8xbf16>
    %694 = vector.shape_cast %693 : vector<1x8x8xbf16> to vector<8x8xbf16>
    %695 = arith.truncf %651 : vector<8x256xf32> to vector<8x256xbf16>
    %cst_321 = arith.constant dense<0.000000e+00> : vector<8x256xf32>
    %696 = tpu.matmul %694, %695, %cst_321 {dimension_numbers = #tpu.dot_dimension_numbers<[1], [0], [0], [1], [0, 0, 1, 1], [], []>} : vector<8x8xbf16>, vector<8x256xbf16>, vector<8x256xf32> -> vector<8x256xf32>
    %697 = arith.addf %692, %696 : vector<8x256xf32>
    %c4_322 = arith.constant 4 : index
    %c0_323 = arith.constant 0 : index
    %c0_324 = arith.constant 0 : index
    %698 = vector.load %arg18[%c4_322, %c0_323, %c0_324] : memref<9x8x8xbf16, #tpu.memory_space<vmem>>, vector<1x8x8xbf16>
    %699 = vector.shape_cast %698 : vector<1x8x8xbf16> to vector<8x8xbf16>
    %700 = arith.truncf %630 : vector<8x256xf32> to vector<8x256xbf16>
    %cst_325 = arith.constant dense<0.000000e+00> : vector<8x256xf32>
    %701 = tpu.matmul %699, %700, %cst_325 {dimension_numbers = #tpu.dot_dimension_numbers<[1], [0], [0], [1], [0, 0, 1, 1], [], []>} : vector<8x8xbf16>, vector<8x256xbf16>, vector<8x256xf32> -> vector<8x256xf32>
    %702 = arith.addf %697, %701 : vector<8x256xf32>
    %c5_326 = arith.constant 5 : index
    %c0_327 = arith.constant 0 : index
    %c0_328 = arith.constant 0 : index
    %703 = vector.load %arg18[%c5_326, %c0_327, %c0_328] : memref<9x8x8xbf16, #tpu.memory_space<vmem>>, vector<1x8x8xbf16>
    %704 = vector.shape_cast %703 : vector<1x8x8xbf16> to vector<8x8xbf16>
    %705 = arith.truncf %662 : vector<8x256xf32> to vector<8x256xbf16>
    %cst_329 = arith.constant dense<0.000000e+00> : vector<8x256xf32>
    %706 = tpu.matmul %704, %705, %cst_329 {dimension_numbers = #tpu.dot_dimension_numbers<[1], [0], [0], [1], [0, 0, 1, 1], [], []>} : vector<8x8xbf16>, vector<8x256xbf16>, vector<8x256xf32> -> vector<8x256xf32>
    %707 = arith.addf %702, %706 : vector<8x256xf32>
    %708 = arith.addf %691, %707 : vector<8x256xf32>
    %cst_330 = arith.constant 0.000000e+00 : f32
    %709 = vector.broadcast %cst_330 : f32 to vector<8x256xf32>
    %c6_331 = arith.constant 6 : index
    %c0_332 = arith.constant 0 : index
    %c0_333 = arith.constant 0 : index
    %710 = vector.load %arg18[%c6_331, %c0_332, %c0_333] : memref<9x8x8xbf16, #tpu.memory_space<vmem>>, vector<1x8x8xbf16>
    %711 = vector.shape_cast %710 : vector<1x8x8xbf16> to vector<8x8xbf16>
    %712 = arith.truncf %651 : vector<8x256xf32> to vector<8x256xbf16>
    %cst_334 = arith.constant dense<0.000000e+00> : vector<8x256xf32>
    %713 = tpu.matmul %711, %712, %cst_334 {dimension_numbers = #tpu.dot_dimension_numbers<[1], [0], [0], [1], [0, 0, 1, 1], [], []>} : vector<8x8xbf16>, vector<8x256xbf16>, vector<8x256xf32> -> vector<8x256xf32>
    %714 = arith.addf %709, %713 : vector<8x256xf32>
    %c7_335 = arith.constant 7 : index
    %c0_336 = arith.constant 0 : index
    %c0_337 = arith.constant 0 : index
    %715 = vector.load %arg18[%c7_335, %c0_336, %c0_337] : memref<9x8x8xbf16, #tpu.memory_space<vmem>>, vector<1x8x8xbf16>
    %716 = vector.shape_cast %715 : vector<1x8x8xbf16> to vector<8x8xbf16>
    %717 = arith.truncf %630 : vector<8x256xf32> to vector<8x256xbf16>
    %cst_338 = arith.constant dense<0.000000e+00> : vector<8x256xf32>
    %718 = tpu.matmul %716, %717, %cst_338 {dimension_numbers = #tpu.dot_dimension_numbers<[1], [0], [0], [1], [0, 0, 1, 1], [], []>} : vector<8x8xbf16>, vector<8x256xbf16>, vector<8x256xf32> -> vector<8x256xf32>
    %719 = arith.addf %714, %718 : vector<8x256xf32>
    %c8_339 = arith.constant 8 : index
    %c0_340 = arith.constant 0 : index
    %c0_341 = arith.constant 0 : index
    %720 = vector.load %arg18[%c8_339, %c0_340, %c0_341] : memref<9x8x8xbf16, #tpu.memory_space<vmem>>, vector<1x8x8xbf16>
    %721 = vector.shape_cast %720 : vector<1x8x8xbf16> to vector<8x8xbf16>
    %722 = arith.truncf %662 : vector<8x256xf32> to vector<8x256xbf16>
    %cst_342 = arith.constant dense<0.000000e+00> : vector<8x256xf32>
    %723 = tpu.matmul %721, %722, %cst_342 {dimension_numbers = #tpu.dot_dimension_numbers<[1], [0], [0], [1], [0, 0, 1, 1], [], []>} : vector<8x8xbf16>, vector<8x256xbf16>, vector<8x256xf32> -> vector<8x256xf32>
    %724 = arith.addf %719, %723 : vector<8x256xf32>
    %725 = arith.cmpi eq, %636, %640 : vector<256x256xi32>
    %c1_i32_343 = arith.constant 1 : i32
    %726 = vector.broadcast %c1_i32_343 : i32 to vector<256x256xi32>
    %727 = arith.addi %638, %726 : vector<256x256xi32>
    %728 = arith.cmpi eq, %634, %727 : vector<256x256xi32>
    %729 = arith.andi %725, %728 : vector<256x256xi1>
    %cst_344 = arith.constant 1.000000e+00 : f32
    %cst_345 = arith.constant 0.000000e+00 : f32
    %730 = vector.broadcast %cst_344 : f32 to vector<256x256xf32>
    %731 = vector.broadcast %cst_345 : f32 to vector<256x256xf32>
    %732 = arith.select %729, %730, %731 : vector<256x256xi1>, vector<256x256xf32>
    %733 = arith.truncf %732 : vector<256x256xf32> to vector<256x256xbf16>
    %734 = arith.truncf %724 : vector<8x256xf32> to vector<8x256xbf16>
    %cst_346 = arith.constant dense<0.000000e+00> : vector<8x256xf32>
    %735 = tpu.matmul %734, %733, %cst_346 {dimension_numbers = #tpu.dot_dimension_numbers<[1], [0], [0], [1], [0, 0, 1, 1], [], []>} : vector<8x256xbf16>, vector<256x256xbf16>, vector<8x256xf32> -> vector<8x256xf32>
    %736 = arith.addf %708, %735 : vector<8x256xf32>
    %c0_347 = arith.constant 0 : index
    %c0_348 = arith.constant 0 : index
    %737 = vector.load %arg19[%c0_347, %c0_348] : memref<8x1xf32, #tpu.memory_space<vmem>>, vector<8x1xf32>
    %738 = vector.broadcast %737 : vector<8x1xf32> to vector<8x256xf32>
    %739 = arith.addf %736, %738 : vector<8x256xf32>
    %cst_349 = arith.constant dense<0.000000e+00> : vector<8xf32>
    %740 = vector.multi_reduction <add>, %739, %cst_349 [1] : vector<8x256xf32> to vector<8xf32>
    %741 = vector.shape_cast %740 : vector<8xf32> to vector<8x1xf32>
    %cst_350 = arith.constant 2.560000e+02 : f32
    %742 = vector.broadcast %cst_350 : f32 to vector<8x1xf32>
    %743 = arith.divf %741, %742 : vector<8x1xf32>
    %744 = vector.broadcast %743 : vector<8x1xf32> to vector<8x256xf32>
    %745 = arith.subf %739, %744 : vector<8x256xf32>
    %746 = arith.mulf %745, %745 : vector<8x256xf32>
    %cst_351 = arith.constant dense<0.000000e+00> : vector<8xf32>
    %747 = vector.multi_reduction <add>, %746, %cst_351 [1] : vector<8x256xf32> to vector<8xf32>
    %748 = vector.shape_cast %747 : vector<8xf32> to vector<8x1xf32>
    %cst_352 = arith.constant 2.560000e+02 : f32
    %749 = vector.broadcast %cst_352 : f32 to vector<8x1xf32>
    %750 = arith.divf %748, %749 : vector<8x1xf32>
    %cst_353 = arith.constant 9.99999974E-6 : f32
    %751 = vector.broadcast %cst_353 : f32 to vector<8x1xf32>
    %752 = arith.addf %750, %751 : vector<8x1xf32>
    %753 = math.rsqrt %752 : vector<8x1xf32>
    %754 = vector.broadcast %753 : vector<8x1xf32> to vector<8x256xf32>
    %755 = arith.mulf %745, %754 : vector<8x256xf32>
    %cst_354 = arith.constant 0.000000e+00 : f32
    %756 = vector.broadcast %cst_354 : f32 to vector<8x256xf32>
    %757 = arith.maximumf %755, %756 : vector<8x256xf32>
    %c0_355 = arith.constant 0 : index
    %c0_356 = arith.constant 0 : index
    %758 = vector.load %arg20[%c0_355, %c0_356] : memref<8x8xbf16, #tpu.memory_space<vmem>>, vector<8x8xbf16>
    %759 = arith.truncf %757 : vector<8x256xf32> to vector<8x256xbf16>
    %cst_357 = arith.constant dense<0.000000e+00> : vector<8x256xf32>
    %760 = tpu.matmul %758, %759, %cst_357 {dimension_numbers = #tpu.dot_dimension_numbers<[1], [0], [0], [1], [0, 0, 1, 1], [], []>} : vector<8x8xbf16>, vector<8x256xbf16>, vector<8x256xf32> -> vector<8x256xf32>
    %c0_358 = arith.constant 0 : index
    %c0_359 = arith.constant 0 : index
    %761 = vector.load %arg21[%c0_358, %c0_359] : memref<8x1xf32, #tpu.memory_space<vmem>>, vector<8x1xf32>
    %762 = vector.broadcast %761 : vector<8x1xf32> to vector<8x256xf32>
    %763 = arith.addf %760, %762 : vector<8x256xf32>
    %764 = arith.addf %606, %763 : vector<8x256xf32>
    %cst_360 = arith.constant dense<0.000000e+00> : vector<8xf32>
    %765 = vector.multi_reduction <add>, %764, %cst_360 [1] : vector<8x256xf32> to vector<8xf32>
    %766 = vector.shape_cast %765 : vector<8xf32> to vector<8x1xf32>
    %cst_361 = arith.constant 2.560000e+02 : f32
    %767 = vector.broadcast %cst_361 : f32 to vector<8x1xf32>
    %768 = arith.divf %766, %767 : vector<8x1xf32>
    %769 = vector.broadcast %768 : vector<8x1xf32> to vector<8x256xf32>
    %770 = arith.subf %764, %769 : vector<8x256xf32>
    %771 = arith.mulf %770, %770 : vector<8x256xf32>
    %cst_362 = arith.constant dense<0.000000e+00> : vector<8xf32>
    %772 = vector.multi_reduction <add>, %771, %cst_362 [1] : vector<8x256xf32> to vector<8xf32>
    %773 = vector.shape_cast %772 : vector<8xf32> to vector<8x1xf32>
    %cst_363 = arith.constant 2.560000e+02 : f32
    %774 = vector.broadcast %cst_363 : f32 to vector<8x1xf32>
    %775 = arith.divf %773, %774 : vector<8x1xf32>
    %cst_364 = arith.constant 9.99999974E-6 : f32
    %776 = vector.broadcast %cst_364 : f32 to vector<8x1xf32>
    %777 = arith.addf %775, %776 : vector<8x1xf32>
    %778 = math.rsqrt %777 : vector<8x1xf32>
    %779 = vector.broadcast %778 : vector<8x1xf32> to vector<8x256xf32>
    %780 = arith.mulf %770, %779 : vector<8x256xf32>
    %cst_365 = arith.constant 0.000000e+00 : f32
    %781 = vector.broadcast %cst_365 : f32 to vector<8x256xf32>
    %782 = arith.maximumf %780, %781 : vector<8x256xf32>
    %c0_366 = arith.constant 0 : index
    %c0_367 = arith.constant 0 : index
    %c0_368 = arith.constant 0 : index
    %783 = vector.load %arg22[%c0_366, %c0_367, %c0_368] : memref<1x8x256xf32, #tpu.memory_space<vmem>>, vector<1x8x256xf32>
    %784 = vector.shape_cast %783 : vector<1x8x256xf32> to vector<8x256xf32>
    %785 = vector.shape_cast %782 : vector<8x256xf32> to vector<1x8x256xf32>
    tpu.vector_store %arg22[%c0_366, %c0_367, %c0_368], %785 {strides = array<i32>} : memref<1x8x256xf32, #tpu.memory_space<vmem>>, vector<1x8x256xf32>,
    return
  }
  func.func @transform_0(%arg0: i32) -> (i32, i32, i32) {
    %c0_i32 = arith.constant 0 : i32
    %c0_i32_0 = arith.constant 0 : i32
    %c0_i32_1 = arith.constant 0 : i32
    return %arg0, %c0_i32, %c0_i32_0 : i32, i32, i32
  }
  func.func @transform_1(%arg0: i32) -> (i32, i32, i32) {
    %c0_i32 = arith.constant 0 : i32
    %c0_i32_0 = arith.constant 0 : i32
    %c0_i32_1 = arith.constant 0 : i32
    return %arg0, %c0_i32, %c0_i32_0 : i32, i32, i32
  }
  func.func @transform_2(%arg0: i32) -> (i32, i32, i32) {
    %c0_i32 = arith.constant 0 : i32
    %c0_i32_0 = arith.constant 0 : i32
    %c0_i32_1 = arith.constant 0 : i32
    %c0_i32_2 = arith.constant 0 : i32
    return %c0_i32, %c0_i32_0, %c0_i32_1 : i32, i32, i32
  }
  func.func @transform_3(%arg0: i32) -> (i32, i32) {
    %c0_i32 = arith.constant 0 : i32
    %c0_i32_0 = arith.constant 0 : i32
    %c0_i32_1 = arith.constant 0 : i32
    return %c0_i32, %c0_i32_0 : i32, i32
  }
  func.func @transform_4(%arg0: i32) -> (i32, i32) {
    %c0_i32 = arith.constant 0 : i32
    %c0_i32_0 = arith.constant 0 : i32
    %c0_i32_1 = arith.constant 0 : i32
    return %c0_i32, %c0_i32_0 : i32, i32
  }
  func.func @transform_5(%arg0: i32) -> (i32, i32) {
    %c0_i32 = arith.constant 0 : i32
    %c0_i32_0 = arith.constant 0 : i32
    %c0_i32_1 = arith.constant 0 : i32
    return %c0_i32, %c0_i32_0 : i32, i32
  }
  func.func @transform_6(%arg0: i32) -> (i32, i32) {
    %c0_i32 = arith.constant 0 : i32
    %c0_i32_0 = arith.constant 0 : i32
    %c0_i32_1 = arith.constant 0 : i32
    return %c0_i32, %c0_i32_0 : i32, i32
  }
  func.func @transform_7(%arg0: i32) -> (i32, i32) {
    %c0_i32 = arith.constant 0 : i32
    %c0_i32_0 = arith.constant 0 : i32
    %c0_i32_1 = arith.constant 0 : i32
    return %c0_i32, %c0_i32_0 : i32, i32
  }
  func.func @transform_8(%arg0: i32) -> (i32, i32) {
    %c0_i32 = arith.constant 0 : i32
    %c0_i32_0 = arith.constant 0 : i32
    %c0_i32_1 = arith.constant 0 : i32
    return %c0_i32, %c0_i32_0 : i32, i32
  }
  func.func @transform_9(%arg0: i32) -> (i32, i32) {
    %c0_i32 = arith.constant 0 : i32
    %c0_i32_0 = arith.constant 0 : i32
    %c0_i32_1 = arith.constant 0 : i32
    return %c0_i32, %c0_i32_0 : i32, i32
  }
  func.func @transform_10(%arg0: i32) -> (i32, i32) {
    %c0_i32 = arith.constant 0 : i32
    %c0_i32_0 = arith.constant 0 : i32
    %c0_i32_1 = arith.constant 0 : i32
    return %c0_i32, %c0_i32_0 : i32, i32
  }
  func.func @transform_11(%arg0: i32) -> (i32, i32) {
    %c0_i32 = arith.constant 0 : i32
    %c0_i32_0 = arith.constant 0 : i32
    %c0_i32_1 = arith.constant 0 : i32
    return %c0_i32, %c0_i32_0 : i32, i32
  }
  func.func @transform_12(%arg0: i32) -> (i32, i32) {
    %c0_i32 = arith.constant 0 : i32
    %c0_i32_0 = arith.constant 0 : i32
    %c0_i32_1 = arith.constant 0 : i32
    return %c0_i32, %c0_i32_0 : i32, i32
  }
  func.func @transform_13(%arg0: i32) -> (i32, i32) {
    %c0_i32 = arith.constant 0 : i32
    %c0_i32_0 = arith.constant 0 : i32
    %c0_i32_1 = arith.constant 0 : i32
    return %c0_i32, %c0_i32_0 : i32, i32
  }
  func.func @transform_14(%arg0: i32) -> (i32, i32) {
    %c0_i32 = arith.constant 0 : i32
    %c0_i32_0 = arith.constant 0 : i32
    %c0_i32_1 = arith.constant 0 : i32
    return %c0_i32, %c0_i32_0 : i32, i32
  }
  func.func @transform_15(%arg0: i32) -> (i32, i32) {
    %c0_i32 = arith.constant 0 : i32
    %c0_i32_0 = arith.constant 0 : i32
    %c0_i32_1 = arith.constant 0 : i32
    return %c0_i32, %c0_i32_0 : i32, i32
  }
  func.func @transform_16(%arg0: i32) -> (i32, i32) {
    %c0_i32 = arith.constant 0 : i32
    %c0_i32_0 = arith.constant 0 : i32
    %c0_i32_1 = arith.constant 0 : i32
    return %c0_i32, %c0_i32_0 : i32, i32
  }
  func.func @transform_17(%arg0: i32) -> (i32, i32, i32) {
    %c0_i32 = arith.constant 0 : i32
    %c0_i32_0 = arith.constant 0 : i32
    %c0_i32_1 = arith.constant 0 : i32
    %c0_i32_2 = arith.constant 0 : i32
    return %c0_i32, %c0_i32_0, %c0_i32_1 : i32, i32, i32
  }
  func.func @transform_18(%arg0: i32) -> (i32, i32) {
    %c0_i32 = arith.constant 0 : i32
    %c0_i32_0 = arith.constant 0 : i32
    %c0_i32_1 = arith.constant 0 : i32
    return %c0_i32, %c0_i32_0 : i32, i32
  }
  func.func @transform_19(%arg0: i32) -> (i32, i32) {
    %c0_i32 = arith.constant 0 : i32
    %c0_i32_0 = arith.constant 0 : i32
    %c0_i32_1 = arith.constant 0 : i32
    return %c0_i32, %c0_i32_0 : i32, i32
  }
  func.func @transform_20(%arg0: i32) -> (i32, i32) {
    %c0_i32 = arith.constant 0 : i32
    %c0_i32_0 = arith.constant 0 : i32
    %c0_i32_1 = arith.constant 0 : i32
    return %c0_i32, %c0_i32_0 : i32, i32
  }
  func.func @transform_21(%arg0: i32) -> (i32, i32, i32) {
    %c0_i32 = arith.constant 0 : i32
    %c0_i32_0 = arith.constant 0 : i32
    %c0_i32_1 = arith.constant 0 : i32
    return %arg0, %c0_i32, %c0_i32_0 : i32, i32, i32
  }
}

</mosaic_0001>

<bundles_post_ra>
// kernel: _forward.1
= control target key start
LH: loop header
LB: loop body
LE: loop exit
PB: predicated region body
PF: predicated region fallthrough
CT: control target
= control target key end

     0   :  { %s15301_s0 = inlined_call_operand.vmem [shape: f32[2,8,64], index: 0, kind: input, shape index: {}]   ;;  %s15302_s1 = inlined_call_operand.vmem [shape: f32[2,4,256], index: 1, kind: input, shape index: {}]   ;;  %s15303_s2 = inlined_call_operand.vmem [shape: bf16[16,4,8], index: 2, kind: input, shape index: {}]   ;;  %s15304_s3 = inlined_call_operand.vmem [shape: f32[4,1], index: 3, kind: input, shape index: {}]   ;;  %s15305_s4 = inlined_call_operand.vmem [shape: bf16[8,4], index: 4, kind: input, shape index: {}]   ;;  %s15306_s5 = inlined_call_operand.vmem [shape: bf16[8,4], index: 5, kind: input, shape index: {}]   ;;  %s15307_s6 = inlined_call_operand.vmem [shape: f32[8,1], index: 6, kind: input, shape index: {}]   ;;  %s15308_s7 = inlined_call_operand.vmem [shape: bf16[4,8], index: 7, kind: input, shape index: {}]   ;;  %s15309_s8 = inlined_call_operand.vmem [shape: f32[4,1], index: 8, kind: input, shape index: {}]   ;;  %s15310_s9 = inlined_call_operand.vmem [shape: bf16[4,8], index: 9, kind: input, shape index: {}]   ;;  %s15311_s10 = inlined_call_operand.vmem [shape: f32[4,1], index: 10, kind: input, shape index: {}]   ;;  %s15312_s11 = inlined_call_operand.vmem [shape: bf16[4,8], index: 11, kind: input, shape index: {}]   ;;  %s15313_s12 = inlined_call_operand.vmem [shape: f32[4,1], index: 12, kind: input, shape index: {}]   ;;  %s15314_s13 = inlined_call_operand.vmem [shape: bf16[8,4], index: 13, kind: input, shape index: {}]   ;;  %s15315_s14 = inlined_call_operand.vmem [shape: f32[8,1], index: 14, kind: input, shape index: {}]   ;;  %s15316_s15 = inlined_call_operand.vmem [shape: bf16[8,8], index: 15, kind: input, shape index: {}]   ;;  %s15317_s16 = inlined_call_operand.vmem [shape: f32[8,1], index: 16, kind: input, shape index: {}]   ;;  %s15318_s17 = inlined_call_operand.vmem [shape: bf16[9,8,8], index: 17, kind: input, shape index: {}]   ;;  %s15319_s18 = inlined_call_operand.vmem [shape: f32[8,1], index: 18, kind: input, shape index: {}]   ;;  %s15320_s19 = inlined_call_operand.vmem [shape: bf16[8,8], index: 19, kind: input, shape index: {}]   ;;  %s15321_s20 = inlined_call_operand.vmem [shape: f32[8,1], index: 20, kind: input, shape index: {}]   ;;  %s15322_s21 = inlined_call_operand.vmem [shape: f32[2,8,256], index: 21, kind: output, shape index: {}]  }
   0x1   :  { %15797 = sst [smem:[#allocation44_spill]] %s15301_s0 }
   0x2   :  { %15798 = sst [smem:[#allocation45_spill]] %s15302_s1 }
   0x3   :  { %15799 = sst [smem:[#allocation46_spill]] %s15303_s2  ;;  %s8761_s2 = smov 0  }
   0x4   :  { %15800 = sst [smem:[#allocation47_spill]] %s15304_s3 }
   0x5   :  { %15801 = sst [smem:[#allocation48_spill]] %s15305_s4 }
   0x6   :  { %15802 = sst [smem:[#allocation49_spill]] %s15306_s5 }
   0x7 LB: > { %s7291_s25 = sadd.s32 4294967295, %s8645_s2   ;;  %p7295_p0 = scmp.ge.s32.totalorder %s8645_s2, 1  ;;  %s8645_s2 = sphi %s8761_s2, %s31_s2  }
   0x8   : > { %p596_p1 = scmp.lt.s32.totalorder %s8645_s2, 3 }
   0xa   : > { %p597_p2 = pnand %p7295_p0, %p596_p1 }
   0xc   : > { %600 = sbr.rel (%p597_p2) target bundleno = 8395 (0x20cb), region = 104 }
  0x13   : > { %p660_p3 = scmp.lt.s32.totalorder %s7291_s25, 1  ;;  %v683_v0 = vlaneseq  ;;  %v15371_v1 = vmov 0.0   ;;  %vm15339_vm0 = vmmov 0   ;;  %s15807_s28 = sld [smem:[#allocation44_spill]]  ;;  %vm15324_vm1 = vcmask 1043456  }
  0x14   : > { %8274 = vmatprep.subr.bf16.mxu0 %v15371_v1  ;;  %8280 = vmatprep.subr.bf16.mxu1 %v15371_v1  ;;  %vm15338_vm2 = vcmask 64512   ;;  %s15813_s30 = sld [smem:[#allocation46_spill]]  ;;  %v15376_v35 = vmov 1.0|1.0   ;;  %s16230_s4 = sld [smem:[#allocation47_spill]] }
  0x15   : > { %s17043_s25 = smov (!%p660_p3, %s7291_s25), 1  ;;  %8276 = vmatprep.mubr.msk.bf16.mxu0 %vm15339_vm0, %v15371_v1  ;;  %8282 = vmatprep.mubr.msk.bf16.mxu1 %vm15339_vm0, %v15371_v1  ;;  %v8777_v2 = vshrl.u32 %v683_v0, 7  ;;  %v693_v3 = vand.u32 127, %v683_v0  ;;  %s16250_s3 = sld [smem:[#allocation45_spill]] }
  0x16   : > { %s7296_s26 = sshll.u32 %s17043_s25, 3  ;;  %s16251_s0 = sld [smem:[#allocation49_spill]] }
  0x17   : > { %15803 = vst [vmem:[#allocation2_spill] sm:$0xff] %v8777_v2  ;;  %v8781_v4 = vadd.s32 8, %v8777_v2  ;;  %v694_v5 = vadd.s32 128, %v693_v3  ;;  %v8784_v6 = vshra.s32 %v8777_v2, 3  ;;  %v8787_v7 = vand.u32 7, %v8777_v2  ;;  %s16252_s22 = sld [smem:[#allocation48_spill]] }
  0x18   : > { %v8795_v8 = vadd.s32 16, %v8777_v2  ;;  %v8806_v13 = vadd.s32 24, %v8777_v2  ;;  %v8855_v29 = vshra.s32 %v693_v3, 4  ;;  %v8857_v30 = vand.u32 15, %v693_v3 }
  0x19   : > { %15804 = vst [vmem:[#allocation3_spill] sm:$0xff] %v8781_v4  ;;  %15805 = vst [vmem:[#allocation4_spill] sm:$0xff] %v8784_v6  ;;  %s663_s29 = scalar_lea.vmem %s15807_s28, %s7296_s26  ;;  %v8798_v10 = vshra.s32 %v8781_v4, 3  ;;  %v8801_v11 = vand.u32 7, %v8781_v4  ;;  %v8803_v12 = vand.u32 15, %v694_v5  ;;  %v8808_v15 = vshra.s32 %v694_v5, 4 }
  0x1a   : > { %15806 = vst [vmem:[#allocation5_spill] sm:$0xff] %v8787_v7  ;;  %15808 = vst [vmem:[#allocation6_spill] sm:$0xff] %v8795_v8  ;;  %v675_v9 = vld [vmem:[%s663_s29] sm:$0xff]  ;;  %v8811_v16 = vmul.u32 2, %v8784_v6  ;;  %v8814_v17 = vmul.u32 2, %v8787_v7  ;;  %v8823_v20 = vshra.s32 %v8795_v8, 3 }
  0x1b   : > { %15809 = vst [vmem:[#allocation7_spill] sm:$0xff] %v8798_v10  ;;  %15810 = vst [vmem:[#allocation8_spill] sm:$0xff] %v8801_v11  ;;  %v676_v14 = vpack.c.bf16 %v675_v9, %v675_v9  ;;  %v8817_v18 = vmul.u32 2, %v8798_v10  ;;  %v8820_v19 = vmul.u32 2, %v8801_v11  ;;  %v819_v22 = vld [vmem:[%s15813_s30] sm:$0x3]  ;;  %s668_s28 = scalar_lea.vmem %s16250_s3, %s7296_s26 }
  0x1c   : > { %15811 = vst [vmem:[#allocation9_spill] sm:$0xff] %v8806_v13  ;;  %15812 = vst [vmem:[#allocation10_spill] sm:$0xff] %v8823_v20  ;;  %v8832_v23 = vadd.s32 4294967295, %v8811_v16  ;;  %vm15327_vm3 = vcmp.eq.s32.totalorder %v8803_v12, %v8814_v17  ;;  %v8837_v24 = vadd.s32 4294967295, %v8814_v17  ;;  %v7318_v25 = vld [vmem:[%s15813_s30 + $0x2] sm:$0x3]  ;;  %vm15325_vm14 = vcmp.eq.s32.totalorder %v8857_v30, %v8814_v17 }
  0x1d   : > { %v8826_v21 = vsel %vm15324_vm1, %v676_v14, 0  ;;  %v8845_v26 = vadd.s32 4294967295, %v8817_v18  ;;  %vm15326_vm4 = vcmp.eq.s32.totalorder %v8803_v12, %v8820_v19  ;;  %v8850_v27 = vadd.s32 4294967295, %v8820_v19  ;;  %v7373_v4 = vld [vmem:[%s15813_s30 + $0x6] sm:$0x3]  ;;  %s8201_s26 = sshll.u32 %s17043_s25, 4 }
  0x1e   : > { %15814 = vst [vmem:[#allocation11_spill] sm:$0xff] %v8832_v23  ;;  %8275 = vmatpush3.bf16.msra.mxu0 %v8826_v21  ;;  %8281 = vmatpush3.bf16.msra.mxu1 %v8826_v21  ;;  %v8853_v28 = vshra.s32 %v8806_v13, 3  ;;  %vm732_vm5 = vcmp.eq.s32.totalorder %v8808_v15, %v8832_v23  ;;  %vm15334_vm8 = vcmp.eq.s32.totalorder %v8803_v12, %v8837_v24  ;;  %v8872_v31 = vand.u32 7, %v8795_v8 }
  0x1f   : > { %15815 = vst [vmem:[#allocation12_spill] sm:$0xff] %v8845_v26  ;;  %vm734_vm6 = vcmp.eq.s32.totalorder %v8808_v15, %v8845_v26  ;;  %vm886_vm7 = vmand %vm732_vm5, %vm15327_vm3  ;;  %vm15330_vm10 = vcmp.eq.s32.totalorder %v8803_v12, %v8850_v27  ;;  %v8885_v32 = vand.u32 7, %v8806_v13  ;;  %v8888_v33 = vmul.u32 2, %v8823_v20 }
  0x20   : > { %15816 = vst [vmem:[#allocation13_spill] sm:$0xff] %v8853_v28  ;;  %15817 = vst [vmem:[#allocation14_spill] sm:$0xff] %v8872_v31  ;;  %v8891_v34 = vmul.u32 2, %v8853_v28  ;;  %vm731_vm13 = vcmp.eq.s32.totalorder %v8855_v29, %v8832_v23  ;;  %v8915_v36 = vmul.u32 2, %v8872_v31  ;;  %v8924_v39 = vadd.s32 32, %v8777_v2 }
  0x21   : > { %8277 = vmatmul.mubr.msk.bf16.vlgmr.msra.gmra.mrb[0].mxu0 %vm15338_vm2, %v819_v22  ;;  %8283 = vmatmul.mubr.msk.bf16.vlgmr.msra.gmra.mrb[0].mxu1 %vm15338_vm2, %v7318_v25  ;;  %vm888_vm9 = vmand %vm734_vm6, %vm15326_vm4  ;;  %15818 = vst [vmem:[#allocation15_spill] sm:$0xff] %v8885_v32  ;;  %v8918_v37 = vadd.s32 4294967295, %v8888_v33  ;;  %v8921_v38 = vmul.u32 2, %v8885_v32  ;;  %v8939_v41 = vadd.s32 40, %v8777_v2  ;;  %v9042_v53 = vadd.s32 48, %v8777_v2 }
  0x22   : > { %vm7320_vm11 = vmpackc.low %vm888_vm9, %vm886_vm7  ;;  %vm733_vm7 = vcmp.eq.s32.totalorder %v8855_v29, %v8845_v26  ;;  %vm15328_vm9 = vcmp.eq.s32.totalorder %v8857_v30, %v8820_v19  ;;  %15819 = vst [vmem:[#allocation16_spill] sm:$0xff] %v8915_v36  ;;  %v8936_v40 = vadd.s32 4294967295, %v8891_v34  ;;  %v8950_v42 = vadd.s32 4294967295, %v8915_v36 }
  0x23   : > { %7321 = vmatprep.subr.msk.bf16.mxu0 %vm7320_vm11, %v15376_v35  ;;  %vm780_vm12 = vmand %vm732_vm5, %vm15334_vm8  ;;  %15820 = vst [vmem:[#allocation17_spill] sm:$0xff] %v8918_v37  ;;  %vm15413_vm3 = vcmp.eq.s32.totalorder %v8808_v15, %v8918_v37  ;;  %v8964_v43 = vadd.s32 4294967295, %v8921_v38  ;;  %v8967_v44 = vshra.s32 %v8924_v39, 3  ;;  %v8980_v45 = vshra.s32 %v8939_v41, 3 }
  0x24   : > { %vm782_vm15 = vmand %vm734_vm6, %vm15330_vm10  ;;  %15821 = vst [vmem:[#allocation18_spill] sm:$0xff] %v8921_v38  ;;  %v8992_v46 = vand.u32 7, %v8924_v39  ;;  %v9003_v47 = vand.u32 7, %v8939_v41  ;;  %vm15337_vm8 = vcmp.eq.s32.totalorder %v8857_v30, %v8915_v36  ;;  %v9057_v55 = vadd.s32 56, %v8777_v2 }
  0x25   : > { %vm7337_vm11 = vmpackc.low %vm782_vm15, %vm780_vm12  ;;  %15822 = vst [vmem:[#allocation19_spill] sm:$0xff] %v8924_v39  ;;  %vm15329_vm12 = vcmp.eq.s32.totalorder %v8857_v30, %v8837_v24  ;;  %v9006_v48 = vmul.u32 2, %v8967_v44  ;;  %v9009_v49 = vmul.u32 2, %v8980_v45  ;;  %v9085_v58 = vshra.s32 %v9042_v53, 3 }
  0x26   : > { %7338 = vmatprep.subr.msk.bf16.mxu1 %vm7337_vm11, %v15376_v35  ;;  %vm885_vm1 = vmand %vm731_vm13, %vm15325_vm14  ;;  %15823 = vst [vmem:[#allocation20_spill] sm:$0xff] %v8936_v40  ;;  %vm15331_vm11 = vcmp.eq.s32.totalorder %v8857_v30, %v8850_v27  ;;  %v9033_v50 = vmul.u32 2, %v8992_v46  ;;  %v9039_v52 = vmul.u32 2, %v9003_v47  ;;  %v9098_v59 = vshra.s32 %v9057_v55, 3 }
  0x27   : > { %15824 = vst [vmem:[#allocation21_spill] sm:$0xff] %v8939_v41  ;;  %vm887_vm15 = vmand %vm733_vm7, %vm15328_vm9  ;;  %vm15333_vm9 = vcmp.eq.s32.totalorder %v8803_v12, %v8915_v36  ;;  %v9036_v51 = vadd.s32 4294967295, %v9006_v48  ;;  %v9054_v54 = vadd.s32 4294967295, %v9009_v49  ;;  %v9110_v60 = vand.u32 7, %v9042_v53 }
  0x28   : > { %vm7322_vm14 = vmpackc.low %vm887_vm15, %vm885_vm1  ;;  %15825 = vst [vmem:[#allocation22_spill] sm:$0xff] %v8967_v44  ;;  %vm15332_vm15 = vcmp.eq.s32.totalorder %v8803_v12, %v8921_v38  ;;  %v9068_v56 = vadd.s32 4294967295, %v9033_v50  ;;  %v9082_v57 = vadd.s32 4294967295, %v9039_v52  ;;  %v9121_v61 = vand.u32 7, %v9057_v55 }
  0x29   : > { %7323 = vmatpush1.bf16.msk.msra.mxu0 %vm7322_vm14, %v15376_v35  ;;  %vm779_vm4 = vmand %vm731_vm13, %vm15329_vm12  ;;  %vm15356_vm14 = vcmp.eq.s32.totalorder %v8808_v15, %v8936_v40  ;;  %15826 = vst [vmem:[#allocation23_spill] sm:$0xff] %v8980_v45  ;;  %vm15352_vm0 = vcmp.eq.s32.totalorder %v8808_v15, %v9036_v51  ;;  %v9124_v62 = vmul.u32 2, %v9085_v58  ;;  %v9127_v63 = vmul.u32 2, %v9098_v59 }
  0x2a   : > { %vm781_vm1 = vmand %vm733_vm7, %vm15331_vm11  ;;  %vm15335_vm11 = vcmp.eq.s32.totalorder %v8803_v12, %v8950_v42  ;;  %15827 = vst [vmem:[#allocation24_spill] sm:$0xff] %v8992_v46  ;;  %v9151_v0 = vmul.u32 2, %v9110_v60  ;;  %v9157_v5 = vmul.u32 2, %v9121_v61  ;;  %v15369_v25 = vmov 0  }
  0x2b   : > { %vm7339_vm12 = vmpackc.low %vm781_vm1, %vm779_vm4  ;;  %15828 = vst [vmem:[#allocation25_spill] sm:$0xff] %v9003_v47  ;;  %v9154_v3 = vadd.s32 4294967295, %v9124_v62  ;;  %v9169_v9 = vadd.s32 4294967295, %v9127_v63  ;;  %1007 = vmatprep.mubr.bf16.mxu0 %v15369_v25  ;;  %1051 = vmatprep.mubr.bf16.mxu1 %v15369_v25  ;;  %v9397_v39 = vadd.s32 2, %v9068_v56  ;;  %v9400_v41 = vadd.s32 2, %v9082_v57 }
  0x2c   : > { %7340 = vmatpush1.bf16.msk.msra.mxu1 %vm7339_vm12, %v15376_v35  ;;  %vm890_vm10 = vmand %vm15413_vm3, %vm15333_vm9  ;;  %vm15336_vm12 = vcmp.eq.s32.totalorder %v8803_v12, %v8964_v43  ;;  %vm15343_vm9 = vcmp.eq.s32.totalorder %v8855_v29, %v8918_v37  ;;  %15829 = vst [vmem:[#allocation26_spill] sm:$0xff] %v9033_v50  ;;  %v9180_v14 = vadd.s32 4294967295, %v9151_v0  ;;  %v9194_v22 = vadd.s32 4294967295, %v9157_v5  ;;  %8502 = vset.pattern.permute.xlu0 %v15369_v25 }
  0x2d   : > { %vm892_vm4 = vmand %vm15356_vm14, %vm15332_vm15  ;;  %15830 = vst [vmem:[#allocation27_spill] sm:$0xff] %v9036_v51  ;;  %8503 = vset.pattern.permute.xlu1 %v15369_v25  ;;  %v9304_v25 = vadd.s32 2, %v8950_v42 }
  0x2e   : > { %vm7324_vm1 = vmpackc.low %vm892_vm4, %vm890_vm10  ;;  %vm15347_vm4 = vcmp.eq.s32.totalorder %v8855_v29, %v8936_v40  ;;  %15831 = vst [vmem:[#allocation28_spill] sm:$0xff] %v9039_v52  ;;  %v9585_v44 = vadd.s32 3, %v9194_v22 }
  0x2f   : > { %7325 = vmatprep.subr.msk.bf16.mxu0 %vm7324_vm1, %v15376_v35  ;;  %vm784_vm15 = vmand %vm15413_vm3, %vm15335_vm11  ;;  %vm15341_vm1 = vcmp.eq.s32.totalorder %v8857_v30, %v8921_v38  ;;  %15832 = vst [vmem:[#allocation29_spill] sm:$0xff] %v9042_v53  ;;  %v9284_v53 = vadd.s32 2, %v8850_v27 }
  0x30   : > { %vm786_vm10 = vmand %vm15356_vm14, %vm15336_vm12  ;;  %15833 = vst [vmem:[#allocation30_spill] sm:$0xff] %v9054_v54  ;;  %vm15360_vm14 = vcmp.eq.s32.totalorder %v8803_v12, %v9180_v14 }
  0x31   : > { %vm7341_vm11 = vmpackc.low %vm786_vm10, %vm784_vm15  ;;  %vm15342_vm15 = vcmp.eq.s32.totalorder %v8857_v30, %v8950_v42  ;;  %15834 = vst [vmem:[#allocation31_spill] sm:$0xff] %v9057_v55  ;;  %vm15344_vm10 = vcmp.eq.s32.totalorder %v8857_v30, %v8964_v43  ;;  %v9281_v55 = vadd.s32 2, %v8837_v24 }
  0x32   : > { %7342 = vmatprep.subr.msk.bf16.mxu1 %vm7341_vm11, %v15376_v35  ;;  %vm889_vm12 = vmand %vm15343_vm9, %vm15337_vm8  ;;  %15835 = vst [vmem:[#allocation32_spill] sm:$0xff] %v9085_v58 }
  0x33   : > { %vm891_vm11 = vmand %vm15347_vm4, %vm15341_vm1  ;;  %vm15346_vm1 = vcmp.eq.s32.totalorder %v8803_v12, %v9033_v50  ;;  %15836 = vst [vmem:[#allocation33_spill] sm:$0xff] %v9098_v59 }
  0x34   : > { %vm7326_vm8 = vmpackc.low %vm891_vm11, %vm889_vm12  ;;  %vm15350_vm12 = vcmp.eq.s32.totalorder %v8808_v15, %v9054_v54  ;;  %vm15345_vm11 = vcmp.eq.s32.totalorder %v8803_v12, %v9039_v52  ;;  %15837 = vst [vmem:[#allocation34_spill] sm:$0xff] %v9110_v60 }
  0x35   : > { %7327 = vmatpush1.bf16.msk.msra.mxu0 %vm7326_vm8, %v15376_v35  ;;  %vm783_vm2 = vmand %vm15343_vm9, %vm15342_vm15  ;;  %15838 = vst [vmem:[#allocation35_spill] sm:$0xff] %v9121_v61 }
  0x36   : > { %vm785_vm8 = vmand %vm15347_vm4, %vm15344_vm10  ;;  %vm15348_vm10 = vcmp.eq.s32.totalorder %v8803_v12, %v9068_v56  ;;  %vm15351_vm4 = vcmp.eq.s32.totalorder %v8857_v30, %v9033_v50  ;;  %15839 = vst [vmem:[#allocation36_spill] sm:$0xff] %v9151_v0 }
  0x37   : > { %vm7343_vm15 = vmpackc.low %vm785_vm8, %vm783_vm2  ;;  %15840 = vst [vmem:[#allocation37_spill] sm:$0xff] %v9154_v3 }
  0x38   : > { %7344 = vmatpush1.bf16.msk.msra.mxu1 %vm7343_vm15, %v15376_v35  ;;  %vm894_vm9 = vmand %vm15352_vm0, %vm15346_vm1  ;;  %vm15349_vm15 = vcmp.eq.s32.totalorder %v8803_v12, %v9082_v57  ;;  %vm15355_vm1 = vcmp.eq.s32.totalorder %v8855_v29, %v9036_v51  ;;  %15841 = vst [vmem:[#allocation38_spill] sm:$0xff] %v9157_v5 }
  0x39   : > { %vm896_vm2 = vmand %vm15350_vm12, %vm15345_vm11  ;;  %15842 = vst [vmem:[#allocation39_spill] sm:$0xff] %v9169_v9 }
  0x3a   : > { %vm7328_vm8 = vmpackc.low %vm896_vm2, %vm894_vm9  ;;  %vm741_vm2 = vcmp.eq.s32.totalorder %v8855_v29, %v9054_v54  ;;  %15843 = vst [vmem:[#allocation40_spill] sm:$0xff] %v9194_v22 }
  0x3b   : > { %7329 = vmatprep.subr.msk.bf16.mxu0 %vm7328_vm8, %v15376_v35  ;;  %vm788_vm11 = vmand %vm15352_vm0, %vm15348_vm10  ;;  %vm15353_vm8 = vcmp.eq.s32.totalorder %v8857_v30, %v9039_v52  ;;  %vm15414_vm0 = vcmp.eq.s32.totalorder %v8808_v15, %v9154_v3  ;;  %15874 = vst [vmem:[#allocation42_spill] sm:$0xff] %v9585_v44 }
  0x3c   : > { %vm790_vm9 = vmand %vm15350_vm12, %vm15349_vm15  ;;  %vm15354_vm12 = vcmp.eq.s32.totalorder %v8857_v30, %v9068_v56 }
  0x3d   : > { %vm7345_vm10 = vmpackc.low %vm790_vm9, %vm788_vm11  ;;  %vm15357_vm11 = vcmp.eq.s32.totalorder %v8857_v30, %v9082_v57 }
  0x3e   : > { %7346 = vmatprep.subr.msk.bf16.mxu1 %vm7345_vm10, %v15376_v35  ;;  %vm893_vm15 = vmand %vm15355_vm1, %vm15351_vm4 }
  0x3f   : > { %vm895_vm10 = vmand %vm741_vm2, %vm15353_vm8  ;;  %vm15359_vm8 = vcmp.eq.s32.totalorder %v8803_v12, %v9151_v0 }
  0x40   : > { %vm7330_vm9 = vmpackc.low %vm895_vm10, %vm893_vm15  ;;  %vm15362_vm10 = vcmp.eq.s32.totalorder %v8808_v15, %v9169_v9 }
  0x41   : > { %7331 = vmatpush1.bf16.msk.msra.mxu0 %vm7330_vm9, %v15376_v35  ;;  %vm787_vm4 = vmand %vm15355_vm1, %vm15354_vm12  ;;  %vm15358_vm9 = vcmp.eq.s32.totalorder %v8803_v12, %v9157_v5 }
  0x42   : > { %vm789_vm15 = vmand %vm741_vm2, %vm15357_vm11 }
  0x43   : > { %vm7347_vm12 = vmpackc.low %vm789_vm15, %vm787_vm4  ;;  %vm15361_vm4 = vcmp.eq.s32.totalorder %v8803_v12, %v9194_v22 }
  0x44   : > { %7348 = vmatpush1.bf16.msk.msra.mxu1 %vm7347_vm12, %v15376_v35  ;;  %vm898_vm1 = vmand %vm15414_vm0, %vm15359_vm8 }
  0x45   : > { %vm900_vm11 = vmand %vm15362_vm10, %vm15358_vm9 }
  0x46   : > { %vm7332_vm12 = vmpackc.low %vm900_vm11, %vm898_vm1  ;;  %vm15412_vm1 = vcmp.eq.s32.totalorder %v8855_v29, %v9154_v3  ;;  %vm15389_vm11 = vcmp.eq.s32.totalorder %v8855_v29, %v9169_v9 }
  0x47   : > { %7333 = vmatprep.subr.msk.bf16.mxu0 %vm7332_vm12, %v15376_v35  ;;  %vm792_vm15 = vmand %vm15414_vm0, %vm15360_vm14  ;;  %vm15363_vm12 = vcmp.eq.s32.totalorder %v8857_v30, %v9151_v0  ;;  %vm15364_vm14 = vcmp.eq.s32.totalorder %v8857_v30, %v9157_v5 }
  0x48   : > { %vm794_vm9 = vmand %vm15362_vm10, %vm15361_vm4  ;;  %vm15373_vm4 = vcmp.eq.s32.totalorder %v8857_v30, %v9194_v22 }
  0x49   : > { %vm7349_vm8 = vmpackc.low %vm794_vm9, %vm792_vm15 }
  0x4a   : > { %7350 = vmatprep.subr.msk.bf16.mxu1 %vm7349_vm8, %v15376_v35  ;;  %vm897_vm9 = vmand %vm15412_vm1, %vm15363_vm12  ;;  %vm15375_vm8 = vcmp.eq.s32.totalorder %v8857_v30, %v9180_v14 }
  0x4b   : > { %vm899_vm15 = vmand %vm15389_vm11, %vm15364_vm14 }
  0x4c   : > { %vm7334_vm10 = vmpackc.low %vm899_vm15, %vm897_vm9  ;;  %vm15374_vm9 = vcmp.eq.s32.totalorder %v8803_v12, %v9281_v55 }
  0x4d   : > { %7335 = vmatpush1.bf16.msk.msra.mxu0 %vm7334_vm10, %v15376_v35  ;;  %vm791_vm12 = vmand %vm15412_vm1, %vm15375_vm8  ;;  %vm15404_vm8 = vcmp.eq.s32.totalorder %v8803_v12, %v9304_v25  ;;  %vm15861_vm1 = vcmp.eq.s32.totalorder %v8808_v15, %v9036_v51 }
  0x4e   : > { %vm793_vm14 = vmand %vm15389_vm11, %vm15373_vm4  ;;  %8286 = vmatprep.subr.bf16.mxu0 %v15371_v1  ;;  %v9307_v1 = vadd.s32 2, %v8964_v43  ;;  %vm15380_vm4 = vcmp.eq.s32.totalorder %v8857_v30, %v9281_v55 }
  0x4f   : > { %vm7351_vm10 = vmpackc.low %vm793_vm14, %vm791_vm12  ;;  %vm15387_vm14 = vcmp.eq.s32.totalorder %v8803_v12, %v9284_v53 }
  0x50   : > { %7352 = vmatpush1.bf16.msk.msra.mxu1 %vm7351_vm10, %v15376_v35  ;;  %vm1085_vm12 = vmand %vm732_vm5, %vm15374_vm9  ;;  %vm15388_vm9 = vcmp.eq.s32.totalorder %v8857_v30, %v9284_v53 }
  0x51   : > { %vm1087_vm15 = vmand %vm734_vm6, %vm15387_vm14  ;;  %vm15411_vm14 = vcmask 523264  }
  0x52   : > { %vm7356_vm10 = vmpackc.low %vm1087_vm15, %vm1085_vm12  ;;  %vm15409_vm15 = vcmp.eq.s32.totalorder %v8803_v12, %v9307_v1 }
  0x53   : > { %7357 = vmatprep.subr.msk.bf16.mxu1 %vm7356_vm10, %v15376_v35  ;;  %vm9321_vm12 = vmand %vm731_vm13, %vm15380_vm4  ;;  %v15856_v35 = vmov 0  }
  0x54   : > { %vm9333_vm10 = vmand %vm733_vm7, %vm15388_vm9  ;;  %vm15850_vm9 = vcmp.eq.s32.totalorder %v8808_v15, %v8936_v40 }
  0x55   : > { %vm9343_vm4 = vmand %vm15413_vm3, %vm15404_vm8 }
  0x56   : > { %vm9353_vm11 = vmand %vm15850_vm9, %vm15409_vm15  ;;  %vm15854_vm15 = vmmov 0  }
  0x57   : > { %vm7358_vm8 = vmpackc.low %vm9333_vm10, %vm9321_vm12  ;;  %vm15857_vm12 = vcmask 64512   ;;  %vm15859_vm10 = vcmp.eq.s32.totalorder %v8855_v29, %v8918_v37 }
  0x58   : > { %vm7360_vm9 = vmpackc.low %vm9353_vm11, %vm9343_vm4  ;;  %vm15410_vm11 = vcmp.eq.s32.totalorder %v8857_v30, %v9304_v25 }
  0x59   : > { %vm15858_vm4 = vmmov %vm15857_vm12 }
  0xf4   : > { %v862_v13 = vpop.f32.mrb[0].mxu0  ;;  %v964_v8 = vpop.f32.mrb[0].mxu1 }
  0xf5   : > { %v868_v2 = vpack.c.bf16 %v862_v13, %v862_v13  ;;  %v970_v61 = vpack.c.bf16 %v964_v8, %v964_v8  ;;  %v8284_v59 = vpop.f32.mrb[1].mxu1  ;;  %v8278_v60 = vpop.f32.mrb[1].mxu0  ;;  %v15853_v8 = vmov 0.0   ;;  %v15855_v13 = vmov 1.0|1.0  }
  0xf6   : > { %v967_v58 = vpop.f32.mrb[2].mxu1  ;;  %v865_v47 = vpop.f32.mrb[2].mxu0  ;;  %v9476_v59 = vadd.s32 3, %v8950_v42  ;;  %v9488_v60 = vadd.s32 3, %v8964_v43 }
  0xf7   : > { %v8285_v45 = vpop.f32.mrb[3].mxu1  ;;  %7336 = vmatmul.mubr.msk.bf16.vlgmr.msra.gmra.mrb[4].mxu0 %vm15411_vm14, %v970_v61  ;;  %7353 = vmatmul.mubr.msk.bf16.vlgmr.msra.gmra.mrb[4].mxu1 %vm15411_vm14, %v868_v2  ;;  %v8279_v46 = vpop.f32.mrb[3].mxu0  ;;  %v7354_v2 = vld [vmem:[%s15813_s30 + $0x4] sm:$0x3]  ;;  %vm15476_vm14 = vcmp.eq.s32.totalorder %v8803_v12, %v9400_v41  ;;  %v9453_v47 = vadd.s32 2, %v9180_v14  ;;  %v9465_v58 = vadd.s32 2, %v9194_v22 }
  0xf8   : > { %8287 = vmatpush3.bf16.msra.mxu0 %v8826_v21  ;;  %8288 = vmatprep.mubr.msk.bf16.mxu0 %vm15854_vm15, %v15853_v8  ;;  %v9403_v45 = vadd.s32 3, %v8837_v24  ;;  %v9406_v46 = vadd.s32 3, %v8850_v27  ;;  %v9533_v61 = vadd.s32 3, %v9068_v56 }
  0xf9   : > { %8292 = vmatprep.subr.bf16.mxu0 %v15853_v8  ;;  %7359 = vmatpush1.bf16.msk.msra.mxu1 %vm7358_vm8, %v15855_v13  ;;  %vm15477_vm8 = vcmp.eq.s32.totalorder %v8857_v30, %v9307_v1 }
  0xfa   : > { %7361 = vmatprep.subr.msk.bf16.mxu1 %vm7360_vm9, %v15855_v13  ;;  %1205 = vmatprep.mubr.bf16.mxu1 %v15856_v35  ;;  %vm1088_vm9 = vmand %vm15859_vm10, %vm15410_vm11  ;;  %vm15415_vm11 = vcmp.eq.s32.totalorder %v8803_v12, %v9397_v39  ;;  %vm15416_vm0 = vcmp.eq.s32.totalorder %v8803_v12, %v9403_v45 }
  0xfb   : > { %vm1093_vm3 = vmand %vm15861_vm1, %vm15415_vm11  ;;  %vm15474_vm11 = vcmp.eq.s32.totalorder %v8857_v30, %v9397_v39 }
  0xfc   : > { %vm1241_vm1 = vmand %vm732_vm5, %vm15416_vm0  ;;  %vm15863_vm5 = vcmp.eq.s32.totalorder %v8855_v29, %v9036_v51  ;;  %vm15417_vm0 = vcmp.eq.s32.totalorder %v8857_v30, %v9403_v45 }
  0xff   : > { %8289 = vmatmul.mubr.msk.bf16.vlgmr.msra.gmra.mrb[8].mxu0 %vm15857_vm12, %v7354_v2  ;;  %vm15860_vm12 = vcmp.eq.s32.totalorder %v8855_v29, %v8936_v40  ;;  %v9545_v2 = vadd.s32 3, %v9082_v57 }
 0x100   : > { %8293 = vmatpush3.bf16.msra.mxu0 %v8826_v21  ;;  %8294 = vmatprep.mubr.msk.bf16.mxu0 %vm15854_vm15, %v15853_v8 }
 0x107   : > { %8295 = vmatmul.mubr.msk.bf16.vlgmr.msra.gmra.mrb[12].mxu0 %vm15858_vm4, %v7373_v4  ;;  %vm1090_vm4 = vmand %vm15860_vm12, %vm15477_vm8  ;;  %v9573_v4 = vadd.s32 3, %v9180_v14  ;;  %vm1381_vm8 = vcmp.eq.s32.totalorder %v8808_v15, %v9006_v48 }
 0x108   : > { %1361 = vmatprep.mubr.bf16.mxu0 %v15856_v35  ;;  %vm7362_vm10 = vmpackc.low %vm1090_vm4, %vm1088_vm9  ;;  %vm15862_vm9 = vcmp.eq.s32.totalorder %v8808_v15, %v9054_v54  ;;  %vm15475_vm4 = vcmp.eq.s32.totalorder %v8803_v12, %v9406_v46 }
 0x109   : > { %7363 = vmatpush1.bf16.msk.msra.mxu1 %vm7362_vm10, %v15855_v13  ;;  %vm1095_vm12 = vmand %vm15862_vm9, %vm15476_vm14  ;;  %15872 = vst [vmem:[#allocation41_spill] sm:$0xff] %v9573_v4  ;;  %vm15890_vm14 = vcmp.eq.s32.totalorder %v8803_v12, %v8964_v43 }
 0x10a   : > { %vm7364_vm10 = vmpackc.low %vm1095_vm12, %vm1093_vm3  ;;  %vm15418_vm3 = vcmp.eq.s32.totalorder %v8857_v30, %v9400_v41 }
 0x10b   : > { %7365 = vmatprep.subr.msk.bf16.mxu1 %vm7364_vm10, %v15855_v13  ;;  %vm1243_vm9 = vmand %vm734_vm6, %vm15475_vm4  ;;  %vm15479_vm4 = vcmp.eq.s32.totalorder %v8855_v29, %v8888_v33 }
 0x10c   : > { %vm7375_vm12 = vmpackc.low %vm1243_vm9, %vm1241_vm1  ;;  %vm15419_vm1 = vcmp.eq.s32.totalorder %v8857_v30, %v9406_v46 }
 0x10d   : > { %7376 = vmatprep.subr.msk.bf16.mxu0 %vm7375_vm12, %v15855_v13  ;;  %vm1092_vm10 = vmand %vm15863_vm5, %vm15474_vm11  ;;  %vm15420_vm5 = vcmp.eq.s32.totalorder %v8803_v12, %v9453_v47  ;;  %vm15888_vm11 = vcmp.eq.s32.totalorder %v8857_v30, %v8850_v27 }
 0x10e   : > { %vm1094_vm6 = vmand %vm741_vm2, %vm15418_vm3  ;;  %vm15422_vm3 = vcmp.eq.s32.totalorder %v8803_v12, %v9476_v59 }
 0x10f   : > { %vm7366_vm9 = vmpackc.low %vm1094_vm6, %vm1092_vm10  ;;  %vm15421_vm6 = vcmp.eq.s32.totalorder %v8803_v12, %v9465_v58 }
 0x110   : > { %7367 = vmatpush1.bf16.msk.msra.mxu1 %vm7366_vm9, %v15855_v13  ;;  %vm1240_vm12 = vmand %vm731_vm13, %vm15417_vm0  ;;  %vm15864_vm13 = vcmp.eq.s32.totalorder %v8808_v15, %v9154_v3 }
 0x111   : > { %vm1242_vm10 = vmand %vm733_vm7, %vm15419_vm1  ;;  %vm15865_vm7 = vcmp.eq.s32.totalorder %v8808_v15, %v9169_v9 }
 0x112   : > { %vm7377_vm9 = vmpackc.low %vm1242_vm10, %vm1240_vm12  ;;  %vm15424_vm12 = vcmp.eq.s32.totalorder %v8803_v12, %v9488_v60 }
 0x113   : > { %7378 = vmatpush1.bf16.msk.msra.mxu0 %vm7377_vm9, %v15855_v13  ;;  %vm1097_vm0 = vmand %vm15864_vm13, %vm15420_vm5  ;;  %vm15866_vm9 = vcmp.eq.s32.totalorder %v8808_v15, %v8918_v37  ;;  %vm15423_vm5 = vcmp.eq.s32.totalorder %v8857_v30, %v9453_v47 }
 0x114   : > { %vm1099_vm1 = vmand %vm15865_vm7, %vm15421_vm6  ;;  %vm15867_vm7 = vcmp.eq.s32.totalorder %v8808_v15, %v8936_v40 }
 0x115   : > { %vm7368_vm10 = vmpackc.low %vm1099_vm1, %vm1097_vm0  ;;  %vm15425_vm0 = vcmp.eq.s32.totalorder %v8857_v30, %v9465_v58 }
 0x116   : > { %7369 = vmatprep.subr.msk.bf16.mxu1 %vm7368_vm10, %v15855_v13  ;;  %vm1245_vm13 = vmand %vm15866_vm9, %vm15422_vm3  ;;  %vm15868_vm10 = vcmp.eq.s32.totalorder %v8855_v29, %v9154_v3  ;;  %vm15426_vm3 = vcmp.eq.s32.totalorder %v8857_v30, %v9476_v59 }
 0x117   : > { %vm1247_vm6 = vmand %vm15867_vm7, %vm15424_vm12  ;;  %vm15430_vm7 = vcmp.eq.s32.totalorder %v8857_v30, %v9488_v60  ;;  %vm15429_vm12 = vcmp.eq.s32.totalorder %v8803_v12, %v9533_v61 }
 0x118   : > { %vm7379_vm1 = vmpackc.low %vm1247_vm6, %vm1245_vm13  ;;  %vm15869_vm6 = vcmp.eq.s32.totalorder %v8855_v29, %v9169_v9 }
 0x119   : > { %7380 = vmatprep.subr.msk.bf16.mxu0 %vm7379_vm1, %v15855_v13  ;;  %vm1096_vm9 = vmand %vm15868_vm10, %vm15423_vm5  ;;  %vm15870_vm10 = vcmp.eq.s32.totalorder %v8855_v29, %v8918_v37 }
 0x11a   : > { %vm1098_vm13 = vmand %vm15869_vm6, %vm15425_vm0  ;;  %vm15871_vm6 = vcmp.eq.s32.totalorder %v8855_v29, %v8936_v40 }
 0x11b   : > { %vm7370_vm1 = vmpackc.low %vm1098_vm13, %vm1096_vm9  ;;  %vm15473_vm9 = vcmp.eq.s32.totalorder %v8803_v12, %v9545_v2 }
 0x11c   : > { %7371 = vmatpush1.bf16.msk.msra.mxu1 %vm7370_vm1, %v15855_v13  ;;  %vm1244_vm5 = vmand %vm15870_vm10, %vm15426_vm3  ;;  %vm15873_vm1 = vcmp.eq.s32.totalorder %v8808_v15, %v9036_v51  ;;  %vm15431_vm3 = vcmp.eq.s32.totalorder %v8857_v30, %v9533_v61 }
 0x11d   : > { %vm1246_vm0 = vmand %vm15871_vm6, %vm15430_vm7  ;;  %vm15432_vm6 = vcmp.eq.s32.totalorder %v8857_v30, %v9545_v2  ;;  %vm15433_vm7 = vcmp.eq.s32.totalorder %v8803_v12, %v9573_v4 }
 0x11e   : > { %vm7381_vm13 = vmpackc.low %vm1246_vm0, %vm1244_vm5  ;;  %vm15875_vm5 = vcmp.eq.s32.totalorder %v8808_v15, %v9054_v54 }
 0x11f   : > { %7382 = vmatpush1.bf16.msk.msra.mxu0 %vm7381_vm13, %v15855_v13  ;;  %vm1249_vm10 = vmand %vm15873_vm1, %vm15429_vm12  ;;  %vm15876_vm1 = vcmp.eq.s32.totalorder %v8855_v29, %v9036_v51 }
 0x120   : > { %vm1251_vm0 = vmand %vm15875_vm5, %vm15473_vm9  ;;  %vm15478_vm9 = vcmp.eq.s32.totalorder %v8808_v15, %v8888_v33 }
 0x121   : > { %vm7383_vm13 = vmpackc.low %vm1251_vm0, %vm1249_vm10  ;;  %vm15434_vm10 = vcmp.eq.s32.totalorder %v8803_v12, %v9585_v44 }
 0x122   : > { %7384 = vmatprep.subr.msk.bf16.mxu0 %vm7383_vm13, %v15855_v13  ;;  %vm1248_vm12 = vmand %vm15876_vm1, %vm15431_vm3  ;;  %vm15877_vm13 = vcmp.eq.s32.totalorder %v8808_v15, %v9154_v3  ;;  %vm15472_vm3 = vcmp.eq.s32.totalorder %v8857_v30, %v9573_v4 }
 0x123   : > { %vm1250_vm5 = vmand %vm741_vm2, %vm15432_vm6  ;;  %vm15878_vm2 = vcmp.eq.s32.totalorder %v8808_v15, %v9169_v9 }
 0x124   : > { %vm7385_vm0 = vmpackc.low %vm1250_vm5, %vm1248_vm12  ;;  %vm15471_vm12 = vcmp.eq.s32.totalorder %v8857_v30, %v9585_v44 }
 0x125   : > { %7386 = vmatpush1.bf16.msk.msra.mxu0 %vm7385_vm0, %v15855_v13  ;;  %vm1253_vm1 = vmand %vm15877_vm13, %vm15433_vm7  ;;  %vm15879_vm0 = vcmp.eq.s32.totalorder %v8855_v29, %v9154_v3  ;;  %vm15880_vm7 = vcmp.eq.s32.totalorder %v8855_v29, %v9169_v9 }
 0x126   : > { %vm1255_vm6 = vmand %vm15878_vm2, %vm15434_vm10 }
 0x127   : > { %vm7387_vm5 = vmpackc.low %vm1255_vm6, %vm1253_vm1 }
 0x128   : > { %7388 = vmatprep.subr.msk.bf16.mxu0 %vm7387_vm5, %v15855_v13  ;;  %vm1252_vm13 = vmand %vm15879_vm0, %vm15472_vm3  ;;  %vm15481_vm5 = vcmp.eq.s32.totalorder %v8808_v15, %v8811_v16  ;;  %vm15482_vm0 = vcmp.eq.s32.totalorder %v8808_v15, %v8817_v18  ;;  %vm15887_vm3 = vcmp.eq.s32.totalorder %v8857_v30, %v8837_v24 }
 0x129   : > { %vm1254_vm2 = vmand %vm15880_vm7, %vm15471_vm12  ;;  %vm15881_vm7 = vcmask 523264  }
 0x12a   : > { %vm7389_vm10 = vmpackc.low %vm1254_vm2, %vm1252_vm13  ;;  %vm15885_vm13 = vcmp.eq.s32.totalorder %v8803_v12, %v8837_v24 }
 0x12b   : > { %7390 = vmatpush1.bf16.msk.msra.mxu0 %vm7389_vm10, %v15855_v13  ;;  %vm15882_vm6 = vmmov %vm15881_vm7  ;;  %vm15883_vm10 = vcmask 64512  }
 0x12c   : > { %8298 = vmatprep.subr.bf16.mxu0 %v15853_v8  ;;  %vm15884_vm1 = vmmov %vm15883_vm10 }
 0x12d   : > { %vm1389_vm2 = vmand %vm15481_vm5, %vm15885_vm13 }
 0x1ca   : > { %v1009_v32 = vpop.f32.mrb[4].mxu0  ;;  %v1053_v28 = vpop.f32.mrb[4].mxu1 }
 0x1cb   : > { %v9644_v31 = vadd.f32 %v1053_v28, %v1009_v32  ;;  %v1011_v20 = vpop.f32.mrb[5].mxu0  ;;  %v1055_v11 = vpop.f32.mrb[5].mxu1 }
 0x1cc   : > { %v9646_v10 = vadd.f32 %v1055_v11, %v1011_v20  ;;  %v1013_v7 = vpop.f32.mrb[6].mxu0  ;;  %v1057_v6 = vpop.f32.mrb[6].mxu1 }
 0x1cd   : > { %v1014_v3 = vpop.f32.mrb[7].mxu0  ;;  %v1058_v54 = vpop.f32.mrb[7].mxu1  ;;  %v7392_v6 = vld [vmem:[%s15813_s30 + $0x8] sm:$0x3]  ;;  %v7411_v7 = vld [vmem:[%s15813_s30 + $0xa] sm:$0x3] }
 0x1d2   : > { %v1163_v51 = vpop.f32.mrb[8].mxu0 }
 0x1d3   : > { %v1169_v9 = vpack.c.bf16 %v1163_v51, %v1163_v51  ;;  %v8290_v40 = vpop.f32.mrb[9].mxu0 }
 0x1d4   : > { %v1166_v37 = vpop.f32.mrb[10].mxu0 }
 0x1d5   : > { %v8291_v26 = vpop.f32.mrb[11].mxu0  ;;  %7372 = vmatmul.mubr.msk.bf16.vlgmr.msra.gmra.mrb[8].mxu1 %vm15881_vm7, %v1169_v9  ;;  %vm15483_vm7 = vcmp.eq.s32.totalorder %v8855_v29, %v8811_v16 }
 0x1d6   : > { %1509 = vmatprep.mubr.bf16.mxu1 %v15856_v35  ;;  %vm1388_vm13 = vmand %vm15483_vm7, %vm15887_vm3 }
 0x1da   : > { %v1319_v23 = vpop.f32.mrb[12].mxu0 }
 0x1db   : > { %v1325_v28 = vpack.c.bf16 %v1319_v23, %v1319_v23  ;;  %v8296_v32 = vpop.f32.mrb[13].mxu0 }
 0x1dc   : > { %v1322_v44 = vpop.f32.mrb[14].mxu0 }
 0x1dd   : > { %v8297_v4 = vpop.f32.mrb[15].mxu0  ;;  %7391 = vmatmul.mubr.msk.bf16.vlgmr.msra.gmra.mrb[16].mxu0 %vm15882_vm6, %v1325_v28  ;;  %vm15886_vm6 = vcmp.eq.s32.totalorder %v8803_v12, %v8850_v27 }
 0x1de   : > { %8299 = vmatpush3.bf16.msra.mxu0 %v8826_v21  ;;  %8300 = vmatprep.mubr.msk.bf16.mxu0 %vm15854_vm15, %v15853_v8 }
 0x1df   : > { %8304 = vmatprep.subr.bf16.mxu0 %v15853_v8 }
 0x1e5   : > { %8301 = vmatmul.mubr.msk.bf16.vlgmr.msra.gmra.mrb[20].mxu0 %vm15883_vm10, %v7392_v6  ;;  %vm1391_vm10 = vmand %vm15482_vm0, %vm15886_vm6 }
 0x1e6   : > { %8305 = vmatpush3.bf16.msra.mxu0 %v8826_v21  ;;  %8306 = vmatprep.mubr.msk.bf16.mxu0 %vm15854_vm15, %v15853_v8  ;;  %vm7394_vm12 = vmpackc.low %vm1391_vm10, %vm1389_vm2  ;;  %vm15889_vm10 = vcmp.eq.s32.totalorder %v8803_v12, %v8950_v42 }
 0x1e7   : > { %7395 = vmatprep.subr.msk.bf16.mxu1 %vm7394_vm12, %v15855_v13  ;;  %vm15486_vm12 = vcmp.eq.s32.totalorder %v8808_v15, %v8891_v34  ;;  %vm1393_vm3 = vmand %vm15478_vm9, %vm15889_vm10  ;;  %vm15892_vm9 = vcmp.eq.s32.totalorder %v8857_v30, %v8964_v43 }
 0x1ed   : > { %8307 = vmatmul.mubr.msk.bf16.vlgmr.msra.gmra.mrb[24].mxu0 %vm15884_vm1, %v7411_v7  ;;  %vm15484_vm1 = vcmp.eq.s32.totalorder %v8855_v29, %v8817_v18  ;;  %v16000_v7 = vld [vmem:[#allocation17_spill] sm:$0xff] }
 0x1ee   : > { %1641 = vmatprep.mubr.bf16.mxu0 %v15856_v35  ;;  %vm1390_vm6 = vmand %vm15484_vm1, %vm15888_vm11 }
 0x1ef   : > { %vm7396_vm2 = vmpackc.low %vm1390_vm6, %vm1388_vm13  ;;  %vm15480_vm13 = vcmp.eq.s32.totalorder %v8855_v29, %v8891_v34 }
 0x1f0   : > { %7397 = vmatpush1.bf16.msk.msra.mxu1 %vm7396_vm2, %v15855_v13  ;;  %vm1395_vm11 = vmand %vm15486_vm12, %vm15890_vm14  ;;  %vm15891_vm2 = vcmp.eq.s32.totalorder %v8857_v30, %v8950_v42 }
 0x1f1   : > { %vm7398_vm6 = vmpackc.low %vm1395_vm11, %vm1393_vm3  ;;  %vm1383_vm3 = vcmp.eq.s32.totalorder %v8808_v15, %v9009_v49 }
 0x1f2   : > { %7399 = vmatprep.subr.msk.bf16.mxu1 %vm7398_vm6, %v15855_v13  ;;  %vm1392_vm10 = vmand %vm15479_vm4, %vm15891_vm2  ;;  %vm15893_vm6 = vcmp.eq.s32.totalorder %v8803_v12, %v9068_v56  ;;  %vm15894_vm4 = vcmp.eq.s32.totalorder %v8803_v12, %v9082_v57 }
 0x1f3   : > { %vm1394_vm14 = vmand %vm15480_vm13, %vm15892_vm9 }
 0x1f4   : > { %vm7400_vm11 = vmpackc.low %vm1394_vm14, %vm1392_vm10  ;;  %vm15895_vm10 = vcmp.eq.s32.totalorder %v8803_v12, %v8814_v17 }
 0x1f5   : > { %7401 = vmatpush1.bf16.msk.msra.mxu1 %vm7400_vm11, %v15855_v13  ;;  %vm1397_vm2 = vmand %vm1381_vm8, %vm15893_vm6  ;;  %vm15489_vm11 = vcmp.eq.s32.totalorder %v8855_v29, %v9006_v48  ;;  %vm15896_vm6 = vcmp.eq.s32.totalorder %v8803_v12, %v8820_v19 }
 0x1f6   : > { %vm1399_vm9 = vmand %vm1383_vm3, %vm15894_vm4 }
 0x1f7   : > { %vm7402_vm13 = vmpackc.low %vm1399_vm9, %vm1397_vm2  ;;  %vm15897_vm9 = vcmp.eq.s32.totalorder %v8857_v30, %v9068_v56 }
 0x1f8   : > { %7403 = vmatprep.subr.msk.bf16.mxu1 %vm7402_vm13, %v15855_v13  ;;  %vm1521_vm14 = vmand %vm15481_vm5, %vm15895_vm10  ;;  %vm15490_vm13 = vcmp.eq.s32.totalorder %v8855_v29, %v9009_v49  ;;  %vm15898_vm5 = vcmp.eq.s32.totalorder %v8857_v30, %v9082_v57 }
 0x1f9   : > { %vm1523_vm4 = vmand %vm15482_vm0, %vm15896_vm6 }
 0x1fa   : > { %vm7413_vm2 = vmpackc.low %vm1523_vm4, %vm1521_vm14  ;;  %vm15899_vm14 = vcmp.eq.s32.totalorder %v8857_v30, %v8814_v17 }
 0x1fb   : > { %7414 = vmatprep.subr.msk.bf16.mxu0 %vm7413_vm2, %v15855_v13  ;;  %vm1396_vm10 = vmand %vm15489_vm11, %vm15897_vm9  ;;  %vm15485_vm2 = vcmp.eq.s32.totalorder %v8808_v15, %v9124_v62  ;;  %vm15900_vm9 = vcmp.eq.s32.totalorder %v8857_v30, %v8820_v19 }
 0x1fc   : > { %vm1398_vm6 = vmand %vm15490_vm13, %vm15898_vm5 }
 0x1fd   : > { %vm7404_vm0 = vmpackc.low %vm1398_vm6, %vm1396_vm10  ;;  %vm15901_vm6 = vcmp.eq.s32.totalorder %v8803_v12, %v9180_v14 }
 0x1fe   : > { %7405 = vmatpush1.bf16.msk.msra.mxu1 %vm7404_vm0, %v15855_v13  ;;  %vm1520_vm4 = vmand %vm15483_vm7, %vm15899_vm14  ;;  %vm15488_vm0 = vcmp.eq.s32.totalorder %v8808_v15, %v9127_v63  ;;  %vm15902_vm7 = vcmp.eq.s32.totalorder %v8803_v12, %v9194_v22 }
 0x1ff   : > { %vm1522_vm5 = vmand %vm15484_vm1, %vm15900_vm9 }
 0x200   : > { %vm7415_vm10 = vmpackc.low %vm1522_vm5, %vm1520_vm4  ;;  %vm15903_vm4 = vcmp.eq.s32.totalorder %v8803_v12, %v8915_v36  ;;  %vm15904_vm5 = vcmp.eq.s32.totalorder %v8808_v15, %v8888_v33 }
 0x201   : > { %7416 = vmatpush1.bf16.msk.msra.mxu0 %vm7415_vm10, %v15855_v13  ;;  %vm1401_vm14 = vmand %vm15485_vm2, %vm15901_vm6  ;;  %vm15487_vm6 = vcmp.eq.s32.totalorder %v8855_v29, %v9124_v62  ;;  %vm15905_vm2 = vcmp.eq.s32.totalorder %v8803_v12, %v8921_v38 }
 0x202   : > { %vm1403_vm9 = vmand %vm15488_vm0, %vm15902_vm7 }
 0x203   : > { %vm7406_vm1 = vmpackc.low %vm1403_vm9, %vm1401_vm14  ;;  %vm15906_vm9 = vcmp.eq.s32.totalorder %v8857_v30, %v9180_v14 }
 0x204   : > { %7407 = vmatprep.subr.msk.bf16.mxu1 %vm7406_vm1, %v15855_v13  ;;  %vm1525_vm10 = vmand %vm15904_vm5, %vm15903_vm4  ;;  %vm1386_vm1 = vcmp.eq.s32.totalorder %v8855_v29, %v9127_v63  ;;  %vm15907_vm5 = vcmp.eq.s32.totalorder %v8857_v30, %v9194_v22 }
 0x205   : > { %vm1527_vm7 = vmand %vm15486_vm12, %vm15905_vm2 }
 0x206   : > { %vm7417_vm14 = vmpackc.low %vm1527_vm7, %vm1525_vm10  ;;  %vm15908_vm10 = vcmp.eq.s32.totalorder %v8857_v30, %v8915_v36  ;;  %vm15909_vm7 = vcmp.eq.s32.totalorder %v8855_v29, %v8888_v33 }
 0x207   : > { %7418 = vmatprep.subr.msk.bf16.mxu0 %vm7417_vm14, %v15855_v13  ;;  %vm1400_vm4 = vmand %vm15487_vm6, %vm15906_vm9  ;;  %vm15910_vm9 = vcmp.eq.s32.totalorder %v8857_v30, %v8921_v38  ;;  %vm15911_vm6 = vcmp.eq.s32.totalorder %v8855_v29, %v8891_v34 }
 0x208   : > { %vm1402_vm2 = vmand %vm1386_vm1, %vm15907_vm5 }
 0x209   : > { %vm7408_vm12 = vmpackc.low %vm1402_vm2, %vm1400_vm4  ;;  %vm15913_vm2 = vcmp.eq.s32.totalorder %v8803_v12, %v9039_v52 }
 0x20a   : > { %7409 = vmatpush1.bf16.msk.msra.mxu1 %vm7408_vm12, %v15855_v13  ;;  %vm1524_vm14 = vmand %vm15909_vm7, %vm15908_vm10  ;;  %vm15912_vm12 = vcmp.eq.s32.totalorder %v8803_v12, %v9033_v50 }
 0x20b   : > { %vm1526_vm0 = vmand %vm15911_vm6, %vm15910_vm9  ;;  %8310 = vmatprep.subr.bf16.mxu1 %v15853_v8 }
 0x20c   : > { %vm7419_vm5 = vmpackc.low %vm1526_vm0, %vm1524_vm14  ;;  %vm15914_vm0 = vcmp.eq.s32.totalorder %v8857_v30, %v9033_v50  ;;  %vm15915_vm14 = vcmp.eq.s32.totalorder %v8857_v30, %v9039_v52 }
 0x20d   : > { %7420 = vmatpush1.bf16.msk.msra.mxu0 %vm7419_vm5, %v15855_v13  ;;  %vm1529_vm4 = vmand %vm1381_vm8, %vm15912_vm12  ;;  %vm15916_vm12 = vcmp.eq.s32.totalorder %v8803_v12, %v9151_v0 }
 0x20e   : > { %vm1531_vm10 = vmand %vm1383_vm3, %vm15913_vm2 }
 0x20f   : > { %vm7421_vm6 = vmpackc.low %vm1531_vm10, %vm1529_vm4  ;;  %vm15917_vm4 = vcmp.eq.s32.totalorder %v8808_v15, %v9124_v62  ;;  %vm15918_vm10 = vcmp.eq.s32.totalorder %v8803_v12, %v9157_v5 }
 0x210   : > { %7422 = vmatprep.subr.msk.bf16.mxu0 %vm7421_vm6, %v15855_v13  ;;  %vm1528_vm7 = vmand %vm15489_vm11, %vm15914_vm0  ;;  %vm15919_vm6 = vcmp.eq.s32.totalorder %v8808_v15, %v9127_v63 }
 0x211   : > { %vm1530_vm9 = vmand %vm15490_vm13, %vm15915_vm14  ;;  %vm15921_vm14 = vcmp.eq.s32.totalorder %v8855_v29, %v9124_v62 }
 0x212   : > { %vm7423_vm5 = vmpackc.low %vm1530_vm9, %vm1528_vm7  ;;  %vm15920_vm7 = vcmp.eq.s32.totalorder %v8857_v30, %v9151_v0 }
 0x213   : > { %7424 = vmatpush1.bf16.msk.msra.mxu0 %vm7423_vm5, %v15855_v13  ;;  %vm1533_vm2 = vmand %vm15917_vm4, %vm15916_vm12  ;;  %vm15922_vm5 = vcmp.eq.s32.totalorder %v8857_v30, %v9157_v5 }
 0x214   : > { %vm1535_vm0 = vmand %vm15919_vm6, %vm15918_vm10  ;;  %vm15925_vm6 = vcmp.eq.s32.totalorder %v8803_v12, %v9284_v53 }
 0x215   : > { %vm7425_vm11 = vmpackc.low %vm1535_vm0, %vm1533_vm2  ;;  %vm15924_vm2 = vcmp.eq.s32.totalorder %v8808_v15, %v8811_v16  ;;  %vm15926_vm0 = vcmp.eq.s32.totalorder %v8808_v15, %v8817_v18 }
 0x216   : > { %7426 = vmatprep.subr.msk.bf16.mxu0 %vm7425_vm11, %v15855_v13  ;;  %vm1532_vm9 = vmand %vm15921_vm14, %vm15920_vm7  ;;  %vm15923_vm11 = vcmp.eq.s32.totalorder %v8803_v12, %v9281_v55 }
 0x217   : > { %vm1534_vm12 = vmand %vm1386_vm1, %vm15922_vm5  ;;  %vm15928_vm5 = vcmp.eq.s32.totalorder %v8857_v30, %v9281_v55 }
 0x218   : > { %vm7427_vm4 = vmpackc.low %vm1534_vm12, %vm1532_vm9  ;;  %vm15927_vm9 = vcmask 523264   ;;  %vm15929_vm12 = vcmp.eq.s32.totalorder %v8855_v29, %v8811_v16 }
 0x219   : > { %7428 = vmatpush1.bf16.msk.msra.mxu0 %vm7427_vm4, %v15855_v13  ;;  %vm1653_vm10 = vmand %vm15924_vm2, %vm15923_vm11  ;;  %vm15932_vm11 = vcmp.eq.s32.totalorder %v8857_v30, %v9284_v53  ;;  %vm15933_vm2 = vcmp.eq.s32.totalorder %v8855_v29, %v8817_v18 }
 0x21a   : > { %8316 = vmatprep.subr.bf16.mxu0 %v15853_v8  ;;  %vm1655_vm7 = vmand %vm15926_vm0, %vm15925_vm6  ;;  %vm15936_vm6 = vcmp.eq.s32.totalorder %v8803_v12, %v9304_v25  ;;  %vm15937_vm0 = vcmp.eq.s32.totalorder %v8808_v15, %v8888_v33 }
 0x21b   : > { %vm7432_vm14 = vmpackc.low %vm1655_vm7, %vm1653_vm10 }
 0x21c   : > { %vm9938_vm4 = vmand %vm15929_vm12, %vm15928_vm5 }
 0x21d   : > { %vm9948_vm10 = vmand %vm15933_vm2, %vm15932_vm11  ;;  %vm15942_vm11 = vcmask 523264   ;;  %vm15943_vm2 = vcmask 64512  }
 0x21e   : > { %vm9958_vm7 = vmand %vm15937_vm0, %vm15936_vm6  ;;  %vm15946_vm0 = vcmp.eq.s32.totalorder %v8855_v29, %v8888_v33 }
 0x21f   : > { %vm7434_vm12 = vmpackc.low %vm9948_vm10, %vm9938_vm4  ;;  %vm15945_vm10 = vcmp.eq.s32.totalorder %v8857_v30, %v9304_v25 }
 0x220   : > { %vm15944_vm4 = vmmov %vm15943_vm2 }
 0x2a8   : > { %v1207_v11 = vpop.f32.mrb[8].mxu1 }
 0x2a9   : > { %v1214_v20 = vadd.f32 %v1207_v11, %v9644_v31  ;;  %v1209_v23 = vpop.f32.mrb[9].mxu1  ;;  %v10194_v11 = vadd.s32 2, %v16000_v7 }
 0x2aa   : > { %v1215_v26 = vadd.f32 %v1209_v23, %v9646_v10  ;;  %v1211_v37 = vpop.f32.mrb[10].mxu1 }
 0x2ab   : > { %v1212_v40 = vpop.f32.mrb[11].mxu1 }
 0x2b0   : > { %v1363_v44 = vpop.f32.mrb[16].mxu0 }
 0x2b1   : > { %v9911_v51 = vadd.f32 %v1363_v44, %v1214_v20  ;;  %v1365_v54 = vpop.f32.mrb[17].mxu0 }
 0x2b2   : > { %v9913_v3 = vadd.f32 %v1365_v54, %v1215_v26  ;;  %v1367_v9 = vpop.f32.mrb[18].mxu0  ;;  %v7430_v26 = vld [vmem:[%s15813_s30 + $0xc] sm:$0x3] }
 0x2b3   : > { %v1368_v4 = vpop.f32.mrb[19].mxu0  ;;  %v7449_v9 = vld [vmem:[%s15813_s30 + $0xe] sm:$0x3] }
 0x2b8   : > { %v1467_v10 = vpop.f32.mrb[20].mxu0 }
 0x2b9   : > { %v1473_v31 = vpack.c.bf16 %v1467_v10, %v1467_v10  ;;  %v8302_v28 = vpop.f32.mrb[21].mxu0 }
 0x2ba   : > { %v1470_v32 = vpop.f32.mrb[22].mxu0 }
 0x2bb   : > { %v8303_v6 = vpop.f32.mrb[23].mxu0  ;;  %7410 = vmatmul.mubr.msk.bf16.vlgmr.msra.gmra.mrb[12].mxu1 %vm15927_vm9, %v1473_v31  ;;  %vm15941_vm9 = vcmp.eq.s32.totalorder %v8808_v15, %v8891_v34 }
 0x2bc   : > { %8311 = vmatpush3.bf16.msra.mxu1 %v8826_v21  ;;  %8312 = vmatprep.mubr.msk.bf16.mxu1 %vm15854_vm15, %v15853_v8 }
 0x2bd   : > { %7433 = vmatprep.subr.msk.bf16.mxu1 %vm7432_vm14, %v15855_v13  ;;  %vm15940_vm14 = vcmp.eq.s32.totalorder %v8803_v12, %v9307_v1 }
 0x2be   : > { %vm1659_vm5 = vmand %vm15941_vm9, %vm15940_vm14  ;;  %vm15947_vm14 = vcmp.eq.s32.totalorder %v8857_v30, %v9307_v1  ;;  %vm15948_vm9 = vcmp.eq.s32.totalorder %v8855_v29, %v8891_v34 }
 0x2bf   : > { %vm7436_vm6 = vmpackc.low %vm1659_vm5, %vm9958_vm7 }
 0x2c0   : > { %v1599_v23 = vpop.f32.mrb[24].mxu0  ;;  %vm1656_vm7 = vmand %vm15946_vm0, %vm15945_vm10  ;;  %vm15951_vm0 = vcmp.eq.s32.totalorder %v8803_v12, %v9403_v45 }
 0x2c1   : > { %v1605_v37 = vpack.c.bf16 %v1599_v23, %v1599_v23  ;;  %v8308_v40 = vpop.f32.mrb[25].mxu0  ;;  %vm1658_vm5 = vmand %vm15948_vm9, %vm15947_vm14  ;;  %vm15953_vm9 = vcmp.eq.s32.totalorder %v8803_v12, %v9406_v46 }
 0x2c2   : > { %v1602_v44 = vpop.f32.mrb[26].mxu0  ;;  %v16001_v40 = vld [vmem:[#allocation20_spill] sm:$0xff] }
 0x2c3   : > { %v8309_v54 = vpop.f32.mrb[27].mxu0  ;;  %7429 = vmatmul.mubr.msk.bf16.vlgmr.msra.gmra.mrb[28].mxu0 %vm15942_vm11, %v1605_v37  ;;  %8313 = vmatmul.mubr.msk.bf16.vlgmr.msra.gmra.mrb[16].mxu1 %vm15943_vm2, %v7430_v26  ;;  %vm15949_vm11 = vcmp.eq.s32.totalorder %v8803_v12, %v9397_v39  ;;  %v10199_v44 = vadd.s32 2, %v16001_v40 }
 0x2c4   : > { %8317 = vmatpush3.bf16.msra.mxu0 %v8826_v21  ;;  %8318 = vmatprep.mubr.msk.bf16.mxu0 %vm15854_vm15, %v15853_v8  ;;  %vm1661_vm2 = vmand %vm1381_vm8, %vm15949_vm11 }
 0x2c5   : > { %7435 = vmatpush1.bf16.msk.msra.mxu1 %vm7434_vm12, %v15855_v13  ;;  %1773 = vmatprep.mubr.bf16.mxu1 %v15856_v35  ;;  %vm7438_vm12 = vmpackc.low %vm1658_vm5, %vm1656_vm7  ;;  %vm15952_vm7 = vcmp.eq.s32.totalorder %v8808_v15, %v8811_v16  ;;  %vm15954_vm5 = vcmp.eq.s32.totalorder %v8808_v15, %v8817_v18 }
 0x2c6   : > { %7437 = vmatprep.subr.msk.bf16.mxu1 %vm7436_vm6, %v15855_v13  ;;  %vm15950_vm6 = vcmp.eq.s32.totalorder %v8803_v12, %v9400_v41  ;;  %vm1785_vm14 = vmand %vm15952_vm7, %vm15951_vm0 }
 0x2c9   : > { %7439 = vmatpush1.bf16.msk.msra.mxu1 %vm7438_vm12, %v15855_v13  ;;  %vm1787_vm12 = vmand %vm15954_vm5, %vm15953_vm9  ;;  %vm15959_vm9 = vcmp.eq.s32.totalorder %v8855_v29, %v8811_v16  ;;  %v15983_v16 = vld [vmem:[#allocation41_spill] sm:$0xff] }
 0x2ca   : > { %vm7451_vm11 = vmpackc.low %vm1787_vm12, %vm1785_vm14  ;;  %vm15958_vm14 = vcmp.eq.s32.totalorder %v8857_v30, %v9403_v45  ;;  %vm15960_vm12 = vcmp.eq.s32.totalorder %v8857_v30, %v9406_v46 }
 0x2cb   : > { %8319 = vmatmul.mubr.msk.bf16.vlgmr.msra.gmra.mrb[32].mxu0 %vm15944_vm4, %v7449_v9  ;;  %vm1663_vm4 = vmand %vm1383_vm3, %vm15950_vm6  ;;  %7452 = vmatprep.subr.msk.bf16.mxu0 %vm7451_vm11, %v15855_v13  ;;  %vm15956_vm6 = vcmp.eq.s32.totalorder %v8855_v29, %v9006_v48  ;;  %vm15961_vm11 = vcmp.eq.s32.totalorder %v8855_v29, %v8817_v18  ;;  %v15986_v18 = vld [vmem:[#allocation42_spill] sm:$0xff] }
 0x2cc   : > { %1905 = vmatprep.mubr.bf16.mxu0 %v15856_v35  ;;  %vm7440_vm10 = vmpackc.low %vm1663_vm4, %vm1661_vm2  ;;  %vm15955_vm2 = vcmp.eq.s32.totalorder %v8857_v30, %v9397_v39 }
 0x2cd   : > { %7441 = vmatprep.subr.msk.bf16.mxu1 %vm7440_vm10, %v15855_v13  ;;  %vm1660_vm4 = vmand %vm15956_vm6, %vm15955_vm2  ;;  %vm15957_vm10 = vcmp.eq.s32.totalorder %v8857_v30, %v9400_v41 }
 0x2ce   : > { %vm1662_vm0 = vmand %vm15490_vm13, %vm15957_vm10  ;;  %vm15963_vm10 = vcmp.eq.s32.totalorder %v8808_v15, %v9124_v62 }
 0x2cf   : > { %vm7442_vm7 = vmpackc.low %vm1662_vm0, %vm1660_vm4  ;;  %vm15962_vm4 = vcmp.eq.s32.totalorder %v8803_v12, %v9453_v47 }
 0x2d0   : > { %7443 = vmatpush1.bf16.msk.msra.mxu1 %vm7442_vm7, %v15855_v13  ;;  %vm1784_vm5 = vmand %vm15959_vm9, %vm15958_vm14  ;;  %vm15964_vm7 = vcmp.eq.s32.totalorder %v8803_v12, %v9465_v58  ;;  %vm15965_vm14 = vcmp.eq.s32.totalorder %v8808_v15, %v9127_v63 }
 0x2d1   : > { %vm1786_vm2 = vmand %vm15961_vm11, %vm15960_vm12  ;;  %vm15967_vm12 = vcmp.eq.s32.totalorder %v8808_v15, %v8888_v33 }
 0x2d2   : > { %vm7453_vm6 = vmpackc.low %vm1786_vm2, %vm1784_vm5  ;;  %vm15966_vm5 = vcmp.eq.s32.totalorder %v8803_v12, %v9476_v59  ;;  %vm15968_vm2 = vcmp.eq.s32.totalorder %v8803_v12, %v9488_v60 }
 0x2d3   : > { %7454 = vmatpush1.bf16.msk.msra.mxu0 %vm7453_vm6, %v15855_v13  ;;  %vm1665_vm0 = vmand %vm15963_vm10, %vm15962_vm4  ;;  %vm15969_vm6 = vcmp.eq.s32.totalorder %v8808_v15, %v8891_v34 }
 0x2d4   : > { %vm1667_vm9 = vmand %vm15965_vm14, %vm15964_vm7  ;;  %vm15972_vm14 = vcmp.eq.s32.totalorder %v8857_v30, %v9465_v58 }
 0x2d5   : > { %vm7444_vm13 = vmpackc.low %vm1667_vm9, %vm1665_vm0  ;;  %vm15971_vm0 = vcmp.eq.s32.totalorder %v8855_v29, %v9124_v62 }
 0x2d6   : > { %7445 = vmatprep.subr.msk.bf16.mxu1 %vm7444_vm13, %v15855_v13  ;;  %vm1789_vm11 = vmand %vm15967_vm12, %vm15966_vm5  ;;  %vm15970_vm13 = vcmp.eq.s32.totalorder %v8857_v30, %v9453_v47  ;;  %vm15973_vm12 = vcmp.eq.s32.totalorder %v8857_v30, %v9476_v59 }
 0x2d7   : > { %vm1791_vm4 = vmand %vm15969_vm6, %vm15968_vm2  ;;  %vm15975_vm6 = vcmp.eq.s32.totalorder %v8857_v30, %v9488_v60 }
 0x2d8   : > { %vm7455_vm10 = vmpackc.low %vm1791_vm4, %vm1789_vm11  ;;  %vm15974_vm11 = vcmp.eq.s32.totalorder %v8855_v29, %v8888_v33  ;;  %vm15976_vm4 = vcmp.eq.s32.totalorder %v8855_v29, %v8891_v34  ;;  %v15992_v33 = vld [vmem:[#allocation11_spill] sm:$0xff] }
 0x2d9   : > { %7456 = vmatprep.subr.msk.bf16.mxu0 %vm7455_vm10, %v15855_v13  ;;  %vm1664_vm7 = vmand %vm15971_vm0, %vm15970_vm13  ;;  %vm15977_vm0 = vcmp.eq.s32.totalorder %v8803_v12, %v9533_v61  ;;  %v10162_v34 = vadd.s32 2, %v15992_v33 }
 0x2da   : > { %vm1666_vm9 = vmand %vm1386_vm1, %vm15972_vm14  ;;  %vm15978_vm14 = vcmp.eq.s32.totalorder %v8803_v12, %v9545_v2 }
 0x2db   : > { %vm7446_vm5 = vmpackc.low %vm1666_vm9, %vm1664_vm7 }
 0x2dc   : > { %7447 = vmatpush1.bf16.msk.msra.mxu1 %vm7446_vm5, %v15855_v13  ;;  %vm1788_vm2 = vmand %vm15974_vm11, %vm15973_vm12  ;;  %vm15979_vm12 = vcmp.eq.s32.totalorder %v8857_v30, %v9533_v61  ;;  %vm15980_vm11 = vcmp.eq.s32.totalorder %v8855_v29, %v9006_v48 }
 0x2dd   : > { %vm1790_vm10 = vmand %vm15976_vm4, %vm15975_vm6  ;;  %8322 = vmatprep.subr.bf16.mxu1 %v15853_v8  ;;  %vm15982_vm6 = vcmp.eq.s32.totalorder %v8855_v29, %v9009_v49  ;;  %v15993_v49 = vld [vmem:[#allocation12_spill] sm:$0xff] }
 0x2de   : > { %vm7457_vm13 = vmpackc.low %vm1790_vm10, %vm1788_vm2  ;;  %v10165_v4 = vadd.s32 2, %v15993_v49 }
 0x2df   : > { %7458 = vmatpush1.bf16.msk.msra.mxu0 %vm7457_vm13, %v15855_v13  ;;  %vm1793_vm7 = vmand %vm1381_vm8, %vm15977_vm0  ;;  %vm15981_vm8 = vcmp.eq.s32.totalorder %v8857_v30, %v9545_v2  ;;  %vm15985_vm13 = vcmp.eq.s32.totalorder %v8808_v15, %v9124_v62 }
 0x2e0   : > { %vm1795_vm9 = vmand %vm1383_vm3, %vm15978_vm14  ;;  %vm15984_vm3 = vcmp.eq.s32.totalorder %v8803_v12, %v15983_v16  ;;  %vm15988_vm14 = vcmp.eq.s32.totalorder %v8808_v15, %v9127_v63 }
 0x2e1   : > { %vm7459_vm5 = vmpackc.low %vm1795_vm9, %vm1793_vm7  ;;  %vm15987_vm7 = vcmp.eq.s32.totalorder %v8803_v12, %v15986_v18 }
 0x2e2   : > { %7460 = vmatprep.subr.msk.bf16.mxu0 %vm7459_vm5, %v15855_v13  ;;  %vm1792_vm2 = vmand %vm15980_vm11, %vm15979_vm12  ;;  %vm15989_vm12 = vcmp.eq.s32.totalorder %v8857_v30, %v15983_v16  ;;  %vm15990_vm11 = vcmp.eq.s32.totalorder %v8855_v29, %v9124_v62 }
 0x2e3   : > { %vm1794_vm4 = vmand %vm15982_vm6, %vm15981_vm8  ;;  %vm15991_vm8 = vcmp.eq.s32.totalorder %v8857_v30, %v15986_v18 }
 0x2e4   : > { %vm7461_vm10 = vmpackc.low %vm1794_vm4, %vm1792_vm2 }
 0x2e5   : > { %7462 = vmatpush1.bf16.msk.msra.mxu0 %vm7461_vm10, %v15855_v13  ;;  %vm1797_vm0 = vmand %vm15985_vm13, %vm15984_vm3  ;;  %vm15494_vm10 = vcmp.eq.s32.totalorder %v8808_v15, %v10165_v4  ;;  %vm15994_vm3 = vcmp.eq.s32.totalorder %v8803_v12, %v8837_v24 }
 0x2e6   : > { %vm1799_vm9 = vmand %vm15988_vm14, %vm15987_vm7 }
 0x2e7   : > { %vm7463_vm5 = vmpackc.low %vm1799_vm9, %vm1797_vm0  ;;  %vm15997_vm0 = vcmp.eq.s32.totalorder %v8803_v12, %v8850_v27  ;;  %vm15496_vm9 = vcmp.eq.s32.totalorder %v8855_v29, %v10162_v34 }
 0x2e8   : > { %7464 = vmatprep.subr.msk.bf16.mxu0 %vm7463_vm5, %v15855_v13  ;;  %vm1796_vm2 = vmand %vm15990_vm11, %vm15989_vm12  ;;  %vm16002_vm5 = vcmask 523264   ;;  %vm15497_vm12 = vcmp.eq.s32.totalorder %v8855_v29, %v10165_v4  ;;  %vm15499_vm11 = vcmp.eq.s32.totalorder %v8808_v15, %v10194_v11 }
 0x2e9   : > { %vm1798_vm6 = vmand %vm1386_vm1, %vm15991_vm8  ;;  %vm15495_vm1 = vcmp.eq.s32.totalorder %v8808_v15, %v10162_v34 }
 0x2ea   : > { %vm7465_vm4 = vmpackc.low %vm1798_vm6, %vm1796_vm2  ;;  %vm16003_vm2 = vcmp.eq.s32.totalorder %v8857_v30, %v8837_v24  ;;  %vm15492_vm6 = vcmp.eq.s32.totalorder %v8808_v15, %v10199_v44 }
 0x2eb   : > { %7466 = vmatpush1.bf16.msk.msra.mxu0 %vm7465_vm4, %v15855_v13  ;;  %vm10179_vm13 = vmand %vm15495_vm1, %vm15994_vm3  ;;  %vm16006_vm4 = vcmp.eq.s32.totalorder %v8857_v30, %v8850_v27 }
 0x2ec   : > { %8328 = vmatprep.subr.bf16.mxu0 %v15853_v8  ;;  %vm10189_vm7 = vmand %vm15494_vm10, %vm15997_vm0 }
 0x2ed   : > { %vm7470_vm14 = vmpackc.low %vm10189_vm7, %vm10179_vm13  ;;  %vm16009_vm13 = vcmp.eq.s32.totalorder %v8803_v12, %v8950_v42  ;;  %vm16012_vm7 = vcmp.eq.s32.totalorder %v8803_v12, %v8964_v43 }
 0x2ee   : > { %vm10224_vm8 = vmand %vm15496_vm9, %vm16003_vm2  ;;  %vm16013_vm2 = vcmask 523264  }
 0x2ef   : > { %vm10236_vm3 = vmand %vm15497_vm12, %vm16006_vm4  ;;  %vm16014_vm4 = vcmask 64512  }
 0x2f0   : > { %vm10246_vm0 = vmand %vm15499_vm11, %vm16009_vm13 }
 0x38e   : > { %v1511_v48 = vpop.f32.mrb[12].mxu1 }
 0x38f   : > { %v1518_v62 = vadd.f32 %v1511_v48, %v9911_v51  ;;  %v1513_v10 = vpop.f32.mrb[13].mxu1  ;;  %v7468_v51 = vld [vmem:[%s15813_s30 + $0x10] sm:$0x3] }
 0x390   : > { %v1519_v31 = vadd.f32 %v1513_v10, %v9913_v3  ;;  %v1515_v28 = vpop.f32.mrb[14].mxu1 }
 0x391   : > { %v1516_v63 = vpop.f32.mrb[15].mxu1 }
 0x392   : > { %v16026_v63 = vld [vmem:[#allocation39_spill] sm:$0xff] }
 0x396   : > { %v1643_v3 = vpop.f32.mrb[28].mxu0  ;;  %v1731_v6 = vpop.f32.mrb[16].mxu1 }
 0x397   : > { %v10196_v20 = vadd.f32 %v1643_v3, %v1518_v62  ;;  %v1737_v23 = vpack.c.bf16 %v1731_v6, %v1731_v6  ;;  %v1645_v26 = vpop.f32.mrb[29].mxu0  ;;  %v8314_v37 = vpop.f32.mrb[17].mxu1 }
 0x398   : > { %v10201_v54 = vadd.f32 %v1645_v26, %v1519_v31  ;;  %v1647_v9 = vpop.f32.mrb[30].mxu0  ;;  %v1734_v48 = vpop.f32.mrb[18].mxu1  ;;  %v7487_v37 = vld [vmem:[%s15813_s30 + $0x12] sm:$0x3]  ;;  %v16024_v31 = vld [vmem:[#allocation37_spill] sm:$0xff] }
 0x399   : > { %v1648_v62 = vpop.f32.mrb[31].mxu0  ;;  %7448 = vmatmul.mubr.msk.bf16.vlgmr.msra.gmra.mrb[20].mxu1 %vm16002_vm5, %v1737_v23  ;;  %v8315_v10 = vpop.f32.mrb[19].mxu1  ;;  %vm7472_vm5 = vmpackc.low %vm10236_vm3, %vm10224_vm8  ;;  %vm15491_vm3 = vcmp.eq.s32.totalorder %v8855_v29, %v10194_v11  ;;  %v16017_v9 = vld [vmem:[#allocation27_spill] sm:$0xff]  ;;  %v10335_v28 = vadd.s32 2, %v16024_v31 }
 0x39a   : > { %8323 = vmatpush3.bf16.msra.mxu1 %v8826_v21  ;;  %8324 = vmatprep.mubr.msk.bf16.mxu1 %vm15854_vm15, %v15853_v8  ;;  %vm16015_vm8 = vmmov %vm16014_vm4  ;;  %v10289_v48 = vadd.s32 2, %v16017_v9  ;;  %v16018_v62 = vld [vmem:[#allocation30_spill] sm:$0xff] }
 0x39b   : > { %7471 = vmatprep.subr.msk.bf16.mxu1 %vm7470_vm14, %v15855_v13  ;;  %vm1947_vm14 = vmand %vm15492_vm6, %vm16012_vm7  ;;  %vm16016_vm7 = vcmp.eq.s32.totalorder %v8857_v30, %v8950_v42  ;;  %v10292_v10 = vadd.s32 2, %v16018_v62  ;;  %vm16021_vm6 = vcmp.eq.s32.totalorder %v8803_v12, %v9082_v57 }
 0x39c   : > { %vm7474_vm13 = vmpackc.low %vm1947_vm14, %vm10246_vm0  ;;  %vm15516_vm0 = vcmp.eq.s32.totalorder %v8855_v29, %v10199_v44 }
 0x39d   : > { %vm1944_vm14 = vmand %vm15491_vm3, %vm16016_vm7  ;;  %vm16020_vm7 = vcmp.eq.s32.totalorder %v8803_v12, %v9068_v56 }
 0x39e   : > { %v1863_v32 = vpop.f32.mrb[32].mxu0 }
 0x39f   : > { %v1869_v3 = vpack.c.bf16 %v1863_v32, %v1863_v32  ;;  %v8320_v6 = vpop.f32.mrb[33].mxu0  ;;  %v10345_v32 = vadd.s32 2, %v16026_v63 }
 0x3a0   : > { %v1866_v23 = vpop.f32.mrb[34].mxu0 }
 0x3a1   : > { %v8321_v26 = vpop.f32.mrb[35].mxu0  ;;  %7467 = vmatmul.mubr.msk.bf16.vlgmr.msra.gmra.mrb[36].mxu0 %vm16013_vm2, %v1869_v3  ;;  %8325 = vmatmul.mubr.msk.bf16.vlgmr.msra.gmra.mrb[24].mxu1 %vm16014_vm4, %v7468_v51 }
 0x3a2   : > { %8329 = vmatpush3.bf16.msra.mxu0 %v8826_v21  ;;  %8330 = vmatprep.mubr.msk.bf16.mxu0 %vm15854_vm15, %v15853_v8 }
 0x3a3   : > { %7473 = vmatpush1.bf16.msk.msra.mxu1 %vm7472_vm5, %v15855_v13  ;;  %2061 = vmatprep.mubr.bf16.mxu1 %v15856_v35  ;;  %vm16019_vm5 = vcmp.eq.s32.totalorder %v8857_v30, %v8964_v43 }
 0x3a4   : > { %7475 = vmatprep.subr.msk.bf16.mxu1 %vm7474_vm13, %v15855_v13  ;;  %vm1946_vm2 = vmand %vm15516_vm0, %vm16019_vm5  ;;  %vm15493_vm13 = vcmp.eq.s32.totalorder %v8808_v15, %v10289_v48 }
 0x3a5   : > { %vm7476_vm4 = vmpackc.low %vm1946_vm2, %vm1944_vm14  ;;  %vm16022_vm2 = vcmp.eq.s32.totalorder %v8803_v12, %v8814_v17 }
 0x3a6   : > { %vm1949_vm3 = vmand %vm15493_vm13, %vm16020_vm7  ;;  %vm15501_vm7 = vcmp.eq.s32.totalorder %v8855_v29, %v10289_v48  ;;  %vm16023_vm13 = vcmp.eq.s32.totalorder %v8803_v12, %v8820_v19 }
 0x3a7   : > { %7477 = vmatpush1.bf16.msk.msra.mxu1 %vm7476_vm4, %v15855_v13  ;;  %vm2073_vm4 = vmand %vm15495_vm1, %vm16022_vm2  ;;  %vm16029_vm1 = vcmp.eq.s32.totalorder %v8857_v30, %v8820_v19 }
 0x3a9   : > { %8331 = vmatmul.mubr.msk.bf16.vlgmr.msra.gmra.mrb[40].mxu0 %vm16015_vm8, %v7487_v37  ;;  %vm1935_vm8 = vcmp.eq.s32.totalorder %v8808_v15, %v10292_v10 }
 0x3aa   : > { %2193 = vmatprep.mubr.bf16.mxu0 %v15856_v35  ;;  %vm1951_vm14 = vmand %vm1935_vm8, %vm16021_vm6 }
 0x3ab   : > { %vm7478_vm5 = vmpackc.low %vm1951_vm14, %vm1949_vm3  ;;  %vm1934_vm3 = vcmp.eq.s32.totalorder %v8855_v29, %v10292_v10 }
 0x3ac   : > { %7479 = vmatprep.subr.msk.bf16.mxu1 %vm7478_vm5, %v15855_v13  ;;  %vm2075_vm6 = vmand %vm15494_vm10, %vm16023_vm13  ;;  %vm16025_vm5 = vcmp.eq.s32.totalorder %v8857_v30, %v9068_v56  ;;  %vm16027_vm13 = vcmp.eq.s32.totalorder %v8857_v30, %v9082_v57  ;;  %vm15498_vm10 = vcmp.eq.s32.totalorder %v8808_v15, %v10335_v28 }
 0x3ad   : > { %vm7489_vm14 = vmpackc.low %vm2075_vm6, %vm2073_vm4 }
 0x3ae   : > { %7490 = vmatprep.subr.msk.bf16.mxu0 %vm7489_vm14, %v15855_v13  ;;  %vm1948_vm2 = vmand %vm15501_vm7, %vm16025_vm5  ;;  %vm16028_vm14 = vcmp.eq.s32.totalorder %v8857_v30, %v8814_v17 }
 0x3af   : > { %vm1950_vm4 = vmand %vm1934_vm3, %vm16027_vm13 }
 0x3b0   : > { %vm7480_vm6 = vmpackc.low %vm1950_vm4, %vm1948_vm2  ;;  %vm1939_vm2 = vcmp.eq.s32.totalorder %v8808_v15, %v10345_v32 }
 0x3b1   : > { %7481 = vmatpush1.bf16.msk.msra.mxu1 %vm7480_vm6, %v15855_v13  ;;  %vm2072_vm5 = vmand %vm15496_vm9, %vm16028_vm14  ;;  %vm16030_vm6 = vcmp.eq.s32.totalorder %v8803_v12, %v9180_v14  ;;  %vm16031_vm9 = vcmp.eq.s32.totalorder %v8803_v12, %v9194_v22 }
 0x3b2   : > { %vm2074_vm13 = vmand %vm15497_vm12, %vm16029_vm1 }
 0x3b3   : > { %vm7491_vm4 = vmpackc.low %vm2074_vm13, %vm2072_vm5  ;;  %vm16032_vm5 = vcmp.eq.s32.totalorder %v8803_v12, %v8915_v36 }
 0x3b4   : > { %7492 = vmatpush1.bf16.msk.msra.mxu0 %vm7491_vm4, %v15855_v13  ;;  %vm1953_vm14 = vmand %vm15498_vm10, %vm16030_vm6  ;;  %vm15500_vm4 = vcmp.eq.s32.totalorder %v8855_v29, %v10335_v28  ;;  %vm16033_vm6 = vcmp.eq.s32.totalorder %v8803_v12, %v8921_v38  ;;  %vm16034_vm10 = vcmp.eq.s32.totalorder %v8808_v15, %v10199_v44 }
 0x3b5   : > { %vm1955_vm1 = vmand %vm1939_vm2, %vm16031_vm9 }
 0x3b6   : > { %vm7482_vm12 = vmpackc.low %vm1955_vm1, %vm1953_vm14  ;;  %vm16035_vm1 = vcmp.eq.s32.totalorder %v8857_v30, %v9180_v14 }
 0x3b7   : > { %7483 = vmatprep.subr.msk.bf16.mxu1 %vm7482_vm12, %v15855_v13  ;;  %vm2077_vm13 = vmand %vm15499_vm11, %vm16032_vm5  ;;  %vm1938_vm12 = vcmp.eq.s32.totalorder %v8855_v29, %v10345_v32  ;;  %vm16036_vm11 = vcmp.eq.s32.totalorder %v8857_v30, %v9194_v22 }
 0x3b8   : > { %vm2079_vm9 = vmand %vm16034_vm10, %vm16033_vm6 }
 0x3b9   : > { %vm7493_vm14 = vmpackc.low %vm2079_vm9, %vm2077_vm13  ;;  %vm16037_vm13 = vcmp.eq.s32.totalorder %v8857_v30, %v8915_v36  ;;  %vm16038_vm9 = vcmp.eq.s32.totalorder %v8855_v29, %v10194_v11 }
 0x3ba   : > { %7494 = vmatprep.subr.msk.bf16.mxu0 %vm7493_vm14, %v15855_v13  ;;  %vm1952_vm5 = vmand %vm15500_vm4, %vm16035_vm1  ;;  %vm16039_vm1 = vcmp.eq.s32.totalorder %v8857_v30, %v8921_v38 }
 0x3bb   : > { %vm1954_vm10 = vmand %vm1938_vm12, %vm16036_vm11 }
 0x3bc   : > { %vm7484_vm6 = vmpackc.low %vm1954_vm10, %vm1952_vm5  ;;  %vm16040_vm5 = vcmp.eq.s32.totalorder %v8803_v12, %v9033_v50  ;;  %vm16041_vm10 = vcmp.eq.s32.totalorder %v8808_v15, %v10289_v48 }
 0x3bd   : > { %7485 = vmatpush1.bf16.msk.msra.mxu1 %vm7484_vm6, %v15855_v13  ;;  %vm2076_vm14 = vmand %vm16038_vm9, %vm16037_vm13  ;;  %vm16042_vm13 = vcmp.eq.s32.totalorder %v8803_v12, %v9039_v52 }
 0x3be   : > { %vm2078_vm4 = vmand %vm15516_vm0, %vm16039_vm1  ;;  %8334 = vmatprep.subr.bf16.mxu1 %v15853_v8 }
 0x3bf   : > { %vm7495_vm11 = vmpackc.low %vm2078_vm4, %vm2076_vm14  ;;  %vm16043_vm4 = vcmp.eq.s32.totalorder %v8857_v30, %v9033_v50 }
 0x3c0   : > { %7496 = vmatpush1.bf16.msk.msra.mxu0 %vm7495_vm11, %v15855_v13  ;;  %vm2081_vm6 = vmand %vm16041_vm10, %vm16040_vm5  ;;  %vm16044_vm11 = vcmp.eq.s32.totalorder %v8857_v30, %v9039_v52 }
 0x3c1   : > { %vm2083_vm9 = vmand %vm1935_vm8, %vm16042_vm13  ;;  %vm16046_vm13 = vcmp.eq.s32.totalorder %v8808_v15, %v10335_v28 }
 0x3c2   : > { %vm7497_vm1 = vmpackc.low %vm2083_vm9, %vm2081_vm6  ;;  %vm16045_vm6 = vcmp.eq.s32.totalorder %v8803_v12, %v9151_v0 }
 0x3c3   : > { %7498 = vmatprep.subr.msk.bf16.mxu0 %vm7497_vm1, %v15855_v13  ;;  %vm2080_vm14 = vmand %vm15501_vm7, %vm16043_vm4  ;;  %vm16047_vm1 = vcmp.eq.s32.totalorder %v8803_v12, %v9157_v5 }
 0x3c4   : > { %vm2082_vm5 = vmand %vm1934_vm3, %vm16044_vm11  ;;  %vm16049_vm11 = vcmp.eq.s32.totalorder %v8855_v29, %v10335_v28 }
 0x3c5   : > { %vm7499_vm10 = vmpackc.low %vm2082_vm5, %vm2080_vm14  ;;  %vm16048_vm14 = vcmp.eq.s32.totalorder %v8857_v30, %v9151_v0 }
 0x3c6   : > { %7500 = vmatpush1.bf16.msk.msra.mxu0 %vm7499_vm10, %v15855_v13  ;;  %vm2085_vm9 = vmand %vm16046_vm13, %vm16045_vm6  ;;  %vm16050_vm10 = vcmp.eq.s32.totalorder %v8857_v30, %v9157_v5  ;;  %v7506_v5 = vld [vmem:[%s15813_s30 + $0x14] sm:$0x3] }
 0x3c7   : > { %vm2087_vm4 = vmand %vm1939_vm2, %vm16047_vm1 }
 0x3c8   : > { %vm7501_vm7 = vmpackc.low %vm2087_vm4, %vm2085_vm9  ;;  %vm16052_vm9 = vcmp.eq.s32.totalorder %v8808_v15, %v10162_v34  ;;  %vm16055_vm4 = vcmp.eq.s32.totalorder %v8803_v12, %v9284_v53 }
 0x3c9   : > { %7502 = vmatprep.subr.msk.bf16.mxu0 %vm7501_vm7, %v15855_v13  ;;  %vm2084_vm5 = vmand %vm16049_vm11, %vm16048_vm14  ;;  %vm16051_vm7 = vcmp.eq.s32.totalorder %v8803_v12, %v9281_v55  ;;  %vm16056_vm14 = vcmp.eq.s32.totalorder %v8808_v15, %v10165_v4 }
 0x3ca   : > { %vm2086_vm6 = vmand %vm1938_vm12, %vm16050_vm10  ;;  %vm16059_vm10 = vcmask 523264  }
 0x3cb   : > { %vm7503_vm13 = vmpackc.low %vm2086_vm6, %vm2084_vm5  ;;  %vm16060_vm6 = vcmp.eq.s32.totalorder %v8857_v30, %v9281_v55 }
 0x3cc   : > { %7504 = vmatpush1.bf16.msk.msra.mxu0 %vm7503_vm13, %v15855_v13  ;;  %vm10489_vm1 = vmand %vm16052_vm9, %vm16051_vm7  ;;  %vm16061_vm13 = vcmp.eq.s32.totalorder %v8855_v29, %v10162_v34  ;;  %vm16064_vm9 = vcmp.eq.s32.totalorder %v8857_v30, %v9284_v53 }
 0x3cd   : > { %8340 = vmatprep.subr.bf16.mxu0 %v15853_v8  ;;  %vm10499_vm11 = vmand %vm16056_vm14, %vm16055_vm4  ;;  %vm16068_vm14 = vcmp.eq.s32.totalorder %v8803_v12, %v9304_v25 }
 0x3ce   : > { %vm7508_vm5 = vmpackc.low %vm10499_vm11, %vm10489_vm1  ;;  %vm16065_vm1 = vcmp.eq.s32.totalorder %v8855_v29, %v10165_v4  ;;  %vm16069_vm11 = vcmp.eq.s32.totalorder %v8808_v15, %v10194_v11 }
 0x3cf   : > { %vm10522_vm7 = vmand %vm16061_vm13, %vm16060_vm6  ;;  %vm16073_vm6 = vcmp.eq.s32.totalorder %v8808_v15, %v10199_v44 }
 0x3d0   : > { %vm10532_vm4 = vmand %vm16065_vm1, %vm16064_vm9  ;;  %vm16074_vm1 = vcmask 523264  }
 0x3d1   : > { %vm7510_vm9 = vmpackc.low %vm10532_vm4, %vm10522_vm7  ;;  %vm16077_vm4 = vcmp.eq.s32.totalorder %v8857_v30, %v9304_v25 }
 0x46c   : > { %v1775_v51 = vpop.f32.mrb[20].mxu1 }
 0x46d   : > { %v1782_v3 = vadd.f32 %v1775_v51, %v10196_v20  ;;  %v1777_v6 = vpop.f32.mrb[21].mxu1 }
 0x46e   : > { %v1783_v23 = vadd.f32 %v1777_v6, %v10201_v54  ;;  %v1779_v26 = vpop.f32.mrb[22].mxu1 }
 0x46f   : > { %v1780_v37 = vpop.f32.mrb[23].mxu1 }
 0x474   : > { %v1907_v54 = vpop.f32.mrb[36].mxu0  ;;  %v2019_v51 = vpop.f32.mrb[24].mxu1 }
 0x475   : > { %v10503_v6 = vadd.f32 %v1907_v54, %v1782_v3  ;;  %v2025_v26 = vpack.c.bf16 %v2019_v51, %v2019_v51  ;;  %v1909_v37 = vpop.f32.mrb[37].mxu0  ;;  %v8326_v0 = vpop.f32.mrb[25].mxu1  ;;  %v7525_v54 = vld [vmem:[%s15813_s30 + $0x16] sm:$0x3] }
 0x476   : > { %v10505_v52 = vadd.f32 %v1909_v37, %v1783_v23  ;;  %v1911_v50 = vpop.f32.mrb[38].mxu0  ;;  %v2022_v38 = vpop.f32.mrb[26].mxu1 }
 0x477   : > { %v1912_v36 = vpop.f32.mrb[39].mxu0  ;;  %7486 = vmatmul.mubr.msk.bf16.vlgmr.msra.gmra.mrb[28].mxu1 %vm16059_vm10, %v2025_v26  ;;  %v8327_v22 = vpop.f32.mrb[27].mxu1  ;;  %vm16072_vm10 = vcmp.eq.s32.totalorder %v8803_v12, %v9307_v1  ;;  %v10783_v50 = vadd.s32 3, %v16001_v40 }
 0x478   : > { %8335 = vmatpush3.bf16.msra.mxu1 %v8826_v21  ;;  %8336 = vmatprep.mubr.msk.bf16.mxu1 %vm15854_vm15, %v15853_v8  ;;  %vm2211_vm13 = vmand %vm16073_vm6, %vm16072_vm10  ;;  %vm16079_vm6 = vcmp.eq.s32.totalorder %v8857_v30, %v9307_v1 }
 0x479   : > { %7509 = vmatprep.subr.msk.bf16.mxu1 %vm7508_vm5, %v15855_v13  ;;  %vm10542_vm5 = vmand %vm16069_vm11, %vm16068_vm14  ;;  %vm16075_vm14 = vcmask 64512  }
 0x47a   : > { %vm7512_vm11 = vmpackc.low %vm2211_vm13, %vm10542_vm5  ;;  %vm16078_vm5 = vcmp.eq.s32.totalorder %v8855_v29, %v10194_v11 }
 0x47b   : > { %vm16076_vm7 = vmmov %vm16075_vm14 }
 0x47c   : > { %v2151_v0 = vpop.f32.mrb[40].mxu0  ;;  %vm2208_vm10 = vmand %vm16078_vm5, %vm16077_vm4 }
 0x47d   : > { %v2157_v22 = vpack.c.bf16 %v2151_v0, %v2151_v0  ;;  %v8332_v3 = vpop.f32.mrb[41].mxu0  ;;  %vm2210_vm13 = vmand %vm15516_vm0, %vm16079_vm6  ;;  %vm16084_vm6 = vcmp.eq.s32.totalorder %v8808_v15, %v10162_v34 }
 0x47e   : > { %v2154_v23 = vpop.f32.mrb[42].mxu0 }
 0x47f   : > { %v8333_v20 = vpop.f32.mrb[43].mxu0  ;;  %7505 = vmatmul.mubr.msk.bf16.vlgmr.msra.gmra.mrb[44].mxu0 %vm16074_vm1, %v2157_v22  ;;  %8337 = vmatmul.mubr.msk.bf16.vlgmr.msra.gmra.mrb[32].mxu1 %vm16075_vm14, %v7506_v5  ;;  %vm16080_vm1 = vcmp.eq.s32.totalorder %v8803_v12, %v9397_v39  ;;  %vm16081_vm14 = vcmp.eq.s32.totalorder %v8808_v15, %v10289_v48 }
 0x480   : > { %8341 = vmatpush3.bf16.msra.mxu0 %v8826_v21  ;;  %8342 = vmatprep.mubr.msk.bf16.mxu0 %vm15854_vm15, %v15853_v8 }
 0x481   : > { %7511 = vmatpush1.bf16.msk.msra.mxu1 %vm7510_vm9, %v15855_v13  ;;  %2325 = vmatprep.mubr.bf16.mxu1 %v15856_v35  ;;  %vm7514_vm9 = vmpackc.low %vm2210_vm13, %vm2208_vm10  ;;  %vm16083_vm10 = vcmp.eq.s32.totalorder %v8803_v12, %v9403_v45 }
 0x482   : > { %7513 = vmatprep.subr.msk.bf16.mxu1 %vm7512_vm11, %v15855_v13  ;;  %vm2213_vm11 = vmand %vm16081_vm14, %vm16080_vm1  ;;  %vm16086_vm1 = vcmp.eq.s32.totalorder %v8808_v15, %v10165_v4 }
 0x483   : > { %vm2337_vm13 = vmand %vm16084_vm6, %vm16083_vm10 }
 0x485   : > { %7515 = vmatpush1.bf16.msk.msra.mxu1 %vm7514_vm9, %v15855_v13  ;;  %vm16085_vm9 = vcmp.eq.s32.totalorder %v8803_v12, %v9406_v46 }
 0x486   : > { %vm2339_vm14 = vmand %vm16086_vm1, %vm16085_vm9  ;;  %vm16092_vm1 = vcmp.eq.s32.totalorder %v8857_v30, %v9406_v46 }
 0x487   : > { %8343 = vmatmul.mubr.msk.bf16.vlgmr.msra.gmra.mrb[48].mxu0 %vm16076_vm7, %v7525_v54  ;;  %vm16082_vm7 = vcmp.eq.s32.totalorder %v8803_v12, %v9400_v41  ;;  %vm7527_vm0 = vmpackc.low %vm2339_vm14, %vm2337_vm13  ;;  %vm16091_vm13 = vcmp.eq.s32.totalorder %v8855_v29, %v10162_v34  ;;  %vm16093_vm14 = vcmp.eq.s32.totalorder %v8855_v29, %v10165_v4  ;;  %v10746_v34 = vadd.s32 3, %v15992_v33 }
 0x488   : > { %2457 = vmatprep.mubr.bf16.mxu0 %v15856_v35  ;;  %vm2215_vm4 = vmand %vm1935_vm8, %vm16082_vm7  ;;  %7528 = vmatprep.subr.msk.bf16.mxu0 %vm7527_vm0, %v15855_v13  ;;  %vm16088_vm7 = vcmp.eq.s32.totalorder %v8855_v29, %v10289_v48  ;;  %vm16090_vm0 = vcmp.eq.s32.totalorder %v8857_v30, %v9403_v45 }
 0x489   : > { %vm7516_vm5 = vmpackc.low %vm2215_vm4, %vm2213_vm11  ;;  %vm16087_vm11 = vcmp.eq.s32.totalorder %v8857_v30, %v9397_v39 }
 0x48a   : > { %7517 = vmatprep.subr.msk.bf16.mxu1 %vm7516_vm5, %v15855_v13  ;;  %vm2212_vm4 = vmand %vm16088_vm7, %vm16087_vm11  ;;  %vm16089_vm5 = vcmp.eq.s32.totalorder %v8857_v30, %v9400_v41 }
 0x48b   : > { %vm2214_vm10 = vmand %vm1934_vm3, %vm16089_vm5  ;;  %vm16095_vm5 = vcmp.eq.s32.totalorder %v8808_v15, %v10335_v28 }
 0x48c   : > { %vm7518_vm6 = vmpackc.low %vm2214_vm10, %vm2212_vm4  ;;  %vm16094_vm4 = vcmp.eq.s32.totalorder %v8803_v12, %v9453_v47 }
 0x48d   : > { %7519 = vmatpush1.bf16.msk.msra.mxu1 %vm7518_vm6, %v15855_v13  ;;  %vm2336_vm9 = vmand %vm16091_vm13, %vm16090_vm0  ;;  %vm16096_vm6 = vcmp.eq.s32.totalorder %v8803_v12, %v9465_v58 }
 0x48e   : > { %vm2338_vm11 = vmand %vm16093_vm14, %vm16092_vm1  ;;  %vm16098_vm1 = vcmp.eq.s32.totalorder %v8808_v15, %v10194_v11 }
 0x48f   : > { %vm7529_vm7 = vmpackc.low %vm2338_vm11, %vm2336_vm9  ;;  %vm16097_vm9 = vcmp.eq.s32.totalorder %v8803_v12, %v9476_v59  ;;  %vm16099_vm11 = vcmp.eq.s32.totalorder %v8803_v12, %v9488_v60 }
 0x490   : > { %7530 = vmatpush1.bf16.msk.msra.mxu0 %vm7529_vm7, %v15855_v13  ;;  %vm2217_vm10 = vmand %vm16095_vm5, %vm16094_vm4  ;;  %vm16100_vm7 = vcmp.eq.s32.totalorder %v8808_v15, %v10199_v44 }
 0x491   : > { %vm2219_vm0 = vmand %vm1939_vm2, %vm16096_vm6  ;;  %vm16102_vm6 = vcmp.eq.s32.totalorder %v8855_v29, %v10335_v28 }
 0x492   : > { %vm7520_vm13 = vmpackc.low %vm2219_vm0, %vm2217_vm10  ;;  %vm16101_vm10 = vcmp.eq.s32.totalorder %v8857_v30, %v9453_v47 }
 0x493   : > { %7521 = vmatprep.subr.msk.bf16.mxu1 %vm7520_vm13, %v15855_v13  ;;  %vm2341_vm14 = vmand %vm16098_vm1, %vm16097_vm9  ;;  %vm16103_vm13 = vcmp.eq.s32.totalorder %v8857_v30, %v9465_v58 }
 0x494   : > { %vm2343_vm4 = vmand %vm16100_vm7, %vm16099_vm11  ;;  %vm16105_vm11 = vcmp.eq.s32.totalorder %v8855_v29, %v10194_v11  ;;  %v10749_v11 = vadd.s32 3, %v15993_v49 }
 0x495   : > { %vm7531_vm5 = vmpackc.low %vm2343_vm4, %vm2341_vm14  ;;  %vm16104_vm14 = vcmp.eq.s32.totalorder %v8857_v30, %v9476_v59  ;;  %vm16106_vm4 = vcmp.eq.s32.totalorder %v8857_v30, %v9488_v60 }
 0x496   : > { %7532 = vmatprep.subr.msk.bf16.mxu0 %vm7531_vm5, %v15855_v13  ;;  %vm2216_vm0 = vmand %vm16102_vm6, %vm16101_vm10  ;;  %vm16107_vm5 = vcmp.eq.s32.totalorder %v8855_v29, %v10199_v44 }
 0x497   : > { %vm2218_vm9 = vmand %vm1938_vm12, %vm16103_vm13  ;;  %vm16109_vm13 = vcmp.eq.s32.totalorder %v8808_v15, %v10289_v48 }
 0x498   : > { %vm7522_vm1 = vmpackc.low %vm2218_vm9, %vm2216_vm0  ;;  %vm16108_vm0 = vcmp.eq.s32.totalorder %v8803_v12, %v9533_v61 }
 0x499   : > { %7523 = vmatpush1.bf16.msk.msra.mxu1 %vm7522_vm1, %v15855_v13  ;;  %vm2340_vm7 = vmand %vm16105_vm11, %vm16104_vm14  ;;  %vm16110_vm1 = vcmp.eq.s32.totalorder %v8803_v12, %v9545_v2 }
 0x49a   : > { %vm2342_vm10 = vmand %vm16107_vm5, %vm16106_vm4  ;;  %8346 = vmatprep.subr.bf16.mxu1 %v15853_v8  ;;  %vm16112_vm4 = vcmp.eq.s32.totalorder %v8855_v29, %v10289_v48 }
 0x49b   : > { %vm7533_vm6 = vmpackc.low %vm2342_vm10, %vm2340_vm7  ;;  %vm16111_vm7 = vcmp.eq.s32.totalorder %v8857_v30, %v9533_v61  ;;  %vm16113_vm10 = vcmp.eq.s32.totalorder %v8857_v30, %v9545_v2 }
 0x49c   : > { %7534 = vmatpush1.bf16.msk.msra.mxu0 %vm7533_vm6, %v15855_v13  ;;  %vm2345_vm9 = vmand %vm16109_vm13, %vm16108_vm0  ;;  %vm16115_vm13 = vcmp.eq.s32.totalorder %v8808_v15, %v10335_v28 }
 0x49d   : > { %vm2347_vm14 = vmand %vm1935_vm8, %vm16110_vm1  ;;  %vm16114_vm8 = vcmp.eq.s32.totalorder %v8803_v12, %v15983_v16  ;;  %vm16116_vm1 = vcmp.eq.s32.totalorder %v8803_v12, %v15986_v18 }
 0x49e   : > { %vm7535_vm11 = vmpackc.low %vm2347_vm14, %vm2345_vm9 }
 0x49f   : > { %7536 = vmatprep.subr.msk.bf16.mxu0 %vm7535_vm11, %v15855_v13  ;;  %vm2344_vm5 = vmand %vm16112_vm4, %vm16111_vm7  ;;  %vm16118_vm7 = vcmp.eq.s32.totalorder %v8855_v29, %v10335_v28 }
 0x4a0   : > { %vm2346_vm6 = vmand %vm1934_vm3, %vm16113_vm10  ;;  %vm16117_vm3 = vcmp.eq.s32.totalorder %v8857_v30, %v15983_v16 }
 0x4a1   : > { %vm7537_vm0 = vmpackc.low %vm2346_vm6, %vm2344_vm5  ;;  %vm16119_vm5 = vcmp.eq.s32.totalorder %v8857_v30, %v15986_v18 }
 0x4a2   : > { %7538 = vmatpush1.bf16.msk.msra.mxu0 %vm7537_vm0, %v15855_v13  ;;  %vm2349_vm9 = vmand %vm16115_vm13, %vm16114_vm8  ;;  %vm16120_vm0 = vcmp.eq.s32.totalorder %v8803_v12, %v8837_v24  ;;  %vm16123_vm13 = vcmp.eq.s32.totalorder %v8803_v12, %v8850_v27 }
 0x4a3   : > { %vm2351_vm14 = vmand %vm1939_vm2, %vm16116_vm1  ;;  %vm15521_vm2 = vcmp.eq.s32.totalorder %v8808_v15, %v10746_v34 }
 0x4a4   : > { %vm7539_vm11 = vmpackc.low %vm2351_vm14, %vm2349_vm9  ;;  %vm15522_vm14 = vcmp.eq.s32.totalorder %v8855_v29, %v10746_v34 }
 0x4a5   : > { %7540 = vmatprep.subr.msk.bf16.mxu0 %vm7539_vm11, %v15855_v13  ;;  %vm2348_vm4 = vmand %vm16118_vm7, %vm16117_vm3  ;;  %vm16126_vm11 = vcmask 523264   ;;  %vm15523_vm3 = vcmp.eq.s32.totalorder %v8855_v29, %v10749_v11 }
 0x4a6   : > { %vm2350_vm10 = vmand %vm1938_vm12, %vm16119_vm5  ;;  %vm15520_vm12 = vcmp.eq.s32.totalorder %v8808_v15, %v10749_v11 }
 0x4a7   : > { %vm7541_vm6 = vmpackc.low %vm2350_vm10, %vm2348_vm4  ;;  %vm16127_vm4 = vcmp.eq.s32.totalorder %v8857_v30, %v8837_v24  ;;  %vm15518_vm10 = vcmp.eq.s32.totalorder %v8808_v15, %v10783_v50 }
 0x4a8   : > { %7542 = vmatpush1.bf16.msk.msra.mxu0 %vm7541_vm6, %v15855_v13  ;;  %vm10763_vm8 = vmand %vm15521_vm2, %vm16120_vm0  ;;  %vm16130_vm6 = vcmp.eq.s32.totalorder %v8857_v30, %v8850_v27  ;;  %v7544_v27 = vld [vmem:[%s15813_s30 + $0x18] sm:$0x3] }
 0x4a9   : > { %8352 = vmatprep.subr.bf16.mxu0 %v15853_v8  ;;  %vm10773_vm9 = vmand %vm15520_vm12, %vm16123_vm13 }
 0x4aa   : > { %vm7546_vm1 = vmpackc.low %vm10773_vm9, %vm10763_vm8  ;;  %vm16133_vm8 = vcmp.eq.s32.totalorder %v8803_v12, %v8950_v42  ;;  %vm16136_vm9 = vcmp.eq.s32.totalorder %v8803_v12, %v8964_v43 }
 0x4ab   : > { %vm10808_vm5 = vmand %vm15522_vm14, %vm16127_vm4  ;;  %vm16137_vm4 = vcmask 523264  }
 0x4ac   : > { %vm10820_vm0 = vmand %vm15523_vm3, %vm16130_vm6  ;;  %vm16138_vm6 = vcmask 64512  }
 0x54a   : > { %v2063_v4 = vpop.f32.mrb[28].mxu1 }
 0x54b   : > { %v2070_v44 = vadd.f32 %v2063_v4, %v10503_v6  ;;  %v2065_v48 = vpop.f32.mrb[29].mxu1  ;;  %v10778_v6 = vadd.s32 3, %v16000_v7 }
 0x54c   : > { %v2071_v10 = vadd.f32 %v2065_v48, %v10505_v52  ;;  %v2067_v28 = vpop.f32.mrb[30].mxu1 }
 0x54d   : > { %v2068_v32 = vpop.f32.mrb[31].mxu1  ;;  %vm15525_vm7 = vcmp.eq.s32.totalorder %v8808_v15, %v10778_v6  ;;  %v10873_v28 = vadd.s32 3, %v16017_v9  ;;  %v16170_v9 = vld [vmem:[#allocation36_spill] sm:$0xff] }
 0x54e   : > { %vm10830_vm13 = vmand %vm15525_vm7, %vm16133_vm8  ;;  %v10876_v32 = vadd.s32 3, %v16018_v62  ;;  %v16173_v62 = vld [vmem:[#allocation38_spill] sm:$0xff] }
 0x552   : > { %v2195_v49 = vpop.f32.mrb[44].mxu0  ;;  %v2283_v51 = vpop.f32.mrb[32].mxu1 }
 0x553   : > { %v10780_v26 = vadd.f32 %v2195_v49, %v2070_v44  ;;  %v2289_v37 = vpack.c.bf16 %v2283_v51, %v2283_v51  ;;  %v2197_v38 = vpop.f32.mrb[45].mxu0  ;;  %v8338_v36 = vpop.f32.mrb[33].mxu1 }
 0x554   : > { %v10785_v0 = vadd.f32 %v2197_v38, %v2071_v10  ;;  %v2199_v5 = vpop.f32.mrb[46].mxu0  ;;  %v2286_v22 = vpop.f32.mrb[34].mxu1  ;;  %v7563_v10 = vld [vmem:[%s15813_s30 + $0x1a] sm:$0x3] }
 0x555   : > { %v2200_v7 = vpop.f32.mrb[47].mxu0  ;;  %7524 = vmatmul.mubr.msk.bf16.vlgmr.msra.gmra.mrb[36].mxu1 %vm16126_vm11, %v2289_v37  ;;  %v8339_v3 = vpop.f32.mrb[35].mxu1  ;;  %vm7548_vm11 = vmpackc.low %vm10820_vm0, %vm10808_vm5  ;;  %vm15517_vm0 = vcmp.eq.s32.totalorder %v8855_v29, %v10778_v6 }
 0x556   : > { %8347 = vmatpush3.bf16.msra.mxu1 %v8826_v21  ;;  %8348 = vmatprep.mubr.msk.bf16.mxu1 %vm15854_vm15, %v15853_v8  ;;  %vm16139_vm5 = vmmov %vm16138_vm6 }
 0x557   : > { %7547 = vmatprep.subr.msk.bf16.mxu1 %vm7546_vm1, %v15855_v13  ;;  %vm2499_vm1 = vmand %vm15518_vm10, %vm16136_vm9  ;;  %vm16140_vm9 = vcmp.eq.s32.totalorder %v8857_v30, %v8950_v42  ;;  %vm16143_vm10 = vcmp.eq.s32.totalorder %v8803_v12, %v9082_v57  ;;  %v10919_v42 = vadd.s32 3, %v16024_v31 }
 0x558   : > { %vm7550_vm8 = vmpackc.low %vm2499_vm1, %vm10830_vm13  ;;  %vm15528_vm13 = vcmp.eq.s32.totalorder %v8855_v29, %v10783_v50 }
 0x559   : > { %vm2496_vm1 = vmand %vm15517_vm0, %vm16140_vm9  ;;  %vm16142_vm9 = vcmp.eq.s32.totalorder %v8803_v12, %v9068_v56 }
 0x55a   : > { %v2415_v20 = vpop.f32.mrb[48].mxu0 }
 0x55b   : > { %v2421_v54 = vpack.c.bf16 %v2415_v20, %v2415_v20  ;;  %v8344_v4 = vpop.f32.mrb[49].mxu0 }
 0x55c   : > { %v2418_v44 = vpop.f32.mrb[50].mxu0 }
 0x55d   : > { %v8345_v48 = vpop.f32.mrb[51].mxu0  ;;  %7543 = vmatmul.mubr.msk.bf16.vlgmr.msra.gmra.mrb[52].mxu0 %vm16137_vm4, %v2421_v54  ;;  %8349 = vmatmul.mubr.msk.bf16.vlgmr.msra.gmra.mrb[40].mxu1 %vm16138_vm6, %v7544_v27  ;;  %v3029_v27 = vld [vmem:[%s16251_s0] sm:$0xf] }
 0x55e   : > { %8353 = vmatpush3.bf16.msra.mxu0 %v8826_v21  ;;  %8354 = vmatprep.mubr.msk.bf16.mxu0 %vm15854_vm15, %v15853_v8 }
 0x55f   : > { %7549 = vmatpush1.bf16.msk.msra.mxu1 %vm7548_vm11, %v15855_v13  ;;  %2613 = vmatprep.mubr.bf16.mxu1 %v15856_v35  ;;  %vm16141_vm11 = vcmp.eq.s32.totalorder %v8857_v30, %v8964_v43  ;;  %v10929_v43 = vadd.s32 3, %v16026_v63 }
 0x560   : > { %7551 = vmatprep.subr.msk.bf16.mxu1 %vm7550_vm8, %v15855_v13  ;;  %vm2498_vm4 = vmand %vm15528_vm13, %vm16141_vm11  ;;  %vm15519_vm8 = vcmp.eq.s32.totalorder %v8808_v15, %v10873_v28 }
 0x561   : > { %vm7552_vm6 = vmpackc.low %vm2498_vm4, %vm2496_vm1  ;;  %vm16144_vm4 = vcmp.eq.s32.totalorder %v8803_v12, %v8814_v17 }
 0x562   : > { %vm2501_vm0 = vmand %vm15519_vm8, %vm16142_vm9  ;;  %vm15527_vm9 = vcmp.eq.s32.totalorder %v8855_v29, %v10873_v28  ;;  %vm16145_vm8 = vcmp.eq.s32.totalorder %v8803_v12, %v8820_v19 }
 0x563   : > { %7553 = vmatpush1.bf16.msk.msra.mxu1 %vm7552_vm6, %v15855_v13  ;;  %vm2625_vm6 = vmand %vm15521_vm2, %vm16144_vm4  ;;  %vm16149_vm2 = vcmp.eq.s32.totalorder %v8857_v30, %v8820_v19  ;;  %v16153_v19 = vld [vmem:[#allocation16_spill] sm:$0xff] }
 0x565   : > { %8355 = vmatmul.mubr.msk.bf16.vlgmr.msra.gmra.mrb[56].mxu0 %vm16139_vm5, %v7563_v10  ;;  %vm2487_vm5 = vcmp.eq.s32.totalorder %v8808_v15, %v10876_v32 }
 0x566   : > { %2745 = vmatprep.mubr.bf16.mxu0 %v15856_v35  ;;  %vm2503_vm1 = vmand %vm2487_vm5, %vm16143_vm10 }
 0x567   : > { %vm7554_vm11 = vmpackc.low %vm2503_vm1, %vm2501_vm0  ;;  %vm2486_vm0 = vcmp.eq.s32.totalorder %v8855_v29, %v10876_v32 }
 0x568   : > { %7555 = vmatprep.subr.msk.bf16.mxu1 %vm7554_vm11, %v15855_v13  ;;  %vm2627_vm10 = vmand %vm15520_vm12, %vm16145_vm8  ;;  %vm16146_vm11 = vcmp.eq.s32.totalorder %v8857_v30, %v9068_v56  ;;  %vm16147_vm8 = vcmp.eq.s32.totalorder %v8857_v30, %v9082_v57  ;;  %vm15524_vm12 = vcmp.eq.s32.totalorder %v8808_v15, %v10919_v42  ;;  %v16155_v56 = vld [vmem:[#allocation18_spill] sm:$0xff] }
 0x569   : > { %vm7565_vm1 = vmpackc.low %vm2627_vm10, %vm2625_vm6  ;;  %v16163_v57 = vld [vmem:[#allocation26_spill] sm:$0xff] }
 0x56a   : > { %7566 = vmatprep.subr.msk.bf16.mxu0 %vm7565_vm1, %v15855_v13  ;;  %vm2500_vm4 = vmand %vm15527_vm9, %vm16146_vm11  ;;  %vm16148_vm1 = vcmp.eq.s32.totalorder %v8857_v30, %v8814_v17  ;;  %v16151_v17 = vld [vmem:[#allocation40_spill] sm:$0xff] }
 0x56b   : > { %vm2502_vm6 = vmand %vm2486_vm0, %vm16147_vm8 }
 0x56c   : > { %vm7556_vm10 = vmpackc.low %vm2502_vm6, %vm2500_vm4  ;;  %vm2491_vm4 = vcmp.eq.s32.totalorder %v8808_v15, %v10929_v43 }
 0x56d   : > { %7557 = vmatpush1.bf16.msk.msra.mxu1 %vm7556_vm10, %v15855_v13  ;;  %vm2624_vm11 = vmand %vm15522_vm14, %vm16148_vm1  ;;  %vm16150_vm10 = vcmp.eq.s32.totalorder %v8803_v12, %v9180_v14  ;;  %vm16152_vm14 = vcmp.eq.s32.totalorder %v8803_v12, %v16151_v17 }
 0x56e   : > { %vm2626_vm8 = vmand %vm15523_vm3, %vm16149_vm2 }
 0x56f   : > { %vm7567_vm6 = vmpackc.low %vm2626_vm8, %vm2624_vm11  ;;  %vm16154_vm11 = vcmp.eq.s32.totalorder %v8803_v12, %v16153_v19 }
 0x570   : > { %7568 = vmatpush1.bf16.msk.msra.mxu0 %vm7567_vm6, %v15855_v13  ;;  %vm2505_vm1 = vmand %vm15524_vm12, %vm16150_vm10  ;;  %vm15526_vm6 = vcmp.eq.s32.totalorder %v8855_v29, %v10919_v42  ;;  %vm16156_vm10 = vcmp.eq.s32.totalorder %v8803_v12, %v16155_v56  ;;  %vm16157_vm12 = vcmp.eq.s32.totalorder %v8808_v15, %v10783_v50 }
 0x571   : > { %vm2507_vm2 = vmand %vm2491_vm4, %vm16152_vm14 }
 0x572   : > { %vm7558_vm3 = vmpackc.low %vm2507_vm2, %vm2505_vm1  ;;  %vm16158_vm2 = vcmp.eq.s32.totalorder %v8857_v30, %v9180_v14  ;;  %v16166_v14 = vld [vmem:[#allocation28_spill] sm:$0xff] }
 0x573   : > { %7559 = vmatprep.subr.msk.bf16.mxu1 %vm7558_vm3, %v15855_v13  ;;  %vm2629_vm8 = vmand %vm15525_vm7, %vm16154_vm11  ;;  %vm2490_vm3 = vcmp.eq.s32.totalorder %v8855_v29, %v10929_v43  ;;  %vm16159_vm7 = vcmp.eq.s32.totalorder %v8857_v30, %v16151_v17 }
 0x574   : > { %vm2631_vm14 = vmand %vm16157_vm12, %vm16156_vm10 }
 0x575   : > { %vm7569_vm1 = vmpackc.low %vm2631_vm14, %vm2629_vm8  ;;  %vm16160_vm8 = vcmp.eq.s32.totalorder %v8857_v30, %v16153_v19  ;;  %vm16161_vm14 = vcmp.eq.s32.totalorder %v8855_v29, %v10778_v6  ;;  %v7601_v19 = vld [vmem:[%s15813_s30 + $0x1e] sm:$0x3] }
 0x576   : > { %7570 = vmatprep.subr.msk.bf16.mxu0 %vm7569_vm1, %v15855_v13  ;;  %vm2504_vm11 = vmand %vm15526_vm6, %vm16158_vm2  ;;  %vm16162_vm2 = vcmp.eq.s32.totalorder %v8857_v30, %v16155_v56 }
 0x577   : > { %vm2506_vm12 = vmand %vm2490_vm3, %vm16159_vm7 }
 0x578   : > { %vm7560_vm10 = vmpackc.low %vm2506_vm12, %vm2504_vm11  ;;  %vm16164_vm11 = vcmp.eq.s32.totalorder %v8803_v12, %v16163_v57  ;;  %vm16165_vm12 = vcmp.eq.s32.totalorder %v8808_v15, %v10873_v28 }
 0x579   : > { %7561 = vmatpush1.bf16.msk.msra.mxu1 %vm7560_vm10, %v15855_v13  ;;  %vm2628_vm1 = vmand %vm16161_vm14, %vm16160_vm8  ;;  %vm16167_vm8 = vcmp.eq.s32.totalorder %v8803_v12, %v16166_v14 }
 0x57a   : > { %vm2630_vm6 = vmand %vm15528_vm13, %vm16162_vm2  ;;  %8358 = vmatprep.subr.bf16.mxu1 %v15853_v8 }
 0x57b   : > { %vm7571_vm7 = vmpackc.low %vm2630_vm6, %vm2628_vm1  ;;  %vm16168_vm6 = vcmp.eq.s32.totalorder %v8857_v30, %v16163_v57 }
 0x57c   : > { %7572 = vmatpush1.bf16.msk.msra.mxu0 %vm7571_vm7, %v15855_v13  ;;  %vm2633_vm10 = vmand %vm16165_vm12, %vm16164_vm11  ;;  %vm16169_vm7 = vcmp.eq.s32.totalorder %v8857_v30, %v16166_v14 }
 0x57d   : > { %vm2635_vm14 = vmand %vm2487_vm5, %vm16167_vm8  ;;  %vm16172_vm8 = vcmp.eq.s32.totalorder %v8808_v15, %v10919_v42 }
 0x57e   : > { %vm7573_vm2 = vmpackc.low %vm2635_vm14, %vm2633_vm10  ;;  %vm16171_vm10 = vcmp.eq.s32.totalorder %v8803_v12, %v16170_v9 }
 0x57f   : > { %7574 = vmatprep.subr.msk.bf16.mxu0 %vm7573_vm2, %v15855_v13  ;;  %vm2632_vm1 = vmand %vm15527_vm9, %vm16168_vm6  ;;  %vm16174_vm2 = vcmp.eq.s32.totalorder %v8803_v12, %v16173_v62 }
 0x580   : > { %vm2634_vm11 = vmand %vm2486_vm0, %vm16169_vm7  ;;  %vm16176_vm7 = vcmp.eq.s32.totalorder %v8855_v29, %v10919_v42 }
 0x581   : > { %vm7575_vm12 = vmpackc.low %vm2634_vm11, %vm2632_vm1  ;;  %vm16175_vm1 = vcmp.eq.s32.totalorder %v8857_v30, %v16170_v9 }
 0x582   : > { %7576 = vmatpush1.bf16.msk.msra.mxu0 %vm7575_vm12, %v15855_v13  ;;  %vm2637_vm14 = vmand %vm16172_vm8, %vm16171_vm10  ;;  %vm16177_vm12 = vcmp.eq.s32.totalorder %v8857_v30, %v16173_v62 }
 0x583   : > { %vm2639_vm6 = vmand %vm2491_vm4, %vm16174_vm2 }
 0x584   : > { %vm7577_vm9 = vmpackc.low %vm2639_vm6, %vm2637_vm14  ;;  %vm16179_vm14 = vcmp.eq.s32.totalorder %v8808_v15, %v10746_v34  ;;  %vm16182_vm6 = vcmp.eq.s32.totalorder %v8803_v12, %v9284_v53 }
 0x585   : > { %7578 = vmatprep.subr.msk.bf16.mxu0 %vm7577_vm9, %v15855_v13  ;;  %vm2636_vm11 = vmand %vm16176_vm7, %vm16175_vm1  ;;  %vm16178_vm9 = vcmp.eq.s32.totalorder %v8803_v12, %v9281_v55  ;;  %vm16183_vm1 = vcmp.eq.s32.totalorder %v8808_v15, %v10749_v11 }
 0x586   : > { %vm2638_vm10 = vmand %vm2490_vm3, %vm16177_vm12  ;;  %vm16186_vm12 = vcmask 523264  }
 0x587   : > { %vm7579_vm8 = vmpackc.low %vm2638_vm10, %vm2636_vm11  ;;  %vm16187_vm10 = vcmp.eq.s32.totalorder %v8857_v30, %v9281_v55  ;;  %v3028_v55 = vld [vmem:[%s16252_s22] sm:$0xf] }
 0x588   : > { %7580 = vmatpush1.bf16.msk.msra.mxu0 %vm7579_vm8, %v15855_v13  ;;  %vm11073_vm2 = vmand %vm16179_vm14, %vm16178_vm9  ;;  %vm16188_vm8 = vcmp.eq.s32.totalorder %v8855_v29, %v10746_v34  ;;  %vm16191_vm14 = vcmp.eq.s32.totalorder %v8857_v30, %v9284_v53  ;;  %v7582_v53 = vld [vmem:[%s15813_s30 + $0x1c] sm:$0x3] }
 0x589   : > { %8364 = vmatprep.subr.bf16.mxu0 %v15853_v8  ;;  %vm11083_vm7 = vmand %vm16183_vm1, %vm16182_vm6  ;;  %vm16195_vm1 = vcmp.eq.s32.totalorder %v8803_v12, %v9304_v25 }
 0x58a   : > { %vm7584_vm11 = vmpackc.low %vm11083_vm7, %vm11073_vm2  ;;  %vm16192_vm2 = vcmp.eq.s32.totalorder %v8855_v29, %v10749_v11  ;;  %vm16196_vm7 = vcmp.eq.s32.totalorder %v8808_v15, %v10778_v6 }
 0x58b   : > { %vm11106_vm9 = vmand %vm16188_vm8, %vm16187_vm10  ;;  %vm16200_vm10 = vcmp.eq.s32.totalorder %v8808_v15, %v10783_v50 }
 0x58c   : > { %vm11116_vm6 = vmand %vm16192_vm2, %vm16191_vm14  ;;  %vm16201_vm2 = vcmask 523264  }
 0x58d   : > { %vm7586_vm14 = vmpackc.low %vm11116_vm6, %vm11106_vm9  ;;  %vm16204_vm6 = vcmp.eq.s32.totalorder %v8857_v30, %v9304_v25  ;;  %v3253_v25 = vld [vmem:[%s15313_s12] sm:$0xf] }
 0x628   : > { %v2327_v31 = vpop.f32.mrb[36].mxu1 }
 0x629   : > { %v2334_v63 = vadd.f32 %v2327_v31, %v10780_v26  ;;  %v2329_v33 = vpop.f32.mrb[37].mxu1 }
 0x62a   : > { %v2335_v52 = vadd.f32 %v2329_v33, %v10785_v0  ;;  %v2331_v49 = vpop.f32.mrb[38].mxu1 }
 0x62b   : > { %v2332_v51 = vpop.f32.mrb[39].mxu1 }
 0x630   : > { %v2459_v38 = vpop.f32.mrb[52].mxu0  ;;  %v2571_v36 = vpop.f32.mrb[40].mxu1 }
 0x631   : > { %v11087_v0 = vadd.f32 %v2459_v38, %v2334_v63  ;;  %v2577_v5 = vpack.c.bf16 %v2571_v36, %v2571_v36  ;;  %v2461_v22 = vpop.f32.mrb[53].mxu0  ;;  %v8350_v7 = vpop.f32.mrb[41].mxu1 }
 0x632   : > { %v11089_v3 = vadd.f32 %v2461_v22, %v2335_v52  ;;  %v2463_v40 = vpop.f32.mrb[54].mxu0  ;;  %v2574_v23 = vpop.f32.mrb[42].mxu1  ;;  %v677_v52 = vld [vmem:[%s668_s28] sm:$0xff] }
 0x633   : > { %v2464_v24 = vpop.f32.mrb[55].mxu0  ;;  %7562 = vmatmul.mubr.msk.bf16.vlgmr.msra.gmra.mrb[44].mxu1 %vm16186_vm12, %v2577_v5  ;;  %v8351_v20 = vpop.f32.mrb[43].mxu1  ;;  %vm16199_vm12 = vcmp.eq.s32.totalorder %v8803_v12, %v9307_v1 }
 0x634   : > { %8359 = vmatpush3.bf16.msra.mxu1 %v8826_v21  ;;  %8360 = vmatprep.mubr.msk.bf16.mxu1 %vm15854_vm15, %v15853_v8  ;;  %vm2763_vm8 = vmand %vm16200_vm10, %vm16199_vm12  ;;  %vm16206_vm10 = vcmp.eq.s32.totalorder %v8857_v30, %v9307_v1  ;;  %v3020_v1 = vld [vmem:[%s16230_s4] sm:$0xf]  ;;  %v681_v24 = vpack.c.bf16 %v677_v52, %v677_v52  ;;  %s673_s4 = scalar_lea.vmem %s15322_s21, %s8201_s26 }
 0x635   : > { %7585 = vmatprep.subr.msk.bf16.mxu1 %vm7584_vm11, %v15855_v13  ;;  %vm11126_vm11 = vmand %vm16196_vm7, %vm16195_vm1  ;;  %vm16202_vm1 = vcmask 64512   ;;  %3023 = vperm.xlu0 %8502, %v3020_v1  }
 0x636   : > { %vm7588_vm7 = vmpackc.low %vm2763_vm8, %vm11126_vm11  ;;  %vm16205_vm11 = vcmp.eq.s32.totalorder %v8855_v29, %v10778_v6 }
 0x637   : > { %vm16203_vm9 = vmmov %vm16202_vm1 }
 0x638   : > { %v2703_v4 = vpop.f32.mrb[56].mxu0  ;;  %vm2760_vm12 = vmand %vm16205_vm11, %vm16204_vm6 }
 0x639   : > { %v2709_v44 = vpack.c.bf16 %v2703_v4, %v2703_v4  ;;  %v8356_v48 = vpop.f32.mrb[57].mxu0  ;;  %vm2762_vm8 = vmand %vm15528_vm13, %vm16206_vm10  ;;  %vm16211_vm10 = vcmp.eq.s32.totalorder %v8808_v15, %v10746_v34  ;;  %v3145_v4 = vld [vmem:[%s15309_s8] sm:$0xf] }
 0x63a   : > { %v2706_v10 = vpop.f32.mrb[58].mxu0  ;;  %3148 = vperm.xlu1 %8503, %v3145_v4  }
 0x63b   : > { %v8357_v17 = vpop.f32.mrb[59].mxu0  ;;  %7581 = vmatmul.mubr.msk.bf16.vlgmr.msra.gmra.mrb[60].mxu0 %vm16201_vm2, %v2709_v44  ;;  %8361 = vmatmul.mubr.msk.bf16.vlgmr.msra.gmra.mrb[48].mxu1 %vm16202_vm1, %v7582_v53  ;;  %vm16207_vm2 = vcmp.eq.s32.totalorder %v8803_v12, %v9397_v39  ;;  %vm16208_vm1 = vcmp.eq.s32.totalorder %v8808_v15, %v10873_v28  ;;  %v3202_v53 = vld [vmem:[%s15311_s10] sm:$0xf] }
 0x63c   : > { %8365 = vmatpush3.bf16.msra.mxu0 %v8826_v21  ;;  %8366 = vmatprep.mubr.msk.bf16.mxu0 %vm15854_vm15, %v15853_v8  ;;  %v3134_v21 = vld [vmem:[%s15307_s6] sm:$0xff] }
 0x63d   : > { %7587 = vmatpush1.bf16.msk.msra.mxu1 %vm7586_vm14, %v15855_v13  ;;  %2877 = vmatprep.mubr.bf16.mxu1 %v15856_v35  ;;  %vm7590_vm14 = vmpackc.low %vm2762_vm8, %vm2760_vm12  ;;  %vm16210_vm12 = vcmp.eq.s32.totalorder %v8803_v12, %v9403_v45 }
 0x63e   : > { %7589 = vmatprep.subr.msk.bf16.mxu1 %vm7588_vm7, %v15855_v13  ;;  %vm2765_vm7 = vmand %vm16208_vm1, %vm16207_vm2  ;;  %vm16213_vm2 = vcmp.eq.s32.totalorder %v8808_v15, %v10749_v11  ;;  %3137 = vperm.xlu0 %8502, %v3134_v21  }
 0x63f   : > { %vm2889_vm8 = vmand %vm16211_vm10, %vm16210_vm12  ;;  %3205 = vperm.xlu1 %8503, %v3202_v53  }
 0x641   : > { %7591 = vmatpush1.bf16.msk.msra.mxu1 %vm7590_vm14, %v15855_v13  ;;  %vm16212_vm14 = vcmp.eq.s32.totalorder %v8803_v12, %v9406_v46 }
 0x642   : > { %vm2891_vm1 = vmand %vm16213_vm2, %vm16212_vm14  ;;  %vm16219_vm2 = vcmp.eq.s32.totalorder %v8857_v30, %v9406_v46  ;;  %3256 = vperm.xlu0 %8502, %v3253_v25  }
 0x643   : > { %8367 = vmatmul.mubr.msk.bf16.vlgmr.msra.gmra.mrb[64].mxu0 %vm16203_vm9, %v7601_v19  ;;  %vm16209_vm9 = vcmp.eq.s32.totalorder %v8803_v12, %v9400_v41  ;;  %vm7603_vm13 = vmpackc.low %vm2891_vm1, %vm2889_vm8  ;;  %vm16218_vm8 = vcmp.eq.s32.totalorder %v8855_v29, %v10746_v34  ;;  %vm16220_vm1 = vcmp.eq.s32.totalorder %v8855_v29, %v10749_v11 }
 0x644   : > { %3009 = vmatprep.mubr.bf16.mxu0 %v15856_v35  ;;  %vm2767_vm6 = vmand %vm2487_vm5, %vm16209_vm9  ;;  %7604 = vmatprep.subr.msk.bf16.mxu0 %vm7603_vm13, %v15855_v13  ;;  %vm16215_vm9 = vcmp.eq.s32.totalorder %v8855_v29, %v10873_v28  ;;  %vm16217_vm13 = vcmp.eq.s32.totalorder %v8857_v30, %v9403_v45 }
 0x645   : > { %vm7592_vm11 = vmpackc.low %vm2767_vm6, %vm2765_vm7  ;;  %vm16214_vm7 = vcmp.eq.s32.totalorder %v8857_v30, %v9397_v39 }
 0x646   : > { %7593 = vmatprep.subr.msk.bf16.mxu1 %vm7592_vm11, %v15855_v13  ;;  %vm2764_vm6 = vmand %vm16215_vm9, %vm16214_vm7  ;;  %vm16216_vm11 = vcmp.eq.s32.totalorder %v8857_v30, %v9400_v41 }
 0x647   : > { %vm2766_vm12 = vmand %vm2486_vm0, %vm16216_vm11  ;;  %vm16222_vm11 = vcmp.eq.s32.totalorder %v8808_v15, %v10919_v42 }
 0x648   : > { %vm7594_vm10 = vmpackc.low %vm2766_vm12, %vm2764_vm6  ;;  %vm16221_vm6 = vcmp.eq.s32.totalorder %v8803_v12, %v9453_v47 }
 0x649   : > { %7595 = vmatpush1.bf16.msk.msra.mxu1 %vm7594_vm10, %v15855_v13  ;;  %vm2888_vm14 = vmand %vm16218_vm8, %vm16217_vm13  ;;  %vm16223_vm10 = vcmp.eq.s32.totalorder %v8803_v12, %v9465_v58 }
 0x64a   : > { %vm2890_vm7 = vmand %vm16220_vm1, %vm16219_vm2  ;;  %vm16225_vm2 = vcmp.eq.s32.totalorder %v8808_v15, %v10778_v6 }
 0x64b   : > { %vm7605_vm9 = vmpackc.low %vm2890_vm7, %vm2888_vm14  ;;  %vm16224_vm14 = vcmp.eq.s32.totalorder %v8803_v12, %v9476_v59  ;;  %vm16226_vm7 = vcmp.eq.s32.totalorder %v8803_v12, %v9488_v60 }
 0x64c   : > { %7606 = vmatpush1.bf16.msk.msra.mxu0 %vm7605_vm9, %v15855_v13  ;;  %vm2769_vm12 = vmand %vm16222_vm11, %vm16221_vm6  ;;  %vm16227_vm9 = vcmp.eq.s32.totalorder %v8808_v15, %v10783_v50 }
 0x64d   : > { %vm2771_vm13 = vmand %vm2491_vm4, %vm16223_vm10  ;;  %vm16229_vm10 = vcmp.eq.s32.totalorder %v8855_v29, %v10919_v42 }
 0x64e   : > { %vm7596_vm8 = vmpackc.low %vm2771_vm13, %vm2769_vm12  ;;  %vm16228_vm12 = vcmp.eq.s32.totalorder %v8857_v30, %v9453_v47 }
 0x64f   : > { %7597 = vmatprep.subr.msk.bf16.mxu1 %vm7596_vm8, %v15855_v13  ;;  %vm2893_vm1 = vmand %vm16225_vm2, %vm16224_vm14  ;;  %vm16231_vm8 = vcmp.eq.s32.totalorder %v8857_v30, %v9465_v58 }
 0x650   : > { %vm2895_vm6 = vmand %vm16227_vm9, %vm16226_vm7  ;;  %vm16233_vm7 = vcmp.eq.s32.totalorder %v8855_v29, %v10778_v6 }
 0x651   : > { %vm7607_vm11 = vmpackc.low %vm2895_vm6, %vm2893_vm1  ;;  %vm16232_vm1 = vcmp.eq.s32.totalorder %v8857_v30, %v9476_v59  ;;  %vm16234_vm6 = vcmp.eq.s32.totalorder %v8857_v30, %v9488_v60 }
 0x652   : > { %7608 = vmatprep.subr.msk.bf16.mxu0 %vm7607_vm11, %v15855_v13  ;;  %vm2768_vm13 = vmand %vm16229_vm10, %vm16228_vm12  ;;  %vm16235_vm11 = vcmp.eq.s32.totalorder %v8855_v29, %v10783_v50 }
 0x653   : > { %vm2770_vm14 = vmand %vm2490_vm3, %vm16231_vm8  ;;  %vm16237_vm8 = vcmp.eq.s32.totalorder %v8808_v15, %v10873_v28 }
 0x654   : > { %vm7598_vm2 = vmpackc.low %vm2770_vm14, %vm2768_vm13  ;;  %vm16236_vm13 = vcmp.eq.s32.totalorder %v8803_v12, %v9533_v61 }
 0x655   : > { %7599 = vmatpush1.bf16.msk.msra.mxu1 %vm7598_vm2, %v15855_v13  ;;  %vm2892_vm9 = vmand %vm16233_vm7, %vm16232_vm1  ;;  %vm16238_vm2 = vcmp.eq.s32.totalorder %v8803_v12, %v9545_v2 }
 0x656   : > { %vm2894_vm12 = vmand %vm16235_vm11, %vm16234_vm6  ;;  %vm16240_vm6 = vcmp.eq.s32.totalorder %v8855_v29, %v10873_v28 }
 0x657   : > { %vm7609_vm10 = vmpackc.low %vm2894_vm12, %vm2892_vm9  ;;  %vm16239_vm9 = vcmp.eq.s32.totalorder %v8857_v30, %v9533_v61  ;;  %vm16241_vm12 = vcmp.eq.s32.totalorder %v8857_v30, %v9545_v2 }
 0x658   : > { %7610 = vmatpush1.bf16.msk.msra.mxu0 %vm7609_vm10, %v15855_v13  ;;  %vm2897_vm14 = vmand %vm16237_vm8, %vm16236_vm13  ;;  %vm16243_vm8 = vcmp.eq.s32.totalorder %v8808_v15, %v10919_v42 }
 0x659   : > { %vm2899_vm1 = vmand %vm2487_vm5, %vm16238_vm2  ;;  %vm16242_vm5 = vcmp.eq.s32.totalorder %v8803_v12, %v15983_v16  ;;  %vm16244_vm2 = vcmp.eq.s32.totalorder %v8803_v12, %v15986_v18 }
 0x65a   : > { %vm7611_vm7 = vmpackc.low %vm2899_vm1, %vm2897_vm14 }
 0x65b   : > { %7612 = vmatprep.subr.msk.bf16.mxu0 %vm7611_vm7, %v15855_v13  ;;  %vm2896_vm11 = vmand %vm16240_vm6, %vm16239_vm9  ;;  %vm16246_vm9 = vcmp.eq.s32.totalorder %v8855_v29, %v10919_v42 }
 0x65c   : > { %vm2898_vm10 = vmand %vm2486_vm0, %vm16241_vm12  ;;  %vm16245_vm0 = vcmp.eq.s32.totalorder %v8857_v30, %v15983_v16 }
 0x65d   : > { %vm7613_vm13 = vmpackc.low %vm2898_vm10, %vm2896_vm11  ;;  %vm16247_vm11 = vcmp.eq.s32.totalorder %v8857_v30, %v15986_v18 }
 0x65e   : > { %7614 = vmatpush1.bf16.msk.msra.mxu0 %vm7613_vm13, %v15855_v13  ;;  %vm2901_vm14 = vmand %vm16243_vm8, %vm16242_vm5  ;;  %vm15546_vm13 = vcmask 1041408   ;;  %vm15543_vm5 = vcmask 31744  }
 0x65f   : > { %vm2903_vm1 = vmand %vm2491_vm4, %vm16244_vm2  ;;  %vm16248_vm4 = vcmask 523264   ;;  %v3088_v54 = vsel %vm15546_vm13, %v681_v24, 0 }
 0x660   : > { %vm7615_vm7 = vmpackc.low %vm2903_vm1, %vm2901_vm14 }
 0x661   : > { %7616 = vmatprep.subr.msk.bf16.mxu0 %vm7615_vm7, %v15855_v13  ;;  %vm2900_vm6 = vmand %vm16246_vm9, %vm16245_vm0  ;;  %vm16259_vm7 = vcmask 1043456  }
 0x662   : > { %vm2902_vm12 = vmand %vm2490_vm3, %vm16247_vm11 }
 0x663   : > { %vm7617_vm10 = vmpackc.low %vm2902_vm12, %vm2900_vm6 }
 0x664   : > { %7618 = vmatpush1.bf16.msk.msra.mxu0 %vm7617_vm10, %v15855_v13  ;;  %vm16249_vm3 = vmmov %vm16248_vm4 }
 0x665   : > { %vm16260_vm9 = vmmov %vm16259_vm7 }
 0x666   : > { %vm16261_vm6 = vmmov %vm16259_vm7 }
 0x667   : > { %vm16262_vm12 = vmmov %vm16261_vm6 }
 0x6b4   : > { %v3024_v26 = vpop.permute.xlu0 %3023 }
 0x6bd   : > { %v3138_v25 = vpop.permute.xlu0 %3137 }
 0x706   : > { %v2615_v39 = vpop.f32.mrb[44].mxu1 }
 0x707   : > { %v2622_v41 = vadd.f32 %v2615_v39, %v11087_v0  ;;  %v2617_v45 = vpop.f32.mrb[45].mxu1  ;;  %v679_v0 = vcombine.high %v677_v52, %v677_v52  ;;  %v16288_v52 = vld [vmem:[#allocation32_spill] sm:$0xff] }
 0x708   : > { %v2623_v46 = vadd.f32 %v2617_v45, %v11089_v3  ;;  %v2619_v47 = vpop.f32.mrb[46].mxu1 }
 0x709   : > { %v2620_v58 = vpop.f32.mrb[47].mxu1  ;;  %v682_v23 = vpack.c.bf16 %v679_v0, %v679_v0  ;;  %v3149_v0 = vpop.permute.xlu1 %3148 }
 0x70a   : > { %v16255_v58 = vld [vmem:[#allocation4_spill] sm:$0xff] }
 0x70b   : > { %vm15538_vm8 = vcmp.eq.s32.totalorder %v8808_v15, %v16255_v58 }
 0x70e   : > { %v2747_v59 = vpop.f32.mrb[60].mxu0  ;;  %v2835_v60 = vpop.f32.mrb[48].mxu1 }
 0x70f   : > { %v2754_v61 = vadd.f32 %v2747_v59, %v2622_v41  ;;  %v2841_v2 = vpack.c.bf16 %v2835_v60, %v2835_v60  ;;  %v2749_v16 = vpop.f32.mrb[61].mxu0  ;;  %v8362_v18 = vpop.f32.mrb[49].mxu1  ;;  %v16256_v59 = vld [vmem:[#allocation5_spill] sm:$0xff] }
 0x710   : > { %v2755_v34 = vadd.f32 %v2749_v16, %v2623_v46  ;;  %v2751_v11 = vpop.f32.mrb[62].mxu0  ;;  %v2838_v6 = vpop.f32.mrb[50].mxu1  ;;  %vm15530_vm14 = vcmp.eq.s32.totalorder %v8803_v12, %v16256_v59 }
 0x711   : > { %v2752_v50 = vpop.f32.mrb[63].mxu0  ;;  %7600 = vmatmul.mubr.msk.bf16.vlgmr.msra.gmra.mrb[52].mxu1 %vm16248_vm4, %v2841_v2  ;;  %v8363_v28 = vpop.f32.mrb[51].mxu1  ;;  %v16258_v2 = vld [vmem:[#allocation8_spill] sm:$0xff]  ;;  %vm3336_vm0 = vmand %vm15538_vm8, %vm15530_vm14  ;;  %v3201_v11 = vld [vmem:[%s15310_s9] sm:$0x3]  ;;  %v16263_v6 = vmov 0  ;;  %vm15532_vm4 = vcmp.eq.s32.totalorder %v8855_v29, %v16255_v58 }
 0x712   : > { %3075 = vmatprep.mubr.bf16.mxu1 %v15856_v35  ;;  %vm15529_vm1 = vcmp.eq.s32.totalorder %v8803_v12, %v16258_v2  ;;  %v16267_v50 = vld [vmem:[#allocation10_spill] sm:$0xff] }
 0x713   : > { %v16268_v28 = vld [vmem:[#allocation14_spill] sm:$0xff] }
 0x716   : > { %v2967_v32 = vpop.f32.mrb[64].mxu0 }
 0x717   : > { %v2973_v42 = vpack.c.bf16 %v2967_v32, %v2967_v32  ;;  %v8368_v43 = vpop.f32.mrb[65].mxu0  ;;  %v16269_v32 = vld [vmem:[#allocation13_spill] sm:$0xff] }
 0x718   : > { %v2970_v56 = vpop.f32.mrb[66].mxu0  ;;  %v3252_v43 = vld [vmem:[%s15312_s11] sm:$0x3]  ;;  %vm15545_vm8 = vcmp.eq.s32.totalorder %v8855_v29, %v16269_v32 }
 0x719   : > { %v8369_v57 = vpop.f32.mrb[67].mxu0  ;;  %7619 = vmatmul.mubr.msk.bf16.vlgmr.msra.gmra.mrb[68].mxu0 %vm16249_vm3, %v2973_v42  ;;  %vm15531_vm3 = vcmp.eq.s32.totalorder %v8857_v30, %v16256_v59  ;;  %v16270_v42 = vld [vmem:[#allocation15_spill] sm:$0xff]  ;;  %v16271_v56 = vmov 0 }
 0x71a   : > { %3192 = vmatprep.mubr.bf16.mxu0 %v15856_v35  ;;  %v16275_v57 = vmov 0 }
 0x7e4   : > { %v2879_v14 = vpop.f32.mrb[52].mxu1 }
 0x7e5   : > { %v2886_v9 = vadd.f32 %v2879_v14, %v2754_v61  ;;  %v2881_v62 = vpop.f32.mrb[53].mxu1  ;;  %v16257_v61 = vld [vmem:[#allocation7_spill] sm:$0xff]  ;;  %v16278_v14 = vld [vmem:[#allocation22_spill] sm:$0xff] }
 0x7e6   : > { %v2887_v31 = vadd.f32 %v2881_v62, %v2755_v34  ;;  %v2883_v63 = vpop.f32.mrb[54].mxu1  ;;  %vm15533_vm2 = vcmp.eq.s32.totalorder %v8808_v15, %v16257_v61  ;;  %v3144_v34 = vld [vmem:[%s15308_s7] sm:$0x3]  ;;  %v16280_v62 = vld [vmem:[#allocation23_spill] sm:$0xff] }
 0x7e7   : > { %v2884_v33 = vpop.f32.mrb[55].mxu1  ;;  %vm3338_vm11 = vmand %vm15533_vm2, %vm15529_vm1  ;;  %vm15539_vm1 = vcmp.eq.s32.totalorder %v8803_v12, %v16270_v42  ;;  %v16282_v63 = vmov 0 }
 0x7e8   : > { %vm11405_vm10 = vmpackc.low %vm3338_vm11, %vm3336_vm0  ;;  %vm15536_vm0 = vcmp.eq.s32.totalorder %v8808_v15, %v16267_v50  ;;  %vm15535_vm11 = vcmp.eq.s32.totalorder %v8803_v12, %v16268_v28  ;;  %v16285_v33 = vmov 0 }
 0x7e9   : > { %v16264_v6 = vsel %vm11405_vm10, 4294967295, %v16263_v6 }
 0x7ec   : > { %v3011_v49 = vpop.f32.mrb[68].mxu0 }
 0x7ed   : > { %v3018_v51 = vadd.f32 %v3011_v49, %v2886_v9  ;;  %v3013_v37 = vpop.f32.mrb[69].mxu0  ;;  %v16279_v9 = vld [vmem:[#allocation24_spill] sm:$0xff]  ;;  %v16289_v49 = vld [vmem:[#allocation34_spill] sm:$0xff] }
 0x7ee   : > { %v3019_v38 = vadd.f32 %v3013_v37, %v2887_v31  ;;  %v3015_v36 = vpop.f32.mrb[70].mxu0  ;;  %v16281_v31 = vld [vmem:[#allocation25_spill] sm:$0xff]  ;;  %v16291_v37 = vld [vmem:[#allocation35_spill] sm:$0xff] }
 0x7ef   : > { %v3026_v5 = vadd.f32 %v3024_v26, %v3018_v51  ;;  %v3016_v22 = vpop.f32.mrb[71].mxu0  ;;  %v16290_v51 = vld [vmem:[#allocation33_spill] sm:$0xff]  ;;  %v16298_v36 = vmov 0 }
 0x7f0   : > { %v3027_v7 = vadd.f32 %v3024_v26, %v3019_v38  ;;  %v16292_v26 = vmov 0  ;;  %v16295_v38 = vmov 0 }
 0x7f1   : > { %v3030_v3 = vpack.c.bf16 %v3026_v5, %v3026_v5  ;;  %v3206_v5 = vpop.permute.xlu1 %3205 }
 0x7f2   : > { %v3031_v40 = vpack.c.bf16 %v3027_v7, %v3027_v7 }
 0x7f3   : > { %v3038_v20 = vsel %vm15546_vm13, %v3030_v3, 0 }
 0x7f4   : > { %7620 = vmatprep.subr.msk.bf16.mxu1 %vm15546_vm13, %v3031_v40 }
 0x7f5   : > { %3044 = vmatpush1.bf16.msra.mxu1 %v3038_v20 }
 0x7f6   : > { %7622 = vmatprep.subr.msk.bf16.mxu1 %vm15546_vm13, %v682_v23 }
 0x7f8   : > { %7621 = vmatmul.mubr.msk.bf16.vlgmr.msra.gmra.mrb[56].mxu1 %vm15543_vm5, %v3029_v27 }
 0x7f9   : > { %3094 = vmatpush1.bf16.msra.mxu1 %v3088_v54  ;;  %3125 = vmatprep.mubr.bf16.mxu1 %v15856_v35 }
 0x800   : > { %7623 = vmatmul.mubr.msk.bf16.vlgmr.msra.gmra.mrb[60].mxu1 %vm15543_vm5, %v3028_v55 }
 0x801   : > { %3243 = vmatprep.mubr.bf16.mxu1 %v15856_v35 }
 0x8cb   : > { %v3077_v44 = vpop.f32.mrb[56].mxu1 }
 0x8cc   : > { %v3079_v48 = vpop.f32.mrb[57].mxu1 }
 0x8cd   : > { %v3081_v10 = vpop.f32.mrb[58].mxu1 }
 0x8ce   : > { %v3082_v17 = vpop.f32.mrb[59].mxu1 }
 0x8d3   : > { %v3127_v19 = vpop.f32.mrb[60].mxu1 }
 0x8d4   : > { %v3128_v1 = vadd.f32 %v3127_v19, %v3077_v44  ;;  %v3129_v21 = vpop.f32.mrb[61].mxu1 }
 0x8d5   : > { %v3130_v39 = vadd.f32 %v3129_v21, %v3079_v48  ;;  %v3131_v41 = vpop.f32.mrb[62].mxu1 }
 0x8d6   : > { %v11367_v45 = vadd.f32 %v3138_v25, %v3128_v1  ;;  %v3132_v46 = vpop.f32.mrb[63].mxu1 }
 0x8d7   : > { %v11369_v47 = vadd.f32 %v3138_v25, %v3130_v39  ;;  %v3257_v39 = vpop.permute.xlu0 %3256 }
 0x8d8   : > { %16253 = vst [vmem:[#allocation41_spill] sm:$0xff] %v11367_v45  ;;  %v3142_v60 = vpack.c.bf16 %v11367_v45, %v11367_v45 }
 0x8d9   : > { %16254 = vst [vmem:[#allocation42_spill] sm:$0xff] %v11369_v47  ;;  %v3143_v16 = vpack.c.bf16 %v11369_v47, %v11369_v47 }
 0x8da   : > { %v3155_v18 = vsel %vm16259_vm7, %v3142_v60, 0  ;;  %vm16265_vm7 = vcmask 64512  }
 0x8db   : > { %7624 = vmatprep.subr.msk.bf16.mxu0 %vm16260_vm9, %v3143_v16  ;;  %7626 = vmatprep.subr.msk.bf16.mxu1 %vm16261_vm6, %v3143_v16  ;;  %vm16266_vm9 = vmmov %vm16265_vm7  ;;  %vm15537_vm6 = vcmp.eq.s32.totalorder %v8855_v29, %v16257_v61 }
 0x8dc   : > { %3161 = vmatpush1.bf16.msra.mxu0 %v3155_v18  ;;  %3212 = vmatpush1.bf16.msra.mxu1 %v3155_v18 }
 0x8dd   : > { %7628 = vmatprep.subr.msk.bf16.mxu0 %vm16262_vm12, %v3143_v16  ;;  %vm15534_vm12 = vcmp.eq.s32.totalorder %v8857_v30, %v16258_v2 }
 0x8de   : > { %vm3337_vm14 = vmand %vm15537_vm6, %vm15534_vm12  ;;  %vm15542_vm12 = vcmp.eq.s32.totalorder %v8855_v29, %v16267_v50 }
 0x8df   : > { %7625 = vmatmul.mubr.msk.bf16.vlgmr.msra.gmra.mrb[72].mxu0 %vm16265_vm7, %v3144_v34  ;;  %7627 = vmatmul.mubr.msk.bf16.vlgmr.msra.gmra.mrb[64].mxu1 %vm16266_vm9, %v3201_v11  ;;  %vm3335_vm7 = vmand %vm15532_vm4, %vm15531_vm3  ;;  %vm15540_vm9 = vcmp.eq.s32.totalorder %v8808_v15, %v16269_v32 }
 0x8e0   : > { %3263 = vmatpush1.bf16.msra.mxu0 %v3155_v18  ;;  %3294 = vmatprep.mubr.bf16.mxu0 %v15856_v35  ;;  %vm3340_vm3 = vmand %vm15536_vm0, %vm15535_vm11  ;;  %vm15541_vm11 = vcmp.eq.s32.totalorder %v8857_v30, %v16268_v28  ;;  %vm16274_vm0 = vcmask 64512  }
 0x8e1   : > { %7647 = vmatprep.subr.msk.bf16.mxu0 %vm11405_vm10, %v15855_v13  ;;  %7631 = vmatprep.mubr.msk.bf16.mxu1 %vm11405_vm10, %v15855_v13  ;;  %vm3342_vm4 = vmand %vm15540_vm9, %vm15539_vm1  ;;  %vm15547_vm1 = vcmp.eq.s32.totalorder %v8803_v12, %v16279_v9 }
 0x8e2   : > { %vm11461_vm2 = vmpackc.low %vm3337_vm14, %vm3335_vm7  ;;  %vm15544_vm14 = vcmp.eq.s32.totalorder %v8857_v30, %v16270_v42  ;;  %vm15550_vm7 = vcmp.eq.s32.totalorder %v8808_v15, %v16278_v14 }
 0x8e3   : > { %v16272_v56 = vsel %vm11461_vm2, 4294967295, %v16271_v56  ;;  %vm11470_vm6 = vmpackc.low %vm3342_vm4, %vm3340_vm3  ;;  %vm15549_vm3 = vcmp.eq.s32.totalorder %v8808_v15, %v16280_v62 }
 0x8e4   : > { %16273 = vst [vmem:[#allocation11_spill] sm:$0xff] %v16272_v56  ;;  %v16276_v57 = vsel %vm11470_vm6, 4294967295, %v16275_v57  ;;  %vm3339_vm4 = vmand %vm15542_vm12, %vm15541_vm11 }
 0x8e5   : > { %16277 = vst [vmem:[#allocation12_spill] sm:$0xff] %v16276_v57  ;;  %vm3341_vm9 = vmand %vm15545_vm8, %vm15544_vm14  ;;  %vm15552_vm14 = vcmp.eq.s32.totalorder %v8855_v29, %v16278_v14  ;;  %vm15551_vm8 = vcmp.eq.s32.totalorder %v8857_v30, %v16279_v9 }
 0x8e6   : > { %vm3344_vm11 = vmand %vm15550_vm7, %vm15547_vm1  ;;  %vm15565_vm1 = vcmp.eq.s32.totalorder %v8855_v29, %v16280_v62 }
 0x8e7   : > { %7629 = vmatmul.mubr.msk.bf16.vlgmr.msra.gmra.mrb[76].mxu0 %vm16274_vm0, %v3252_v43  ;;  %vm15548_vm0 = vcmp.eq.s32.totalorder %v8803_v12, %v16281_v31  ;;  %vm11516_vm5 = vmpackc.low %vm3341_vm9, %vm3339_vm4  ;;  %vm15564_vm9 = vcmp.eq.s32.totalorder %v8808_v15, %v16288_v52  ;;  %vm15556_vm4 = vcmp.eq.s32.totalorder %v8803_v12, %v16289_v49 }
 0x8e8   : > { %vm3346_vm12 = vmand %vm15549_vm3, %vm15548_vm0  ;;  %v16283_v63 = vsel %vm11516_vm5, 4294967295, %v16282_v63  ;;  %vm15558_vm0 = vcmp.eq.s32.totalorder %v8857_v30, %v16281_v31  ;;  %vm15557_vm3 = vcmp.eq.s32.totalorder %v8803_v12, %v16291_v37 }
 0x8e9   : > { %7649 = vmatpush1.bf16.xpose.msk.msra.mxu0 %vm11461_vm2, %v15855_v13  ;;  %16284 = vst [vmem:[#allocation17_spill] sm:$0xff] %v16283_v63  ;;  %vm11524_vm13 = vmpackc.low %vm3346_vm12, %vm3344_vm11  ;;  %vm15563_vm11 = vcmp.eq.s32.totalorder %v8808_v15, %v16290_v51 }
 0x8ea   : > { %7651 = vmatprep.subr.msk.bf16.mxu0 %vm11470_vm6, %v15855_v13  ;;  %v16286_v33 = vsel %vm11524_vm13, 4294967295, %v16285_v33  ;;  %vm3343_vm12 = vmand %vm15552_vm14, %vm15551_vm8 }
 0x8eb   : > { %16287 = vst [vmem:[#allocation20_spill] sm:$0xff] %v16286_v33  ;;  %vm3345_vm7 = vmand %vm15565_vm1, %vm15558_vm0 }
 0x8ec   : > { %vm3348_vm8 = vmand %vm15564_vm9, %vm15556_vm4  ;;  %vm15562_vm4 = vcmp.eq.s32.totalorder %v8855_v29, %v16288_v52 }
 0x8ed   : > { %vm3350_vm14 = vmand %vm15563_vm11, %vm15557_vm3 }
 0x8ee   : > { %vm11570_vm15 = vmpackc.low %vm3345_vm7, %vm3343_vm12  ;;  %vm15561_vm7 = vcmp.eq.s32.totalorder %v8855_v29, %v16290_v51 }
 0x8ef   : > { %v16293_v26 = vsel %vm11570_vm15, 4294967295, %v16292_v26 }
 0x8f0   : > { %16294 = vst [vmem:[#allocation27_spill] sm:$0xff] %v16293_v26 }
 0x8f1   : > { %7653 = vmatpush1.bf16.xpose.msk.msra.mxu0 %vm11516_vm5, %v15855_v13 }
 0x8f2   : > { %7655 = vmatprep.subr.msk.bf16.mxu0 %vm11524_vm13, %v15855_v13  ;;  %vm11574_vm13 = vmpackc.low %vm3350_vm14, %vm3348_vm8  ;;  %vm15560_vm8 = vcmp.eq.s32.totalorder %v8857_v30, %v16289_v49  ;;  %vm15559_vm14 = vcmp.eq.s32.totalorder %v8857_v30, %v16291_v37 }
 0x8f3   : > { %v16296_v38 = vsel %vm11574_vm13, 4294967295, %v16295_v38  ;;  %vm3347_vm12 = vmand %vm15562_vm4, %vm15560_vm8  ;;  %vm16310_vm4 = vcmp.eq.s32.totalorder %v8808_v15, %v16255_v58 }
 0x8f4   : > { %16297 = vst [vmem:[#allocation30_spill] sm:$0xff] %v16296_v38  ;;  %vm3349_vm3 = vmand %vm15561_vm7, %vm15559_vm14  ;;  %vm16305_vm14 = vcmask 1041408   ;;  %vm16309_vm7 = vcmask 31744  }
 0x8f5   : > { %vm11604_vm0 = vmpackc.low %vm3349_vm3, %vm3347_vm12  ;;  %vm16303_vm3 = vnez %v16286_v33  ;;  %vm16304_vm12 = vmmov 0  }
 0x8f6   : > { %v16299_v36 = vsel %vm11604_vm0, 4294967295, %v16298_v36  ;;  %vm16306_vm8 = vmmov %vm16305_vm14 }
 0x8f7   : > { %16300 = vst [vmem:[#allocation37_spill] sm:$0xff] %v16299_v36 }
 0x8f9   : > { %7657 = vmatpush1.bf16.xpose.msk.msra.mxu0 %vm11570_vm15, %v15855_v13 }
 0x8fa   : > { %7659 = vmatprep.subr.msk.bf16.mxu0 %vm11574_vm13, %v15855_v13 }
 0x901   : > { %7661 = vmatpush1.bf16.xpose.msk.msra.mxu0 %vm11604_vm0, %v15855_v13 }
 0x9b2   : > { %v3194_v22 = vpop.f32.mrb[72].mxu0  ;;  %v3245_v7 = vpop.f32.mrb[64].mxu1 }
 0x9b3   : > { %v3195_v3 = vadd.f32 %v3194_v22, %v3149_v0  ;;  %v3246_v40 = vadd.f32 %v3245_v7, %v3206_v5  ;;  %v3196_v23 = vpop.f32.mrb[73].mxu0  ;;  %v3247_v24 = vpop.f32.mrb[65].mxu1 }
 0x9b4   : > { %v3197_v20 = vadd.f32 %v3196_v23, %v3149_v0  ;;  %v3248_v27 = vadd.f32 %v3247_v24, %v3206_v5  ;;  %v3198_v54 = vpop.f32.mrb[74].mxu0  ;;  %v3249_v55 = vpop.f32.mrb[66].mxu1  ;;  %v11684_v23 = vadd.s32 8, %v16258_v2 }
 0x9b5   : > { %v11611_v4 = vpack.c.bf16 %v3246_v40, %v3246_v40  ;;  %v3199_v53 = vpop.f32.mrb[75].mxu0  ;;  %v3250_v44 = vpop.f32.mrb[67].mxu1  ;;  %v11617_v17 = vpack.c.bf16 %v3195_v3, %v3195_v3  ;;  %v11681_v3 = vadd.s32 8, %v16256_v59 }
 0x9b6   : > { %v11613_v48 = vpack.c.bf16 %v3197_v20, %v3197_v20  ;;  %v11615_v10 = vpack.c.bf16 %v3248_v27, %v3248_v27  ;;  %16308 = vst [vmem:[#allocation18_spill] sm:$0xff] %v11684_v23 }
 0x9b7   : > { %16301 = vst [vmem:[#allocation39_spill] sm:$0xff] %v11611_v4  ;;  %16307 = vst [vmem:[#allocation16_spill] sm:$0xff] %v11681_v3 }
 0x9b8   : > { %16302 = vst [vmem:[#allocation40_spill] sm:$0xff] %v11615_v10  ;;  %3377 = vmatprep.subr.bf16.mxu1 %v11613_v48  ;;  %3476 = vmatprep.mubr.bf16.mxu0 %v11615_v10 }
 0x9b9   : > { %3378 = vmatpush1.bf16.xpose.msra.mxu1 %v11617_v17  ;;  %3477 = vmatmul.mubr.bf16.vlgmr.msra.gmra.mrb[80].mxu0 %v11611_v4 }
 0x9ba   : > { %v3296_v19 = vpop.f32.mrb[76].mxu0  ;;  %7663 = vmatprep.subr.msk.bf16.mxu1 %vm11405_vm10, %v15855_v13 }
 0x9bb   : > { %v3298_v1 = vpop.f32.mrb[77].mxu0  ;;  %v3297_v60 = vadd.f32 %v3296_v19, %v3257_v39 }
 0x9bc   : > { %v3300_v21 = vpop.f32.mrb[78].mxu0  ;;  %v3299_v41 = vadd.f32 %v3298_v1, %v3257_v39 }
 0x9bd   : > { %v3301_v25 = vpop.f32.mrb[79].mxu0  ;;  %v11672_v16 = vpack.c.bf16 %v3297_v60, %v3297_v60 }
 0x9be   : > { %v11662_v46 = vpack.c.bf16 %v3299_v41, %v3299_v41 }
 0x9c0   : > { %7633 = vmatmul.mubr.msk.bf16.vlgmr.msra.gmra.mrb[68].mxu1 %vm11461_vm2, %v15855_v13 }
 0x9c1   : > { %7665 = vmatpush1.bf16.xpose.msk.msra.mxu1 %vm11461_vm2, %v15855_v13  ;;  %7635 = vmatprep.mubr.msk.bf16.mxu1 %vm11470_vm6, %v15855_v13  ;;  %vm16343_vm2 = vcmp.eq.s32.totalorder %v8808_v15, %v16290_v51 }
 0x9c2   : > { %7667 = vmatprep.subr.msk.bf16.mxu1 %vm11470_vm6, %v15855_v13 }
 0x9c8   : > { %7637 = vmatmul.mubr.msk.bf16.gmra.mrb[72].mxu1 %vm11516_vm5, %v15855_v13 }
 0x9c9   : > { %7669 = vmatpush1.bf16.xpose.msk.msra.mxu1 %vm11516_vm5, %v15855_v13  ;;  %7639 = vmatprep.mubr.msk.bf16.mxu1 %vm16303_vm3, %v15855_v13  ;;  %vm16333_vm5 = vcmp.eq.s32.totalorder %v8808_v15, %v16280_v62 }
 0x9ca   : > { %7671 = vmatprep.subr.msk.bf16.mxu1 %vm16303_vm3, %v15855_v13 }
 0x9d0   : > { %7641 = vmatmul.mubr.msk.bf16.gmra.mrb[76].mxu1 %vm11570_vm15, %v15855_v13 }
 0x9d1   : > { %7673 = vmatpush1.bf16.xpose.msk.msra.mxu1 %vm11570_vm15, %v15855_v13  ;;  %7643 = vmatprep.mubr.msk.bf16.mxu1 %vm11574_vm13, %v15855_v13  ;;  %vm16323_vm15 = vcmp.eq.s32.totalorder %v8808_v15, %v16269_v32 }
 0x9d2   : > { %7675 = vmatprep.subr.msk.bf16.mxu1 %vm11574_vm13, %v15855_v13 }
 0x9d8   : > { %7645 = vmatmul.mubr.msk.bf16.gmra.mrb[80].mxu1 %vm11604_vm0, %v15855_v13 }
 0x9d9   : > { %7677 = vmatpush1.bf16.xpose.msk.msra.mxu1 %vm11604_vm0, %v15855_v13  ;;  %3518 = vmatprep.mubr.bf16.mxu1 %v11662_v46  ;;  %vm16314_vm0 = vcmask 31744  }
 0x9da   : > { %8380 = vmatprep.subr.bf16.mxu1 %v15853_v8 }
 0x9e0   : > { %3519 = vmatmul.mubr.bf16.vlgmr.msra.gmra.mrb[84].mxu1 %v11672_v16 }
 0x9e1   : > { %8388 = vmatprep.mubr.msk.bf16.mxu1 %vm16304_vm12, %v15853_v8 }
 0xa8c   : > { %v3478_v18 = vpop.f32.mrb[80].mxu0 }
 0xa8d   : > { %v3530_v34 = vpack.c.bf16 %v3478_v18, %v3478_v18  ;;  %v3480_v11 = vpop.f32.mrb[81].mxu0  ;;  %v11714_v18 = vadd.s32 8, %v16268_v28 }
 0xa8e   : > { %v3481_v43 = vpop.f32.mrb[82].mxu0  ;;  %v11717_v11 = vadd.s32 8, %v16270_v42 }
 0xa8f   : > { %v3544_v0 = vsel %vm16305_vm14, %v3530_v34, 0  ;;  %v3482_v5 = vpop.f32.mrb[83].mxu0  ;;  %8486 = vmatprep.subr.msk.bf16.mxu0 %vm16306_vm8, %v3530_v34  ;;  %vm15568_vm14 = vcmp.eq.s32.totalorder %v8803_v12, %v11681_v3  ;;  %vm15567_vm8 = vcmp.eq.s32.totalorder %v8803_v12, %v11684_v23  ;;  %16316 = vst [vmem:[#allocation26_spill] sm:$0xff] %v11714_v18  ;;  %vm16321_vm13 = vcmp.eq.s32.totalorder %v8803_v12, %v11714_v18 }
 0xa90   : > { %8371 = vmatpush3.bf16.msra.mxu0 %v3544_v0  ;;  %vm3785_vm11 = vmand %vm16310_vm4, %vm15568_vm14  ;;  %16317 = vst [vmem:[#allocation28_spill] sm:$0xff] %v11717_v11  ;;  %vm15573_vm14 = vcmp.eq.s32.totalorder %v8803_v12, %v11717_v11 }
 0xa91   : > { %3824 = vmatprep.subr.bf16.mxu0 %v11613_v48  ;;  %vm16315_vm4 = vmmov %vm16314_vm0 }
 0xa92   : > { %vm3791_vm3 = vmand %vm16323_vm15, %vm15573_vm14  ;;  %vm15580_vm15 = vcmp.eq.s32.totalorder %v8857_v30, %v11717_v11 }
 0xa93   : > { %v3411_v22 = vpop.f32.mrb[68].mxu1 }
 0xa94   : > { %v3413_v7 = vpop.f32.mrb[69].mxu1 }
 0xa95   : > { %v3414_v40 = vpop.f32.mrb[70].mxu1  ;;  %v11758_v7 = vadd.s32 8, %v16279_v9 }
 0xa96   : > { %v3526_v24 = vpack.c.bf16 %v3414_v40, %v3411_v22  ;;  %v3416_v20 = vpop.f32.mrb[71].mxu1 }
 0xa97   : > { %16324 = vst [vmem:[#allocation36_spill] sm:$0xff] %v11758_v7  ;;  %vm15578_vm14 = vcmp.eq.s32.totalorder %v8803_v12, %v11758_v7 }
 0xa98   : > { %8372 = vmatprep.mubr.msk.bf16.mxu0 %vm16309_vm7, %v3526_v24  ;;  %vm16311_vm7 = vcmp.eq.s32.totalorder %v8808_v15, %v16257_v61  ;;  %v11761_v24 = vadd.s32 8, %v16281_v31 }
 0xa99   : > { %vm3787_vm9 = vmand %vm16311_vm7, %vm15567_vm8 }
 0xa9a   : > { %vm11703_vm1 = vmpackc.low %vm3787_vm9, %vm3785_vm11  ;;  %vm15574_vm9 = vcmp.eq.s32.totalorder %v8857_v30, %v11684_v23  ;;  %16325 = vst [vmem:[#allocation38_spill] sm:$0xff] %v11761_v24 }
 0xa9b   : > { %v3419_v27 = vpop.f32.mrb[72].mxu1  ;;  %vm16318_vm7 = vmmov %vm16315_vm4 }
 0xa9c   : > { %v3421_v54 = vpop.f32.mrb[73].mxu1 }
 0xa9d   : > { %v3422_v55 = vpop.f32.mrb[74].mxu1 }
 0xa9e   : > { %v3527_v53 = vpack.c.bf16 %v3422_v55, %v3419_v27  ;;  %v3424_v44 = vpop.f32.mrb[75].mxu1 }
 0xa9f   : > { %v11819_v44 = vadd.s32 8, %v16291_v37 }
 0xaa0   : > { %8373 = vmatmul.mubr.msk.bf16.vlgmr.msra.gmra.mrb[84].mxu0 %vm16314_vm0, %v3527_v53  ;;  %vm15570_vm0 = vcmp.eq.s32.totalorder %v8857_v30, %v11681_v3  ;;  %v11816_v53 = vadd.s32 8, %v16289_v49 }
 0xaa1   : > { %3825 = vmatpush1.bf16.xpose.msra.mxu0 %v11617_v17  ;;  %16335 = vst [vmem:[#allocation5_spill] sm:$0xff] %v11819_v44 }
 0xaa2   : > { %7700 = vmatprep.subr.msk.bf16.mxu0 %vm11703_vm1, %v15855_v13  ;;  %16334 = vst [vmem:[#allocation4_spill] sm:$0xff] %v11816_v53 }
 0xaa3   : > { %v3427_v1 = vpop.f32.mrb[76].mxu1 }
 0xaa4   : > { %v3429_v21 = vpop.f32.mrb[77].mxu1 }
 0xaa5   : > { %v3430_v25 = vpop.f32.mrb[78].mxu1 }
 0xaa6   : > { %v3528_v39 = vpack.c.bf16 %v3430_v25, %v3427_v1  ;;  %v3432_v41 = vpop.f32.mrb[79].mxu1  ;;  %v16336_v1 = vmov 0 }
 0xaa8   : > { %8376 = vmatprep.mubr.msk.bf16.mxu0 %vm16315_vm4, %v3528_v39  ;;  %vm16319_vm4 = vcmp.eq.s32.totalorder %v8855_v29, %v16255_v58 }
 0xaa9   : > { %vm3784_vm8 = vmand %vm16319_vm4, %vm15570_vm0  ;;  %vm16322_vm4 = vcmp.eq.s32.totalorder %v8808_v15, %v16267_v50 }
 0xaaa   : > { %vm3789_vm0 = vmand %vm16322_vm4, %vm16321_vm13  ;;  %vm15575_vm13 = vcmp.eq.s32.totalorder %v8857_v30, %v11714_v18 }
 0xaab   : > { %v3435_v60 = vpop.f32.mrb[80].mxu1  ;;  %vm11769_vm4 = vmpackc.low %vm3791_vm3, %vm3789_vm0  ;;  %vm15579_vm0 = vcmp.eq.s32.totalorder %v8803_v12, %v11761_v24 }
 0xaac   : > { %v3437_v34 = vpop.f32.mrb[81].mxu1  ;;  %vm3795_vm6 = vmand %vm16333_vm5, %vm15579_vm0  ;;  %vm15586_vm5 = vcmp.eq.s32.totalorder %v8857_v30, %v11761_v24  ;;  %vm15619_vm0 = vcmp.eq.s32.totalorder %v8803_v12, %v11816_v53 }
 0xaad   : > { %v3438_v43 = vpop.f32.mrb[82].mxu1 }
 0xaae   : > { %v3529_v0 = vpack.c.bf16 %v3438_v43, %v3435_v60  ;;  %v3440_v5 = vpop.f32.mrb[83].mxu1 }
 0xab0   : > { %8377 = vmatmul.mubr.msk.bf16.gmra.mrb[88].mxu0 %vm16318_vm7, %v3529_v0  ;;  %vm16320_vm7 = vcmp.eq.s32.totalorder %v8855_v29, %v16257_v61 }
 0xab1   : > { %7684 = vmatprep.mubr.msk.bf16.mxu0 %vm11703_vm1, %v15855_v13  ;;  %vm3786_vm11 = vmand %vm16320_vm7, %vm15574_vm9 }
 0xab2   : > { %vm11763_vm7 = vmpackc.low %vm3786_vm11, %vm3784_vm8  ;;  %vm16330_vm8 = vcmp.eq.s32.totalorder %v8855_v29, %v16267_v50  ;;  %vm16331_vm11 = vcmp.eq.s32.totalorder %v8855_v29, %v16269_v32 }
 0xab3   : > { %v11749_v22 = vpop.f32.mrb[84].mxu1  ;;  %vm3788_vm3 = vmand %vm16330_vm8, %vm15575_vm13  ;;  %vm16332_vm8 = vcmp.eq.s32.totalorder %v8808_v15, %v16278_v14 }
 0xab4   : > { %v3522_v40 = vpop.f32.mrb[85].mxu1  ;;  %vm3790_vm9 = vmand %vm16331_vm11, %vm15580_vm15 }
 0xab5   : > { %v3523_v20 = vpop.f32.mrb[86].mxu1  ;;  %vm3793_vm13 = vmand %vm16332_vm8, %vm15578_vm14  ;;  %vm15581_vm8 = vcmp.eq.s32.totalorder %v8857_v30, %v11758_v7 }
 0xab6   : > { %v3524_v54 = vpop.f32.mrb[87].mxu1  ;;  %vm11821_vm11 = vmpackc.low %vm3790_vm9, %vm3788_vm3  ;;  %vm16340_vm9 = vcmp.eq.s32.totalorder %v8855_v29, %v16278_v14  ;;  %vm16341_vm3 = vcmp.eq.s32.totalorder %v8855_v29, %v16280_v62 }
 0xab7   : > { %v16337_v1 = vsel %vm11821_vm11, 4294967295, %v16336_v1  ;;  %vm11827_vm14 = vmpackc.low %vm3795_vm6, %vm3793_vm13  ;;  %vm15617_vm13 = vcmp.eq.s32.totalorder %v8803_v12, %v11819_v44 }
 0xab8   : > { %7686 = vmatmul.mubr.msk.bf16.vlgmr.msra.gmra.mrb[92].mxu0 %vm11763_vm7, %v15855_v13  ;;  %vm3792_vm6 = vmand %vm16340_vm9, %vm15581_vm8  ;;  %vm16342_vm9 = vcmp.eq.s32.totalorder %v8808_v15, %v16288_v52 }
 0xab9   : > { %7702 = vmatpush1.bf16.xpose.msk.msra.mxu0 %vm11763_vm7, %v15855_v13  ;;  %7688 = vmatprep.mubr.msk.bf16.mxu0 %vm11769_vm4, %v15855_v13  ;;  %vm3794_vm15 = vmand %vm16341_vm3, %vm15586_vm5  ;;  %vm15629_vm5 = vcmp.eq.s32.totalorder %v8857_v30, %v11816_v53 }
 0xaba   : > { %7704 = vmatprep.subr.msk.bf16.mxu0 %vm11769_vm4, %v15855_v13  ;;  %vm3797_vm8 = vmand %vm16342_vm9, %vm15619_vm0  ;;  %vm15626_vm9 = vcmp.eq.s32.totalorder %v8857_v30, %v11819_v44  ;;  %vm16402_vm0 = vcmp.eq.s32.totalorder %v8803_v12, %v16270_v42 }
 0xabb   : > { %vm3799_vm10 = vmand %vm16343_vm2, %vm15617_vm13  ;;  %vm16348_vm2 = vcmp.eq.s32.totalorder %v8855_v29, %v16288_v52 }
 0xabc   : > { %vm11877_vm3 = vmpackc.low %vm3799_vm10, %vm3797_vm8 }
 0xabd   : > { %vm3796_vm10 = vmand %vm16348_vm2, %vm15629_vm5  ;;  %vm16352_vm2 = vcmask 523264  }
 0xac0   : > { %7690 = vmatmul.mubr.msk.bf16.gmra.mrb[96].mxu0 %vm11821_vm11, %v15855_v13 }
 0xac1   : > { %7706 = vmatpush1.bf16.xpose.msk.msra.mxu0 %vm11821_vm11, %v15855_v13  ;;  %7692 = vmatprep.mubr.msk.bf16.mxu0 %vm11827_vm14, %v15855_v13  ;;  %vm11873_vm11 = vmpackc.low %vm3794_vm15, %vm3792_vm6  ;;  %vm16349_vm15 = vcmp.eq.s32.totalorder %v8855_v29, %v16290_v51 }
 0xac2   : > { %7708 = vmatprep.subr.msk.bf16.mxu0 %vm11827_vm14, %v15855_v13  ;;  %vm3798_vm8 = vmand %vm16349_vm15, %vm15626_vm9 }
 0xac3   : > { %vm11909_vm6 = vmpackc.low %vm3798_vm8, %vm3796_vm10 }
 0xac4   : > { %vm16353_vm10 = vmmov %vm16352_vm2 }
 0xac5   : > { %vm16354_vm15 = vmmov %vm16352_vm2 }
 0xac6   : > { %vm16355_vm8 = vmmov %vm16352_vm2 }
 0xac8   : > { %7694 = vmatmul.mubr.msk.bf16.gmra.mrb[100].mxu0 %vm11873_vm11, %v15855_v13 }
 0xac9   : > { %7710 = vmatpush1.bf16.xpose.msk.msra.mxu0 %vm11873_vm11, %v15855_v13  ;;  %7696 = vmatprep.mubr.msk.bf16.mxu0 %vm11877_vm3, %v15855_v13 }
 0xaca   : > { %7712 = vmatprep.subr.msk.bf16.mxu0 %vm11877_vm3, %v15855_v13 }
 0xad0   : > { %7698 = vmatmul.mubr.msk.bf16.gmra.mrb[104].mxu0 %vm11909_vm6, %v15855_v13 }
 0xad1   : > { %7714 = vmatpush1.bf16.xpose.msk.msra.mxu0 %vm11909_vm6, %v15855_v13  ;;  %3921 = vmatprep.mubr.bf16.mxu0 %v11615_v10 }
 0xad8   : > { %3922 = vmatmul.mubr.bf16.vlgmr.msra.gmra.mrb[108].mxu0 %v11611_v4 }
 0xb73   : > { %v11921_v60 = vpop.f32.mrb[84].mxu0 }
 0xb74   : > { %v3580_v34 = vpop.f32.mrb[85].mxu0  ;;  %v3617_v54 = vsel %vm16355_vm8, %v11921_v60, -inf  ;;  %vm16358_vm8 = vmmov %vm16352_vm2 }
 0xb75   : > { %v11923_v43 = vpop.f32.mrb[86].mxu0  ;;  %v3611_v0 = vsel %vm16352_vm2, %v3580_v34, -inf }
 0xb76   : > { %3612 = vmax.xlane.f32.xlu1 %v3611_v0  ;;  %v3583_v5 = vpop.f32.mrb[87].mxu0  ;;  %v3620_v20 = vsel %vm16354_vm15, %v11923_v43, -inf  ;;  %vm16357_vm15 = vmmov %vm16352_vm2 }
 0xb77   : > { %v3614_v40 = vsel %vm16353_vm10, %v3583_v5, -inf  ;;  %vm16356_vm10 = vmmov %vm16352_vm2 }
 0xb78   : > { %3615 = vmax.xlane.f32.xlu0 %v3614_v40 }
 0xb7a   : > { %3621 = vmax.xlane.f32.xlu1 %v3620_v20 }
 0xb7c   : > { %3618 = vmax.xlane.f32.xlu0 %v3617_v54 }
 0xb83   : > { %v11931_v47 = vpop.f32.mrb[88].mxu0 }
 0xb84   : > { %v11933_v45 = vpop.f32.mrb[89].mxu0  ;;  %v3629_v20 = vsel %vm16357_vm15, %v11931_v47, -inf }
 0xb85   : > { %v11935_v23 = vpop.f32.mrb[90].mxu0  ;;  %v3623_v0 = vsel %vm16352_vm2, %v11933_v45, -inf  ;;  %vm16359_vm2 = vcmask 31744  }
 0xb86   : > { %3624 = vmax.xlane.f32.xlu0 %v3623_v0  ;;  %v11939_v3 = vpop.f32.mrb[91].mxu0  ;;  %v3632_v44 = vsel %vm16358_vm8, %v11935_v23, -inf  ;;  %vm16362_vm8 = vmmov %vm16359_vm2 }
 0xb87   : > { %v3626_v40 = vsel %vm16356_vm10, %v11939_v3, -inf  ;;  %vm16360_vm10 = vcmask 1041408   ;;  %vm16363_vm13 = vmmov %vm16359_vm2 }
 0xb88   : > { %3627 = vmax.xlane.f32.xlu1 %v3626_v40  ;;  %vm16361_vm15 = vmmov %vm16360_vm10 }
 0xb8a   : > { %3630 = vmax.xlane.f32.xlu0 %v3629_v20 }
 0xb8b   : > { %v3858_v54 = vpop.f32.mrb[92].mxu0 }
 0xb8c   : > { %v3860_v53 = vpop.f32.mrb[93].mxu0  ;;  %3633 = vmax.xlane.f32.xlu1 %v3632_v44 }
 0xb8d   : > { %v3861_v24 = vpop.f32.mrb[94].mxu0 }
 0xb8e   : > { %v3969_v7 = vpack.c.bf16 %v3861_v24, %v3858_v54  ;;  %v3863_v11 = vpop.f32.mrb[95].mxu0 }
 0xb90   : > { %8394 = vmatprep.mubr.msk.bf16.mxu0 %vm16359_vm2, %v3969_v7 }
 0xb93   : > { %v3866_v0 = vpop.f32.mrb[96].mxu0 }
 0xb94   : > { %v3868_v18 = vpop.f32.mrb[97].mxu0 }
 0xb95   : > { %v3869_v4 = vpop.f32.mrb[98].mxu0 }
 0xb96   : > { %v3970_v10 = vpack.c.bf16 %v3869_v4, %v3866_v0  ;;  %v3871_v40 = vpop.f32.mrb[99].mxu0 }
 0xb9b   : > { %v3874_v36 = vpop.f32.mrb[100].mxu0 }
 0xb9c   : > { %v3876_v38 = vpop.f32.mrb[101].mxu0 }
 0xb9d   : > { %v3877_v26 = vpop.f32.mrb[102].mxu0 }
 0xb9e   : > { %v3971_v20 = vpack.c.bf16 %v3877_v26, %v3874_v36  ;;  %v3879_v33 = vpop.f32.mrb[103].mxu0 }
 0xba3   : > { %v3882_v63 = vpop.f32.mrb[104].mxu0 }
 0xba4   : > { %v3884_v57 = vpop.f32.mrb[105].mxu0 }
 0xba5   : > { %v3885_v56 = vpop.f32.mrb[106].mxu0 }
 0xba6   : > { %v3972_v53 = vpack.c.bf16 %v3885_v56, %v3882_v63  ;;  %v3887_v44 = vpop.f32.mrb[107].mxu0 }
 0xbab   : > { %v3923_v37 = vpop.f32.mrb[108].mxu0 }
 0xbac   : > { %v3973_v24 = vpack.c.bf16 %v3923_v37, %v3923_v37  ;;  %v3925_v11 = vpop.f32.mrb[109].mxu0 }
 0xbad   : > { %v3926_v54 = vpop.f32.mrb[110].mxu0 }
 0xbae   : > { %v3987_v7 = vsel %vm16360_vm10, %v3973_v24, 0  ;;  %v3927_v18 = vpop.f32.mrb[111].mxu0  ;;  %8487 = vmatprep.subr.msk.bf16.mxu0 %vm16361_vm15, %v3973_v24 }
 0xbaf   : > { %8393 = vmatpush3.bf16.msra.mxu0 %v3987_v7 }
 0xbb0   : > { %8402 = vmatprep.subr.bf16.mxu0 %v15853_v8 }
 0xbb2   : > { %8395 = vmatmul.mubr.msk.bf16.vlgmr.msra.gmra.mrb[112].mxu0 %vm16362_vm8, %v3970_v10 }
 0xbb3   : > { %8398 = vmatprep.mubr.msk.bf16.mxu0 %vm16359_vm2, %v3971_v20 }
 0xbba   : > { %8399 = vmatmul.mubr.msk.bf16.gmra.mrb[116].mxu0 %vm16363_vm13, %v3972_v53  ;;  %vm16364_vm13 = vcmask 523264  }
 0xbbb   : > { %8410 = vmatprep.mubr.msk.bf16.mxu0 %vm16304_vm12, %v15853_v8  ;;  %vm16365_vm10 = vmmov %vm16364_vm13 }
 0xbbc   : > { %vm16366_vm15 = vmmov %vm16365_vm10 }
 0xbbd   : > { %vm16367_vm8 = vmmov %vm16365_vm10 }
 0xbbe   : > { %vm16368_vm2 = vmmov %vm16367_vm8 }
 0xc03   : > { %v3613_v56 = vpop.xlane.xlu1 %3612 }
 0xc04   : > { %v3635_v57 = vsub.f32 %v3580_v34, %v3613_v56 }
 0xc05   : > { %v3616_v63 = vpop.xlane.xlu0 %3615 }
 0xc06   : > { %v3643_v33 = vmul.f32 1.442695, %v3635_v57  ;;  %v3636_v37 = vsub.f32 %v3583_v5, %v3616_v63 }
 0xc07   : > { %v3622_v26 = vpop.xlane.xlu1 %3621 }
 0xc08   : > { %8505 = vpow2.f32 %v3643_v33  ;;  %v3645_v38 = vmul.f32 1.442695, %v3636_v37  ;;  %v3638_v36 = vsub.f32 %v11923_v43, %v3622_v26 }
 0xc09   : > { %v3619_v4 = vpop.xlane.xlu0 %3618 }
 0xc0a   : > { %8507 = vpow2.f32 %v3645_v38  ;;  %v3649_v10 = vmul.f32 1.442695, %v3638_v36  ;;  %v3637_v0 = vsub.f32 %v11921_v60, %v3619_v4 }
 0xc0c   : > { %8509 = vpow2.f32 %v3649_v10  ;;  %v3647_v40 = vmul.f32 1.442695, %v3637_v0 }
 0xc0e   : > { %8511 = vpow2.f32 %v3647_v40 }
 0xc12   : > { %v11958_v20 = vpop.eup %8505 }
 0xc13   : > { %v3625_v53 = vpop.xlane.xlu0 %3624  ;;  %v3659_v34 = vsel %vm16364_vm13, %v11958_v20, 0.0  ;;  %vm16369_vm13 = vmmov %vm16368_vm2 }
 0xc14   : > { %v11962_v5 = vpop.eup %8507  ;;  %v3639_v44 = vsub.f32 %v11933_v45, %v3625_v53  ;;  %3660 = vadd.xlane.f32.xlu0 %v3659_v34 }
 0xc15   : > { %v3628_v43 = vpop.xlane.xlu1 %3627  ;;  %v3662_v24 = vsel %vm16365_vm10, %v11962_v5, 0.0  ;;  %vm16370_vm10 = vmmov %vm16368_vm2 }
 0xc16   : > { %v11967_v11 = vpop.eup %8509  ;;  %v3651_v60 = vmul.f32 1.442695, %v3639_v44  ;;  %v3640_v54 = vsub.f32 %v11939_v3, %v3628_v43  ;;  %3663 = vadd.xlane.f32.xlu1 %v3662_v24 }
 0xc17   : > { %v3631_v7 = vpop.xlane.xlu0 %3630  ;;  %v3668_v33 = vsel %vm16367_vm8, %v11967_v11, 0.0  ;;  %vm16372_vm8 = vmmov %vm16368_vm2 }
 0xc18   : > { %v11970_v18 = vpop.eup %8511  ;;  %8513 = vpow2.f32 %v3651_v60  ;;  %v3653_v56 = vmul.f32 1.442695, %v3640_v54  ;;  %v3641_v57 = vsub.f32 %v11931_v47, %v3631_v7 }
 0xc19   : > { %v3634_v63 = vpop.xlane.xlu1 %3633  ;;  %v3665_v45 = vsel %vm16366_vm15, %v11970_v18, 0.0  ;;  %vm16371_vm15 = vmmov %vm16368_vm2 }
 0xc1a   : > { %8515 = vpow2.f32 %v3653_v56  ;;  %v3655_v37 = vmul.f32 1.442695, %v3641_v57  ;;  %v3642_v26 = vsub.f32 %v11935_v23, %v3634_v63  ;;  %3666 = vadd.xlane.f32.xlu0 %v3665_v45  ;;  %3669 = vadd.xlane.f32.xlu1 %v3668_v33 }
 0xc1c   : > { %8517 = vpow2.f32 %v3655_v37  ;;  %v3657_v3 = vmul.f32 1.442695, %v3642_v26 }
 0xc1e   : > { %8519 = vpow2.f32 %v3657_v3 }
 0xc22   : > { %v11978_v38 = vpop.eup %8513 }
 0xc23   : > { %v3671_v47 = vsel %vm16368_vm2, %v11978_v38, 0.0 }
 0xc24   : > { %v11982_v36 = vpop.eup %8515  ;;  %3672 = vadd.xlane.f32.xlu0 %v3671_v47 }
 0xc25   : > { %v3674_v4 = vsel %vm16369_vm13, %v11982_v36, 0.0  ;;  %vm16373_vm13 = vmmov %vm16368_vm2 }
 0xc26   : > { %v11986_v10 = vpop.eup %8517  ;;  %3675 = vadd.xlane.f32.xlu1 %v3674_v4 }
 0xc27   : > { %v3677_v23 = vsel %vm16370_vm10, %v11986_v10, 0.0  ;;  %vm16374_vm10 = vmmov %vm16368_vm2 }
 0xc28   : > { %v11990_v0 = vpop.eup %8519  ;;  %3678 = vadd.xlane.f32.xlu0 %v3677_v23 }
 0xc29   : > { %v3680_v40 = vsel %vm16371_vm15, %v11990_v0, 0.0  ;;  %vm16375_vm15 = vmmov %vm16368_vm2 }
 0xc2a   : > { %3681 = vadd.xlane.f32.xlu1 %v3680_v40 }
 0xc85   : > { %v11994_v53 = vpop.f32.mrb[112].mxu0 }
 0xc86   : > { %v11996_v34 = vpop.f32.mrb[113].mxu0  ;;  %v4060_v54 = vsel %vm16373_vm13, %v11994_v53, -inf  ;;  %vm16377_vm13 = vmmov %vm16368_vm2 }
 0xc87   : > { %v11998_v44 = vpop.f32.mrb[114].mxu0  ;;  %v4054_v43 = vsel %vm16372_vm8, %v11996_v34, -inf  ;;  %vm16376_vm8 = vmmov %vm16368_vm2 }
 0xc88   : > { %4055 = vmax.xlane.f32.xlu0 %v4054_v43  ;;  %v12002_v24 = vpop.f32.mrb[115].mxu0  ;;  %v4063_v56 = vsel %vm16374_vm10, %v11998_v44, -inf  ;;  %vm16378_vm10 = vmmov %vm16368_vm2 }
 0xc89   : > { %v4057_v60 = vsel %vm16368_vm2, %v12002_v24, -inf }
 0xc8a   : > { %4058 = vmax.xlane.f32.xlu1 %v4057_v60 }
 0xc8c   : > { %4061 = vmax.xlane.f32.xlu0 %v4060_v54 }
 0xc8d   : > { %v12008_v7 = vpop.f32.mrb[116].mxu0 }
 0xc8e   : > { %v12012_v57 = vpop.f32.mrb[117].mxu0  ;;  %4064 = vmax.xlane.f32.xlu1 %v4063_v56  ;;  %v4072_v26 = vsel %vm16368_vm2, %v12008_v7, -inf }
 0xc8f   : > { %v12014_v63 = vpop.f32.mrb[118].mxu0  ;;  %v4066_v45 = vsel %vm16375_vm15, %v12012_v57, -inf  ;;  %vm16379_vm15 = vmmov %vm16368_vm2 }
 0xc90   : > { %4067 = vmax.xlane.f32.xlu0 %v4066_v45  ;;  %v12018_v33 = vpop.f32.mrb[119].mxu0  ;;  %v4075_v3 = vsel %vm16377_vm13, %v12014_v63, -inf  ;;  %vm16381_vm13 = vmmov %vm16368_vm2 }
 0xc91   : > { %v4069_v37 = vsel %vm16376_vm8, %v12018_v33, -inf  ;;  %vm16380_vm8 = vmmov %vm16368_vm2 }
 0xc92   : > { %4070 = vmax.xlane.f32.xlu1 %v4069_v37 }
 0xc94   : > { %4073 = vmax.xlane.f32.xlu0 %v4072_v26 }
 0xc96   : > { %4076 = vmax.xlane.f32.xlu1 %v4075_v3 }
 0xca1   : > { %v3661_v47 = vpop.xlane.xlu0 %3660 }
 0xca2   : > { %8521 = vrcp.f32 %v3661_v47 }
 0xca3   : > { %v3664_v4 = vpop.xlane.xlu1 %3663 }
 0xca4   : > { %8523 = vrcp.f32 %v3664_v4 }
 0xca7   : > { %v3667_v23 = vpop.xlane.xlu0 %3666  ;;  %v3670_v40 = vpop.xlane.xlu1 %3669 }
 0xca8   : > { %8525 = vrcp.f32 %v3667_v23 }
 0xca9   : > { %8527 = vrcp.f32 %v3670_v40 }
 0xcac   : > { %v8522_v43 = vpop.eup %8521 }
 0xcad   : > { %v3691_v54 = vmul.f32 %v8522_v43, %v11958_v20 }
 0xcae   : > { %v8524_v60 = vpop.eup %8523 }
 0xcaf   : > { %v3692_v56 = vmul.f32 %v8524_v60, %v11962_v5 }
 0xcb1   : > { %v3673_v45 = vpop.xlane.xlu0 %3672  ;;  %v3700_v37 = vpack.c.bf16 %v3692_v56, %v3691_v54 }
 0xcb2   : > { %v8526_v26 = vpop.eup %8525  ;;  %8529 = vrcp.f32 %v3673_v45 }
 0xcb3   : > { %v8528_v49 = vpop.eup %8527  ;;  %v3676_v3 = vpop.xlane.xlu1 %3675  ;;  %v3708_v47 = vsel %vm16378_vm10, %v3700_v37, 0  ;;  %v3693_v4 = vmul.f32 %v8526_v26, %v11970_v18  ;;  %vm16382_vm10 = vnez %v16337_v1 }
 0xcb4   : > { %8531 = vrcp.f32 %v3676_v3  ;;  %8381 = vmatpush3.bf16.xpose.msra.mxu1 %v3708_v47  ;;  %v3694_v23 = vmul.f32 %v8528_v49, %v11967_v11 }
 0xcb5   : > { %v3679_v40 = vpop.xlane.xlu0 %3678  ;;  %8382 = vmatprep.subr.bf16.mxu1 %v15853_v8 }
 0xcb6   : > { %8533 = vrcp.f32 %v3679_v40  ;;  %v3701_v5 = vpack.c.bf16 %v3694_v23, %v3693_v4 }
 0xcb7   : > { %v3682_v20 = vpop.xlane.xlu1 %3681 }
 0xcb8   : > { %8535 = vrcp.f32 %v3682_v20  ;;  %v3711_v43 = vsel %vm16379_vm15, %v3701_v5, 0  ;;  %vm16390_vm15 = vmmov %vm16368_vm2 }
 0xcbc   : > { %v8530_v60 = vpop.eup %8529  ;;  %8383 = vmatpush3.bf16.xpose.msra.mxu1 %v3711_v43 }
 0xcbd   : > { %8384 = vmatprep.subr.bf16.mxu1 %v15853_v8  ;;  %v3695_v18 = vmul.f32 %v8530_v60, %v11978_v38  ;;  %v3699_v38 = vpack.c.bf16 %v11749_v22, %v11749_v22 }
 0xcbe   : > { %v8532_v54 = vpop.eup %8531 }
 0xcbf   : > { %v3696_v56 = vmul.f32 %v8532_v54, %v11982_v36 }
 0xcc0   : > { %v8534_v45 = vpop.eup %8533 }
 0xcc1   : > { %v3702_v49 = vpack.c.bf16 %v3696_v56, %v3695_v18  ;;  %v3697_v3 = vmul.f32 %v8534_v45, %v11986_v10 }
 0xcc2   : > { %v8536_v11 = vpop.eup %8535 }
 0xcc3   : > { %v3714_v37 = vsel %vm16380_vm8, %v3702_v49, 0  ;;  %v3698_v26 = vmul.f32 %v8536_v11, %v11990_v0  ;;  %vm16391_vm8 = vmmov %vm16368_vm2 }
 0xcc4   : > { %8385 = vmatpush3.bf16.xpose.msra.mxu1 %v3714_v37 }
 0xcc5   : > { %8386 = vmatprep.subr.bf16.mxu1 %v15853_v8  ;;  %v3703_v47 = vpack.c.bf16 %v3698_v26, %v3697_v3 }
 0xcc7   : > { %v3717_v4 = vsel %vm16368_vm2, %v3703_v47, 0 }
 0xccc   : > { %8387 = vmatpush3.bf16.xpose.msra.mxu1 %v3717_v4 }
 0xccd   : > { %7716 = vmatprep.subr.msk.bf16.mxu1 %vm11703_vm1, %v15855_v13 }
 0xcd3   : > { %8389 = vmatmul.mubr.msk.bf16.vlgmr.msra.gmra.mrb[88].mxu1 %vm16381_vm13, %v3699_v38  ;;  %vm16392_vm13 = vmmov %vm16368_vm2 }
 0xcd4   : > { %7718 = vmatpush1.bf16.xpose.msk.msra.mxu1 %vm11763_vm7, %v15855_v13  ;;  %3961 = vmatprep.mubr.bf16.mxu1 %v11662_v46 }
 0xcd5   : > { %7720 = vmatprep.subr.msk.bf16.mxu1 %vm11769_vm4, %v15855_v13 }
 0xcdc   : > { %7722 = vmatpush1.bf16.xpose.msk.msra.mxu1 %vm16382_vm10, %v15855_v13 }
 0xcdd   : > { %7724 = vmatprep.subr.msk.bf16.mxu1 %vm11827_vm14, %v15855_v13 }
 0xce4   : > { %7726 = vmatpush1.bf16.xpose.msk.msra.mxu1 %vm11873_vm11, %v15855_v13 }
 0xce5   : > { %7728 = vmatprep.subr.msk.bf16.mxu1 %vm11877_vm3, %v15855_v13 }
 0xcec   : > { %7730 = vmatpush1.bf16.xpose.msk.msra.mxu1 %vm11909_vm6, %v15855_v13 }
 0xced   : > { %7737 = vmatprep.subr.msk.bf16.mxu1 %vm11703_vm1, %v15855_v13  ;;  %vm16383_vm1 = vnez %v16264_v6 }
 0xcf3   : > { %3962 = vmatmul.mubr.bf16.vlgmr.msra.gmra.mrb[92].mxu1 %v11672_v16 }
 0xcf4   : > { %7739 = vmatpush1.bf16.msk.msra.mxu1 %vm11763_vm7, %v15855_v13  ;;  %4238 = vmatprep.mubr.bf16.mxu1 %v15856_v35  ;;  %vm16385_vm7 = vmmov %vm16368_vm2 }
 0xcf5   : > { %7741 = vmatprep.subr.msk.bf16.mxu1 %vm11769_vm4, %v15855_v13  ;;  %vm16386_vm4 = vmmov %vm16368_vm2 }
 0xcf8   : > { %7743 = vmatpush1.bf16.msk.msra.mxu1 %vm16382_vm10, %v15855_v13  ;;  %vm16393_vm10 = vmmov %vm16368_vm2 }
 0xcf9   : > { %7745 = vmatprep.subr.msk.bf16.mxu1 %vm11827_vm14, %v15855_v13  ;;  %vm16384_vm14 = vmmov %vm16368_vm2 }
 0xcfc   : > { %7747 = vmatpush1.bf16.msk.msra.mxu1 %vm11873_vm11, %v15855_v13  ;;  %vm16387_vm11 = vmmov %vm16368_vm2 }
 0xcfd   : > { %7749 = vmatprep.subr.msk.bf16.mxu1 %vm11877_vm3, %v15855_v13  ;;  %vm16388_vm3 = vmmov %vm16368_vm2 }
 0xd00   : > { %7751 = vmatpush1.bf16.msk.msra.mxu1 %vm11909_vm6, %v15855_v13  ;;  %vm16389_vm6 = vmmov %vm16368_vm2 }
 0xd01   : > { %7754 = vmatprep.subr.msk.bf16.mxu1 %vm16383_vm1, %v15855_v13 }
 0xd15   : > { %v4056_v19 = vpop.xlane.xlu0 %4055 }
 0xd16   : > { %v4078_v22 = vsub.f32 %v11996_v34, %v4056_v19 }
 0xd17   : > { %v4059_v27 = vpop.xlane.xlu1 %4058 }
 0xd18   : > { %v4086_v55 = vmul.f32 1.442695, %v4078_v22  ;;  %v4079_v1 = vsub.f32 %v12002_v24, %v4059_v27 }
 0xd19   : > { %v4062_v21 = vpop.xlane.xlu0 %4061 }
 0xd1a   : > { %8537 = vpow2.f32 %v4086_v55  ;;  %v4088_v25 = vmul.f32 1.442695, %v4079_v1  ;;  %v4080_v39 = vsub.f32 %v11994_v53, %v4062_v21 }
 0xd1b   : > { %v4065_v36 = vpop.xlane.xlu1 %4064 }
 0xd1c   : > { %8539 = vpow2.f32 %v4088_v25  ;;  %v4090_v41 = vmul.f32 1.442695, %v4080_v39  ;;  %v4081_v10 = vsub.f32 %v11998_v44, %v4065_v36 }
 0xd1d   : > { %v4068_v0 = vpop.xlane.xlu0 %4067 }
 0xd1e   : > { %8541 = vpow2.f32 %v4090_v41  ;;  %v4092_v6 = vmul.f32 1.442695, %v4081_v10  ;;  %v4082_v23 = vsub.f32 %v12012_v57, %v4068_v0 }
 0xd1f   : > { %v4071_v34 = vpop.xlane.xlu1 %4070 }
 0xd20   : > { %8543 = vpow2.f32 %v4092_v6  ;;  %v4094_v40 = vmul.f32 1.442695, %v4082_v23  ;;  %v4083_v24 = vsub.f32 %v12018_v33, %v4071_v34 }
 0xd21   : > { %v4074_v20 = vpop.xlane.xlu0 %4073 }
 0xd22   : > { %8545 = vpow2.f32 %v4094_v40  ;;  %v4096_v5 = vmul.f32 1.442695, %v4083_v24  ;;  %v4084_v53 = vsub.f32 %v12008_v7, %v4074_v20 }
 0xd23   : > { %v4077_v43 = vpop.xlane.xlu1 %4076 }
 0xd24   : > { %v8538_v60 = vpop.eup %8537  ;;  %8547 = vpow2.f32 %v4096_v5  ;;  %v4098_v54 = vmul.f32 1.442695, %v4084_v53  ;;  %v4085_v44 = vsub.f32 %v12014_v63, %v4077_v43 }
 0xd25   : > { %v4102_v18 = vsel %vm16384_vm14, %v8538_v60, 0.0  ;;  %vm16394_vm14 = vmmov %vm16368_vm2 }
 0xd26   : > { %v8540_v56 = vpop.eup %8539  ;;  %8549 = vpow2.f32 %v4098_v54  ;;  %v4100_v57 = vmul.f32 1.442695, %v4085_v44  ;;  %4103 = vadd.xlane.f32.xlu0 %v4102_v18 }
 0xd27   : > { %v4105_v45 = vsel %vm16385_vm7, %v8540_v56, 0.0 }
 0xd28   : > { %v8542_v33 = vpop.eup %8541  ;;  %8551 = vpow2.f32 %v4100_v57  ;;  %4106 = vadd.xlane.f32.xlu1 %v4105_v45 }
 0xd29   : > { %v4108_v49 = vsel %vm16386_vm4, %v8542_v33, 0.0  ;;  %vm16395_vm4 = vcmp.eq.s32.totalorder %v8803_v12, %v16256_v59 }
 0xd2a   : > { %v8544_v7 = vpop.eup %8543  ;;  %4109 = vadd.xlane.f32.xlu0 %v4108_v49 }
 0xd2b   : > { %v4111_v11 = vsel %vm16387_vm11, %v8544_v7, 0.0 }
 0xd2c   : > { %v8546_v37 = vpop.eup %8545  ;;  %4112 = vadd.xlane.f32.xlu1 %v4111_v11 }
 0xd2d   : > { %v4114_v63 = vsel %vm16388_vm3, %v8546_v37, 0.0  ;;  %vm16396_vm3 = vcmp.eq.s32.totalorder %v8803_v12, %v16258_v2 }
 0xd2e   : > { %v8548_v26 = vpop.eup %8547  ;;  %4115 = vadd.xlane.f32.xlu0 %v4114_v63 }
 0xd2f   : > { %v4117_v3 = vsel %vm16389_vm6, %v8548_v26, 0.0 }
 0xd30   : > { %v8550_v47 = vpop.eup %8549  ;;  %4118 = vadd.xlane.f32.xlu1 %v4117_v3 }
 0xd31   : > { %v4120_v4 = vsel %vm16390_vm15, %v8550_v47, 0.0 }
 0xd32   : > { %v8552_v38 = vpop.eup %8551  ;;  %4121 = vadd.xlane.f32.xlu0 %v4120_v4 }
 0xd33   : > { %v4123_v19 = vsel %vm16391_vm8, %v8552_v38, 0.0 }
 0xd34   : > { %4124 = vadd.xlane.f32.xlu1 %v4123_v19 }
 0xda6   : > { %v12114_v22 = vpop.f32.mrb[88].mxu1 }
 0xda7   : > { %v8390_v27 = vpop.f32.mrb[89].mxu1 }
 0xda8   : > { %v3756_v55 = vpop.f32.mrb[90].mxu1 }
 0xda9   : > { %v8391_v1 = vpop.f32.mrb[91].mxu1 }
 0xdb3   : > { %v4104_v21 = vpop.xlane.xlu0 %4103 }
 0xdb4   : > { %8553 = vrcp.f32 %v4104_v21  ;;  %v12123_v21 = vadd.s32 8, %v16255_v58  ;;  %v12147_v58 = vadd.s32 8, %v16267_v50 }
 0xdb5   : > { %v4107_v25 = vpop.xlane.xlu1 %4106 }
 0xdb6   : > { %8555 = vrcp.f32 %v4107_v25  ;;  %vm15625_vm1 = vcmp.eq.s32.totalorder %v8808_v15, %v12123_v21  ;;  %vm15620_vm15 = vcmp.eq.s32.totalorder %v8855_v29, %v12123_v21 }
 0xdb7   : > { %v4110_v39 = vpop.xlane.xlu0 %4109  ;;  %vm4316_vm11 = vmand %vm15625_vm1, %vm16395_vm4  ;;  %vm16410_vm1 = vcmp.eq.s32.totalorder %v8803_v12, %v16281_v31 }
 0xdb8   : > { %8557 = vrcp.f32 %v4110_v39 }
 0xdb9   : > { %v4113_v36 = vpop.xlane.xlu1 %4112 }
 0xdba   : > { %8559 = vrcp.f32 %v4113_v36 }
 0xdbb   : > { %v4116_v0 = vpop.xlane.xlu0 %4115 }
 0xdbd   : > { %v4119_v41 = vpop.xlane.xlu1 %4118 }
 0xdbe   : > { %v8554_v10 = vpop.eup %8553  ;;  %8561 = vrcp.f32 %v4119_v41 }
 0xdbf   : > { %v4134_v23 = vmul.f32 %v8554_v10, %v8538_v60  ;;  %8563 = vrcp.f32 %v4116_v0  ;;  %v4122_v44 = vpop.xlane.xlu0 %4121 }
 0xdc0   : > { %v8556_v6 = vpop.eup %8555 }
 0xdc1   : > { %v4135_v34 = vmul.f32 %v8556_v6, %v8540_v56  ;;  %v4125_v5 = vpop.xlane.xlu1 %4124 }
 0xdc2   : > { %v8558_v40 = vpop.eup %8557  ;;  %8565 = vrcp.f32 %v4125_v5 }
 0xdc3   : > { %v4143_v24 = vpack.c.bf16 %v4135_v34, %v4134_v23  ;;  %v4136_v57 = vmul.f32 %v8558_v40, %v8542_v33  ;;  %8567 = vrcp.f32 %v4122_v44  ;;  %v16430_v23 = vld [vmem:[#allocation11_spill] sm:$0xff]  ;;  %v16432_v34 = vld [vmem:[#allocation12_spill] sm:$0xff]  ;;  %v16434_v40 = vld [vmem:[#allocation17_spill] sm:$0xff] }
 0xdc4   : > { %v8560_v20 = vpop.eup %8559  ;;  %v16438_v44 = vld [vmem:[#allocation27_spill] sm:$0xff] }
 0xdc5   : > { %v4151_v53 = vsel %vm16368_vm2, %v4143_v24, 0  ;;  %v4137_v43 = vmul.f32 %v8560_v20, %v8544_v7  ;;  %v16436_v20 = vld [vmem:[#allocation20_spill] sm:$0xff] }
 0xdc6   : > { %v3963_v54 = vpop.f32.mrb[92].mxu1  ;;  %8403 = vmatpush3.bf16.xpose.msra.mxu0 %v4151_v53 }
 0xdc7   : > { %v3965_v18 = vpop.f32.mrb[93].mxu1  ;;  %8404 = vmatprep.subr.bf16.mxu0 %v15853_v8  ;;  %v4144_v60 = vpack.c.bf16 %v4137_v43, %v4136_v57  ;;  %v16442_v57 = vld [vmem:[#allocation37_spill] sm:$0xff] }
 0xdc8   : > { %v3966_v45 = vpop.f32.mrb[94].mxu1  ;;  %v8562_v56 = vpop.eup %8561  ;;  %v16440_v18 = vld [vmem:[#allocation30_spill] sm:$0xff] }
 0xdc9   : > { %v3967_v49 = vpop.f32.mrb[95].mxu1  ;;  %v8564_v11 = vpop.eup %8563  ;;  %v4154_v63 = vsel %vm16392_vm13, %v4144_v60, 0  ;;  %v4139_v3 = vmul.f32 %v8562_v56, %v8548_v26  ;;  %v12126_v26 = vadd.s32 8, %v16257_v61  ;;  %v12150_v61 = vadd.s32 8, %v16269_v32 }
 0xdca   : > { %v4138_v7 = vmul.f32 %v8564_v11, %v8546_v37  ;;  %vm15621_vm13 = vcmp.eq.s32.totalorder %v8808_v15, %v12147_v58  ;;  %v3759_v49 = vpack.c.bf16 %v12114_v22, %v12114_v22 }
 0xdcb   : > { %vm15624_vm7 = vcmp.eq.s32.totalorder %v8808_v15, %v12126_v26  ;;  %vm15623_vm2 = vcmp.eq.s32.totalorder %v8855_v29, %v12126_v26 }
 0xdcc   : > { %v4145_v4 = vpack.c.bf16 %v4139_v3, %v4138_v7  ;;  %v8566_v19 = vpop.eup %8565  ;;  %vm4318_vm6 = vmand %vm15624_vm7, %vm16396_vm3  ;;  %vm16400_vm3 = vcmp.eq.s32.totalorder %v8857_v30, %v16258_v2  ;;  %v12200_v2 = vadd.s32 8, %v16280_v62  ;;  %v16445_v3 = vld [vmem:[#allocation40_spill] sm:$0xff] }
 0xdcd   : > { %v8568_v27 = vpop.eup %8567  ;;  %v4141_v33 = vmul.f32 %v8566_v19, %v8552_v38  ;;  %vm12154_vm8 = vmpackc.low %vm4318_vm6, %vm4316_vm11  ;;  %vm15622_vm11 = vcmp.eq.s32.totalorder %v8808_v15, %v12150_v61 }
 0xdce   : > { %8405 = vmatpush3.bf16.xpose.msra.mxu0 %v4154_v63  ;;  %v4157_v55 = vsel %vm16393_vm10, %v4145_v4, 0  ;;  %v4140_v1 = vmul.f32 %v8568_v27, %v8550_v47  ;;  %v4142_v47 = vpack.c.bf16 %v3963_v54, %v3963_v54  ;;  %vm4317_vm6 = vmand %vm15623_vm2, %vm16400_vm3 }
 0xdcf   : > { %8406 = vmatprep.subr.bf16.mxu0 %v15853_v8 }
 0xdd0   : > { %v4146_v25 = vpack.c.bf16 %v4141_v33, %v4140_v1 }
 0xdd2   : > { %v4160_v37 = vsel %vm16394_vm14, %v4146_v25, 0  ;;  %vm16399_vm14 = vcmp.eq.s32.totalorder %v8857_v30, %v16256_v59  ;;  %v12197_v59 = vadd.s32 8, %v16278_v14  ;;  %v16411_v14 = vmov 0 }
 0xdd3   : > { %vm4315_vm4 = vmand %vm15620_vm15, %vm16399_vm14 }
 0xdd4   : > { %vm4322_vm15 = vmand %vm15622_vm11, %vm16402_vm0  ;;  %vm15631_vm0 = vcmp.eq.s32.totalorder %v8855_v29, %v12150_v61  ;;  %vm15627_vm11 = vcmp.eq.s32.totalorder %v8808_v15, %v12197_v59 }
 0xdd5   : > { %vm12202_vm3 = vmpackc.low %vm4317_vm6, %vm4315_vm4  ;;  %vm16407_vm4 = vcmp.eq.s32.totalorder %v8857_v30, %v16268_v28  ;;  %vm15628_vm6 = vcmp.eq.s32.totalorder %v8808_v15, %v12200_v2 }
 0xdd6   : > { %8407 = vmatpush3.bf16.xpose.msra.mxu0 %v4157_v55  ;;  %vm4326_vm9 = vmand %vm15628_vm6, %vm16410_vm1  ;;  %vm15635_vm1 = vcmp.eq.s32.totalorder %v8855_v29, %v12200_v2 }
 0xdd7   : > { %8408 = vmatprep.subr.bf16.mxu0 %v15853_v8 }
 0xdde   : > { %8409 = vmatpush3.bf16.xpose.msra.mxu0 %v4160_v37 }
 0xddf   : > { %4355 = vmatprep.subr.bf16.mxu0 %v11613_v48 }
 0xde5   : > { %8411 = vmatmul.mubr.msk.bf16.vlgmr.msra.gmra.mrb[120].mxu0 %vm16393_vm10, %v4142_v47  ;;  %vm16401_vm10 = vcmp.eq.s32.totalorder %v8803_v12, %v16268_v28  ;;  %v12255_v28 = vadd.s32 8, %v16288_v52  ;;  %v16419_v52 = vld [vmem:[#allocation35_spill] sm:$0xff] }
 0xde6   : > { %4356 = vmatpush1.bf16.xpose.msra.mxu0 %v11617_v17  ;;  %7771 = vmatprep.mubr.msk.bf16.mxu0 %vm12154_vm8, %v15855_v13  ;;  %vm4320_vm14 = vmand %vm15621_vm13, %vm16401_vm10  ;;  %vm15632_vm10 = vcmp.eq.s32.totalorder %v8855_v29, %v12147_v58 }
 0xde7   : > { %7803 = vmatprep.subr.msk.bf16.mxu0 %vm12154_vm8, %v15855_v13  ;;  %vm12208_vm13 = vmpackc.low %vm4322_vm15, %vm4320_vm14  ;;  %vm16408_vm14 = vcmp.eq.s32.totalorder %v8857_v30, %v16270_v42  ;;  %v12258_v42 = vadd.s32 8, %v16290_v51  ;;  %vm15637_vm6 = vcmp.eq.s32.totalorder %v8808_v15, %v12255_v28 }
 0xde8   : > { %vm4319_vm15 = vmand %vm15632_vm10, %vm16407_vm4  ;;  %vm16409_vm4 = vcmp.eq.s32.totalorder %v8803_v12, %v16279_v9 }
 0xde9   : > { %vm4321_vm2 = vmand %vm15631_vm0, %vm16408_vm14  ;;  %vm16420_vm0 = vcmp.eq.s32.totalorder %v8803_v12, %v16419_v52 }
 0xdea   : > { %vm4324_vm7 = vmand %vm15627_vm11, %vm16409_vm4  ;;  %vm15630_vm4 = vcmp.eq.s32.totalorder %v8855_v29, %v12197_v59 }
 0xdeb   : > { %vm12260_vm14 = vmpackc.low %vm4321_vm2, %vm4319_vm15  ;;  %vm16415_vm2 = vcmp.eq.s32.totalorder %v8857_v30, %v16279_v9  ;;  %vm16416_vm15 = vcmp.eq.s32.totalorder %v8857_v30, %v16281_v31  ;;  %v16417_v9 = vld [vmem:[#allocation34_spill] sm:$0xff] }
 0xdec   : > { %v16412_v14 = vsel %vm12260_vm14, 4294967295, %v16411_v14  ;;  %vm12266_vm11 = vmpackc.low %vm4326_vm9, %vm4324_vm7  ;;  %vm15636_vm7 = vcmp.eq.s32.totalorder %v8808_v15, %v12258_v42 }
 0xded   : > { %7773 = vmatmul.mubr.msk.bf16.vlgmr.msra.gmra.mrb[124].mxu0 %vm12202_vm3, %v15855_v13  ;;  %vm4323_vm9 = vmand %vm15630_vm4, %vm16415_vm2  ;;  %vm16418_vm2 = vcmp.eq.s32.totalorder %v8803_v12, %v16417_v9 }
 0xdee   : > { %7805 = vmatpush1.bf16.xpose.msk.msra.mxu0 %vm12202_vm3, %v15855_v13  ;;  %7775 = vmatprep.mubr.msk.bf16.mxu0 %vm12208_vm13, %v15855_v13  ;;  %vm4325_vm5 = vmand %vm15635_vm1, %vm16416_vm15  ;;  %vm4311_vm1 = vcmp.eq.s32.totalorder %v8855_v29, %v12255_v28 }
 0xdef   : > { %7807 = vmatprep.subr.msk.bf16.mxu0 %vm12208_vm13, %v15855_v13  ;;  %vm4328_vm4 = vmand %vm15637_vm6, %vm16418_vm2  ;;  %vm4313_vm2 = vcmp.eq.s32.totalorder %v8855_v29, %v12258_v42 }
 0xdf0   : > { %vm4330_vm10 = vmand %vm15636_vm7, %vm16420_vm0  ;;  %vm16426_vm0 = vcmp.eq.s32.totalorder %v8857_v30, %v16419_v52  ;;  %vm16437_vm7 = vnez %v16436_v20 }
 0xdf1   : > { %vm12316_vm15 = vmpackc.low %vm4330_vm10, %vm4328_vm4 }
 0xdf2   : > { %vm4329_vm4 = vmand %vm4313_vm2, %vm16426_vm0  ;;  %vm16433_vm0 = vnez %v16432_v34 }
 0xdf5   : > { %7777 = vmatmul.mubr.msk.bf16.gmra.mrb[128].mxu0 %vm12260_vm14, %v15855_v13 }
 0xdf6   : > { %7809 = vmatpush1.bf16.xpose.msk.msra.mxu0 %vm12260_vm14, %v15855_v13  ;;  %7779 = vmatprep.mubr.msk.bf16.mxu0 %vm12266_vm11, %v15855_v13  ;;  %vm12312_vm14 = vmpackc.low %vm4325_vm5, %vm4323_vm9  ;;  %vm16425_vm5 = vcmp.eq.s32.totalorder %v8857_v30, %v16417_v9 }
 0xdf7   : > { %7811 = vmatprep.subr.msk.bf16.mxu0 %vm12266_vm11, %v15855_v13  ;;  %vm4327_vm10 = vmand %vm4311_vm1, %vm16425_vm5  ;;  %vm16429_vm5 = vcmask 523264  }
 0xdf8   : > { %vm12348_vm9 = vmpackc.low %vm4329_vm4, %vm4327_vm10  ;;  %vm16431_vm10 = vnez %v16430_v23  ;;  %vm16435_vm4 = vnez %v16434_v40 }
 0xdfd   : > { %7781 = vmatmul.mubr.msk.bf16.gmra.mrb[132].mxu0 %vm12312_vm14, %v15855_v13 }
 0xdfe   : > { %7813 = vmatpush1.bf16.xpose.msk.msra.mxu0 %vm12312_vm14, %v15855_v13  ;;  %7783 = vmatprep.mubr.msk.bf16.mxu0 %vm12316_vm15, %v15855_v13 }
 0xdff   : > { %7815 = vmatprep.subr.msk.bf16.mxu0 %vm12316_vm15, %v15855_v13 }
 0xe05   : > { %7785 = vmatmul.mubr.msk.bf16.gmra.mrb[136].mxu0 %vm12348_vm9, %v15855_v13 }
 0xe06   : > { %7817 = vmatpush1.bf16.xpose.msk.msra.mxu0 %vm12348_vm9, %v15855_v13  ;;  %4492 = vmatprep.mubr.bf16.mxu0 %v11662_v46 }
 0xe07   : > { %8424 = vmatprep.subr.bf16.mxu0 %v15853_v8 }
 0xe0d   : > { %4493 = vmatmul.mubr.bf16.vlgmr.msra.gmra.mrb[140].mxu0 %v11672_v16 }
 0xe0e   : > { %8432 = vmatprep.mubr.msk.bf16.mxu0 %vm16304_vm12, %v15853_v8 }
 0xeb8   : > { %v4196_v36 = vpop.f32.mrb[120].mxu0 }
 0xeb9   : > { %v4202_v41 = vpack.c.bf16 %v4196_v36, %v4196_v36  ;;  %v8412_v10 = vpop.f32.mrb[121].mxu0 }
 0xeba   : > { %v4199_v0 = vpop.f32.mrb[122].mxu0 }
 0xebb   : > { %v8413_v6 = vpop.f32.mrb[123].mxu0  ;;  %7752 = vmatmul.mubr.msk.bf16.vlgmr.msra.gmra.mrb[96].mxu1 %vm16429_vm5, %v4202_v41  ;;  %vm16439_vm5 = vnez %v16438_v44  ;;  %v16447_v41 = vld [vmem:[#allocation39_spill] sm:$0xff] }
 0xebc   : > { %7756 = vmatpush1.bf16.msk.msra.mxu1 %vm16431_vm10, %v15855_v13  ;;  %4282 = vmatprep.mubr.bf16.mxu1 %v15856_v35  ;;  %vm16441_vm10 = vnez %v16440_v18 }
 0xebd   : > { %7758 = vmatprep.subr.msk.bf16.mxu1 %vm16433_vm0, %v15855_v13  ;;  %vm16443_vm0 = vnez %v16442_v57 }
 0xec0   : > { %7760 = vmatpush1.bf16.msk.msra.mxu1 %vm16435_vm4, %v15855_v13  ;;  %v4389_v24 = vpop.f32.mrb[124].mxu0  ;;  %vm16446_vm4 = vnez %v16412_v14 }
 0xec1   : > { %7762 = vmatprep.subr.msk.bf16.mxu1 %vm16437_vm7, %v15855_v13  ;;  %v4391_v5 = vpop.f32.mrb[125].mxu0  ;;  %vm16444_vm7 = vcmask 523264  }
 0xec2   : > { %v4392_v53 = vpop.f32.mrb[126].mxu0 }
 0xec3   : > { %v4500_v43 = vpack.c.bf16 %v4392_v53, %v4389_v24  ;;  %v4394_v54 = vpop.f32.mrb[127].mxu0 }
 0xec4   : > { %7764 = vmatpush1.bf16.msk.msra.mxu1 %vm16439_vm5, %v15855_v13  ;;  %vm16448_vm5 = vcmask 31744  }
 0xec5   : > { %7766 = vmatprep.subr.msk.bf16.mxu1 %vm16441_vm10, %v15855_v13  ;;  %vm16449_vm10 = vcmask 1041408  }
 0xec8   : > { %7768 = vmatpush1.bf16.msk.msra.mxu1 %vm16443_vm0, %v15855_v13  ;;  %v4397_v45 = vpop.f32.mrb[128].mxu0  ;;  %vm16450_vm0 = vmmov %vm16449_vm10 }
 0xec9   : > { %7787 = vmatprep.subr.msk.bf16.mxu1 %vm12154_vm8, %v15855_v13  ;;  %v4399_v60 = vpop.f32.mrb[129].mxu0 }
 0xeca   : > { %v4400_v56 = vpop.f32.mrb[130].mxu0 }
 0xecb   : > { %7769 = vmatmul.mubr.msk.bf16.vlgmr.msra.gmra.mrb[96].mxu1 %vm16444_vm7, %v3759_v49  ;;  %v4501_v11 = vpack.c.bf16 %v4400_v56, %v4397_v45  ;;  %v4402_v63 = vpop.f32.mrb[131].mxu0  ;;  %vm16451_vm7 = vmmov %vm16448_vm5 }
 0xecc   : > { %4452 = vmatprep.mubr.bf16.mxu1 %v16445_v3 }
 0xed0   : > { %v4405_v7 = vpop.f32.mrb[132].mxu0 }
 0xed1   : > { %7789 = vmatpush1.bf16.xpose.msk.msra.mxu1 %vm12202_vm3, %v15855_v13  ;;  %v4407_v4 = vpop.f32.mrb[133].mxu0 }
 0xed2   : > { %7791 = vmatprep.subr.msk.bf16.mxu1 %vm12208_vm13, %v15855_v13  ;;  %v4408_v22 = vpop.f32.mrb[134].mxu0 }
 0xed3   : > { %v4502_v19 = vpack.c.bf16 %v4408_v22, %v4405_v7  ;;  %v4410_v27 = vpop.f32.mrb[135].mxu0 }
 0xed8   : > { %v4413_v55 = vpop.f32.mrb[136].mxu0 }
 0xed9   : > { %7793 = vmatpush1.bf16.xpose.msk.msra.mxu1 %vm16446_vm4, %v15855_v13  ;;  %v4415_v33 = vpop.f32.mrb[137].mxu0 }
 0xeda   : > { %v4416_v1 = vpop.f32.mrb[138].mxu0  ;;  %7795 = vmatprep.subr.msk.bf16.mxu1 %vm12266_vm11, %v15855_v13 }
 0xedb   : > { %v4503_v25 = vpack.c.bf16 %v4416_v1, %v4413_v55  ;;  %v4418_v37 = vpop.f32.mrb[139].mxu0 }
 0xee0   : > { %v12405_v47 = vpop.f32.mrb[140].mxu0 }
 0xee1   : > { %7797 = vmatpush1.bf16.xpose.msk.msra.mxu1 %vm12312_vm14, %v15855_v13  ;;  %v4496_v9 = vpop.f32.mrb[141].mxu0 }
 0xee2   : > { %v4497_v52 = vpop.f32.mrb[142].mxu0  ;;  %7799 = vmatprep.subr.msk.bf16.mxu1 %vm12316_vm15, %v15855_v13 }
 0xee3   : > { %v4498_v36 = vpop.f32.mrb[143].mxu0 }
 0xee9   : > { %7801 = vmatpush1.bf16.xpose.msk.msra.mxu1 %vm12348_vm9, %v15855_v13 }
 0xef0   : > { %4453 = vmatmul.mubr.bf16.vlgmr.msra.gmra.mrb[100].mxu1 %v16447_v41 }
 0xef1   : > { %8416 = vmatprep.mubr.msk.bf16.mxu1 %vm16448_vm5, %v4500_v43 }
 0xfc3   : > { %v4454_v10 = vpop.f32.mrb[100].mxu1 }
 0xfc4   : > { %v4504_v0 = vpack.c.bf16 %v4454_v10, %v4454_v10  ;;  %v4456_v6 = vpop.f32.mrb[101].mxu1 }
 0xfc5   : > { %v4457_v23 = vpop.f32.mrb[102].mxu1 }
 0xfc6   : > { %v4518_v34 = vsel %vm16449_vm10, %v4504_v0, 0  ;;  %v4458_v40 = vpop.f32.mrb[103].mxu1  ;;  %8488 = vmatprep.subr.msk.bf16.mxu1 %vm16450_vm0, %v4504_v0 }
 0xfc7   : > { %8415 = vmatpush3.bf16.msra.mxu1 %v4518_v34 }
 0xfc8   : > { %7824 = vmatprep.subr.msk.bf16.mxu1 %vm12154_vm8, %v15855_v13  ;;  %vm16452_vm8 = vmmov %vm16448_vm5 }
 0xfca   : > { %8417 = vmatmul.mubr.msk.bf16.vlgmr.msra.gmra.mrb[104].mxu1 %vm16451_vm7, %v4501_v11 }
 0xfcb   : > { %7826 = vmatpush1.bf16.msk.msra.mxu1 %vm12202_vm3, %v15855_v13  ;;  %8420 = vmatprep.mubr.msk.bf16.mxu1 %vm16448_vm5, %v4502_v19 }
 0xfcc   : > { %7828 = vmatprep.subr.msk.bf16.mxu1 %vm12208_vm13, %v15855_v13  ;;  %vm16453_vm13 = vcmask 523264  }
 0xfcf   : > { %7830 = vmatpush1.bf16.msk.msra.mxu1 %vm16446_vm4, %v15855_v13 }
 0xfd0   : > { %7832 = vmatprep.subr.msk.bf16.mxu1 %vm12266_vm11, %v15855_v13  ;;  %vm16454_vm11 = vmmov %vm16453_vm13 }
 0xfd1   : > { %vm16455_vm3 = vmmov %vm16454_vm11 }
 0xfd2   : > { %8421 = vmatmul.mubr.msk.bf16.gmra.mrb[108].mxu1 %vm16452_vm8, %v4503_v25  ;;  %vm16459_vm4 = vmmov %vm16455_vm3 }
 0xfd3   : > { %7834 = vmatpush1.bf16.msk.msra.mxu1 %vm12312_vm14, %v15855_v13  ;;  %4769 = vmatprep.mubr.bf16.mxu1 %v15856_v35  ;;  %vm16456_vm14 = vmmov %vm16455_vm3 }
 0xfd4   : > { %7836 = vmatprep.subr.msk.bf16.mxu1 %vm12316_vm15, %v15855_v13  ;;  %vm16457_vm15 = vmmov %vm16455_vm3 }
 0xfd5   : > { %vm16460_vm10 = vmmov %vm16455_vm3 }
 0xfd6   : > { %vm16461_vm0 = vmmov %vm16455_vm3 }
 0xfd7   : > { %7838 = vmatpush1.bf16.msk.msra.mxu1 %vm12348_vm9, %v15855_v13  ;;  %vm16458_vm9 = vmmov %vm16455_vm3 }
 0xfd8   : > { %4820 = vmatprep.subr.bf16.mxu1 %v11613_v48  ;;  %vm16462_vm7 = vmmov %vm16461_vm0 }
 0xfd9   : > { %vm16463_vm5 = vmmov %vm16461_vm0 }
 0xfda   : > { %vm16464_vm8 = vmmov %vm16461_vm0 }
0x109d   : > { %v8418_v38 = vpop.f32.mrb[104].mxu1 }
0x109e   : > { %v4554_v50 = vpop.f32.mrb[105].mxu1  ;;  %v4591_v24 = vsel %vm16455_vm3, %v8418_v38, -inf  ;;  %vm16467_vm3 = vmmov %vm16461_vm0 }
0x109f   : > { %v8419_v32 = vpop.f32.mrb[106].mxu1  ;;  %v4585_v14 = vsel %vm16453_vm13, %v4554_v50, -inf  ;;  %vm16465_vm13 = vmmov %vm16461_vm0 }
0x10a0   : > { %4586 = vmax.xlane.f32.xlu0 %v4585_v14  ;;  %v4557_v62 = vpop.f32.mrb[107].mxu1  ;;  %v4594_v20 = vsel %vm16456_vm14, %v8419_v32, -inf  ;;  %vm16468_vm14 = vmmov %vm16461_vm0 }
0x10a1   : > { %v4588_v31 = vsel %vm16454_vm11, %v4557_v62, -inf  ;;  %vm16466_vm11 = vmmov %vm16461_vm0 }
0x10a2   : > { %4589 = vmax.xlane.f32.xlu1 %v4588_v31 }
0x10a4   : > { %4592 = vmax.xlane.f32.xlu0 %v4591_v24 }
0x10a5   : > { %v8422_v51 = vpop.f32.mrb[108].mxu1 }
0x10a6   : > { %4595 = vmax.xlane.f32.xlu1 %v4594_v20  ;;  %v4570_v39 = vpop.f32.mrb[109].mxu1  ;;  %v4603_v54 = vsel %vm16459_vm4, %v8422_v51, -inf }
0x10a7   : > { %v8423_v5 = vpop.f32.mrb[110].mxu1  ;;  %v4597_v48 = vsel %vm16457_vm15, %v4570_v39, -inf }
0x10a8   : > { %4598 = vmax.xlane.f32.xlu0 %v4597_v48  ;;  %v4573_v53 = vpop.f32.mrb[111].mxu1  ;;  %v4606_v44 = vsel %vm16460_vm10, %v8423_v5, -inf }
0x10a9   : > { %v4600_v43 = vsel %vm16458_vm9, %v4573_v53, -inf  ;;  %vm16471_vm9 = vcmp.eq.s32.totalorder %v8855_v29, %v12147_v58 }
0x10aa   : > { %4601 = vmax.xlane.f32.xlu1 %v4600_v43  ;;  %v16469_v43 = vld [vmem:[#allocation26_spill] sm:$0xff] }
0x10ab   : > { %vm16470_vm15 = vcmp.eq.s32.totalorder %v8857_v30, %v16469_v43 }
0x10ac   : > { %4604 = vmax.xlane.f32.xlu0 %v4603_v54  ;;  %vm4784_vm4 = vmand %vm16471_vm9, %vm16470_vm15  ;;  %v16472_v54 = vld [vmem:[#allocation28_spill] sm:$0xff] }
0x10ad   : > { %vm16473_vm10 = vcmp.eq.s32.totalorder %v8857_v30, %v16472_v54 }
0x10ae   : > { %4607 = vmax.xlane.f32.xlu1 %v4606_v44 }
0x112d   : > { %v4587_v18 = vpop.xlane.xlu0 %4586 }
0x112e   : > { %v4609_v57 = vsub.f32 %v4554_v50, %v4587_v18  ;;  %v16477_v18 = vld [vmem:[#allocation36_spill] sm:$0xff] }
0x112f   : > { %v4590_v45 = vpop.xlane.xlu1 %4589 }
0x1130   : > { %v4617_v49 = vmul.f32 1.442695, %v4609_v57  ;;  %v4610_v60 = vsub.f32 %v4557_v62, %v4590_v45  ;;  %v16480_v57 = vld [vmem:[#allocation38_spill] sm:$0xff] }
0x1131   : > { %v4593_v56 = vpop.xlane.xlu0 %4592 }
0x1132   : > { %8569 = vpow2.f32 %v4617_v49  ;;  %v4619_v11 = vmul.f32 1.442695, %v4610_v60  ;;  %v4611_v63 = vsub.f32 %v8418_v38, %v4593_v56  ;;  %v16485_v49 = vld [vmem:[#allocation4_spill] sm:$0xff]  ;;  %v16487_v60 = vld [vmem:[#allocation5_spill] sm:$0xff] }
0x1133   : > { %v4596_v7 = vpop.xlane.xlu1 %4595 }
0x1134   : > { %8571 = vpow2.f32 %v4619_v11  ;;  %v4621_v4 = vmul.f32 1.442695, %v4611_v63  ;;  %v4612_v22 = vsub.f32 %v8419_v32, %v4596_v7 }
0x1135   : > { %v4599_v19 = vpop.xlane.xlu0 %4598 }
0x1136   : > { %8573 = vpow2.f32 %v4621_v4  ;;  %v4623_v27 = vmul.f32 1.442695, %v4612_v22  ;;  %v4613_v55 = vsub.f32 %v4570_v39, %v4599_v19 }
0x1137   : > { %v4602_v33 = vpop.xlane.xlu1 %4601 }
0x1138   : > { %8575 = vpow2.f32 %v4623_v27  ;;  %v4625_v1 = vmul.f32 1.442695, %v4613_v55  ;;  %v4614_v25 = vsub.f32 %v4573_v53, %v4602_v33 }
0x1139   : > { %v4605_v37 = vpop.xlane.xlu0 %4604 }
0x113a   : > { %8577 = vpow2.f32 %v4625_v1  ;;  %v4627_v9 = vmul.f32 1.442695, %v4614_v25  ;;  %v4615_v52 = vsub.f32 %v8422_v51, %v4605_v37 }
0x113b   : > { %v4608_v36 = vpop.xlane.xlu1 %4607 }
0x113c   : > { %v8570_v10 = vpop.eup %8569  ;;  %8579 = vpow2.f32 %v4627_v9  ;;  %v4629_v0 = vmul.f32 1.442695, %v4615_v52  ;;  %v4616_v6 = vsub.f32 %v8423_v5, %v4608_v36 }
0x113d   : > { %v4633_v23 = vsel %vm16461_vm0, %v8570_v10, 0.0  ;;  %vm16474_vm0 = vcmp.eq.s32.totalorder %v8855_v29, %v12150_v61 }
0x113e   : > { %v8572_v34 = vpop.eup %8571  ;;  %8581 = vpow2.f32 %v4629_v0  ;;  %v4631_v40 = vmul.f32 1.442695, %v4616_v6  ;;  %4634 = vadd.xlane.f32.xlu0 %v4633_v23 }
0x113f   : > { %v4636_v38 = vsel %vm16462_vm7, %v8572_v34, 0.0  ;;  %vm4786_vm7 = vmand %vm16474_vm0, %vm16473_vm10  ;;  %vm16488_vm0 = vcmp.eq.s32.totalorder %v8857_v30, %v16487_v60 }
0x1140   : > { %v8574_v50 = vpop.eup %8573  ;;  %8583 = vpow2.f32 %v4631_v40  ;;  %4637 = vadd.xlane.f32.xlu1 %v4636_v38 }
0x1141   : > { %v4639_v32 = vsel %vm16463_vm5, %v8574_v50, 0.0  ;;  %vm12477_vm5 = vmpackc.low %vm4786_vm7, %vm4784_vm4  ;;  %vm16486_vm4 = vcmp.eq.s32.totalorder %v8857_v30, %v16485_v49 }
0x1142   : > { %v8576_v14 = vpop.eup %8575  ;;  %4640 = vadd.xlane.f32.xlu0 %v4639_v32  ;;  %vm4792_vm10 = vmand %vm4311_vm1, %vm16486_vm4  ;;  %vm16491_vm1 = vcmask 523264   ;;  %vm16499_vm4 = vcmp.eq.s32.totalorder %v8808_v15, %v12126_v26 }
0x1143   : > { %v4642_v62 = vsel %vm16464_vm8, %v8576_v14, 0.0  ;;  %vm16478_vm8 = vcmp.eq.s32.totalorder %v8857_v30, %v16477_v18  ;;  %vm4794_vm7 = vmand %vm4313_vm2, %vm16488_vm0 }
0x1144   : > { %v8578_v31 = vpop.eup %8577  ;;  %4643 = vadd.xlane.f32.xlu1 %v4642_v62  ;;  %vm16492_vm2 = vmmov %vm16491_vm1 }
0x1145   : > { %v4645_v24 = vsel %vm16465_vm13, %v8578_v31, 0.0  ;;  %vm16479_vm13 = vcmp.eq.s32.totalorder %v8855_v29, %v12197_v59 }
0x1146   : > { %v8580_v51 = vpop.eup %8579  ;;  %4646 = vadd.xlane.f32.xlu0 %v4645_v24 }
0x1147   : > { %v4648_v20 = vsel %vm16466_vm11, %v8580_v51, 0.0  ;;  %vm4788_vm11 = vmand %vm16479_vm13, %vm16478_vm8 }
0x1148   : > { %v8582_v39 = vpop.eup %8581  ;;  %4649 = vadd.xlane.f32.xlu1 %v4648_v20  ;;  %vm12509_vm8 = vmpackc.low %vm4794_vm7, %vm4792_vm10 }
0x1149   : > { %v4651_v5 = vsel %vm16467_vm3, %v8582_v39, 0.0  ;;  %vm16481_vm3 = vcmp.eq.s32.totalorder %v8857_v30, %v16480_v57  ;;  %vm16493_vm13 = vmmov %vm16491_vm1 }
0x114a   : > { %v8584_v48 = vpop.eup %8583  ;;  %4652 = vadd.xlane.f32.xlu0 %v4651_v5  ;;  %vm16502_vm7 = vmmov %vm16491_vm1 }
0x114b   : > { %v4654_v53 = vsel %vm16468_vm14, %v8584_v48, 0.0  ;;  %vm16482_vm14 = vcmp.eq.s32.totalorder %v8855_v29, %v12200_v2 }
0x114c   : > { %4655 = vadd.xlane.f32.xlu1 %v4654_v53  ;;  %vm4790_vm15 = vmand %vm16482_vm14, %vm16481_vm3  ;;  %vm16496_vm3 = vcmp.eq.s32.totalorder %v8808_v15, %v12123_v21 }
0x114d   : > { %vm12493_vm9 = vmpackc.low %vm4790_vm15, %vm4788_vm11 }
0x11cb   : > { %v4635_v11 = vpop.xlane.xlu0 %4634 }
0x11cc   : > { %8585 = vrcp.f32 %v4635_v11  ;;  %v16494_v11 = vld [vmem:[#allocation16_spill] sm:$0xff] }
0x11cd   : > { %v4638_v63 = vpop.xlane.xlu1 %4637  ;;  %vm16495_vm11 = vcmp.eq.s32.totalorder %v8803_v12, %v16494_v11 }
0x11ce   : > { %8587 = vrcp.f32 %v4638_v63  ;;  %vm4781_vm14 = vmand %vm16496_vm3, %vm16495_vm11  ;;  %vm16506_vm3 = vcmp.eq.s32.totalorder %v8855_v29, %v12126_v26 }
0x11cf   : > { %v4641_v7 = vpop.xlane.xlu0 %4640 }
0x11d0   : > { %8589 = vrcp.f32 %v4641_v7 }
0x11d1   : > { %v4644_v4 = vpop.xlane.xlu1 %4643 }
0x11d2   : > { %8591 = vrcp.f32 %v4644_v4 }
0x11d3   : > { %v4647_v27 = vpop.xlane.xlu0 %4646 }
0x11d5   : > { %v4650_v22 = vpop.xlane.xlu1 %4649 }
0x11d6   : > { %v8586_v19 = vpop.eup %8585  ;;  %8593 = vrcp.f32 %v4650_v22 }
0x11d7   : > { %v4665_v33 = vmul.f32 %v8586_v19, %v8570_v10  ;;  %8595 = vrcp.f32 %v4647_v27  ;;  %v4653_v6 = vpop.xlane.xlu0 %4652 }
0x11d8   : > { %v8588_v55 = vpop.eup %8587 }
0x11d9   : > { %v4666_v1 = vmul.f32 %v8588_v55, %v8572_v34  ;;  %v4656_v52 = vpop.xlane.xlu1 %4655 }
0x11da   : > { %v8590_v25 = vpop.eup %8589  ;;  %8597 = vrcp.f32 %v4656_v52 }
0x11db   : > { %v4674_v37 = vpack.c.bf16 %v4666_v1, %v4665_v33  ;;  %v4667_v23 = vmul.f32 %v8590_v25, %v8574_v50  ;;  %8599 = vrcp.f32 %v4653_v6 }
0x11dc   : > { %v8592_v9 = vpop.eup %8591 }
0x11dd   : > { %v4682_v36 = vsel %vm16491_vm1, %v4674_v37, 0  ;;  %v4668_v0 = vmul.f32 %v8592_v9, %v8576_v14  ;;  %vm16503_vm1 = vcmp.eq.s32.totalorder %v8857_v30, %v16494_v11 }
0x11de   : > { %8425 = vmatpush3.bf16.xpose.msra.mxu0 %v4682_v36 }
0x11df   : > { %8426 = vmatprep.subr.bf16.mxu0 %v15853_v8  ;;  %v4675_v40 = vpack.c.bf16 %v4668_v0, %v4667_v23 }
0x11e0   : > { %v8594_v38 = vpop.eup %8593 }
0x11e1   : > { %v8596_v32 = vpop.eup %8595  ;;  %v4685_v10 = vsel %vm16492_vm2, %v4675_v40, 0  ;;  %v4670_v34 = vmul.f32 %v8594_v38, %v8580_v51  ;;  %vm16504_vm2 = vcmp.eq.s32.totalorder %v8855_v29, %v12123_v21  ;;  %v4673_v21 = vpack.c.bf16 %v12405_v47, %v12405_v47 }
0x11e2   : > { %v4669_v62 = vmul.f32 %v8596_v32, %v8578_v31  ;;  %v16497_v31 = vld [vmem:[#allocation18_spill] sm:$0xff] }
0x11e3   : > { %vm16498_vm15 = vcmp.eq.s32.totalorder %v8803_v12, %v16497_v31  ;;  %vm16505_vm11 = vcmp.eq.s32.totalorder %v8857_v30, %v16497_v31 }
0x11e4   : > { %v4676_v24 = vpack.c.bf16 %v4670_v34, %v4669_v62  ;;  %v8598_v20 = vpop.eup %8597  ;;  %vm4783_vm10 = vmand %vm16499_vm4, %vm16498_vm15  ;;  %vm16507_vm15 = vcmp.eq.s32.totalorder %v8803_v12, %v16469_v43  ;;  %vm16508_vm4 = vcmp.eq.s32.totalorder %v8808_v15, %v12147_v58 }
0x11e5   : > { %v8600_v14 = vpop.eup %8599  ;;  %v4672_v53 = vmul.f32 %v8598_v20, %v8584_v48  ;;  %vm12531_vm0 = vmpackc.low %vm4783_vm10, %vm4781_vm14 }
0x11e6   : > { %8427 = vmatpush3.bf16.xpose.msra.mxu0 %v4685_v10  ;;  %v4688_v5 = vsel %vm16493_vm13, %v4676_v24, 0  ;;  %v4671_v50 = vmul.f32 %v8600_v14, %v8582_v39  ;;  %vm4780_vm13 = vmand %vm16504_vm2, %vm16503_vm1  ;;  %vm16510_vm1 = vcmp.eq.s32.totalorder %v8808_v15, %v12150_v61 }
0x11e7   : > { %8428 = vmatprep.subr.bf16.mxu0 %v15853_v8  ;;  %vm4782_vm14 = vmand %vm16506_vm3, %vm16505_vm11  ;;  %vm16515_vm3 = vcmask 523264  }
0x11e8   : > { %v4677_v51 = vpack.c.bf16 %v4672_v53, %v4671_v50  ;;  %vm4785_vm10 = vmand %vm16508_vm4, %vm16507_vm15  ;;  %vm16518_vm4 = vcmp.eq.s32.totalorder %v8803_v12, %v16480_v57 }
0x11e9   : > { %vm12565_vm6 = vmpackc.low %vm4782_vm14, %vm4780_vm13  ;;  %vm16516_vm13 = vcmp.eq.s32.totalorder %v8803_v12, %v16477_v18  ;;  %vm16517_vm14 = vcmp.eq.s32.totalorder %v8808_v15, %v12197_v59 }
0x11ea   : > { %v4691_v39 = vsel %vm16502_vm7, %v4677_v51, 0  ;;  %vm16509_vm7 = vcmp.eq.s32.totalorder %v8803_v12, %v16472_v54  ;;  %vm4789_vm15 = vmand %vm16517_vm14, %vm16516_vm13  ;;  %vm16524_vm14 = vcmp.eq.s32.totalorder %v8803_v12, %v16487_v60 }
0x11eb   : > { %vm4787_vm2 = vmand %vm16510_vm1, %vm16509_vm7 }
0x11ec   : > { %vm12569_vm11 = vmpackc.low %vm4787_vm2, %vm4785_vm10  ;;  %vm16519_vm10 = vcmp.eq.s32.totalorder %v8808_v15, %v12200_v2  ;;  %vm16522_vm2 = vcmp.eq.s32.totalorder %v8803_v12, %v16485_v49 }
0x11ed   : > { %vm4791_vm7 = vmand %vm16519_vm10, %vm16518_vm4 }
0x11ee   : > { %8429 = vmatpush3.bf16.xpose.msra.mxu0 %v4688_v5  ;;  %vm12593_vm1 = vmpackc.low %vm4791_vm7, %vm4789_vm15  ;;  %vm16525_vm15 = vcmp.eq.s32.totalorder %v8808_v15, %v12258_v42  ;;  %vm16528_vm7 = vcmask 523264  }
0x11ef   : > { %8430 = vmatprep.subr.bf16.mxu0 %v15853_v8  ;;  %vm4795_vm4 = vmand %vm16525_vm15, %vm16524_vm14 }
0x11f6   : > { %8431 = vmatpush3.bf16.xpose.msra.mxu0 %v4691_v39 }
0x11f7   : > { %7873 = vmatprep.subr.msk.bf16.mxu0 %vm12531_vm0, %v15855_v13 }
0x11fd   : > { %8433 = vmatmul.mubr.msk.bf16.vlgmr.msra.gmra.mrb[144].mxu0 %vm16515_vm3, %v4673_v21  ;;  %vm16523_vm3 = vcmp.eq.s32.totalorder %v8808_v15, %v12255_v28 }
0x11fe   : > { %7875 = vmatpush1.bf16.xpose.msk.msra.mxu0 %vm12565_vm6, %v15855_v13  ;;  %4957 = vmatprep.mubr.bf16.mxu0 %v11662_v46  ;;  %vm4793_vm13 = vmand %vm16523_vm3, %vm16522_vm2  ;;  %vm16530_vm2 = vcmask 1041408  }
0x11ff   : > { %7877 = vmatprep.subr.msk.bf16.mxu0 %vm12569_vm11, %v15855_v13  ;;  %vm12615_vm10 = vmpackc.low %vm4795_vm4, %vm4793_vm13 }
0x1200   : > { %vm16531_vm3 = vmmov %vm16530_vm2 }
0x1206   : > { %7879 = vmatpush1.bf16.xpose.msk.msra.mxu0 %vm12477_vm5, %v15855_v13 }
0x1207   : > { %7881 = vmatprep.subr.msk.bf16.mxu0 %vm12593_vm1, %v15855_v13 }
0x120e   : > { %7883 = vmatpush1.bf16.xpose.msk.msra.mxu0 %vm12493_vm9, %v15855_v13 }
0x120f   : > { %7885 = vmatprep.subr.msk.bf16.mxu0 %vm12615_vm10, %v15855_v13 }
0x1216   : > { %7887 = vmatpush1.bf16.xpose.msk.msra.mxu0 %vm12509_vm8, %v15855_v13 }
0x1217   : > { %8446 = vmatprep.subr.bf16.mxu0 %v15853_v8 }
0x121d   : > { %4958 = vmatmul.mubr.bf16.vlgmr.msra.gmra.mrb[148].mxu0 %v11672_v16 }
0x121e   : > { %8454 = vmatprep.mubr.msk.bf16.mxu0 %vm16304_vm12, %v15853_v8  ;;  %vm16529_vm12 = vcmask 31744  }
0x121f   : > { %vm16532_vm13 = vmmov %vm16529_vm12 }
0x1220   : > { %vm16533_vm14 = vmmov %vm16529_vm12 }
0x12d0   : > { %v4727_v61 = vpop.f32.mrb[144].mxu0 }
0x12d1   : > { %v4733_v59 = vpack.c.bf16 %v4727_v61, %v4727_v61  ;;  %v8434_v2 = vpop.f32.mrb[145].mxu0 }
0x12d2   : > { %v4730_v28 = vpop.f32.mrb[146].mxu0 }
0x12d3   : > { %v8435_v42 = vpop.f32.mrb[147].mxu0  ;;  %7839 = vmatmul.mubr.msk.bf16.vlgmr.msra.gmra.mrb[96].mxu1 %vm16528_vm7, %v4733_v59 }
0x12d4   : > { %4821 = vmatpush1.bf16.xpose.msra.mxu1 %v11617_v17  ;;  %7841 = vmatprep.mubr.msk.bf16.mxu1 %vm12531_vm0, %v15855_v13 }
0x12d5   : > { %7857 = vmatprep.subr.msk.bf16.mxu1 %vm12531_vm0, %v15855_v13 }
0x12db   : > { %7843 = vmatmul.mubr.msk.bf16.vlgmr.msra.gmra.mrb[112].mxu1 %vm12565_vm6, %v15855_v13 }
0x12dc   : > { %7859 = vmatpush1.bf16.xpose.msk.msra.mxu1 %vm12565_vm6, %v15855_v13  ;;  %7845 = vmatprep.mubr.msk.bf16.mxu1 %vm12569_vm11, %v15855_v13 }
0x12dd   : > { %7861 = vmatprep.subr.msk.bf16.mxu1 %vm12569_vm11, %v15855_v13 }
0x12e3   : > { %7847 = vmatmul.mubr.msk.bf16.gmra.mrb[116].mxu1 %vm12477_vm5, %v15855_v13 }
0x12e4   : > { %7863 = vmatpush1.bf16.xpose.msk.msra.mxu1 %vm12477_vm5, %v15855_v13  ;;  %7849 = vmatprep.mubr.msk.bf16.mxu1 %vm12593_vm1, %v15855_v13 }
0x12e5   : > { %7865 = vmatprep.subr.msk.bf16.mxu1 %vm12593_vm1, %v15855_v13 }
0x12eb   : > { %7851 = vmatmul.mubr.msk.bf16.gmra.mrb[120].mxu1 %vm12493_vm9, %v15855_v13 }
0x12ec   : > { %7867 = vmatpush1.bf16.xpose.msk.msra.mxu1 %vm12493_vm9, %v15855_v13  ;;  %7853 = vmatprep.mubr.msk.bf16.mxu1 %vm12615_vm10, %v15855_v13 }
0x12ed   : > { %7869 = vmatprep.subr.msk.bf16.mxu1 %vm12615_vm10, %v15855_v13 }
0x12f0   : > { %v12676_v17 = vpop.f32.mrb[148].mxu0 }
0x12f1   : > { %v4961_v16 = vpop.f32.mrb[149].mxu0 }
0x12f2   : > { %v4962_v47 = vpop.f32.mrb[150].mxu0 }
0x12f3   : > { %7855 = vmatmul.mubr.msk.bf16.gmra.mrb[124].mxu1 %vm12509_vm8, %v15855_v13  ;;  %v4963_v54 = vpop.f32.mrb[151].mxu0 }
0x12f4   : > { %7871 = vmatpush1.bf16.xpose.msk.msra.mxu1 %vm12509_vm8, %v15855_v13  ;;  %4917 = vmatprep.mubr.bf16.mxu1 %v16445_v3 }
0x12fb   : > { %4918 = vmatmul.mubr.bf16.vlgmr.msra.gmra.mrb[128].mxu1 %v16447_v41 }
0x13ae   : > { %v4854_v18 = vpop.f32.mrb[112].mxu1 }
0x13af   : > { %v4856_v57 = vpop.f32.mrb[113].mxu1 }
0x13b0   : > { %v4857_v49 = vpop.f32.mrb[114].mxu1 }
0x13b1   : > { %v4965_v60 = vpack.c.bf16 %v4857_v49, %v4854_v18  ;;  %v4859_v63 = vpop.f32.mrb[115].mxu1 }
0x13b3   : > { %8438 = vmatprep.mubr.msk.bf16.mxu1 %vm16529_vm12, %v4965_v60 }
0x13b6   : > { %v4862_v7 = vpop.f32.mrb[116].mxu1 }
0x13b7   : > { %v4864_v4 = vpop.f32.mrb[117].mxu1 }
0x13b8   : > { %v4865_v22 = vpop.f32.mrb[118].mxu1 }
0x13b9   : > { %v4966_v19 = vpack.c.bf16 %v4865_v22, %v4862_v7  ;;  %v4867_v27 = vpop.f32.mrb[119].mxu1 }
0x13be   : > { %v4870_v55 = vpop.f32.mrb[120].mxu1 }
0x13bf   : > { %v4872_v33 = vpop.f32.mrb[121].mxu1 }
0x13c0   : > { %v4873_v1 = vpop.f32.mrb[122].mxu1 }
0x13c1   : > { %v4967_v25 = vpack.c.bf16 %v4873_v1, %v4870_v55  ;;  %v4875_v37 = vpop.f32.mrb[123].mxu1 }
0x13c6   : > { %v4878_v3 = vpop.f32.mrb[124].mxu1 }
0x13c7   : > { %v4880_v9 = vpop.f32.mrb[125].mxu1 }
0x13c8   : > { %v4881_v41 = vpop.f32.mrb[126].mxu1 }
0x13c9   : > { %v4968_v52 = vpack.c.bf16 %v4881_v41, %v4878_v3  ;;  %v4883_v36 = vpop.f32.mrb[127].mxu1 }
0x13ce   : > { %v4919_v0 = vpop.f32.mrb[128].mxu1 }
0x13cf   : > { %v4969_v6 = vpack.c.bf16 %v4919_v0, %v4919_v0  ;;  %v4921_v23 = vpop.f32.mrb[129].mxu1 }
0x13d0   : > { %v4922_v40 = vpop.f32.mrb[130].mxu1 }
0x13d1   : > { %v4983_v38 = vsel %vm16530_vm2, %v4969_v6, 0  ;;  %v4923_v32 = vpop.f32.mrb[131].mxu1  ;;  %8489 = vmatprep.subr.msk.bf16.mxu1 %vm16531_vm3, %v4969_v6 }
0x13d2   : > { %8437 = vmatpush3.bf16.msra.mxu1 %v4983_v38 }
0x13d3   : > { %7894 = vmatprep.subr.msk.bf16.mxu1 %vm12531_vm0, %v15855_v13  ;;  %vm16534_vm0 = vmmov %vm16529_vm12 }
0x13d5   : > { %8439 = vmatmul.mubr.msk.bf16.vlgmr.msra.gmra.mrb[132].mxu1 %vm16532_vm13, %v4966_v19 }
0x13d6   : > { %8442 = vmatprep.mubr.msk.bf16.mxu1 %vm16533_vm14, %v4967_v25  ;;  %7896 = vmatpush1.bf16.msk.msra.mxu1 %vm12565_vm6, %v15855_v13  ;;  %vm16535_vm6 = vmmov %vm16528_vm7 }
0x13d7   : > { %7898 = vmatprep.subr.msk.bf16.mxu1 %vm12569_vm11, %v15855_v13 }
0x13da   : > { %7900 = vmatpush1.bf16.msk.msra.mxu1 %vm12477_vm5, %v15855_v13  ;;  %vm16536_vm5 = vmmov %vm16535_vm6 }
0x13db   : > { %7902 = vmatprep.subr.msk.bf16.mxu1 %vm12593_vm1, %v15855_v13  ;;  %vm16538_vm11 = vmmov %vm16536_vm5 }
0x13dc   : > { %vm16540_vm1 = vmmov %vm16536_vm5 }
0x13dd   : > { %8443 = vmatmul.mubr.msk.bf16.gmra.mrb[136].mxu1 %vm16534_vm0, %v4968_v52  ;;  %vm16541_vm15 = vmmov %vm16540_vm1 }
0x13de   : > { %7904 = vmatpush1.bf16.msk.msra.mxu1 %vm12493_vm9, %v15855_v13  ;;  %5234 = vmatprep.mubr.bf16.mxu1 %v15856_v35  ;;  %vm16537_vm9 = vmmov %vm16536_vm5 }
0x13df   : > { %7906 = vmatprep.subr.msk.bf16.mxu1 %vm12615_vm10, %v15855_v13  ;;  %vm16542_vm4 = vmmov %vm16540_vm1 }
0x13e0   : > { %vm16543_vm10 = vmmov %vm16540_vm1 }
0x13e1   : > { %vm16544_vm7 = vmmov %vm16540_vm1 }
0x13e2   : > { %7908 = vmatpush1.bf16.msk.msra.mxu1 %vm12509_vm8, %v15855_v13  ;;  %vm16539_vm8 = vmmov %vm16536_vm5 }
0x13e3   : > { %vm16545_vm12 = vmmov %vm16540_vm1 }
0x13e4   : > { %vm16546_vm2 = vmmov %vm16540_vm1 }
0x13e5   : > { %vm16547_vm3 = vmmov %vm16540_vm1 }
0x13e6   : > { %vm16548_vm13 = vmmov %vm16540_vm1 }
0x13e7   : > { %vm16549_vm14 = vmmov %vm16540_vm1 }
0x13e8   : > { %vm16550_vm0 = vmmov %vm16540_vm1 }
0x14a8   : > { %v8440_v44 = vpop.f32.mrb[132].mxu1 }
0x14a9   : > { %v5019_v10 = vpop.f32.mrb[133].mxu1  ;;  %v5056_v20 = vsel %vm16537_vm9, %v8440_v44, -inf  ;;  %vm16553_vm9 = vmmov %vm16550_vm0 }
0x14aa   : > { %v8441_v34 = vpop.f32.mrb[134].mxu1  ;;  %v5050_v62 = vsel %vm16535_vm6, %v5019_v10, -inf  ;;  %vm16551_vm6 = vmmov %vm16550_vm0 }
0x14ab   : > { %5051 = vmax.xlane.f32.xlu0 %v5050_v62  ;;  %v5022_v24 = vpop.f32.mrb[135].mxu1  ;;  %v5059_v5 = vsel %vm16538_vm11, %v8441_v34, -inf  ;;  %vm16554_vm11 = vmmov %vm16550_vm0 }
0x14ac   : > { %v5053_v45 = vsel %vm16536_vm5, %v5022_v24, -inf  ;;  %vm16552_vm5 = vmmov %vm16550_vm0 }
0x14ad   : > { %5054 = vmax.xlane.f32.xlu1 %v5053_v45 }
0x14af   : > { %5057 = vmax.xlane.f32.xlu0 %v5056_v20 }
0x14b0   : > { %v8444_v14 = vpop.f32.mrb[136].mxu1 }
0x14b1   : > { %5060 = vmax.xlane.f32.xlu1 %v5059_v5  ;;  %v5035_v53 = vpop.f32.mrb[137].mxu1  ;;  %v5068_v31 = vsel %vm16541_vm15, %v8444_v14, -inf  ;;  %vm16557_vm15 = vcmask 1041408  }
0x14b2   : > { %v8445_v56 = vpop.f32.mrb[138].mxu1  ;;  %v5062_v50 = vsel %vm16539_vm8, %v5035_v53, -inf  ;;  %vm16555_vm8 = vmmov %vm16550_vm0 }
0x14b3   : > { %5063 = vmax.xlane.f32.xlu0 %v5062_v50  ;;  %v5038_v11 = vpop.f32.mrb[139].mxu1  ;;  %v5071_v48 = vsel %vm16542_vm4, %v8445_v56, -inf  ;;  %vm16558_vm4 = vmmov %vm16557_vm15 }
0x14b4   : > { %v5065_v51 = vsel %vm16540_vm1, %v5038_v11, -inf  ;;  %vm16556_vm1 = vmmov %vm16550_vm0 }
0x14b5   : > { %5066 = vmax.xlane.f32.xlu1 %v5065_v51 }
0x14b7   : > { %5069 = vmax.xlane.f32.xlu0 %v5068_v31 }
0x14b9   : > { %5072 = vmax.xlane.f32.xlu1 %v5071_v48 }
0x1538   : > { %v5052_v39 = vpop.xlane.xlu0 %5051 }
0x1539   : > { %v5074_v21 = vsub.f32 %v5019_v10, %v5052_v39  ;;  %v5248_v10 = vld [vmem:[%s15315_s14] sm:$0xff] }
0x153a   : > { %v5055_v26 = vpop.xlane.xlu1 %5054 }
0x153b   : > { %v5082_v43 = vmul.f32 1.442695, %v5074_v21  ;;  %v5075_v46 = vsub.f32 %v5022_v24, %v5055_v26 }
0x153c   : > { %v5058_v58 = vpop.xlane.xlu0 %5057 }
0x153d   : > { %8601 = vpow2.f32 %v5082_v43  ;;  %v5084_v61 = vmul.f32 1.442695, %v5075_v46  ;;  %v5076_v59 = vsub.f32 %v8440_v44, %v5058_v58  ;;  %v5309_v44 = vld [vmem:[%s15317_s16] sm:$0xff] }
0x153e   : > { %v5061_v2 = vpop.xlane.xlu1 %5060 }
0x153f   : > { %8603 = vpow2.f32 %v5084_v61  ;;  %v5086_v28 = vmul.f32 1.442695, %v5076_v59  ;;  %v5077_v42 = vsub.f32 %v8441_v34, %v5061_v2 }
0x1540   : > { %v5064_v16 = vpop.xlane.xlu0 %5063 }
0x1541   : > { %8605 = vpow2.f32 %v5086_v28  ;;  %v5088_v47 = vmul.f32 1.442695, %v5077_v42  ;;  %v5078_v54 = vsub.f32 %v5035_v53, %v5064_v16 }
0x1542   : > { %v5067_v18 = vpop.xlane.xlu1 %5066 }
0x1543   : > { %8607 = vpow2.f32 %v5088_v47  ;;  %v5090_v57 = vmul.f32 1.442695, %v5078_v54  ;;  %v5079_v49 = vsub.f32 %v5038_v11, %v5067_v18 }
0x1544   : > { %v5070_v60 = vpop.xlane.xlu0 %5069 }
0x1545   : > { %8609 = vpow2.f32 %v5090_v57  ;;  %v5092_v63 = vmul.f32 1.442695, %v5079_v49  ;;  %v5080_v7 = vsub.f32 %v8444_v14, %v5070_v60 }
0x1546   : > { %v5073_v4 = vpop.xlane.xlu1 %5072 }
0x1547   : > { %v8602_v22 = vpop.eup %8601  ;;  %8611 = vpow2.f32 %v5092_v63  ;;  %v5094_v19 = vmul.f32 1.442695, %v5080_v7  ;;  %v5081_v27 = vsub.f32 %v8445_v56, %v5073_v4  ;;  %v5138_v63 = vpack.c.bf16 %v12676_v17, %v12676_v17  ;;  %v5245_v17 = vld [vmem:[%s15314_s13] sm:$0xf] }
0x1548   : > { %v5098_v55 = vsel %vm16543_vm10, %v8602_v22, 0.0  ;;  %vm16559_vm10 = vcmask 31744  }
0x1549   : > { %v8604_v33 = vpop.eup %8603  ;;  %8613 = vpow2.f32 %v5094_v19  ;;  %v5096_v1 = vmul.f32 1.442695, %v5081_v27  ;;  %5099 = vadd.xlane.f32.xlu0 %v5098_v55 }
0x154a   : > { %v5101_v25 = vsel %vm16544_vm7, %v8604_v33, 0.0  ;;  %vm16564_vm7 = vcmask 1043456  }
0x154b   : > { %v8606_v37 = vpop.eup %8605  ;;  %8615 = vpow2.f32 %v5096_v1  ;;  %5102 = vadd.xlane.f32.xlu1 %v5101_v25 }
0x154c   : > { %v5104_v3 = vsel %vm16545_vm12, %v8606_v37, 0.0  ;;  %vm16565_vm12 = vmmov %vm16564_vm7 }
0x154d   : > { %v8608_v9 = vpop.eup %8607  ;;  %5105 = vadd.xlane.f32.xlu0 %v5104_v3 }
0x154e   : > { %v5107_v41 = vsel %vm16546_vm2, %v8608_v9, 0.0  ;;  %vm16566_vm2 = vcmask 64512  }
0x154f   : > { %v8610_v52 = vpop.eup %8609  ;;  %5108 = vadd.xlane.f32.xlu1 %v5107_v41 }
0x1550   : > { %v5110_v36 = vsel %vm16547_vm3, %v8610_v52, 0.0 }
0x1551   : > { %v8612_v0 = vpop.eup %8611  ;;  %5111 = vadd.xlane.f32.xlu0 %v5110_v36 }
0x1552   : > { %v5113_v6 = vsel %vm16548_vm13, %v8612_v0, 0.0 }
0x1553   : > { %v8614_v23 = vpop.eup %8613  ;;  %5114 = vadd.xlane.f32.xlu1 %v5113_v6 }
0x1554   : > { %v5116_v40 = vsel %vm16549_vm14, %v8614_v23, 0.0 }
0x1555   : > { %v8616_v38 = vpop.eup %8615  ;;  %5117 = vadd.xlane.f32.xlu0 %v5116_v40 }
0x1556   : > { %v5119_v32 = vsel %vm16550_vm0, %v8616_v38, 0.0 }
0x1557   : > { %5120 = vadd.xlane.f32.xlu1 %v5119_v32  ;;  %v16562_v32 = vld [vmem:[#allocation42_spill] sm:$0xff] }
0x1568   : > { %5312 = vperm.xlu1 %8503, %v5309_v44  }
0x156b   : > { %5251 = vperm.xlu0 %8502, %v5248_v10  }
0x15d6   : > { %v5100_v34 = vpop.xlane.xlu0 %5099 }
0x15d7   : > { %8617 = vrcp.f32 %v5100_v34 }
0x15d8   : > { %v5103_v62 = vpop.xlane.xlu1 %5102 }
0x15d9   : > { %8619 = vrcp.f32 %v5103_v62 }
0x15da   : > { %v5106_v24 = vpop.xlane.xlu0 %5105 }
0x15db   : > { %8621 = vrcp.f32 %v5106_v24  ;;  %v5306_v24 = vld [vmem:[%s15316_s15] sm:$0xf] }
0x15dc   : > { %v5109_v45 = vpop.xlane.xlu1 %5108 }
0x15dd   : > { %8623 = vrcp.f32 %v5109_v45 }
0x15de   : > { %v5112_v5 = vpop.xlane.xlu0 %5111 }
0x15e0   : > { %v5115_v20 = vpop.xlane.xlu1 %5114 }
0x15e1   : > { %v8618_v14 = vpop.eup %8617  ;;  %8625 = vrcp.f32 %v5115_v20 }
0x15e2   : > { %v5130_v56 = vmul.f32 %v8618_v14, %v8602_v22  ;;  %8627 = vrcp.f32 %v5112_v5  ;;  %v5118_v26 = vpop.xlane.xlu0 %5117 }
0x15e3   : > { %v8620_v53 = vpop.eup %8619 }
0x15e4   : > { %v5131_v50 = vmul.f32 %v8620_v53, %v8604_v33  ;;  %v5121_v48 = vpop.xlane.xlu1 %5120 }
0x15e5   : > { %v8622_v11 = vpop.eup %8621  ;;  %8629 = vrcp.f32 %v5121_v48  ;;  %v16568_v48 = vld [vmem:[#allocation3_spill] sm:$0xff] }
0x15e6   : > { %v5139_v51 = vpack.c.bf16 %v5131_v50, %v5130_v56  ;;  %v5132_v43 = vmul.f32 %v8622_v11, %v8606_v37  ;;  %8631 = vrcp.f32 %v5118_v26  ;;  %v12790_v26 = vand.u32 15, %v16568_v48 }
0x15e7   : > { %v8624_v31 = vpop.eup %8623 }
0x15e8   : > { %v5147_v39 = vsel %vm16551_vm6, %v5139_v51, 0  ;;  %v5133_v21 = vmul.f32 %v8624_v31, %v8608_v9  ;;  %v5313_v45 = vpop.permute.xlu1 %5312  ;;  %v16567_v51 = vld [vmem:[#allocation2_spill] sm:$0xff] }
0x15e9   : > { %8447 = vmatpush3.bf16.xpose.msra.mxu0 %v5147_v39  ;;  %v12781_v31 = vshra.s32 %v16567_v51, 4  ;;  %v12784_v39 = vshra.s32 %v16568_v48, 4 }
0x15ea   : > { %8448 = vmatprep.subr.bf16.mxu0 %v15853_v8  ;;  %v5140_v46 = vpack.c.bf16 %v5133_v21, %v5132_v43  ;;  %v5252_v9 = vpop.permute.xlu0 %5251  ;;  %v12787_v21 = vand.u32 15, %v16567_v51  ;;  %v12793_v43 = vadd.s32 4294967295, %v8803_v12 }
0x15eb   : > { %v8626_v58 = vpop.eup %8625  ;;  %vm5473_vm3 = vcmp.eq.s32.totalorder %v12781_v31, %v8808_v15  ;;  %vm5475_vm13 = vcmp.eq.s32.totalorder %v12784_v39, %v8808_v15 }
0x15ec   : > { %v8628_v61 = vpop.eup %8627  ;;  %v5150_v59 = vsel %vm16552_vm5, %v5140_v46, 0  ;;  %v5135_v2 = vmul.f32 %v8626_v58, %v8612_v0  ;;  %v12796_v46 = vadd.s32 1, %v8803_v12  ;;  %vm5539_vm14 = vcmp.eq.s32.totalorder %v12787_v21, %v12793_v43 }
0x15ed   : > { %v5134_v28 = vmul.f32 %v8628_v61, %v8610_v52  ;;  %vm5541_vm0 = vcmp.eq.s32.totalorder %v12790_v26, %v12793_v43  ;;  %v12807_v58 = vadd.s32 4294967295, %v8857_v30  ;;  %vm5603_vm6 = vmand %vm5473_vm3, %vm5539_vm14  ;;  %v12814_v61 = vadd.s32 1, %v8857_v30 }
0x15ee   : > { %vm5808_vm5 = vcmp.eq.s32.totalorder %v12787_v21, %v12796_v46 }
0x15ef   : > { %v5141_v42 = vpack.c.bf16 %v5135_v2, %v5134_v28  ;;  %v8630_v16 = vpop.eup %8629 }
0x15f0   : > { %v8632_v47 = vpop.eup %8631  ;;  %v5137_v18 = vmul.f32 %v8630_v16, %v8616_v38 }
0x15f1   : > { %8449 = vmatpush3.bf16.xpose.msra.mxu0 %v5150_v59  ;;  %v5153_v54 = vsel %vm16553_vm9, %v5141_v42, 0  ;;  %v5136_v57 = vmul.f32 %v8632_v47, %v8614_v23  ;;  %v16560_v23 = vld [vmem:[#allocation41_spill] sm:$0xff]  ;;  %vm5605_vm9 = vmand %vm5475_vm13, %vm5541_vm0  ;;  %v16569_v59 = vld [vmem:[#allocation6_spill] sm:$0xff]  ;;  %vm5809_vm0 = vcmp.eq.s32.totalorder %v12790_v26, %v12814_v61 }
0x15f2   : > { %8450 = vmatprep.subr.bf16.mxu0 %v15853_v8  ;;  %v12826_v2 = vshra.s32 %v16569_v59, 4  ;;  %v12829_v28 = vand.u32 15, %v16569_v59  ;;  %v16570_v42 = vld [vmem:[#allocation9_spill] sm:$0xff] }
0x15f3   : > { %v5142_v49 = vpack.c.bf16 %v5137_v18, %v5136_v57  ;;  %v12838_v16 = vshra.s32 %v16570_v42, 4  ;;  %v12841_v47 = vand.u32 15, %v16570_v42 }
0x15f5   : > { %v5156_v60 = vsel %vm16554_vm11, %v5142_v49, 0  ;;  %vm5810_vm11 = vcmp.eq.s32.totalorder %v12790_v26, %v12796_v46  ;;  %v16573_v49 = vld [vmem:[#allocation21_spill] sm:$0xff] }
0x15f9   : > { %8451 = vmatpush3.bf16.xpose.msra.mxu0 %v5153_v54  ;;  %v16571_v54 = vld [vmem:[#allocation19_spill] sm:$0xff] }
0x15fa   : > { %8452 = vmatprep.subr.bf16.mxu0 %v15853_v8  ;;  %v12878_v18 = vshra.s32 %v16571_v54, 4  ;;  %v12881_v57 = vand.u32 15, %v16571_v54 }
0x15fc   : > { %16572 = vst [vmem:[#allocation10_spill] sm:$0xff] %v12878_v18 }
0x1601   : > { %8453 = vmatpush3.bf16.xpose.msra.mxu0 %v5156_v60  ;;  %v12890_v60 = vshra.s32 %v16573_v49, 4 }
0x1603   : > { %16574 = vst [vmem:[#allocation14_spill] sm:$0xff] %v12890_v60 }
0x1608   : > { %8455 = vmatmul.mubr.msk.bf16.vlgmr.msra.gmra.mrb[152].mxu0 %vm16555_vm8, %v5138_v63  ;;  %vm7914_vm8 = vmpackc.low %vm5605_vm9, %vm5603_vm6  ;;  %vm5477_vm9 = vcmp.eq.s32.totalorder %v12826_v2, %v8808_v15  ;;  %v12893_v63 = vand.u32 15, %v16573_v49 }
0x1609   : > { %7915 = vmatprep.subr.msk.bf16.mxu0 %vm7914_vm8, %v15855_v13 }
0x16db   : > { %v5192_v7 = vpop.f32.mrb[152].mxu0 }
0x16dc   : > { %v5198_v4 = vpack.c.bf16 %v5192_v7, %v5192_v7  ;;  %v8456_v22 = vpop.f32.mrb[153].mxu0  ;;  %v16575_v7 = vld [vmem:[#allocation29_spill] sm:$0xff] }
0x16dd   : > { %v5195_v19 = vpop.f32.mrb[154].mxu0  ;;  %v12933_v22 = vand.u32 15, %v16575_v7 }
0x16de   : > { %v8457_v27 = vpop.f32.mrb[155].mxu0  ;;  %7909 = vmatmul.mubr.msk.bf16.vlgmr.msra.gmra.mrb[96].mxu1 %vm16556_vm1, %v5198_v4  ;;  %vm5872_vm1 = vmand %vm5473_vm3, %vm5808_vm5  ;;  %v12930_v4 = vshra.s32 %v16575_v7, 4  ;;  %v16577_v19 = vld [vmem:[#allocation31_spill] sm:$0xff] }
0x16df   : > { %5295 = vmatprep.mubr.bf16.mxu1 %v15856_v35  ;;  %16576 = vst [vmem:[#allocation13_spill] sm:$0xff] %v12933_v22  ;;  %v12942_v27 = vshra.s32 %v16577_v19, 4 }
0x17b1   : > { %v5236_v8 = vpop.f32.mrb[96].mxu1 }
0x17b2   : > { %v5246_v55 = vpack.c.bf16 %v5236_v8, %v5236_v8  ;;  %v5238_v33 = vpop.f32.mrb[97].mxu1  ;;  %v12945_v8 = vand.u32 15, %v16577_v19 }
0x17b3   : > { %v5247_v1 = vpack.c.bf16 %v5238_v33, %v5238_v33  ;;  %v5240_v25 = vpop.f32.mrb[98].mxu1  ;;  %v5385_v33 = vadd.s32 72, %v16567_v51 }
0x17b4   : > { %v5258_v37 = vsel %vm16557_vm15, %v5246_v55, 0  ;;  %v5241_v3 = vpop.f32.mrb[99].mxu1  ;;  %vm5472_vm15 = vcmp.eq.s32.totalorder %v12781_v31, %v8855_v29  ;;  %16578 = vst [vmem:[#allocation15_spill] sm:$0xff] %v12945_v8  ;;  %v5384_v55 = vadd.s32 64, %v16567_v51 }
0x17b5   : > { %7910 = vmatprep.subr.msk.bf16.mxu1 %vm16558_vm4, %v5247_v1  ;;  %vm5538_vm4 = vcmp.eq.s32.totalorder %v12787_v21, %v12807_v58  ;;  %v13007_v3 = vand.u32 15, %v5385_v33 }
0x17b6   : > { %5264 = vmatpush1.bf16.msra.mxu1 %v5258_v37  ;;  %vm5602_vm3 = vmand %vm5472_vm15, %vm5538_vm4  ;;  %vm5545_vm4 = vcmp.eq.s32.totalorder %v12841_v47, %v12793_v43  ;;  %v12995_v1 = vshra.s32 %v5384_v55, 4  ;;  %v12997_v25 = vand.u32 15, %v5384_v55  ;;  %v13005_v37 = vshra.s32 %v5385_v33, 4 }
0x17b8   : > { %16579 = vst [vmem:[#allocation22_spill] sm:$0xff] %v12995_v1  ;;  %16580 = vst [vmem:[#allocation24_spill] sm:$0xff] %v12997_v25 }
0x17b9   : > { %7911 = vmatmul.mubr.msk.bf16.vlgmr.msra.gmra.mrb[140].mxu1 %vm16559_vm10, %v5245_v17  ;;  %vm5874_vm10 = vmand %vm5475_vm13, %vm5810_vm11  ;;  %vm5807_vm13 = vcmp.eq.s32.totalorder %v12787_v21, %v12814_v61  ;;  %vm5543_vm11 = vcmp.eq.s32.totalorder %v12829_v28, %v12793_v43  ;;  %v5386_v17 = vadd.s32 80, %v16567_v51 }
0x17ba   : > { %5356 = vmatprep.mubr.bf16.mxu1 %v15856_v35  ;;  %vm5871_vm5 = vmand %vm5472_vm15, %vm5807_vm13 }
0x17bb   : > { %vm5607_vm15 = vmand %vm5477_vm9, %vm5543_vm11  ;;  %vm5544_vm11 = vcmp.eq.s32.totalorder %v12841_v47, %v12807_v58 }
0x188c   : > { %v5297_v41 = vpop.f32.mrb[140].mxu1 }
0x188d   : > { %v5298_v52 = vadd.f32 %v5297_v41, %v5252_v9  ;;  %v5299_v36 = vpop.f32.mrb[141].mxu1  ;;  %v13057_v41 = vshra.s32 %v5386_v17, 4 }
0x188e   : > { %v5300_v0 = vadd.f32 %v5299_v36, %v5252_v9  ;;  %v5301_v6 = vpop.f32.mrb[142].mxu1  ;;  %v5387_v9 = vadd.s32 88, %v16567_v51 }
0x188f   : > { %v12759_v40 = vadd.f32 %v5298_v52, %v16560_v23  ;;  %v5302_v38 = vpop.f32.mrb[143].mxu1  ;;  %v13059_v52 = vand.u32 15, %v5386_v17  ;;  %v5388_v6 = vadd.s32 96, %v16567_v51  ;;  %v5389_v23 = vadd.s32 104, %v16567_v51 }
0x1890   : > { %v12762_v44 = vadd.f32 %v5300_v0, %v16562_v32  ;;  %v13067_v36 = vshra.s32 %v5387_v9, 4  ;;  %v13069_v0 = vand.u32 15, %v5387_v9  ;;  %v5395_v17 = vadd.s32 152, %v16567_v51 }
0x1891   : > { %16561 = vst [vmem:[#allocation7_spill] sm:$0xff] %v12759_v40  ;;  %v5307_v10 = vpack.c.bf16 %v12759_v40, %v12759_v40  ;;  %16581 = vst [vmem:[#allocation23_spill] sm:$0xff] %v13059_v52  ;;  %v13119_v38 = vshra.s32 %v5388_v6, 4  ;;  %v13121_v32 = vand.u32 15, %v5388_v6 }
0x1892   : > { %16563 = vst [vmem:[#allocation8_spill] sm:$0xff] %v12762_v44  ;;  %v5308_v34 = vpack.c.bf16 %v12762_v44, %v12762_v44  ;;  %16582 = vst [vmem:[#allocation25_spill] sm:$0xff] %v13067_v36 }
0x1893   : > { %v5319_v62 = vsel %vm16564_vm7, %v5307_v10, 0  ;;  %vm5474_vm7 = vcmp.eq.s32.totalorder %v12784_v39, %v8855_v29  ;;  %16583 = vst [vmem:[#allocation32_spill] sm:$0xff] %v13069_v0  ;;  %v13129_v10 = vshra.s32 %v5389_v23, 4 }
0x1894   : > { %7912 = vmatprep.subr.msk.bf16.mxu1 %vm16565_vm12, %v5308_v34  ;;  %vm5540_vm12 = vcmp.eq.s32.totalorder %v12790_v26, %v12807_v58  ;;  %vm5873_vm8 = vmand %vm5474_vm7, %vm5809_vm0  ;;  %vm5542_vm0 = vcmp.eq.s32.totalorder %v12829_v28, %v12807_v58  ;;  %v13131_v34 = vand.u32 15, %v5389_v23 }
0x1895   : > { %5325 = vmatpush1.bf16.msra.mxu1 %v5319_v62  ;;  %vm5604_vm14 = vmand %vm5474_vm7, %vm5540_vm12  ;;  %vm5812_vm12 = vcmp.eq.s32.totalorder %v12829_v28, %v12796_v46  ;;  %v5390_v62 = vadd.s32 112, %v16567_v51 }
0x1896   : > { %vm7916_vm6 = vmpackc.low %vm5604_vm14, %vm5602_vm3  ;;  %vm5814_vm3 = vcmp.eq.s32.totalorder %v12841_v47, %v12796_v46  ;;  %vm5476_vm14 = vcmp.eq.s32.totalorder %v12826_v2, %v8855_v29 }
0x1897   : > { %7917 = vmatpush1.bf16.msk.msra.mxu0 %vm7916_vm6, %v15855_v13  ;;  %vm5876_vm7 = vmand %vm5477_vm9, %vm5812_vm12 }
0x1898   : > { %7913 = vmatmul.mubr.msk.bf16.vlgmr.msra.gmra.mrb[144].mxu1 %vm16566_vm2, %v5306_v24  ;;  %vm7978_vm2 = vmpackc.low %vm5874_vm10, %vm5872_vm1  ;;  %vm5479_vm1 = vcmp.eq.s32.totalorder %v12838_v16, %v8808_v15  ;;  %v5391_v24 = vadd.s32 120, %v16567_v51 }
0x1899   : > { %7979 = vmatprep.subr.msk.bf16.mxu1 %vm7978_vm2, %v15855_v13  ;;  %vm7980_vm10 = vmpackc.low %vm5873_vm8, %vm5871_vm5  ;;  %vm5478_vm5 = vcmp.eq.s32.totalorder %v12838_v16, %v8855_v29 }
0x189a   : > { %7981 = vmatpush1.bf16.msk.msra.mxu1 %vm7980_vm10, %v15855_v13  ;;  %vm5609_vm2 = vmand %vm5479_vm1, %vm5545_vm4  ;;  %vm5813_vm10 = vcmp.eq.s32.totalorder %v12841_v47, %v12814_v61 }
0x189b   : > { %vm7918_vm13 = vmpackc.low %vm5609_vm2, %vm5607_vm15  ;;  %vm5481_vm2 = vcmp.eq.s32.totalorder %v12878_v18, %v8808_v15 }
0x189c   : > { %7919 = vmatprep.subr.msk.bf16.mxu0 %vm7918_vm13, %v15855_v13  ;;  %vm5878_vm6 = vmand %vm5479_vm1, %vm5814_vm3  ;;  %vm5811_vm1 = vcmp.eq.s32.totalorder %v12829_v28, %v12814_v61  ;;  %vm5547_vm3 = vcmp.eq.s32.totalorder %v12881_v57, %v12793_v43 }
0x189d   : > { %vm7982_vm8 = vmpackc.low %vm5878_vm6, %vm5876_vm7  ;;  %vm5483_vm7 = vcmp.eq.s32.totalorder %v12890_v60, %v8808_v15 }
0x189e   : > { %7983 = vmatprep.subr.msk.bf16.mxu1 %vm7982_vm8, %v15855_v13  ;;  %vm5606_vm9 = vmand %vm5476_vm14, %vm5542_vm0  ;;  %vm5549_vm0 = vcmp.eq.s32.totalorder %v12893_v63, %v12793_v43 }
0x189f   : > { %vm5608_vm4 = vmand %vm5478_vm5, %vm5544_vm11  ;;  %vm5816_vm11 = vcmp.eq.s32.totalorder %v12881_v57, %v12796_v46 }
0x18a0   : > { %vm7920_vm15 = vmpackc.low %vm5608_vm4, %vm5606_vm9  ;;  %vm5818_vm9 = vcmp.eq.s32.totalorder %v12893_v63, %v12796_v46  ;;  %vm5480_vm4 = vcmp.eq.s32.totalorder %v12878_v18, %v8855_v29 }
0x18a1   : > { %7921 = vmatpush1.bf16.msk.msra.mxu0 %vm7920_vm15, %v15855_v13  ;;  %vm5875_vm12 = vmand %vm5476_vm14, %vm5811_vm1 }
0x18a2   : > { %vm5877_vm13 = vmand %vm5478_vm5, %vm5813_vm10  ;;  %vm5546_vm10 = vcmp.eq.s32.totalorder %v12881_v57, %v12807_v58 }
0x18a3   : > { %vm7984_vm6 = vmpackc.low %vm5877_vm13, %vm5875_vm12  ;;  %vm5482_vm12 = vcmp.eq.s32.totalorder %v12890_v60, %v8855_v29 }
0x18a4   : > { %7985 = vmatpush1.bf16.msk.msra.mxu1 %vm7984_vm6, %v15855_v13  ;;  %vm5611_vm14 = vmand %vm5481_vm2, %vm5547_vm3  ;;  %vm5548_vm3 = vcmp.eq.s32.totalorder %v12893_v63, %v12807_v58  ;;  %vm5817_vm6 = vcmp.eq.s32.totalorder %v12893_v63, %v12814_v61 }
0x18a5   : > { %vm5613_vm8 = vmand %vm5483_vm7, %vm5549_vm0 }
0x18a6   : > { %vm7922_vm1 = vmpackc.low %vm5613_vm8, %vm5611_vm14  ;;  %vm5485_vm8 = vcmp.eq.s32.totalorder %v12930_v4, %v8808_v15 }
0x18a7   : > { %7923 = vmatprep.subr.msk.bf16.mxu0 %vm7922_vm1, %v15855_v13  ;;  %vm5880_vm5 = vmand %vm5481_vm2, %vm5816_vm11 }
0x18a8   : > { %vm5882_vm15 = vmand %vm5483_vm7, %vm5818_vm9  ;;  %vm5815_vm7 = vcmp.eq.s32.totalorder %v12881_v57, %v12814_v61  ;;  %vm5551_vm9 = vcmp.eq.s32.totalorder %v12933_v22, %v12793_v43 }
0x18a9   : > { %vm7986_vm13 = vmpackc.low %vm5882_vm15, %vm5880_vm5  ;;  %vm5487_vm5 = vcmp.eq.s32.totalorder %v12942_v27, %v8808_v15 }
0x18aa   : > { %7987 = vmatprep.subr.msk.bf16.mxu1 %vm7986_vm13, %v15855_v13  ;;  %vm5610_vm2 = vmand %vm5480_vm4, %vm5546_vm10  ;;  %vm5553_vm10 = vcmp.eq.s32.totalorder %v12945_v8, %v12793_v43  ;;  %vm5822_vm13 = vcmp.eq.s32.totalorder %v12945_v8, %v12796_v46 }
0x18ab   : > { %vm5612_vm0 = vmand %vm5482_vm12, %vm5548_vm3  ;;  %vm5820_vm3 = vcmp.eq.s32.totalorder %v12933_v22, %v12796_v46 }
0x18ac   : > { %vm7924_vm14 = vmpackc.low %vm5612_vm0, %vm5610_vm2  ;;  %vm5484_vm0 = vcmp.eq.s32.totalorder %v12930_v4, %v8855_v29 }
0x18ad   : > { %7925 = vmatpush1.bf16.msk.msra.mxu0 %vm7924_vm14, %v15855_v13  ;;  %vm5879_vm11 = vmand %vm5480_vm4, %vm5815_vm7 }
0x18ae   : > { %vm5881_vm1 = vmand %vm5482_vm12, %vm5817_vm6  ;;  %vm5550_vm6 = vcmp.eq.s32.totalorder %v12933_v22, %v12807_v58 }
0x18af   : > { %vm7988_vm15 = vmpackc.low %vm5881_vm1, %vm5879_vm11  ;;  %vm5486_vm11 = vcmp.eq.s32.totalorder %v12942_v27, %v8855_v29 }
0x18b0   : > { %7989 = vmatpush1.bf16.msk.msra.mxu1 %vm7988_vm15, %v15855_v13  ;;  %vm5615_vm4 = vmand %vm5485_vm8, %vm5551_vm9  ;;  %vm5552_vm9 = vcmp.eq.s32.totalorder %v12945_v8, %v12807_v58  ;;  %vm5821_vm15 = vcmp.eq.s32.totalorder %v12945_v8, %v12814_v61 }
0x18b1   : > { %vm5617_vm12 = vmand %vm5487_vm5, %vm5553_vm10 }
0x18b2   : > { %vm7926_vm2 = vmpackc.low %vm5617_vm12, %vm5615_vm4  ;;  %vm5489_vm12 = vcmp.eq.s32.totalorder %v12995_v1, %v8808_v15 }
0x18b3   : > { %7927 = vmatprep.subr.msk.bf16.mxu0 %vm7926_vm2, %v15855_v13  ;;  %vm5884_vm7 = vmand %vm5485_vm8, %vm5820_vm3 }
0x18b4   : > { %vm5886_vm14 = vmand %vm5487_vm5, %vm5822_vm13  ;;  %vm5819_vm5 = vcmp.eq.s32.totalorder %v12933_v22, %v12814_v61  ;;  %vm5555_vm13 = vcmp.eq.s32.totalorder %v12997_v25, %v12793_v43 }
0x18b5   : > { %vm7990_vm1 = vmpackc.low %vm5886_vm14, %vm5884_vm7  ;;  %vm5491_vm7 = vcmp.eq.s32.totalorder %v13005_v37, %v8808_v15 }
0x18b6   : > { %7991 = vmatprep.subr.msk.bf16.mxu1 %vm7990_vm1, %v15855_v13  ;;  %vm5614_vm8 = vmand %vm5484_vm0, %vm5550_vm6  ;;  %vm5557_vm6 = vcmp.eq.s32.totalorder %v13007_v3, %v12793_v43  ;;  %vm5826_vm1 = vcmp.eq.s32.totalorder %v13007_v3, %v12796_v46 }
0x18b7   : > { %vm5616_vm10 = vmand %vm5486_vm11, %vm5552_vm9  ;;  %vm5824_vm9 = vcmp.eq.s32.totalorder %v12997_v25, %v12796_v46 }
0x18b8   : > { %vm7928_vm4 = vmpackc.low %vm5616_vm10, %vm5614_vm8  ;;  %vm5488_vm10 = vcmp.eq.s32.totalorder %v12995_v1, %v8855_v29 }
0x18b9   : > { %7929 = vmatpush1.bf16.msk.msra.mxu0 %vm7928_vm4, %v15855_v13  ;;  %vm5883_vm3 = vmand %vm5484_vm0, %vm5819_vm5 }
0x18ba   : > { %vm5885_vm2 = vmand %vm5486_vm11, %vm5821_vm15  ;;  %vm5554_vm15 = vcmp.eq.s32.totalorder %v12997_v25, %v12807_v58 }
0x18bb   : > { %vm7992_vm14 = vmpackc.low %vm5885_vm2, %vm5883_vm3  ;;  %vm5490_vm3 = vcmp.eq.s32.totalorder %v13005_v37, %v8855_v29 }
0x18bc   : > { %7993 = vmatpush1.bf16.msk.msra.mxu1 %vm7992_vm14, %v15855_v13  ;;  %vm5619_vm0 = vmand %vm5489_vm12, %vm5555_vm13  ;;  %vm5556_vm13 = vcmp.eq.s32.totalorder %v13007_v3, %v12807_v58  ;;  %vm5825_vm14 = vcmp.eq.s32.totalorder %v13007_v3, %v12814_v61 }
0x18bd   : > { %vm5621_vm11 = vmand %vm5491_vm7, %vm5557_vm6 }
0x18be   : > { %vm7930_vm8 = vmpackc.low %vm5621_vm11, %vm5619_vm0  ;;  %vm5493_vm11 = vcmp.eq.s32.totalorder %v13057_v41, %v8808_v15 }
0x18bf   : > { %7931 = vmatprep.subr.msk.bf16.mxu0 %vm7930_vm8, %v15855_v13  ;;  %vm5888_vm5 = vmand %vm5489_vm12, %vm5824_vm9 }
0x18c0   : > { %vm5890_vm4 = vmand %vm5491_vm7, %vm5826_vm1  ;;  %vm5823_vm7 = vcmp.eq.s32.totalorder %v12997_v25, %v12814_v61  ;;  %vm5559_vm1 = vcmp.eq.s32.totalorder %v13059_v52, %v12793_v43 }
0x18c1   : > { %vm7994_vm2 = vmpackc.low %vm5890_vm4, %vm5888_vm5  ;;  %vm5495_vm5 = vcmp.eq.s32.totalorder %v13067_v36, %v8808_v15 }
0x18c2   : > { %7995 = vmatprep.subr.msk.bf16.mxu1 %vm7994_vm2, %v15855_v13  ;;  %vm5618_vm12 = vmand %vm5488_vm10, %vm5554_vm15  ;;  %vm5561_vm15 = vcmp.eq.s32.totalorder %v13069_v0, %v12793_v43  ;;  %vm5830_vm2 = vcmp.eq.s32.totalorder %v13069_v0, %v12796_v46 }
0x18c3   : > { %vm5620_vm6 = vmand %vm5490_vm3, %vm5556_vm13  ;;  %vm5828_vm13 = vcmp.eq.s32.totalorder %v13059_v52, %v12796_v46 }
0x18c4   : > { %vm7932_vm0 = vmpackc.low %vm5620_vm6, %vm5618_vm12  ;;  %vm5492_vm6 = vcmp.eq.s32.totalorder %v13057_v41, %v8855_v29 }
0x18c5   : > { %7933 = vmatpush1.bf16.msk.msra.mxu0 %vm7932_vm0, %v15855_v13  ;;  %vm5887_vm9 = vmand %vm5488_vm10, %vm5823_vm7 }
0x18c6   : > { %vm5889_vm8 = vmand %vm5490_vm3, %vm5825_vm14  ;;  %vm5558_vm14 = vcmp.eq.s32.totalorder %v13059_v52, %v12807_v58 }
0x18c7   : > { %vm7996_vm4 = vmpackc.low %vm5889_vm8, %vm5887_vm9  ;;  %vm5494_vm9 = vcmp.eq.s32.totalorder %v13067_v36, %v8855_v29 }
0x18c8   : > { %7997 = vmatpush1.bf16.msk.msra.mxu1 %vm7996_vm4, %v15855_v13  ;;  %vm5623_vm10 = vmand %vm5493_vm11, %vm5559_vm1  ;;  %vm5560_vm1 = vcmp.eq.s32.totalorder %v13069_v0, %v12807_v58  ;;  %vm5829_vm4 = vcmp.eq.s32.totalorder %v13069_v0, %v12814_v61 }
0x18c9   : > { %vm5625_vm3 = vmand %vm5495_vm5, %vm5561_vm15 }
0x18ca   : > { %vm7934_vm12 = vmpackc.low %vm5625_vm3, %vm5623_vm10  ;;  %vm5497_vm3 = vcmp.eq.s32.totalorder %v13119_v38, %v8808_v15 }
0x18cb   : > { %7935 = vmatprep.subr.msk.bf16.mxu0 %vm7934_vm12, %v15855_v13  ;;  %vm5892_vm7 = vmand %vm5493_vm11, %vm5828_vm13 }
0x18cc   : > { %vm5894_vm0 = vmand %vm5495_vm5, %vm5830_vm2  ;;  %vm5827_vm5 = vcmp.eq.s32.totalorder %v13059_v52, %v12814_v61  ;;  %vm5563_vm2 = vcmp.eq.s32.totalorder %v13121_v32, %v12793_v43 }
0x18cd   : > { %vm7998_vm8 = vmpackc.low %vm5894_vm0, %vm5892_vm7  ;;  %vm5499_vm7 = vcmp.eq.s32.totalorder %v13129_v10, %v8808_v15 }
0x18ce   : > { %7999 = vmatprep.subr.msk.bf16.mxu1 %vm7998_vm8, %v15855_v13  ;;  %vm5622_vm11 = vmand %vm5492_vm6, %vm5558_vm14  ;;  %vm5565_vm14 = vcmp.eq.s32.totalorder %v13131_v34, %v12793_v43  ;;  %vm5834_vm8 = vcmp.eq.s32.totalorder %v13131_v34, %v12796_v46 }
0x18cf   : > { %vm5624_vm15 = vmand %vm5494_vm9, %vm5560_vm1  ;;  %vm5832_vm1 = vcmp.eq.s32.totalorder %v13121_v32, %v12796_v46 }
0x18d0   : > { %vm7936_vm10 = vmpackc.low %vm5624_vm15, %vm5622_vm11  ;;  %vm5496_vm15 = vcmp.eq.s32.totalorder %v13119_v38, %v8855_v29 }
0x18d1   : > { %7937 = vmatpush1.bf16.msk.msra.mxu0 %vm7936_vm10, %v15855_v13  ;;  %vm5891_vm13 = vmand %vm5492_vm6, %vm5827_vm5 }
0x18d2   : > { %vm5893_vm12 = vmand %vm5494_vm9, %vm5829_vm4  ;;  %vm5562_vm4 = vcmp.eq.s32.totalorder %v13121_v32, %v12807_v58 }
0x18d3   : > { %vm8000_vm0 = vmpackc.low %vm5893_vm12, %vm5891_vm13  ;;  %vm5498_vm13 = vcmp.eq.s32.totalorder %v13129_v10, %v8855_v29 }
0x18d4   : > { %8001 = vmatpush1.bf16.msk.msra.mxu1 %vm8000_vm0, %v15855_v13  ;;  %vm5627_vm6 = vmand %vm5497_vm3, %vm5563_vm2  ;;  %vm5564_vm2 = vcmp.eq.s32.totalorder %v13131_v34, %v12807_v58  ;;  %vm5833_vm0 = vcmp.eq.s32.totalorder %v13131_v34, %v12814_v61 }
0x18d5   : > { %vm5629_vm9 = vmand %vm5499_vm7, %vm5565_vm14 }
0x18d6   : > { %vm7938_vm11 = vmpackc.low %vm5629_vm9, %vm5627_vm6 }
0x18d7   : > { %7939 = vmatprep.subr.msk.bf16.mxu0 %vm7938_vm11, %v15855_v13  ;;  %vm5896_vm5 = vmand %vm5497_vm3, %vm5832_vm1 }
0x18d8   : > { %vm5898_vm10 = vmand %vm5499_vm7, %vm5834_vm8  ;;  %vm5831_vm7 = vcmp.eq.s32.totalorder %v13121_v32, %v12814_v61 }
0x18d9   : > { %vm8002_vm12 = vmpackc.low %vm5898_vm10, %vm5896_vm5 }
0x18da   : > { %8003 = vmatprep.subr.msk.bf16.mxu1 %vm8002_vm12, %v15855_v13  ;;  %vm5626_vm3 = vmand %vm5496_vm15, %vm5562_vm4 }
0x18db   : > { %vm5628_vm14 = vmand %vm5498_vm13, %vm5564_vm2 }
0x18dc   : > { %vm7940_vm6 = vmpackc.low %vm5628_vm14, %vm5626_vm3 }
0x18dd   : > { %7941 = vmatpush1.bf16.msk.msra.mxu0 %vm7940_vm6, %v15855_v13  ;;  %vm5895_vm1 = vmand %vm5496_vm15, %vm5831_vm7 }
0x18de   : > { %vm5897_vm11 = vmand %vm5498_vm13, %vm5833_vm0 }
0x18df   : > { %vm8004_vm10 = vmpackc.low %vm5897_vm11, %vm5895_vm1 }
0x18e0   : > { %8005 = vmatpush1.bf16.msk.msra.mxu1 %vm8004_vm10, %v15855_v13 }
0x196b   : > { %v5358_v20 = vpop.f32.mrb[144].mxu1 }
0x196c   : > { %v12774_v14 = vadd.f32 %v5358_v20, %v5313_v45  ;;  %v5360_v5 = vpop.f32.mrb[145].mxu1  ;;  %v13183_v20 = vand.u32 15, %v5390_v62 }
0x196d   : > { %v12776_v53 = vadd.f32 %v5360_v5, %v5313_v45  ;;  %v5362_v56 = vpop.f32.mrb[146].mxu1  ;;  %v13181_v45 = vshra.s32 %v5390_v62, 4  ;;  %v13191_v5 = vshra.s32 %v5391_v24, 4  ;;  %v13325_v62 = vshra.s32 %v5395_v17, 4 }
0x196e   : > { %v5363_v50 = vpop.f32.mrb[147].mxu1  ;;  %v13193_v56 = vand.u32 15, %v5391_v24  ;;  %vm5567_vm8 = vcmp.eq.s32.totalorder %v13183_v20, %v12793_v43  ;;  %vm5836_vm2 = vcmp.eq.s32.totalorder %v13183_v20, %v12796_v46  ;;  %vm5566_vm0 = vcmp.eq.s32.totalorder %v13183_v20, %v12807_v58 }
0x196f   : > { %v5365_v11 = vadd.f32 %v12776_v53, %v12774_v14  ;;  %vm5501_vm9 = vcmp.eq.s32.totalorder %v13181_v45, %v8808_v15  ;;  %vm5503_vm5 = vcmp.eq.s32.totalorder %v13191_v5, %v8808_v15  ;;  %v5392_v50 = vadd.s32 128, %v16567_v51  ;;  %16587 = vst [vmem:[#allocation11_spill] sm:$0xff] %v13325_v62 }
0x1970   : > { %vm5569_vm4 = vcmp.eq.s32.totalorder %v13193_v56, %v12793_v43  ;;  %vm5631_vm15 = vmand %vm5501_vm9, %vm5567_vm8  ;;  %vm5838_vm12 = vcmp.eq.s32.totalorder %v13193_v56, %v12796_v46  ;;  %vm5500_vm14 = vcmp.eq.s32.totalorder %v13181_v45, %v8855_v29  ;;  %vm5502_vm1 = vcmp.eq.s32.totalorder %v13191_v5, %v8855_v29 }
0x1971   : > { %5366 = vadd.xlane.f32.xlu1 %v5365_v11  ;;  %vm5633_vm13 = vmand %vm5503_vm5, %vm5569_vm4  ;;  %v5393_v11 = vadd.s32 136, %v16567_v51  ;;  %vm5568_vm8 = vcmp.eq.s32.totalorder %v13193_v56, %v12807_v58  ;;  %v13243_v48 = vshra.s32 %v5392_v50, 4  ;;  %v13245_v59 = vand.u32 15, %v5392_v50 }
0x1972   : > { %vm7942_vm3 = vmpackc.low %vm5633_vm13, %vm5631_vm15  ;;  %vm5837_vm10 = vcmp.eq.s32.totalorder %v13193_v56, %v12814_v61  ;;  %v13327_v24 = vand.u32 15, %v5395_v17  ;;  %v5396_v50 = vadd.s32 160, %v16567_v51  ;;  %v5398_v17 = vadd.s32 176, %v16567_v51 }
0x1973   : > { %7943 = vmatprep.subr.msk.bf16.mxu0 %vm7942_vm3, %v15855_v13  ;;  %vm5900_vm7 = vmand %vm5501_vm9, %vm5836_vm2  ;;  %16584 = vst [vmem:[#allocation33_spill] sm:$0xff] %v13245_v59  ;;  %v13253_v42 = vshra.s32 %v5393_v11, 4  ;;  %v13255_v54 = vand.u32 15, %v5393_v11  ;;  %vm5505_vm13 = vcmp.eq.s32.totalorder %v13243_v48, %v8808_v15  ;;  %v5397_v11 = vadd.s32 168, %v16567_v51 }
0x1974   : > { %vm5902_vm6 = vmand %vm5503_vm5, %vm5838_vm12  ;;  %vm5835_vm5 = vcmp.eq.s32.totalorder %v13183_v20, %v12814_v61  ;;  %vm5571_vm12 = vcmp.eq.s32.totalorder %v13245_v59, %v12793_v43  ;;  %16588 = vst [vmem:[#allocation12_spill] sm:$0xff] %v13327_v24 }
0x1975   : > { %vm8006_vm11 = vmpackc.low %vm5902_vm6, %vm5900_vm7  ;;  %16585 = vst [vmem:[#allocation34_spill] sm:$0xff] %v13255_v54  ;;  %vm5507_vm7 = vcmp.eq.s32.totalorder %v13253_v42, %v8808_v15 }
0x1976   : > { %8007 = vmatprep.subr.msk.bf16.mxu1 %vm8006_vm11, %v15855_v13  ;;  %vm5630_vm9 = vmand %vm5500_vm14, %vm5566_vm0  ;;  %vm5573_vm0 = vcmp.eq.s32.totalorder %v13255_v54, %v12793_v43  ;;  %vm5842_vm11 = vcmp.eq.s32.totalorder %v13255_v54, %v12796_v46 }
0x1977   : > { %vm5632_vm4 = vmand %vm5502_vm1, %vm5568_vm8 }
0x1978   : > { %vm7944_vm15 = vmpackc.low %vm5632_vm4, %vm5630_vm9  ;;  %vm5504_vm4 = vcmp.eq.s32.totalorder %v13243_v48, %v8855_v29 }
0x1979   : > { %7945 = vmatpush1.bf16.msk.msra.mxu0 %vm7944_vm15, %v15855_v13  ;;  %vm5899_vm2 = vmand %vm5500_vm14, %vm5835_vm5 }
0x197a   : > { %vm5901_vm3 = vmand %vm5502_vm1, %vm5837_vm10  ;;  %vm5840_vm1 = vcmp.eq.s32.totalorder %v13245_v59, %v12796_v46  ;;  %vm5570_vm10 = vcmp.eq.s32.totalorder %v13245_v59, %v12807_v58 }
0x197b   : > { %vm8008_vm6 = vmpackc.low %vm5901_vm3, %vm5899_vm2  ;;  %vm5506_vm2 = vcmp.eq.s32.totalorder %v13253_v42, %v8855_v29 }
0x197c   : > { %8009 = vmatpush1.bf16.msk.msra.mxu1 %vm8008_vm6, %v15855_v13  ;;  %vm5635_vm14 = vmand %vm5505_vm13, %vm5571_vm12  ;;  %vm5572_vm12 = vcmp.eq.s32.totalorder %v13255_v54, %v12807_v58  ;;  %vm5841_vm6 = vcmp.eq.s32.totalorder %v13255_v54, %v12814_v61 }
0x197d   : > { %vm5637_vm8 = vmand %vm5507_vm7, %vm5573_vm0 }
0x197e   : > { %vm7946_vm9 = vmpackc.low %vm5637_vm8, %vm5635_vm14 }
0x197f   : > { %7947 = vmatprep.subr.msk.bf16.mxu0 %vm7946_vm9, %v15855_v13  ;;  %vm5904_vm5 = vmand %vm5505_vm13, %vm5840_vm1 }
0x1980   : > { %vm5906_vm15 = vmand %vm5507_vm7, %vm5842_vm11  ;;  %vm5839_vm7 = vcmp.eq.s32.totalorder %v13245_v59, %v12814_v61 }
0x1981   : > { %vm8010_vm3 = vmpackc.low %vm5906_vm15, %vm5904_vm5  ;;  %vm5511_vm5 = vcmp.eq.s32.totalorder %v13325_v62, %v8808_v15 }
0x1982   : > { %8011 = vmatprep.subr.msk.bf16.mxu1 %vm8010_vm3, %v15855_v13  ;;  %vm5634_vm13 = vmand %vm5504_vm4, %vm5570_vm10  ;;  %vm5577_vm10 = vcmp.eq.s32.totalorder %v13327_v24, %v12793_v43  ;;  %vm5846_vm3 = vcmp.eq.s32.totalorder %v13327_v24, %v12796_v46 }
0x1983   : > { %vm5636_vm0 = vmand %vm5506_vm2, %vm5572_vm12 }
0x1984   : > { %vm7948_vm14 = vmpackc.low %vm5636_vm0, %vm5634_vm13 }
0x1985   : > { %7949 = vmatpush1.bf16.msk.msra.mxu0 %vm7948_vm14, %v15855_v13  ;;  %vm5903_vm1 = vmand %vm5504_vm4, %vm5839_vm7 }
0x1986   : > { %vm5905_vm9 = vmand %vm5506_vm2, %vm5841_vm6 }
0x1987   : > { %vm8012_vm15 = vmpackc.low %vm5905_vm9, %vm5903_vm1  ;;  %vm5510_vm1 = vcmp.eq.s32.totalorder %v13325_v62, %v8855_v29  ;;  %v16639_v62 = vmov 0 }
0x1988   : > { %8013 = vmatpush1.bf16.msk.msra.mxu1 %vm8012_vm15, %v15855_v13  ;;  %vm5641_vm2 = vmand %vm5511_vm5, %vm5577_vm10  ;;  %vm5845_vm15 = vcmp.eq.s32.totalorder %v13327_v24, %v12814_v61 }
0x1989   : > { %vm5910_vm14 = vmand %vm5511_vm5, %vm5846_vm3 }
0x19fe   : > { %v5367_v49 = vpop.xlane.xlu1 %5366 }
0x19ff   : > { %v5369_v7 = vmul.f32 0.00390625, %v5367_v49  ;;  %v13377_v49 = vshra.s32 %v5396_v50, 4 }
0x1a01   : > { %v13278_v19 = vsub.f32 %v12774_v14, %v5369_v7  ;;  %v13281_v55 = vsub.f32 %v12776_v53, %v5369_v7  ;;  %v5394_v14 = vadd.s32 144, %v16567_v51  ;;  %16589 = vst [vmem:[#allocation17_spill] sm:$0xff] %v13377_v49  ;;  %v13379_v7 = vand.u32 15, %v5396_v50 }
0x1a02   : > { %v13442_v50 = vshra.s32 %v5398_v17, 4 }
0x1a03   : > { %v5372_v53 = vmul.f32 %v13278_v19, %v13278_v19  ;;  %v5373_v33 = vmul.f32 %v13281_v55, %v13281_v55  ;;  %v13315_v6 = vshra.s32 %v5394_v14, 4  ;;  %v13317_v23 = vand.u32 15, %v5394_v14  ;;  %16590 = vst [vmem:[#allocation20_spill] sm:$0xff] %v13379_v7 }
0x1a04   : > { %v13387_v14 = vshra.s32 %v5397_v11, 4  ;;  %vm5579_vm3 = vcmp.eq.s32.totalorder %v13379_v7, %v12793_v43  ;;  %16593 = vst [vmem:[#allocation37_spill] sm:$0xff] %v13442_v50 }
0x1a05   : > { %v5374_v9 = vadd.f32 %v5373_v33, %v5372_v53  ;;  %16586 = vst [vmem:[#allocation35_spill] sm:$0xff] %v13315_v6  ;;  %vm5509_vm8 = vcmp.eq.s32.totalorder %v13315_v6, %v8808_v15  ;;  %vm5575_vm11 = vcmp.eq.s32.totalorder %v13317_v23, %v12793_v43  ;;  %vm5844_vm12 = vcmp.eq.s32.totalorder %v13317_v23, %v12796_v46  ;;  %v7117_v33 = vld [vmem:[%s15319_s18] sm:$0xff] }
0x1a06   : > { %vm5639_vm4 = vmand %vm5509_vm8, %vm5575_vm11  ;;  %vm5508_vm0 = vcmp.eq.s32.totalorder %v13315_v6, %v8855_v29  ;;  %vm5574_vm6 = vcmp.eq.s32.totalorder %v13317_v23, %v12807_v58  ;;  %vm5576_vm11 = vcmp.eq.s32.totalorder %v13327_v24, %v12807_v58  ;;  %vm5843_vm5 = vcmp.eq.s32.totalorder %v13317_v23, %v12814_v61  ;;  %16591 = vst [vmem:[#allocation27_spill] sm:$0xff] %v13387_v14 }
0x1a07   : > { %5375 = vadd.xlane.f32.xlu0 %v5374_v9  ;;  %vm7950_vm13 = vmpackc.low %vm5641_vm2, %vm5639_vm4  ;;  %v13389_v53 = vand.u32 15, %v5397_v11  ;;  %vm5513_vm2 = vcmp.eq.s32.totalorder %v13377_v49, %v8808_v15  ;;  %v5399_v9 = vadd.s32 184, %v16567_v51  ;;  %v13444_v11 = vand.u32 15, %v5398_v17 }
0x1a08   : > { %7951 = vmatprep.subr.msk.bf16.mxu0 %vm7950_vm13, %v15855_v13  ;;  %vm5908_vm7 = vmand %vm5509_vm8, %vm5844_vm12  ;;  %v5400_v17 = vadd.s32 192, %v16567_v51  ;;  %v16642_v24 = vmov 0 }
0x1a09   : > { %vm8014_vm9 = vmpackc.low %vm5910_vm14, %vm5908_vm7  ;;  %16592 = vst [vmem:[#allocation30_spill] sm:$0xff] %v13389_v53  ;;  %vm5515_vm7 = vcmp.eq.s32.totalorder %v13387_v14, %v8808_v15  ;;  %v13454_v44 = vand.u32 15, %v5399_v9 }
0x1a0a   : > { %8015 = vmatprep.subr.msk.bf16.mxu1 %vm8014_vm9, %v15855_v13  ;;  %vm5638_vm8 = vmand %vm5508_vm0, %vm5574_vm6  ;;  %vm5581_vm6 = vcmp.eq.s32.totalorder %v13389_v53, %v12793_v43  ;;  %vm5850_vm9 = vcmp.eq.s32.totalorder %v13389_v53, %v12796_v46  ;;  %16594 = vst [vmem:[#allocation40_spill] sm:$0xff] %v13444_v11  ;;  %v13504_v40 = vshra.s32 %v5400_v17, 4 }
0x1a0b   : > { %vm5640_vm10 = vmand %vm5510_vm1, %vm5576_vm11  ;;  %vm5848_vm11 = vcmp.eq.s32.totalorder %v13379_v7, %v12796_v46  ;;  %16596 = vst [vmem:[#allocation26_spill] sm:$0xff] %v13454_v44 }
0x1a0c   : > { %vm7952_vm4 = vmpackc.low %vm5640_vm10, %vm5638_vm8  ;;  %vm5512_vm10 = vcmp.eq.s32.totalorder %v13377_v49, %v8855_v29  ;;  %16597 = vst [vmem:[#allocation28_spill] sm:$0xff] %v13504_v40 }
0x1a0d   : > { %7953 = vmatpush1.bf16.msk.msra.mxu0 %vm7952_vm4, %v15855_v13  ;;  %vm5907_vm12 = vmand %vm5508_vm0, %vm5843_vm5 }
0x1a0e   : > { %vm5909_vm13 = vmand %vm5510_vm1, %vm5845_vm15  ;;  %vm5578_vm15 = vcmp.eq.s32.totalorder %v13379_v7, %v12807_v58 }
0x1a0f   : > { %vm8016_vm14 = vmpackc.low %vm5909_vm13, %vm5907_vm12  ;;  %vm5514_vm12 = vcmp.eq.s32.totalorder %v13387_v14, %v8855_v29  ;;  %v13506_v14 = vand.u32 15, %v5400_v17  ;;  %v5402_v17 = vadd.s32 208, %v16567_v51 }
0x1a10   : > { %8017 = vmatpush1.bf16.msk.msra.mxu1 %vm8016_vm14, %v15855_v13  ;;  %vm5643_vm0 = vmand %vm5513_vm2, %vm5579_vm3  ;;  %vm5580_vm3 = vcmp.eq.s32.totalorder %v13389_v53, %v12807_v58  ;;  %vm5849_vm14 = vcmp.eq.s32.totalorder %v13389_v53, %v12814_v61 }
0x1a11   : > { %vm5645_vm1 = vmand %vm5515_vm7, %vm5581_vm6  ;;  %16598 = vst [vmem:[#allocation36_spill] sm:$0xff] %v13506_v14 }
0x1a12   : > { %vm7954_vm8 = vmpackc.low %vm5645_vm1, %vm5643_vm0  ;;  %vm5517_vm1 = vcmp.eq.s32.totalorder %v13442_v50, %v8808_v15 }
0x1a13   : > { %7955 = vmatprep.subr.msk.bf16.mxu0 %vm7954_vm8, %v15855_v13  ;;  %vm5912_vm5 = vmand %vm5513_vm2, %vm5848_vm11 }
0x1a14   : > { %vm5914_vm4 = vmand %vm5515_vm7, %vm5850_vm9  ;;  %vm5847_vm7 = vcmp.eq.s32.totalorder %v13379_v7, %v12814_v61  ;;  %vm5583_vm9 = vcmp.eq.s32.totalorder %v13444_v11, %v12793_v43  ;;  %v16634_v7 = vmov 0 }
0x1a15   : > { %vm8018_vm13 = vmpackc.low %vm5914_vm4, %vm5912_vm5 }
0x1a16   : > { %8019 = vmatprep.subr.msk.bf16.mxu1 %vm8018_vm13, %v15855_v13  ;;  %vm5642_vm2 = vmand %vm5512_vm10, %vm5578_vm15  ;;  %vm5585_vm15 = vcmp.eq.s32.totalorder %v13454_v44, %v12793_v43  ;;  %vm5854_vm13 = vcmp.eq.s32.totalorder %v13454_v44, %v12796_v46 }
0x1a17   : > { %vm5644_vm6 = vmand %vm5514_vm12, %vm5580_vm3  ;;  %vm5852_vm3 = vcmp.eq.s32.totalorder %v13444_v11, %v12796_v46 }
0x1a18   : > { %vm7956_vm0 = vmpackc.low %vm5644_vm6, %vm5642_vm2  ;;  %vm5516_vm6 = vcmp.eq.s32.totalorder %v13442_v50, %v8855_v29 }
0x1a19   : > { %7957 = vmatpush1.bf16.msk.msra.mxu0 %vm7956_vm0, %v15855_v13  ;;  %vm5911_vm11 = vmand %vm5512_vm10, %vm5847_vm7 }
0x1a1a   : > { %vm5913_vm8 = vmand %vm5514_vm12, %vm5849_vm14  ;;  %vm5582_vm14 = vcmp.eq.s32.totalorder %v13444_v11, %v12807_v58 }
0x1a1b   : > { %vm8020_vm4 = vmpackc.low %vm5913_vm8, %vm5911_vm11 }
0x1a1c   : > { %8021 = vmatpush1.bf16.msk.msra.mxu1 %vm8020_vm4, %v15855_v13  ;;  %vm5647_vm10 = vmand %vm5517_vm1, %vm5583_vm9  ;;  %vm5584_vm9 = vcmp.eq.s32.totalorder %v13454_v44, %v12807_v58  ;;  %vm5853_vm4 = vcmp.eq.s32.totalorder %v13454_v44, %v12814_v61  ;;  %v13568_v44 = vand.u32 15, %v5402_v17 }
0x1a1d   : > { %7120 = vperm.xlu0 %8502, %v7117_v33   ;;  %v13452_v33 = vshra.s32 %v5399_v9, 4  ;;  %v5401_v9 = vadd.s32 200, %v16567_v51  ;;  %vm5916_vm7 = vmand %vm5517_vm1, %vm5852_vm3 }
0x1a1e   : > { %vm5646_vm1 = vmand %vm5516_vm6, %vm5582_vm14  ;;  %16602 = vst [vmem:[#allocation16_spill] sm:$0xff] %v13568_v44 }
0x1a1f   : > { %16595 = vst [vmem:[#allocation39_spill] sm:$0xff] %v13452_v33  ;;  %vm5519_vm5 = vcmp.eq.s32.totalorder %v13452_v33, %v8808_v15  ;;  %vm5518_vm11 = vcmp.eq.s32.totalorder %v13452_v33, %v8855_v29  ;;  %v13514_v53 = vshra.s32 %v5401_v9, 4  ;;  %v13516_v49 = vand.u32 15, %v5401_v9 }
0x1a20   : > { %vm5649_vm12 = vmand %vm5519_vm5, %vm5585_vm15  ;;  %v5403_v9 = vadd.s32 216, %v16567_v51  ;;  %v13566_v33 = vshra.s32 %v5402_v17, 4  ;;  %v5404_v17 = vadd.s32 224, %v16567_v51 }
0x1a21   : > { %vm7958_vm2 = vmpackc.low %vm5649_vm12, %vm5647_vm10  ;;  %16599 = vst [vmem:[#allocation38_spill] sm:$0xff] %v13514_v53  ;;  %vm5521_vm12 = vcmp.eq.s32.totalorder %v13504_v40, %v8808_v15  ;;  %vm5589_vm14 = vcmp.eq.s32.totalorder %v13516_v49, %v12793_v43 }
0x1a22   : > { %7959 = vmatprep.subr.msk.bf16.mxu0 %vm7958_vm2, %v15855_v13  ;;  %vm5918_vm0 = vmand %vm5519_vm5, %vm5854_vm13  ;;  %vm5851_vm5 = vcmp.eq.s32.totalorder %v13444_v11, %v12814_v61  ;;  %16600 = vst [vmem:[#allocation4_spill] sm:$0xff] %v13516_v49  ;;  %vm5587_vm13 = vcmp.eq.s32.totalorder %v13506_v14, %v12793_v43  ;;  %v13576_v50 = vshra.s32 %v5403_v9, 4  ;;  %v13578_v11 = vand.u32 15, %v5403_v9 }
0x1a23   : > { %vm8022_vm8 = vmpackc.low %vm5918_vm0, %vm5916_vm7  ;;  %vm5523_vm7 = vcmp.eq.s32.totalorder %v13514_v53, %v8808_v15  ;;  %16601 = vst [vmem:[#allocation5_spill] sm:$0xff] %v13566_v33  ;;  %v5405_v9 = vadd.s32 232, %v16567_v51 }
0x1a24   : > { %8023 = vmatprep.subr.msk.bf16.mxu1 %vm8022_vm8, %v15855_v13  ;;  %vm5648_vm15 = vmand %vm5518_vm11, %vm5584_vm9  ;;  %vm5856_vm9 = vcmp.eq.s32.totalorder %v13506_v14, %v12796_v46  ;;  %vm5858_vm8 = vcmp.eq.s32.totalorder %v13516_v49, %v12796_v46  ;;  %16603 = vst [vmem:[#allocation18_spill] sm:$0xff] %v13576_v50 }
0x1a25   : > { %vm7960_vm10 = vmpackc.low %vm5648_vm15, %vm5646_vm1  ;;  %vm5520_vm15 = vcmp.eq.s32.totalorder %v13504_v40, %v8855_v29  ;;  %16604 = vst [vmem:[#allocation41_spill] sm:$0xff] %v13578_v11  ;;  %v13630_v40 = vand.u32 15, %v5404_v17 }
0x1a26   : > { %7961 = vmatpush1.bf16.msk.msra.mxu0 %vm7960_vm10, %v15855_v13  ;;  %vm5915_vm3 = vmand %vm5516_vm6, %vm5851_vm5 }
0x1a27   : > { %vm5917_vm2 = vmand %vm5518_vm11, %vm5853_vm4  ;;  %vm5586_vm4 = vcmp.eq.s32.totalorder %v13506_v14, %v12807_v58  ;;  %16606 = vst [vmem:[#allocation2_spill] sm:$0xff] %v13630_v40 }
0x1a28   : > { %vm8024_vm0 = vmpackc.low %vm5917_vm2, %vm5915_vm3  ;;  %vm5522_vm3 = vcmp.eq.s32.totalorder %v13514_v53, %v8855_v29  ;;  %v13628_v53 = vshra.s32 %v5404_v17, 4  ;;  %v5406_v17 = vadd.s32 240, %v16567_v51 }
0x1a29   : > { %8025 = vmatpush1.bf16.msk.msra.mxu1 %vm8024_vm0, %v15855_v13  ;;  %vm5651_vm6 = vmand %vm5521_vm12, %vm5587_vm13  ;;  %vm5588_vm13 = vcmp.eq.s32.totalorder %v13516_v49, %v12807_v58  ;;  %vm5857_vm0 = vcmp.eq.s32.totalorder %v13516_v49, %v12814_v61  ;;  %v13638_v49 = vshra.s32 %v5405_v9, 4 }
0x1a2a   : > { %vm5653_vm11 = vmand %vm5523_vm7, %vm5589_vm14  ;;  %16605 = vst [vmem:[#allocation42_spill] sm:$0xff] %v13628_v53 }
0x1a2b   : > { %vm7962_vm1 = vmpackc.low %vm5653_vm11, %vm5651_vm6  ;;  %vm5525_vm11 = vcmp.eq.s32.totalorder %v13566_v33, %v8808_v15  ;;  %16607 = vst [vmem:[#allocation3_spill] sm:$0xff] %v13638_v49 }
0x1a2c   : > { %7963 = vmatprep.subr.msk.bf16.mxu0 %vm7962_vm1, %v15855_v13  ;;  %vm5920_vm5 = vmand %vm5521_vm12, %vm5856_vm9 }
0x1a2d   : > { %vm5922_vm10 = vmand %vm5523_vm7, %vm5858_vm8  ;;  %vm5855_vm7 = vcmp.eq.s32.totalorder %v13506_v14, %v12814_v61  ;;  %vm5591_vm8 = vcmp.eq.s32.totalorder %v13568_v44, %v12793_v43  ;;  %v13640_v14 = vand.u32 15, %v5405_v9  ;;  %v5407_v9 = vadd.s32 248, %v16567_v51 }
0x1a2e   : > { %vm8026_vm2 = vmpackc.low %vm5922_vm10, %vm5920_vm5  ;;  %vm5527_vm5 = vcmp.eq.s32.totalorder %v13576_v50, %v8808_v15  ;;  %v13690_v51 = vshra.s32 %v5406_v17, 4 }
0x1a2f   : > { %8027 = vmatprep.subr.msk.bf16.mxu1 %vm8026_vm2, %v15855_v13  ;;  %vm5650_vm12 = vmand %vm5520_vm15, %vm5586_vm4  ;;  %vm5593_vm4 = vcmp.eq.s32.totalorder %v13578_v11, %v12793_v43  ;;  %vm5862_vm2 = vcmp.eq.s32.totalorder %v13578_v11, %v12796_v46  ;;  %16608 = vst [vmem:[#allocation6_spill] sm:$0xff] %v13640_v14 }
0x1a30   : > { %vm5652_vm14 = vmand %vm5522_vm3, %vm5588_vm13  ;;  %vm5860_vm13 = vcmp.eq.s32.totalorder %v13568_v44, %v12796_v46  ;;  %16609 = vst [vmem:[#allocation9_spill] sm:$0xff] %v13690_v51 }
0x1a31   : > { %vm7964_vm6 = vmpackc.low %vm5652_vm14, %vm5650_vm12  ;;  %vm5524_vm14 = vcmp.eq.s32.totalorder %v13566_v33, %v8855_v29  ;;  %v13702_v33 = vand.u32 15, %v5407_v9 }
0x1a32   : > { %7965 = vmatpush1.bf16.msk.msra.mxu0 %vm7964_vm6, %v15855_v13  ;;  %vm5919_vm9 = vmand %vm5520_vm15, %vm5855_vm7 }
0x1a33   : > { %vm5921_vm1 = vmand %vm5522_vm3, %vm5857_vm0  ;;  %vm5590_vm0 = vcmp.eq.s32.totalorder %v13568_v44, %v12807_v58  ;;  %16612 = vst [vmem:[#allocation29_spill] sm:$0xff] %v13702_v33 }
0x1a34   : > { %vm8028_vm10 = vmpackc.low %vm5921_vm1, %vm5919_vm9  ;;  %vm5526_vm9 = vcmp.eq.s32.totalorder %v13576_v50, %v8855_v29  ;;  %v13692_v50 = vand.u32 15, %v5406_v17 }
0x1a35   : > { %8029 = vmatpush1.bf16.msk.msra.mxu1 %vm8028_vm10, %v15855_v13  ;;  %vm5655_vm15 = vmand %vm5525_vm11, %vm5591_vm8  ;;  %vm5592_vm8 = vcmp.eq.s32.totalorder %v13578_v11, %v12807_v58  ;;  %vm5861_vm10 = vcmp.eq.s32.totalorder %v13578_v11, %v12814_v61  ;;  %v13700_v11 = vshra.s32 %v5407_v9, 4 }
0x1a36   : > { %vm5657_vm3 = vmand %vm5527_vm5, %vm5593_vm4  ;;  %16610 = vst [vmem:[#allocation19_spill] sm:$0xff] %v13692_v50 }
0x1a37   : > { %vm7966_vm12 = vmpackc.low %vm5657_vm3, %vm5655_vm15  ;;  %vm5529_vm3 = vcmp.eq.s32.totalorder %v13628_v53, %v8808_v15  ;;  %16611 = vst [vmem:[#allocation21_spill] sm:$0xff] %v13700_v11 }
0x1a38   : > { %7967 = vmatprep.subr.msk.bf16.mxu0 %vm7966_vm12, %v15855_v13  ;;  %vm5924_vm7 = vmand %vm5525_vm11, %vm5860_vm13 }
0x1a39   : > { %vm5926_vm6 = vmand %vm5527_vm5, %vm5862_vm2  ;;  %vm5859_vm5 = vcmp.eq.s32.totalorder %v13568_v44, %v12814_v61  ;;  %vm5595_vm2 = vcmp.eq.s32.totalorder %v13630_v40, %v12793_v43  ;;  %v16629_v44 = vmov 0 }
0x1a3a   : > { %vm8030_vm1 = vmpackc.low %vm5926_vm6, %vm5924_vm7  ;;  %vm5531_vm7 = vcmp.eq.s32.totalorder %v13638_v49, %v8808_v15 }
0x1a3b   : > { %8031 = vmatprep.subr.msk.bf16.mxu1 %vm8030_vm1, %v15855_v13  ;;  %vm5654_vm11 = vmand %vm5524_vm14, %vm5590_vm0  ;;  %vm5597_vm0 = vcmp.eq.s32.totalorder %v13640_v14, %v12793_v43  ;;  %vm5866_vm1 = vcmp.eq.s32.totalorder %v13640_v14, %v12796_v46 }
0x1a3c   : > { %vm5656_vm4 = vmand %vm5526_vm9, %vm5592_vm8  ;;  %vm5864_vm8 = vcmp.eq.s32.totalorder %v13630_v40, %v12796_v46 }
0x1a3d   : > { %vm7968_vm15 = vmpackc.low %vm5656_vm4, %vm5654_vm11  ;;  %vm5528_vm4 = vcmp.eq.s32.totalorder %v13628_v53, %v8855_v29 }
0x1a3e   : > { %7969 = vmatpush1.bf16.msk.msra.mxu0 %vm7968_vm15, %v15855_v13  ;;  %vm5923_vm13 = vmand %vm5524_vm14, %vm5859_vm5 }
0x1a3f   : > { %vm5925_vm12 = vmand %vm5526_vm9, %vm5861_vm10  ;;  %vm5594_vm10 = vcmp.eq.s32.totalorder %v13630_v40, %v12807_v58 }
0x1a40   : > { %vm8032_vm6 = vmpackc.low %vm5925_vm12, %vm5923_vm13  ;;  %vm5530_vm13 = vcmp.eq.s32.totalorder %v13638_v49, %v8855_v29 }
0x1a41   : > { %8033 = vmatpush1.bf16.msk.msra.mxu1 %vm8032_vm6, %v15855_v13  ;;  %vm5659_vm14 = vmand %vm5529_vm3, %vm5595_vm2  ;;  %vm5596_vm2 = vcmp.eq.s32.totalorder %v13640_v14, %v12807_v58  ;;  %vm5865_vm6 = vcmp.eq.s32.totalorder %v13640_v14, %v12814_v61 }
0x1a42   : > { %vm5661_vm9 = vmand %vm5531_vm7, %vm5597_vm0 }
0x1a43   : > { %vm7970_vm11 = vmpackc.low %vm5661_vm9, %vm5659_vm14  ;;  %vm5533_vm9 = vcmp.eq.s32.totalorder %v13690_v51, %v8808_v15 }
0x1a44   : > { %7971 = vmatprep.subr.msk.bf16.mxu0 %vm7970_vm11, %v15855_v13  ;;  %vm5928_vm5 = vmand %vm5529_vm3, %vm5864_vm8 }
0x1a45   : > { %vm5930_vm15 = vmand %vm5531_vm7, %vm5866_vm1  ;;  %vm5863_vm7 = vcmp.eq.s32.totalorder %v13630_v40, %v12814_v61  ;;  %vm5599_vm1 = vcmp.eq.s32.totalorder %v13692_v50, %v12793_v43 }
0x1a46   : > { %vm8034_vm12 = vmpackc.low %vm5930_vm15, %vm5928_vm5  ;;  %vm5535_vm5 = vcmp.eq.s32.totalorder %v13700_v11, %v8808_v15 }
0x1a47   : > { %8035 = vmatprep.subr.msk.bf16.mxu1 %vm8034_vm12, %v15855_v13  ;;  %vm5658_vm3 = vmand %vm5528_vm4, %vm5594_vm10  ;;  %vm5601_vm10 = vcmp.eq.s32.totalorder %v13702_v33, %v12793_v43 }
0x1a48   : > { %vm5660_vm0 = vmand %vm5530_vm13, %vm5596_vm2  ;;  %vm5868_vm2 = vcmp.eq.s32.totalorder %v13692_v50, %v12796_v46 }
0x1a49   : > { %vm7972_vm14 = vmpackc.low %vm5660_vm0, %vm5658_vm3  ;;  %vm5870_vm3 = vcmp.eq.s32.totalorder %v13702_v33, %v12796_v46  ;;  %vm5532_vm0 = vcmp.eq.s32.totalorder %v13690_v51, %v8855_v29 }
0x1a4a   : > { %7973 = vmatpush1.bf16.msk.msra.mxu0 %vm7972_vm14, %v15855_v13  ;;  %vm5927_vm8 = vmand %vm5528_vm4, %vm5863_vm7 }
0x1a4b   : > { %vm5929_vm11 = vmand %vm5530_vm13, %vm5865_vm6  ;;  %vm5598_vm6 = vcmp.eq.s32.totalorder %v13692_v50, %v12807_v58 }
0x1a4c   : > { %vm8036_vm15 = vmpackc.low %vm5929_vm11, %vm5927_vm8  ;;  %vm5534_vm8 = vcmp.eq.s32.totalorder %v13700_v11, %v8855_v29 }
0x1a4d   : > { %8037 = vmatpush1.bf16.msk.msra.mxu1 %vm8036_vm15, %v15855_v13  ;;  %vm5663_vm4 = vmand %vm5533_vm9, %vm5599_vm1  ;;  %vm5600_vm1 = vcmp.eq.s32.totalorder %v13702_v33, %v12807_v58 }
0x1a4e   : > { %vm5665_vm12 = vmand %vm5535_vm5, %vm5601_vm10 }
0x1a4f   : > { %vm7974_vm7 = vmpackc.low %vm5665_vm12, %vm5663_vm4  ;;  %vm5869_vm4 = vcmp.eq.s32.totalorder %v13702_v33, %v12814_v61 }
0x1a50   : > { %7975 = vmatprep.subr.msk.bf16.mxu0 %vm7974_vm7, %v15855_v13  ;;  %vm5932_vm13 = vmand %vm5533_vm9, %vm5868_vm2  ;;  %vm5867_vm9 = vcmp.eq.s32.totalorder %v13692_v50, %v12814_v61  ;;  %vm16613_vm7 = vcmask 1043456  }
0x1a51   : > { %vm5934_vm14 = vmand %vm5535_vm5, %vm5870_vm3 }
0x1a52   : > { %vm8038_vm11 = vmpackc.low %vm5934_vm14, %vm5932_vm13 }
0x1a53   : > { %8039 = vmatprep.subr.msk.bf16.mxu1 %vm8038_vm11, %v15855_v13  ;;  %vm5662_vm10 = vmand %vm5532_vm0, %vm5598_vm6  ;;  %vm16616_vm6 = vcmask 64512   ;;  %vm15686_vm11 = vcmp.eq.s32.totalorder %v12790_v26, %v8803_v12 }
0x1a54   : > { %vm5664_vm15 = vmand %vm5534_vm8, %vm5600_vm1 }
0x1a55   : > { %vm7976_vm2 = vmpackc.low %vm5664_vm15, %vm5662_vm10 }
0x1a56   : > { %7977 = vmatpush1.bf16.msk.msra.mxu0 %vm7976_vm2, %v15855_v13  ;;  %vm5931_vm5 = vmand %vm5532_vm0, %vm5867_vm9 }
0x1a57   : > { %vm5933_vm12 = vmand %vm5534_vm8, %vm5869_vm4  ;;  %vm15690_vm8 = vcmp.eq.s32.totalorder %v12787_v21, %v8803_v12  ;;  %vm15685_vm4 = vcmp.eq.s32.totalorder %v12787_v21, %v8857_v30 }
0x1a58   : > { %vm8040_vm3 = vmpackc.low %vm5933_vm12, %vm5931_vm5  ;;  %vm15684_vm5 = vcmp.eq.s32.totalorder %v12790_v26, %v8857_v30 }
0x1a59   : > { %8041 = vmatpush1.bf16.msk.msra.mxu1 %vm8040_vm3, %v15855_v13  ;;  %vm16614_vm13 = vmmov %vm16613_vm7  ;;  %vm15689_vm3 = vcmp.eq.s32.totalorder %v12829_v28, %v8803_v12 }
0x1a5a   : > { %vm16615_vm0 = vmmov %vm16613_vm7 }
0x1a5b   : > { %vm16617_vm14 = vmmov %vm16616_vm6 }
0x1a94   : > { %v5376_v43 = vpop.xlane.xlu0 %5375 }
0x1a95   : > { %v5377_v46 = vmul.f32 0.00390625, %v5376_v43 }
0x1a97   : > { %v5378_v58 = vadd.f32 1e-05, %v5377_v46 }
0x1a99   : > { %8633 = vrsqrt.f32 %v5378_v58  ;;  %v16622_v58 = vmov 0 }
0x1aa3   : > { %v8634_v17 = vpop.eup %8633 }
0x1aa4   : > { %v5381_v9 = vmul.f32 %v8634_v17, %v13281_v55  ;;  %v5380_v11 = vmul.f32 %v8634_v17, %v13278_v19  ;;  %v8042_v19 = vld [vmem:[%s15318_s17 + $0x4] sm:$0xf]  ;;  %v8051_v55 = vld [vmem:[%s15318_s17 + $0x10] sm:$0xf] }
0x1aa6   : > { %v5383_v51 = vmax.f32 %v5381_v9, 0.0  ;;  %v5382_v50 = vmax.f32 %v5380_v11, 0.0  ;;  %v13780_v11 = vadd.s32 4294967295, %v8855_v29 }
0x1aa8   : > { %v13747_v61 = vpack.c.bf16 %v5383_v51, %v5383_v51  ;;  %v5762_v33 = vpack.c.bf16 %v5382_v50, %v5382_v50  ;;  %v13773_v50 = vadd.s32 4294967295, %v8808_v15  ;;  %vm6299_vm2 = vcmp.eq.s32.totalorder %v12781_v31, %v13780_v11 }
0x1aa9   : > { %vm6301_vm12 = vcmp.eq.s32.totalorder %v12784_v39, %v13780_v11  ;;  %v16664_v51 = vmov 0 }
0x1aaa   : > { %5796 = vmatprep.mubr.bf16.mxu0 %v13747_v61  ;;  %6063 = vmatprep.mubr.bf16.mxu1 %v13747_v61  ;;  %v13752_v49 = vsel %vm16613_vm7, %v5762_v33, 0  ;;  %vm6300_vm1 = vcmp.eq.s32.totalorder %v12781_v31, %v13773_v50  ;;  %vm6302_vm10 = vcmp.eq.s32.totalorder %v12784_v39, %v13773_v50  ;;  %vm6304_vm7 = vcmp.eq.s32.totalorder %v12826_v2, %v13773_v50 }
0x1aab   : > { %8043 = vmatprep.subr.msk.bf16.mxu0 %vm16614_vm13, %v13747_v61  ;;  %8052 = vmatprep.subr.msk.bf16.mxu1 %vm16615_vm0, %v13747_v61  ;;  %vm13789_vm9 = vmand %vm15690_vm8, %vm6300_vm1  ;;  %vm6310_vm8 = vcmp.eq.s32.totalorder %v12890_v60, %v13773_v50 }
0x1aac   : > { %5797 = vmatmul.mubr.bf16.vlgmr.msra.gmra.mrb[156].mxu0 %v5762_v33  ;;  %6064 = vmatmul.mubr.bf16.vlgmr.msra.gmra.mrb[148].mxu1 %v5762_v33  ;;  %vm13796_vm15 = vmand %vm15686_vm11, %vm6302_vm10  ;;  %vm15694_vm10 = vcmp.eq.s32.totalorder %v12829_v28, %v8857_v30 }
0x1aad   : > { %6087 = vmatpush1.bf16.msra.mxu0 %v13752_v49  ;;  %6533 = vmatpush1.bf16.msra.mxu1 %v13752_v49  ;;  %vm13819_vm0 = vmand %vm15685_vm4, %vm6299_vm2  ;;  %vm6303_vm2 = vcmp.eq.s32.totalorder %v12826_v2, %v13780_v11  ;;  %vm6305_vm4 = vcmp.eq.s32.totalorder %v12838_v16, %v13780_v11 }
0x1aae   : > { %6118 = vmatprep.mubr.bf16.mxu0 %v15856_v35  ;;  %6564 = vmatprep.mubr.bf16.mxu1 %v15856_v35  ;;  %v16623_v58 = vsel %vm13819_vm0, 4294967295, %v16622_v58  ;;  %vm13830_vm1 = vmand %vm15684_vm5, %vm6301_vm12  ;;  %vm15695_vm5 = vcmp.eq.s32.totalorder %v12841_v47, %v8857_v30  ;;  %vm16666_vm0 = vcmp.eq.s32.totalorder %v12945_v8, %v8857_v30 }
0x1aaf   : > { %vm13846_vm12 = vmand %vm15689_vm3, %vm6304_vm7 }
0x1ab0   : > { %vm16628_vm11 = vmmov %vm16614_vm13 }
0x1ab4   : > { %8044 = vmatmul.mubr.msk.bf16.vlgmr.msra.gmra.mrb[160].mxu0 %vm16616_vm6, %v8042_v19  ;;  %8053 = vmatmul.mubr.msk.bf16.vlgmr.msra.gmra.mrb[152].mxu1 %vm16617_vm14, %v8051_v55  ;;  %vm15691_vm6 = vcmp.eq.s32.totalorder %v12841_v47, %v8803_v12  ;;  %vm6306_vm14 = vcmp.eq.s32.totalorder %v12838_v16, %v13773_v50  ;;  %v16624_v55 = vmov 0 }
0x1ab5   : > { %6168 = vmatprep.mubr.bf16.mxu0 %v15856_v35  ;;  %6608 = vmatprep.mubr.bf16.mxu1 %v15856_v35  ;;  %v16625_v55 = vsel %vm13830_vm1, 4294967295, %v16624_v55  ;;  %vm13863_vm7 = vmand %vm15691_vm6, %vm6306_vm14  ;;  %vm16674_vm1 = vcmp.eq.s32.totalorder %v13007_v3, %v8803_v12 }
0x1ab6   : > { %v16630_v44 = vsel %vm13863_vm7, 4294967295, %v16629_v44  ;;  %vm16631_vm14 = vmmov %vm16614_vm13  ;;  %vm16647_vm7 = vcmp.eq.s32.totalorder %v12881_v57, %v8857_v30 }
0x1ab7   : > { %vm13885_vm6 = vmand %vm15694_vm10, %vm6303_vm2  ;;  %vm16636_vm10 = vcmask 1043456   ;;  %vm16645_vm2 = vcmask 64512  }
0x1ab8   : > { %vm16637_vm3 = vmmov %vm16636_vm10 }
0x1b7f   : > { %v5798_v43 = vpop.f32.mrb[156].mxu0  ;;  %v6065_v46 = vpop.f32.mrb[148].mxu1 }
0x1b80   : > { %v6073_v17 = vpack.c.bf16 %v5798_v43, %v5798_v43  ;;  %v5800_v9 = vpop.f32.mrb[157].mxu0  ;;  %v6067_v19 = vpop.f32.mrb[149].mxu1  ;;  %v16626_v43 = vmov 0 }
0x1b81   : > { %v13838_v14 = vpack.c.bf16 %v5800_v9, %v5800_v9  ;;  %v5802_v53 = vpop.f32.mrb[158].mxu0  ;;  %v6069_v40 = vpop.f32.mrb[150].mxu1  ;;  %v16627_v43 = vsel %vm13846_vm12, 4294967295, %v16626_v43 }
0x1b82   : > { %v13855_v9 = vsel %vm16628_vm11, %v6073_v17, 0  ;;  %v5803_v40 = vpop.f32.mrb[159].mxu0  ;;  %v6070_v53 = vpop.f32.mrb[151].mxu1  ;;  %vm6308_vm11 = vcmp.eq.s32.totalorder %v12878_v18, %v13773_v50  ;;  %v6179_v17 = vpack.c.bf16 %v6065_v46, %v6065_v46  ;;  %v6072_v46 = vld [vmem:[%s15318_s17] sm:$0xf] }
0x1b83   : > { %v13873_v40 = vpack.c.bf16 %v6067_v19, %v6067_v19  ;;  %8045 = vmatprep.subr.msk.bf16.mxu0 %vm16614_vm13, %v13838_v14  ;;  %8054 = vmatprep.subr.msk.bf16.mxu1 %vm16631_vm14, %v13838_v14  ;;  %v16632_v53 = vmov 0  ;;  %v8050_v19 = vld [vmem:[%s15318_s17 + $0xc] sm:$0xf]  ;;  %vm13905_vm13 = vmand %vm15695_vm5, %vm6305_vm4  ;;  %vm6307_vm14 = vcmp.eq.s32.totalorder %v12878_v18, %v13780_v11  ;;  %vm16638_vm4 = vcmp.eq.s32.totalorder %v12881_v57, %v8803_v12 }
0x1b84   : > { %v16633_v53 = vsel %vm13885_vm6, 4294967295, %v16632_v53  ;;  %6137 = vmatpush1.bf16.msra.mxu0 %v13855_v9  ;;  %6577 = vmatpush1.bf16.msra.mxu1 %v13855_v9  ;;  %v16635_v7 = vsel %vm13905_vm13, 4294967295, %v16634_v7  ;;  %vm13923_vm5 = vmand %vm16638_vm4, %vm6308_vm11  ;;  %vm6309_vm13 = vcmp.eq.s32.totalorder %v12890_v60, %v13780_v11  ;;  %vm6312_vm11 = vcmp.eq.s32.totalorder %v12930_v4, %v13773_v50 }
0x1b85   : > { %8048 = vmatprep.subr.msk.bf16.mxu0 %vm16636_vm10, %v13873_v40  ;;  %8057 = vmatprep.subr.msk.bf16.mxu1 %vm16637_vm3, %v13873_v40  ;;  %v16640_v62 = vsel %vm13923_vm5, 4294967295, %v16639_v62  ;;  %vm16641_vm10 = vcmp.eq.s32.totalorder %v12893_v63, %v8803_v12  ;;  %vm16644_vm4 = vcmask 1043456   ;;  %vm16646_vm5 = vmmov %vm16645_vm2  ;;  %v16648_v60 = vmov 0 }
0x1b86   : > { %vm13934_vm3 = vmand %vm16641_vm10, %vm6310_vm8  ;;  %v13943_v18 = vsel %vm16644_vm4, %v6179_v17, 0  ;;  %vm15711_vm10 = vcmp.eq.s32.totalorder %v12945_v8, %v8803_v12  ;;  %vm6314_vm6 = vcmp.eq.s32.totalorder %v12942_v27, %v13773_v50  ;;  %v16652_v17 = vmov 0 }
0x1b87   : > { %v16643_v24 = vsel %vm13934_vm3, 4294967295, %v16642_v24  ;;  %8046 = vmatmul.mubr.msk.bf16.vlgmr.msra.gmra.mrb[160].mxu0 %vm16645_vm2, %v6072_v46  ;;  %8055 = vmatmul.mubr.msk.bf16.vlgmr.msra.gmra.mrb[156].mxu1 %vm16646_vm5, %v8050_v19  ;;  %vm13950_vm8 = vmand %vm16647_vm7, %vm6307_vm14  ;;  %v13958_v6 = vpop.f32.mrb[152].mxu1  ;;  %vm16651_vm5 = vcmp.eq.s32.totalorder %v12893_v63, %v8857_v30  ;;  %v16656_v19 = vmov 0  ;;  %vm6313_vm14 = vcmp.eq.s32.totalorder %v12942_v27, %v13780_v11 }
0x1b88   : > { %v16649_v60 = vsel %vm13950_vm8, 4294967295, %v16648_v60  ;;  %16650 = vst [vmem:[#allocation31_spill] sm:$0xff] %v13958_v6  ;;  %6191 = vmatpush1.bf16.msra.mxu0 %v13943_v18  ;;  %6623 = vmatpush1.bf16.msra.mxu1 %v13943_v18  ;;  %vm13965_vm2 = vmand %vm16651_vm5, %vm6309_vm13  ;;  %v13973_v46 = vpop.f32.mrb[153].mxu1  ;;  %vm16655_vm5 = vcmp.eq.s32.totalorder %v12933_v22, %v8803_v12  ;;  %v16670_v6 = vmov 0  ;;  %v16680_v8 = vmov 0 }
0x1b89   : > { %v16653_v17 = vsel %vm13965_vm2, 4294967295, %v16652_v17  ;;  %16654 = vst [vmem:[#allocation43_spill] sm:$0xff] %v13973_v46  ;;  %8125 = vmatprep.subr.msk.bf16.mxu1 %vm16644_vm4, %v13747_v61  ;;  %6654 = vmatprep.mubr.bf16.mxu1 %v15856_v35  ;;  %vm13988_vm7 = vmand %vm16655_vm5, %vm6312_vm11  ;;  %v6570_v61 = vpop.f32.mrb[154].mxu1  ;;  %v16667_v46 = vmov 0  ;;  %vm16677_vm11 = vcmask 64512   ;;  %vm16697_vm2 = vcmp.eq.s32.totalorder %v13059_v52, %v8857_v30 }
0x1b8a   : > { %v16657_v19 = vsel %vm13988_vm7, 4294967295, %v16656_v19  ;;  %6222 = vmatprep.mubr.bf16.mxu0 %v15856_v35  ;;  %vm16658_vm13 = vmpackc.low %vm13796_vm15, %vm13789_vm9  ;;  %v16660_v61 = vmov 0  ;;  %vm6316_vm9 = vcmp.eq.s32.totalorder %v12995_v1, %v13773_v50  ;;  %v6571_v33 = vpop.f32.mrb[155].mxu1  ;;  %vm16662_vm15 = vcmp.eq.s32.totalorder %v12930_v4, %v13780_v11 }
0x1b8b   : > { %8060 = vmatprep.subr.msk.bf16.mxu0 %vm16658_vm13, %v15855_v13  ;;  %vm14013_vm4 = vmand %vm15711_vm10, %vm6314_vm6  ;;  %vm16663_vm13 = vcmp.eq.s32.totalorder %v12933_v22, %v8857_v30  ;;  %vm6318_vm10 = vcmp.eq.s32.totalorder %v13005_v37, %v13773_v50  ;;  %v8056_v33 = vld [vmem:[%s15318_s17 + $0x14] sm:$0xf]  ;;  %vm16669_vm6 = vcmp.eq.s32.totalorder %v12997_v25, %v8803_v12  ;;  %v16684_v22 = vmov 0 }
0x1b8c   : > { %v16661_v61 = vsel %vm14013_vm4, 4294967295, %v16660_v61  ;;  %vm14027_vm5 = vmand %vm16663_vm13, %vm16662_vm15  ;;  %vm6315_vm13 = vcmp.eq.s32.totalorder %v12995_v1, %v13780_v11  ;;  %vm16673_vm15 = vnez %v16635_v7  ;;  %v16675_v1 = vmov 0 }
0x1b8d   : > { %v16665_v51 = vsel %vm14027_vm5, 4294967295, %v16664_v51  ;;  %vm14041_vm12 = vmand %vm16666_vm0, %vm6313_vm14  ;;  %vm16679_vm14 = vcmp.eq.s32.totalorder %v12997_v25, %v8857_v30  ;;  %v8047_v25 = vld [vmem:[%s15318_s17 + $0x8] sm:$0xf]  ;;  %vm16691_vm0 = vcmp.eq.s32.totalorder %v13067_v36, %v13773_v50  ;;  %vm16713_vm8 = vcmp.eq.s32.totalorder %v13131_v34, %v8803_v12 }
0x1b8e   : > { %v16668_v46 = vsel %vm14041_vm12, 4294967295, %v16667_v46  ;;  %vm14052_vm5 = vmand %vm16669_vm6, %vm6316_vm9  ;;  %vm6321_vm9 = vcmp.eq.s32.totalorder %v13067_v36, %v13780_v11  ;;  %vm16686_vm6 = vcmask 1043456   ;;  %v16701_v36 = vmov 0 }
0x1b8f   : > { %v16671_v6 = vsel %vm14052_vm5, 4294967295, %v16670_v6  ;;  %vm14067_vm4 = vmand %vm16674_vm1, %vm6318_vm10  ;;  %8058 = vmatmul.mubr.msk.bf16.vlgmr.msra.gmra.mrb[160].mxu1 %vm16677_vm11, %v8056_v33  ;;  %v14094_v33 = vadd.s32 1, %v8808_v15  ;;  %vm6319_vm10 = vcmp.eq.s32.totalorder %v13057_v41, %v13780_v11  ;;  %v16689_v15 = vmov 0 }
0x1b90   : > { %v16676_v1 = vsel %vm14067_vm4, 4294967295, %v16675_v1  ;;  %vm14083_vm1 = vmand %vm16679_vm14, %vm6315_vm13  ;;  %6714 = vmatpush1.bf16.msra.mxu1 %v13752_v49  ;;  %6745 = vmatprep.mubr.bf16.mxu1 %v15856_v35  ;;  %vm16682_vm13 = vcmp.eq.s32.totalorder %v13005_v37, %v13780_v11  ;;  %vm16683_vm14 = vcmp.eq.s32.totalorder %v13007_v3, %v8857_v30  ;;  %v16693_v49 = vmov 0 }
0x1b91   : > { %v16681_v8 = vsel %vm14083_vm1, 4294967295, %v16680_v8  ;;  %vm14107_vm12 = vmand %vm16683_vm14, %vm16682_vm13  ;;  %8127 = vmatprep.subr.msk.bf16.mxu1 %vm16686_vm6, %v13838_v14  ;;  %vm16687_vm1 = vcmp.eq.s32.totalorder %v13057_v41, %v13773_v50  ;;  %vm16688_vm13 = vcmp.eq.s32.totalorder %v13059_v52, %v8803_v12  ;;  %v16698_v14 = vmov 0  ;;  %v8124_v52 = vld [vmem:[%s15318_s17 + $0x1c] sm:$0xf] }
0x1b92   : > { %v16685_v22 = vsel %vm14107_vm12, 4294967295, %v16684_v22  ;;  %vm14125_vm14 = vmand %vm16688_vm13, %vm16687_vm1  ;;  %vm6324_vm12 = vcmp.eq.s32.totalorder %v13119_v38, %v13773_v50  ;;  %vm16692_vm1 = vcmp.eq.s32.totalorder %v13069_v0, %v8803_v12  ;;  %vm16722_vm7 = vcmask 64512  }
0x1b93   : > { %v16690_v15 = vsel %vm14125_vm14, 4294967295, %v16689_v15  ;;  %vm14143_vm13 = vmand %vm16692_vm1, %vm16691_vm0  ;;  %vm16700_vm1 = vcmp.eq.s32.totalorder %v13069_v0, %v8857_v30  ;;  %v16707_v0 = vmov 0  ;;  %vm6323_vm14 = vcmp.eq.s32.totalorder %v13119_v38, %v13780_v11 }
0x1b94   : > { %v16694_v49 = vsel %vm14143_vm13, 4294967295, %v16693_v49  ;;  %vm16695_vm3 = vmmov %vm16677_vm11  ;;  %vm16749_vm5 = vcmp.eq.s32.totalorder %v12787_v21, %v8857_v30  ;;  %v16766_v7 = vmov 0  ;;  %vm6333_vm13 = vcmp.eq.s32.totalorder %v13253_v42, %v13780_v11 }
0x1b95   : > { %8049 = vmatmul.mubr.msk.bf16.vlgmr.msra.gmra.mrb[160].mxu0 %vm16695_vm3, %v8047_v25  ;;  %vm14159_vm0 = vmand %vm16697_vm2, %vm6319_vm10  ;;  %v14175_v25 = vadd.s32 1, %v8855_v29  ;;  %vm16703_vm2 = vnez %v16625_v55  ;;  %v16714_v29 = vmov 0  ;;  %v16727_v55 = vmov 0 }
0x1b96   : > { %v16699_v14 = vsel %vm14159_vm0, 4294967295, %v16698_v14  ;;  %vm14166_vm11 = vmand %vm16700_vm1, %vm6321_vm9  ;;  %vm16704_vm9 = vnez %v16623_v58  ;;  %vm16706_vm1 = vcmp.eq.s32.totalorder %v13121_v32, %v8803_v12  ;;  %vm16719_vm0 = vcmp.eq.s32.totalorder %v12787_v21, %v8803_v12 }
0x1b97   : > { %v16702_v36 = vsel %vm14166_vm11, 4294967295, %v16701_v36  ;;  %vm16705_vm10 = vmpackc.low %vm16703_vm2, %vm16704_vm9  ;;  %vm6325_vm11 = vcmp.eq.s32.totalorder %v13129_v10, %v13780_v11  ;;  %vm6851_vm2 = vcmp.eq.s32.totalorder %v12784_v39, %v14094_v33  ;;  %vm16709_vm9 = vnez %v16630_v44  ;;  %8126 = vmatmul.mubr.msk.bf16.vlgmr.msra.gmra.mrb[164].mxu1 %vm16722_vm7, %v8124_v52 }
0x1b98   : > { %8062 = vmatpush1.bf16.msk.msra.mxu0 %vm16705_vm10, %v15855_v13  ;;  %vm14189_vm3 = vmand %vm16706_vm1, %vm6324_vm12  ;;  %vm16710_vm12 = vnez %v16627_v43  ;;  %vm16712_vm1 = vcmp.eq.s32.totalorder %v13129_v10, %v13773_v50  ;;  %v16720_v44 = vmov 0  ;;  %v16724_v58 = vmov 0  ;;  %6758 = vmatpush1.bf16.msra.mxu1 %v13855_v9 }
0x1b99   : > { %v16708_v0 = vsel %vm14189_vm3, 4294967295, %v16707_v0  ;;  %vm16711_vm10 = vmpackc.low %vm16709_vm9, %vm16710_vm12  ;;  %vm16717_vm9 = vnez %v16668_v46  ;;  %vm16729_vm7 = vcmp.eq.s32.totalorder %v12790_v26, %v8803_v12  ;;  %v16730_v52 = vmov 0  ;;  %6789 = vmatprep.mubr.bf16.mxu1 %v15856_v35 }
0x1b9a   : > { %8064 = vmatprep.subr.msk.bf16.mxu0 %vm16711_vm10, %v15855_v13  ;;  %vm14213_vm3 = vmand %vm16713_vm8, %vm16712_vm1  ;;  %vm16718_vm1 = vcmp.eq.s32.totalorder %v12781_v31, %v14094_v33  ;;  %vm16723_vm10 = vcmp.eq.s32.totalorder %v13121_v32, %v8857_v30  ;;  %v16734_v43 = vmov 0  ;;  %v16741_v9 = vmov 0 }
0x1b9b   : > { %v16715_v29 = vsel %vm14213_vm3, 4294967295, %v16714_v29  ;;  %vm14235_vm3 = vmand %vm16719_vm0, %vm16718_vm1  ;;  %vm16726_vm0 = vcmp.eq.s32.totalorder %v13131_v34, %v8857_v30  ;;  %vm6332_vm12 = vcmp.eq.s32.totalorder %v13243_v48, %v13773_v50  ;;  %v16759_v21 = vmov 0 }
0x1b9c   : > { %v16721_v44 = vsel %vm14235_vm3, 4294967295, %v16720_v44  ;;  %vm14247_vm8 = vmand %vm16723_vm10, %vm6323_vm14  ;;  %vm16740_vm10 = vcmp.eq.s32.totalorder %v13193_v56, %v8803_v12  ;;  %v16815_v46 = vmov 0 }
0x1b9d   : > { %v16725_v58 = vsel %vm14247_vm8, 4294967295, %v16724_v58  ;;  %vm14254_vm1 = vmand %vm16726_vm0, %vm6325_vm11  ;;  %vm16733_vm0 = vcmp.eq.s32.totalorder %v13183_v20, %v8803_v12  ;;  %vm16736_vm11 = vcmask 1043456   ;;  %vm16748_vm8 = vcmp.eq.s32.totalorder %v12781_v31, %v14175_v25 }
0x1b9e   : > { %v16728_v55 = vsel %vm14254_vm1, 4294967295, %v16727_v55  ;;  %vm14261_vm6 = vmand %vm16729_vm7, %vm6851_vm2  ;;  %vm16732_vm2 = vcmp.eq.s32.totalorder %v13181_v45, %v13773_v50  ;;  %8130 = vmatprep.subr.msk.bf16.mxu1 %vm16736_vm11, %v13873_v40  ;;  %vm16753_vm11 = vcmp.eq.s32.totalorder %v13181_v45, %v13780_v11  ;;  %v16755_v31 = vmov 0 }
0x1b9f   : > { %v16731_v52 = vsel %vm14261_vm6, 4294967295, %v16730_v52  ;;  %vm14281_vm7 = vmand %vm16733_vm0, %vm16732_vm2  ;;  %vm16737_vm2 = vnez %v16633_v53  ;;  %vm16778_vm6 = vnez %v16657_v19  ;;  %v16792_v40 = vmov 0  ;;  %v16798_v19 = vld [vmem:[#allocation11_spill] sm:$0xff] }
0x1ba0   : > { %v16735_v43 = vsel %vm14281_vm7, 4294967295, %v16734_v43  ;;  %vm16738_vm0 = vmpackc.low %vm16673_vm15, %vm16737_vm2  ;;  %vm16739_vm7 = vcmp.eq.s32.totalorder %v13191_v5, %v13773_v50  ;;  %vm6334_vm15 = vcmp.eq.s32.totalorder %v13253_v42, %v13773_v50  ;;  %vm16743_vm2 = vnez %v16643_v24 }
0x1ba1   : > { %8066 = vmatpush1.bf16.msk.msra.mxu0 %vm16738_vm0, %v15855_v13  ;;  %vm14305_vm14 = vmand %vm16740_vm10, %vm16739_vm7  ;;  %vm16744_vm0 = vnez %v16640_v62  ;;  %v16750_v62 = vmov 0  ;;  %v16763_v24 = vmov 0  ;;  %v16795_v53 = vmov 0 }
0x1ba2   : > { %v16742_v9 = vsel %vm14305_vm14, 4294967295, %v16741_v9  ;;  %vm16745_vm1 = vmpackc.low %vm16743_vm2, %vm16744_vm0  ;;  %vm16754_vm14 = vcmp.eq.s32.totalorder %v13183_v20, %v8857_v30  ;;  %vm16761_vm0 = vcmp.eq.s32.totalorder %v12784_v39, %v14175_v25  ;;  %vm16762_vm2 = vcmp.eq.s32.totalorder %v12790_v26, %v8857_v30 }
0x1ba3   : > { %8068 = vmatprep.subr.msk.bf16.mxu0 %vm16745_vm1, %v15855_v13  ;;  %vm14335_vm4 = vmand %vm16749_vm5, %vm16748_vm8  ;;  %vm6853_vm1 = vcmp.eq.s32.totalorder %v12826_v2, %v14094_v33  ;;  %vm16757_vm5 = vcmp.eq.s32.totalorder %v13191_v5, %v13780_v11  ;;  %vm16758_vm8 = vcmp.eq.s32.totalorder %v13193_v56, %v8857_v30  ;;  %v16769_v39 = vmov 0 }
0x1ba4   : > { %v16751_v62 = vsel %vm14335_vm4, 4294967295, %v16750_v62  ;;  %vm14351_vm3 = vmand %vm16754_vm14, %vm16753_vm11  ;;  %vm6855_vm11 = vcmp.eq.s32.totalorder %v12838_v16, %v14094_v33  ;;  %v16775_v26 = vmov 0 }
0x1ba5   : > { %v16756_v31 = vsel %vm14351_vm3, 4294967295, %v16755_v31  ;;  %vm14361_vm4 = vmand %vm16758_vm8, %vm16757_vm5  ;;  %vm16765_vm5 = vcmp.eq.s32.totalorder %v13245_v59, %v8803_v12  ;;  %vm6331_vm3 = vcmp.eq.s32.totalorder %v13243_v48, %v13780_v11 }
0x1ba6   : > { %v16760_v21 = vsel %vm14361_vm4, 4294967295, %v16759_v21  ;;  %vm14371_vm14 = vmand %vm16762_vm2, %vm16761_vm0  ;;  %vm16768_vm4 = vcmp.eq.s32.totalorder %v13255_v54, %v8803_v12 }
0x1ba7   : > { %v16764_v24 = vsel %vm14371_vm14, 4294967295, %v16763_v24  ;;  %vm14382_vm8 = vmand %vm16765_vm5, %vm6332_vm12  ;;  %vm6852_vm12 = vcmp.eq.s32.totalorder %v12826_v2, %v14175_v25  ;;  %vm16771_vm5 = vnez %v16653_v17  ;;  %vm16777_vm14 = vnez %v16661_v61  ;;  %v16797_v17 = vld [vmem:[#allocation12_spill] sm:$0xff]  ;;  %v8123_v61 = vld [vmem:[%s15318_s17 + $0x18] sm:$0xf] }
0x1ba8   : > { %v16767_v7 = vsel %vm14382_vm8, 4294967295, %v16766_v7  ;;  %vm14389_vm2 = vmand %vm16768_vm4, %vm6334_vm15  ;;  %vm16772_vm4 = vnez %v16649_v60  ;;  %vm6854_vm8 = vcmp.eq.s32.totalorder %v12838_v16, %v14175_v25  ;;  %v16783_v2 = vmov 0  ;;  %v16785_v16 = vld [vmem:[#allocation35_spill] sm:$0xff] }
0x1ba9   : > { %v16770_v39 = vsel %vm14389_vm2, 4294967295, %v16769_v39  ;;  %vm16773_vm15 = vmpackc.low %vm16771_vm5, %vm16772_vm4  ;;  %vm16774_vm2 = vcmp.eq.s32.totalorder %v12829_v28, %v8803_v12  ;;  %vm6336_vm7 = vcmp.eq.s32.totalorder %v16785_v16, %v13773_v50  ;;  %v16789_v60 = vmov 0 }
0x1baa   : > { %8070 = vmatpush1.bf16.msk.msra.mxu0 %vm16773_vm15, %v15855_v13  ;;  %vm14410_vm0 = vmand %vm16774_vm2, %vm6853_vm1  ;;  %vm16782_vm1 = vcmp.eq.s32.totalorder %v12841_v47, %v8803_v12  ;;  %vm16788_vm15 = vcmp.eq.s32.totalorder %v13245_v59, %v8857_v30  ;;  %v16806_v59 = vmov 0 }
0x1bab   : > { %v16776_v26 = vsel %vm14410_vm0, 4294967295, %v16775_v26  ;;  %vm16779_vm10 = vmpackc.low %vm16777_vm14, %vm16778_vm6  ;;  %vm16794_vm0 = vcmp.eq.s32.totalorder %v12829_v28, %v8857_v30  ;;  %v16802_v28 = vld [vmem:[#allocation10_spill] sm:$0xff] }
0x1bac   : > { %8072 = vmatprep.subr.msk.bf16.mxu0 %vm16779_vm10, %v15855_v13  ;;  %vm14429_vm2 = vmand %vm16782_vm1, %vm6855_vm11  ;;  %vm16791_vm11 = vcmp.eq.s32.totalorder %v13255_v54, %v8857_v30  ;;  %v16800_v54 = vmov 0  ;;  %vm6335_vm10 = vcmp.eq.s32.totalorder %v16785_v16, %v13780_v11 }
0x1bad   : > { %v16784_v2 = vsel %vm14429_vm2, 4294967295, %v16783_v2  ;;  %vm14444_vm5 = vmand %vm16788_vm15, %vm6331_vm3  ;;  %vm6338_vm15 = vcmp.eq.s32.totalorder %v16798_v19, %v13773_v50  ;;  %vm16805_vm3 = vcmp.eq.s32.totalorder %v13317_v23, %v8803_v12 }
0x1bae   : > { %v16790_v60 = vsel %vm14444_vm5, 4294967295, %v16789_v60  ;;  %vm14451_vm1 = vmand %vm16791_vm11, %vm6333_vm13  ;;  %vm16799_vm13 = vcmp.eq.s32.totalorder %v12841_v47, %v8857_v30  ;;  %v16808_v47 = vld [vmem:[#allocation14_spill] sm:$0xff]  ;;  %vm16810_vm5 = vnez %v16671_v6  ;;  %v16824_v6 = vmov 0 }
0x1baf   : > { %v16793_v40 = vsel %vm14451_vm1, 4294967295, %v16792_v40  ;;  %vm14458_vm4 = vmand %vm16794_vm0, %vm6852_vm12  ;;  %vm6857_vm0 = vcmp.eq.s32.totalorder %v16802_v28, %v14094_v33  ;;  %vm16803_vm12 = vnez %v16665_v51  ;;  %v16847_v51 = vld [vmem:[#allocation17_spill] sm:$0xff] }
0x1bb0   : > { %v16796_v53 = vsel %vm14458_vm4, 4294967295, %v16795_v53  ;;  %vm14472_vm11 = vmand %vm16799_vm13, %vm6854_vm8  ;;  %vm6859_vm8 = vcmp.eq.s32.totalorder %v16808_v47, %v14094_v33  ;;  %vm16809_vm13 = vnez %v16676_v1  ;;  %v16821_v1 = vmov 0 }
0x1bb1   : > { %v16801_v54 = vsel %vm14472_vm11, 4294967295, %v16800_v54  ;;  %vm16804_vm14 = vmpackc.low %vm16717_vm9, %vm16803_vm12  ;;  %vm16820_vm9 = vcmp.eq.s32.totalorder %v12881_v57, %v8803_v12  ;;  %vm6867_vm4 = vcmp.eq.s32.totalorder %v13005_v37, %v14094_v33 }
0x1bb2   : > { %8074 = vmatpush1.bf16.msk.msra.mxu0 %vm16804_vm14, %v15855_v13  ;;  %vm14487_vm1 = vmand %vm16805_vm3, %vm6336_vm7  ;;  %vm16814_vm7 = vcmp.eq.s32.totalorder %v16797_v17, %v8803_v12  ;;  %vm16830_vm14 = vnez %v16721_v44  ;;  %v16874_v44 = vmov 0 }
0x1bb3   : > { %v16807_v59 = vsel %vm14487_vm1, 4294967295, %v16806_v59  ;;  %vm16811_vm6 = vmpackc.low %vm16809_vm13, %vm16810_vm5  ;;  %vm16817_vm5 = vcmask 64512   ;;  %vm6337_vm1 = vcmp.eq.s32.totalorder %v16798_v19, %v13780_v11  ;;  %vm16829_vm13 = vnez %v16731_v52  ;;  %v8129_v52 = vld [vmem:[%s15318_s17 + $0x20] sm:$0xf] }
0x1bb4   : > { %8076 = vmatprep.subr.msk.bf16.mxu0 %vm16811_vm6, %v15855_v13  ;;  %vm14506_vm3 = vmand %vm16814_vm7, %vm6338_vm15  ;;  %8128 = vmatmul.mubr.msk.bf16.vlgmr.msra.gmra.mrb[164].mxu1 %vm16817_vm5, %v8123_v61  ;;  %vm16823_vm5 = vcmp.eq.s32.totalorder %v12893_v63, %v8803_v12  ;;  %vm16827_vm7 = vnez %v16681_v8  ;;  %v16846_v8 = vld [vmem:[#allocation20_spill] sm:$0xff]  ;;  %v16883_v61 = vmov 0 }
0x1bb5   : > { %v16816_v46 = vsel %vm14506_vm3, 4294967295, %v16815_v46  ;;  %vm14522_vm15 = vmand %vm16820_vm9, %vm6857_vm0  ;;  %6804 = vmatpush1.bf16.msra.mxu1 %v13943_v18  ;;  %6835 = vmatprep.mubr.bf16.mxu1 %v15856_v35  ;;  %vm6856_vm0 = vcmp.eq.s32.totalorder %v16802_v28, %v14175_v25  ;;  %vm16826_vm9 = vnez %v16685_v22  ;;  %v16835_v18 = vmov 0 }
0x1bb6   : > { %v16822_v1 = vsel %vm14522_vm15, 4294967295, %v16821_v1  ;;  %vm14535_vm12 = vmand %vm16823_vm5, %vm6859_vm8  ;;  %vm16834_vm15 = vcmp.eq.s32.totalorder %v13317_v23, %v8857_v30  ;;  %vm16843_vm8 = vcmp.eq.s32.totalorder %v16797_v17, %v8857_v30  ;;  %v16844_v22 = vmov 0 }
0x1bb7   : > { %v16825_v6 = vsel %vm14535_vm12, 4294967295, %v16824_v6  ;;  %vm16828_vm6 = vmpackc.low %vm16826_vm9, %vm16827_vm7  ;;  %vm16837_vm7 = vnez %v16694_v49  ;;  %v16854_v49 = vmov 0  ;;  %vm16862_vm9 = vcmp.eq.s32.totalorder %v16846_v8, %v8803_v12 }
0x1bb8   : > { %8078 = vmatpush1.bf16.msk.msra.mxu0 %vm16828_vm6, %v15855_v13  ;;  %vm16831_vm3 = vmpackc.low %vm16829_vm13, %vm16830_vm14  ;;  %vm6858_vm6 = vcmp.eq.s32.totalorder %v16808_v47, %v14175_v25  ;;  %vm16838_vm14 = vnez %v16690_v15  ;;  %v16851_v15 = vmov 0  ;;  %vm6863_vm13 = vcmp.eq.s32.totalorder %v12942_v27, %v14094_v33 }
0x1bb9   : > { %8133 = vmatprep.subr.msk.bf16.mxu1 %vm16831_vm3, %v15855_v13  ;;  %vm14560_vm11 = vmand %vm16834_vm15, %vm6335_vm10  ;;  %vm16850_vm15 = vcmp.eq.s32.totalorder %v12881_v57, %v8857_v30  ;;  %v16860_v57 = vld [vmem:[#allocation30_spill] sm:$0xff]  ;;  %v16889_v28 = vmov 0  ;;  %v16912_v47 = vmov 0 }
0x1bba   : > { %v16836_v18 = vsel %vm14560_vm11, 4294967295, %v16835_v18  ;;  %vm16839_vm3 = vmpackc.low %vm16837_vm7, %vm16838_vm14  ;;  %vm6340_vm14 = vcmp.eq.s32.totalorder %v16847_v51, %v13773_v50  ;;  %vm16882_vm2 = vcmp.eq.s32.totalorder %v16860_v57, %v8803_v12  ;;  %vm6862_vm11 = vcmp.eq.s32.totalorder %v12942_v27, %v14175_v25  ;;  %v16899_v27 = vld [vmem:[#allocation40_spill] sm:$0xff] }
0x1bbb   : > { %8080 = vmatprep.subr.msk.bf16.mxu0 %vm16839_vm3, %v15855_v13  ;;  %vm14583_vm5 = vmand %vm16843_vm8, %vm6337_vm1  ;;  %vm6861_vm1 = vcmp.eq.s32.totalorder %v12930_v4, %v14094_v33  ;;  %vm16853_vm8 = vcmp.eq.s32.totalorder %v12893_v63, %v8857_v30  ;;  %vm16856_vm3 = vnez %v16702_v36  ;;  %v16861_v63 = vld [vmem:[#allocation27_spill] sm:$0xff]  ;;  %v16863_v36 = vmov 0 }
0x1bbc   : > { %v16845_v22 = vsel %vm14583_vm5, 4294967295, %v16844_v22  ;;  %vm14598_vm10 = vmand %vm16850_vm15, %vm6856_vm0  ;;  %vm16857_vm0 = vnez %v16699_v14  ;;  %v16872_v14 = vld [vmem:[#allocation13_spill] sm:$0xff] }
0x1bbd   : > { %v16852_v15 = vsel %vm14598_vm10, 4294967295, %v16851_v15  ;;  %vm14607_vm7 = vmand %vm16853_vm8, %vm6858_vm6  ;;  %vm6342_vm8 = vcmp.eq.s32.totalorder %v16861_v63, %v13773_v50  ;;  %vm16891_vm6 = vnez %v16742_v9  ;;  %v16907_v9 = vld [vmem:[#allocation39_spill] sm:$0xff]  ;;  %vm16916_vm10 = vnez %v16756_v31 }
0x1bbe   : > { %v16855_v49 = vsel %vm14607_vm7, 4294967295, %v16854_v49  ;;  %vm16858_vm15 = vmpackc.low %vm16856_vm3, %vm16857_vm0  ;;  %vm16865_vm3 = vnez %v16715_v29  ;;  %vm16866_vm0 = vnez %v16708_v0  ;;  %v16878_v0 = vld [vmem:[#allocation15_spill] sm:$0xff]  ;;  %v16880_v29 = vmov 0 }
0x1bbf   : > { %8082 = vmatpush1.bf16.msk.msra.mxu0 %vm16858_vm15, %v15855_v13  ;;  %vm14630_vm5 = vmand %vm16862_vm9, %vm6340_vm14  ;;  %vm16873_vm14 = vcmp.eq.s32.totalorder %v16872_v14, %v8803_v12  ;;  %vm16879_vm9 = vcmp.eq.s32.totalorder %v16878_v0, %v8803_v12  ;;  %v16928_v31 = vmov 0 }
0x1bc0   : > { %v16864_v36 = vsel %vm14630_vm5, 4294967295, %v16863_v36  ;;  %vm16867_vm15 = vmpackc.low %vm16865_vm3, %vm16866_vm0  ;;  %vm6339_vm0 = vcmp.eq.s32.totalorder %v16847_v51, %v13780_v11 }
0x1bc1   : > { %8084 = vmatprep.subr.msk.bf16.mxu0 %vm16867_vm15, %v15855_v13  ;;  %vm14651_vm5 = vmand %vm16873_vm14, %vm6861_vm1  ;;  %vm6341_vm14 = vcmp.eq.s32.totalorder %v16861_v63, %v13780_v11  ;;  %vm16886_vm1 = vnez %v16725_v58  ;;  %v16900_v58 = vld [vmem:[#allocation37_spill] sm:$0xff] }
0x1bc2   : > { %v16875_v44 = vsel %vm14651_vm5, 4294967295, %v16874_v44  ;;  %vm14666_vm12 = vmand %vm16879_vm9, %vm6863_vm13  ;;  %vm6860_vm13 = vcmp.eq.s32.totalorder %v12930_v4, %v14175_v25  ;;  %vm16885_vm9 = vnez %v16728_v55  ;;  %v16897_v4 = vmov 0 }
0x1bc3   : > { %v16881_v29 = vsel %vm14666_vm12, 4294967295, %v16880_v29  ;;  %vm14680_vm3 = vmand %vm16882_vm2, %vm6342_vm8  ;;  %vm16888_vm2 = vcmp.eq.s32.totalorder %v16846_v8, %v8857_v30  ;;  %vm16903_vm5 = vcmp.eq.s32.totalorder %v16872_v14, %v8857_v30  ;;  %v16904_v55 = vmov 0  ;;  %v16914_v14 = vld [vmem:[#allocation22_spill] sm:$0xff] }
0x1bc4   : > { %v16884_v61 = vsel %vm14680_vm3, 4294967295, %v16883_v61  ;;  %vm16887_vm15 = vmpackc.low %vm16885_vm9, %vm16886_vm1  ;;  %vm16909_vm12 = vnez %v16751_v62  ;;  %v16922_v62 = vmov 0 }
0x1bc5   : > { %8086 = vmatpush1.bf16.msk.msra.mxu0 %vm16887_vm15, %v15855_v13  ;;  %vm14699_vm8 = vmand %vm16888_vm2, %vm6339_vm0  ;;  %vm16892_vm15 = vnez %v16735_v43  ;;  %vm16896_vm2 = vcmp.eq.s32.totalorder %v16860_v57, %v8857_v30  ;;  %v16906_v43 = vld [vmem:[#allocation26_spill] sm:$0xff]  ;;  %vm16911_vm0 = vcmp.eq.s32.totalorder %v16878_v0, %v8857_v30 }
0x1bc6   : > { %v16890_v28 = vsel %vm14699_vm8, 4294967295, %v16889_v28  ;;  %vm16893_vm1 = vmpackc.low %vm16891_vm6, %vm16892_vm15  ;;  %vm6344_vm15 = vcmp.eq.s32.totalorder %v16900_v58, %v13773_v50  ;;  %vm6346_vm6 = vcmp.eq.s32.totalorder %v16907_v9, %v13773_v50  ;;  %vm16943_vm8 = vnez %v16825_v6 }
0x1bc7   : > { %8088 = vmatprep.subr.msk.bf16.mxu0 %vm16893_vm1, %v15855_v13  ;;  %vm14722_vm7 = vmand %vm16896_vm2, %vm6341_vm14  ;;  %vm16901_vm1 = vcmask 64512   ;;  %vm16915_vm2 = vnez %v16760_v21  ;;  %v16930_v21 = vld [vmem:[#allocation24_spill] sm:$0xff] }
0x1bc8   : > { %v16898_v4 = vsel %vm14722_vm7, 4294967295, %v16897_v4  ;;  %8131 = vmatmul.mubr.msk.bf16.vlgmr.msra.gmra.mrb[164].mxu1 %vm16901_vm1, %v8129_v52  ;;  %vm14738_vm14 = vmand %vm16903_vm5, %vm6860_vm13  ;;  %vm16908_vm1 = vnez %v16764_v24  ;;  %vm6865_vm13 = vcmp.eq.s32.totalorder %v16914_v14, %v14094_v33 }
0x1bc9   : > { %v16905_v55 = vsel %vm14738_vm14, 4294967295, %v16904_v55  ;;  %vm16910_vm9 = vmpackc.low %vm16908_vm1, %vm16909_vm12  ;;  %vm16918_vm12 = vnez %v16784_v2  ;;  %v16981_v2 = vld [vmem:[#allocation32_spill] sm:$0xff] }
0x1bca   : > { %8135 = vmatpush1.bf16.msk.msra.mxu1 %vm16910_vm9, %v15855_v13  ;;  %vm14755_vm5 = vmand %vm16911_vm0, %vm6862_vm11  ;;  %vm16919_vm9 = vnez %v16776_v26  ;;  %vm16921_vm11 = vcmp.eq.s32.totalorder %v16899_v27, %v8803_v12  ;;  %v16979_v26 = vld [vmem:[#allocation23_spill] sm:$0xff] }
0x1bcb   : > { %v16913_v47 = vsel %vm14755_vm5, 4294967295, %v16912_v47  ;;  %vm16917_vm3 = vmpackc.low %vm16915_vm2, %vm16916_vm10  ;;  %vm16924_vm10 = vnez %v16770_v39  ;;  %v16978_v39 = vld [vmem:[#allocation25_spill] sm:$0xff] }
0x1bcc   : > { %8090 = vmatpush1.bf16.msk.msra.mxu0 %vm16917_vm3, %v15855_v13  ;;  %vm16920_vm1 = vmpackc.low %vm16918_vm12, %vm16919_vm9  ;;  %vm16925_vm3 = vnez %v16767_v7 }
0x1bcd   : > { %8137 = vmatprep.subr.msk.bf16.mxu1 %vm16920_vm1, %v15855_v13  ;;  %vm14776_vm0 = vmand %vm16921_vm11, %vm6344_vm15  ;;  %vm16927_vm15 = vcmp.eq.s32.totalorder %v16906_v43, %v8803_v12  ;;  %vm16931_vm1 = vcmp.eq.s32.totalorder %v16930_v21, %v8803_v12 }
0x1bce   : > { %v16923_v62 = vsel %vm14776_vm0, 4294967295, %v16922_v62  ;;  %vm16926_vm2 = vmpackc.low %vm16924_vm10, %vm16925_vm3  ;;  %vm16934_vm10 = vnez %v16801_v54  ;;  %vm16935_vm3 = vnez %v16796_v53  ;;  %vm16952_vm0 = vcmp.eq.s32.totalorder %v16899_v27, %v8857_v30  ;;  %v16977_v54 = vld [vmem:[#allocation38_spill] sm:$0xff] }
0x1bcf   : > { %8092 = vmatprep.subr.msk.bf16.mxu0 %vm16926_vm2, %v15855_v13  ;;  %vm14795_vm9 = vmand %vm16927_vm15, %vm6346_vm6  ;;  %vm16937_vm6 = vcmp.eq.s32.totalorder %v13007_v3, %v8803_v12  ;;  %v16988_v53 = vld [vmem:[#allocation18_spill] sm:$0xff] }
0x1bd0   : > { %v16929_v31 = vsel %vm14795_vm9, 4294967295, %v16928_v31  ;;  %vm14802_vm11 = vmand %vm16931_vm1, %vm6865_vm13  ;;  %vm16940_vm13 = vnez %v16793_v40  ;;  %vm16941_vm1 = vnez %v16790_v60  ;;  %vm16954_vm9 = vnez %v16836_v18  ;;  %v16984_v60 = vld [vmem:[#allocation16_spill] sm:$0xff]  ;;  %v16985_v40 = vld [vmem:[#allocation5_spill] sm:$0xff] }
0x1bd1   : > { %vm16936_vm2 = vmpackc.low %vm16934_vm10, %vm16935_vm3  ;;  %vm16944_vm10 = vnez %v16822_v1  ;;  %v16993_v1 = vld [vmem:[#allocation42_spill] sm:$0xff] }
0x1bd2   : > { %8139 = vmatpush1.bf16.msk.msra.mxu1 %vm16936_vm2, %v15855_v13  ;;  %vm14815_vm15 = vmand %vm16937_vm6, %vm6867_vm4  ;;  %vm6343_vm6 = vcmp.eq.s32.totalorder %v16900_v58, %v13780_v11  ;;  %vm6866_vm4 = vcmp.eq.s32.totalorder %v13005_v37, %v14175_v25  ;;  %vm6345_vm2 = vcmp.eq.s32.totalorder %v16907_v9, %v13780_v11  ;;  %v16974_v37 = vld [vmem:[#allocation36_spill] sm:$0xff] }
0x1bd3   : > { %vm16942_vm12 = vmpackc.low %vm16940_vm13, %vm16941_vm1  ;;  %vm16947_vm13 = vnez %v16807_v59  ;;  %v16976_v59 = vld [vmem:[#allocation28_spill] sm:$0xff] }
0x1bd4   : > { %8094 = vmatpush1.bf16.msk.msra.mxu0 %vm16942_vm12, %v15855_v13  ;;  %vm16945_vm3 = vmpackc.low %vm16943_vm8, %vm16944_vm10  ;;  %vm16946_vm12 = vnez %v16816_v46  ;;  %vm6864_vm10 = vcmp.eq.s32.totalorder %v16914_v14, %v14175_v25  ;;  %vm16959_vm8 = vcmp.eq.s32.totalorder %v16930_v21, %v8857_v30  ;;  %v16992_v46 = vld [vmem:[#allocation2_spill] sm:$0xff] }
0x1bd5   : > { %8141 = vmatprep.subr.msk.bf16.mxu1 %vm16945_vm3, %v15855_v13  ;;  %vm16948_vm1 = vmpackc.low %vm16946_vm12, %vm16947_vm13  ;;  %vm16949_vm12 = vnez %v16855_v49  ;;  %vm16950_vm13 = vnez %v16852_v15 }
0x1bd6   : > { %8096 = vmatprep.subr.msk.bf16.mxu0 %vm16948_vm1, %v15855_v13  ;;  %vm8148_vm3 = vmpackc.low %vm14815_vm15, %vm14802_vm11  ;;  %vm16953_vm15 = vnez %v16845_v22 }
0x1bd7   : > { %vm16951_vm1 = vmpackc.low %vm16949_vm12, %vm16950_vm13  ;;  %vm16956_vm12 = vnez %v16881_v29  ;;  %vm16957_vm13 = vnez %v16875_v44 }
0x1bd8   : > { %8143 = vmatpush1.bf16.msk.msra.mxu1 %vm16951_vm1, %v15855_v13  ;;  %vm6407_vm11 = vmand %vm16952_vm0, %vm6343_vm6  ;;  %vm16960_vm0 = vnez %v16884_v61  ;;  %vm16961_vm6 = vnez %v16864_v36 }
0x1bd9   : > { %vm16955_vm7 = vmpackc.low %vm16953_vm15, %vm16954_vm9  ;;  %vm16964_vm15 = vcmp.eq.s32.totalorder %v16906_v43, %v8857_v30 }
0x1bda   : > { %8098 = vmatpush1.bf16.msk.msra.mxu0 %vm16955_vm7, %v15855_v13  ;;  %vm16958_vm1 = vmpackc.low %vm16956_vm12, %vm16957_vm13  ;;  %vm16963_vm7 = vcmp.eq.s32.totalorder %v13007_v3, %v8857_v30  ;;  %vm16965_vm13 = vnez %v16913_v47  ;;  %v16975_v3 = vld [vmem:[#allocation4_spill] sm:$0xff]  ;;  %v7121_v47 = vpop.permute.xlu0 %7120 }
0x1bdb   : > { %8145 = vmatprep.subr.msk.bf16.mxu1 %vm16958_vm1, %v15855_v13  ;;  %vm6928_vm14 = vmand %vm16959_vm8, %vm6864_vm10  ;;  %vm16966_vm8 = vnez %v16905_v55  ;;  %vm16968_vm1 = vnez %v16898_v4 }
0x1bdc   : > { %vm16962_vm5 = vmpackc.low %vm16960_vm0, %vm16961_vm6  ;;  %vm16972_vm6 = vnez %v16923_v62 }
0x1bdd   : > { %8100 = vmatprep.subr.msk.bf16.mxu0 %vm16962_vm5, %v15855_v13  ;;  %vm6930_vm9 = vmand %vm16963_vm7, %vm6866_vm4  ;;  %vm16969_vm5 = vnez %v16890_v28 }
0x1bde   : > { %vm6409_vm12 = vmand %vm16964_vm15, %vm6345_vm2  ;;  %vm16971_vm2 = vnez %v16929_v31 }
0x1bdf   : > { %vm16967_vm10 = vmpackc.low %vm16965_vm13, %vm16966_vm8  ;;  %vm6282_vm13 = vcmp.eq.s32.totalorder %v16974_v37, %v8803_v12  ;;  %vm6284_vm8 = vcmp.eq.s32.totalorder %v16975_v3, %v8803_v12 }
0x1be0   : > { %8147 = vmatpush1.bf16.msk.msra.mxu1 %vm16967_vm10, %v15855_v13  ;;  %vm16970_vm0 = vmpackc.low %vm16968_vm1, %vm16969_vm5  ;;  %vm6871_vm10 = vcmp.eq.s32.totalorder %v16978_v39, %v14094_v33  ;;  %vm16980_vm5 = vcmp.eq.s32.totalorder %v16979_v26, %v8803_v12 }
0x1be1   : > { %8102 = vmatpush1.bf16.msk.msra.mxu0 %vm16970_vm0, %v15855_v13  ;;  %8149 = vmatprep.subr.msk.bf16.mxu1 %vm8148_vm3, %v15855_v13  ;;  %vm8150_vm4 = vmpackc.low %vm6930_vm9, %vm6928_vm14  ;;  %vm6348_vm14 = vcmp.eq.s32.totalorder %v16976_v59, %v13773_v50  ;;  %vm6350_vm3 = vcmp.eq.s32.totalorder %v16977_v54, %v13773_v50  ;;  %vm6869_vm9 = vcmp.eq.s32.totalorder %v13057_v41, %v14094_v33 }
0x1be2   : > { %vm16973_vm7 = vmpackc.low %vm16971_vm2, %vm16972_vm6  ;;  %vm6347_vm2 = vcmp.eq.s32.totalorder %v16976_v59, %v13780_v11  ;;  %vm16982_vm6 = vcmp.eq.s32.totalorder %v16981_v2, %v8803_v12 }
0x1be3   : > { %8104 = vmatprep.subr.msk.bf16.mxu0 %vm16973_vm7, %v15855_v13  ;;  %vm8105_vm15 = vmpackc.low %vm6409_vm12, %vm6407_vm11 }
0x1be4   : > { %8151 = vmatpush1.bf16.msk.msra.mxu1 %vm8150_vm4, %v15855_v13  ;;  %vm6412_vm11 = vmand %vm6282_vm13, %vm6348_vm14  ;;  %vm6281_vm4 = vcmp.eq.s32.totalorder %v16974_v37, %v8857_v30  ;;  %vm6349_vm14 = vcmp.eq.s32.totalorder %v16977_v54, %v13780_v11 }
0x1be5   : > { %8106 = vmatpush1.bf16.msk.msra.mxu0 %vm8105_vm15, %v15855_v13  ;;  %vm6414_vm12 = vmand %vm6284_vm8, %vm6350_vm3  ;;  %vm6283_vm15 = vcmp.eq.s32.totalorder %v16975_v3, %v8857_v30 }
0x1be6   : > { %vm8107_vm1 = vmpackc.low %vm6414_vm12, %vm6412_vm11 }
0x1be7   : > { %8108 = vmatprep.subr.msk.bf16.mxu0 %vm8107_vm1, %v15855_v13  ;;  %vm6933_vm0 = vmand %vm16980_vm5, %vm6869_vm9  ;;  %vm6868_vm9 = vcmp.eq.s32.totalorder %v13057_v41, %v14175_v25  ;;  %vm16983_vm5 = vcmp.eq.s32.totalorder %v16979_v26, %v8857_v30  ;;  %v16987_v41 = vld [vmem:[#allocation41_spill] sm:$0xff] }
0x1be8   : > { %vm6935_vm7 = vmand %vm16982_vm6, %vm6871_vm10  ;;  %vm6870_vm10 = vcmp.eq.s32.totalorder %v16978_v39, %v14175_v25  ;;  %vm6352_vm6 = vcmp.eq.s32.totalorder %v16985_v40, %v13773_v50 }
0x1be9   : > { %vm8152_vm3 = vmpackc.low %vm6935_vm7, %vm6933_vm0  ;;  %vm16986_vm7 = vcmp.eq.s32.totalorder %v16981_v2, %v8857_v30  ;;  %v7146_v2 = vld [vmem:[%s15321_s20] sm:$0xff] }
0x1bea   : > { %8153 = vmatprep.subr.msk.bf16.mxu1 %vm8152_vm3, %v15855_v13  ;;  %vm6411_vm11 = vmand %vm6281_vm4, %vm6347_vm2  ;;  %vm15785_vm2 = vcmp.eq.s32.totalorder %v16984_v60, %v8803_v12  ;;  %vm15786_vm3 = vcmp.eq.s32.totalorder %v16987_v41, %v8803_v12 }
0x1beb   : > { %vm6413_vm12 = vmand %vm6283_vm15, %vm6349_vm14 }
0x1bec   : > { %vm8109_vm1 = vmpackc.low %vm6413_vm12, %vm6411_vm11  ;;  %vm6354_vm11 = vcmp.eq.s32.totalorder %v16988_v53, %v13773_v50 }
0x1bed   : > { %8110 = vmatpush1.bf16.msk.msra.mxu0 %vm8109_vm1, %v15855_v13  ;;  %vm6932_vm0 = vmand %vm16983_vm5, %vm6868_vm9  ;;  %vm6873_vm1 = vcmp.eq.s32.totalorder %v13119_v38, %v14094_v33  ;;  %vm6875_vm5 = vcmp.eq.s32.totalorder %v13129_v10, %v14094_v33 }
0x1bee   : > { %vm6934_vm14 = vmand %vm16986_vm7, %vm6870_vm10 }
0x1bef   : > { %vm8154_vm12 = vmpackc.low %vm6934_vm14, %vm6932_vm0  ;;  %vm16989_vm0 = vcmp.eq.s32.totalorder %v13121_v32, %v8803_v12 }
0x1bf0   : > { %8155 = vmatpush1.bf16.msk.msra.mxu1 %vm8154_vm12, %v15855_v13  ;;  %vm6416_vm9 = vmand %vm15785_vm2, %vm6352_vm6  ;;  %vm15787_vm6 = vcmp.eq.s32.totalorder %v16984_v60, %v8857_v30  ;;  %vm6351_vm12 = vcmp.eq.s32.totalorder %v16985_v40, %v13780_v11  ;;  %vm16990_vm2 = vcmp.eq.s32.totalorder %v13131_v34, %v8803_v12 }
0x1bf1   : > { %vm6418_vm10 = vmand %vm15786_vm3, %vm6354_vm11  ;;  %vm15788_vm3 = vcmp.eq.s32.totalorder %v16987_v41, %v8857_v30 }
0x1bf2   : > { %vm8111_vm7 = vmpackc.low %vm6418_vm10, %vm6416_vm9  ;;  %vm6353_vm9 = vcmp.eq.s32.totalorder %v16988_v53, %v13780_v11 }
0x1bf3   : > { %8112 = vmatprep.subr.msk.bf16.mxu0 %vm8111_vm7, %v15855_v13  ;;  %vm6937_vm14 = vmand %vm16989_vm0, %vm6873_vm1  ;;  %vm6872_vm7 = vcmp.eq.s32.totalorder %v13119_v38, %v14175_v25  ;;  %v16995_v38 = vld [vmem:[#allocation6_spill] sm:$0xff] }
0x1bf4   : > { %vm6939_vm11 = vmand %vm16990_vm2, %vm6875_vm5  ;;  %vm6874_vm5 = vcmp.eq.s32.totalorder %v13129_v10, %v14175_v25  ;;  %v16996_v10 = vld [vmem:[#allocation3_spill] sm:$0xff] }
0x1bf5   : > { %vm8156_vm10 = vmpackc.low %vm6939_vm11, %vm6937_vm14  ;;  %vm16991_vm14 = vcmp.eq.s32.totalorder %v13121_v32, %v8857_v30  ;;  %v17000_v32 = vld [vmem:[#allocation19_spill] sm:$0xff] }
0x1bf6   : > { %8157 = vmatprep.subr.msk.bf16.mxu1 %vm8156_vm10, %v15855_v13  ;;  %vm6415_vm1 = vmand %vm15787_vm6, %vm6351_vm12  ;;  %vm15789_vm12 = vcmp.eq.s32.totalorder %v16992_v46, %v8803_v12  ;;  %vm6356_vm10 = vcmp.eq.s32.totalorder %v16993_v1, %v13773_v50  ;;  %vm16994_vm6 = vcmp.eq.s32.totalorder %v13131_v34, %v8857_v30  ;;  %v17001_v34 = vld [vmem:[#allocation9_spill] sm:$0xff] }
0x1bf7   : > { %vm6417_vm2 = vmand %vm15788_vm3, %vm6353_vm9  ;;  %vm15790_vm3 = vcmp.eq.s32.totalorder %v16995_v38, %v8803_v12 }
0x1bf8   : > { %vm8113_vm0 = vmpackc.low %vm6417_vm2, %vm6415_vm1  ;;  %vm6358_vm1 = vcmp.eq.s32.totalorder %v16996_v10, %v13773_v50 }
0x1bf9   : > { %8114 = vmatpush1.bf16.msk.msra.mxu0 %vm8113_vm0, %v15855_v13  ;;  %vm6936_vm11 = vmand %vm16991_vm14, %vm6872_vm7  ;;  %vm6877_vm0 = vcmp.eq.s32.totalorder %v13181_v45, %v14094_v33 }
0x1bfa   : > { %vm6938_vm9 = vmand %vm16994_vm6, %vm6874_vm5  ;;  %vm6879_vm5 = vcmp.eq.s32.totalorder %v13191_v5, %v14094_v33 }
0x1bfb   : > { %vm8158_vm2 = vmpackc.low %vm6938_vm9, %vm6936_vm11  ;;  %vm16997_vm11 = vcmp.eq.s32.totalorder %v13183_v20, %v8803_v12 }
0x1bfc   : > { %8159 = vmatpush1.bf16.msk.msra.mxu1 %vm8158_vm2, %v15855_v13  ;;  %vm6420_vm7 = vmand %vm15789_vm12, %vm6356_vm10  ;;  %vm15791_vm10 = vcmp.eq.s32.totalorder %v16992_v46, %v8857_v30  ;;  %vm6355_vm2 = vcmp.eq.s32.totalorder %v16993_v1, %v13780_v11  ;;  %vm16998_vm12 = vcmp.eq.s32.totalorder %v13193_v56, %v8803_v12 }
0x1bfd   : > { %vm6422_vm6 = vmand %vm15790_vm3, %vm6358_vm1  ;;  %vm15792_vm3 = vcmp.eq.s32.totalorder %v16995_v38, %v8857_v30 }
0x1bfe   : > { %vm8115_vm14 = vmpackc.low %vm6422_vm6, %vm6420_vm7  ;;  %vm6357_vm7 = vcmp.eq.s32.totalorder %v16996_v10, %v13780_v11 }
0x1bff   : > { %8116 = vmatprep.subr.msk.bf16.mxu0 %vm8115_vm14, %v15855_v13  ;;  %vm6941_vm9 = vmand %vm16997_vm11, %vm6877_vm0  ;;  %vm6876_vm14 = vcmp.eq.s32.totalorder %v13181_v45, %v14175_v25  ;;  %v17003_v45 = vld [vmem:[#allocation29_spill] sm:$0xff] }
0x1c00   : > { %vm6943_vm1 = vmand %vm16998_vm12, %vm6879_vm5  ;;  %vm6878_vm5 = vcmp.eq.s32.totalorder %v13191_v5, %v14175_v25  ;;  %v17004_v5 = vld [vmem:[#allocation21_spill] sm:$0xff] }
0x1c01   : > { %vm8160_vm6 = vmpackc.low %vm6943_vm1, %vm6941_vm9  ;;  %vm16999_vm9 = vcmp.eq.s32.totalorder %v13183_v20, %v8857_v30  ;;  %v17005_v20 = vld [vmem:[#allocation33_spill] sm:$0xff] }
0x1c02   : > { %8161 = vmatprep.subr.msk.bf16.mxu1 %vm8160_vm6, %v15855_v13  ;;  %vm6419_vm0 = vmand %vm15791_vm10, %vm6355_vm2  ;;  %vm15793_vm2 = vcmp.eq.s32.totalorder %v17000_v32, %v8803_v12  ;;  %vm6360_vm6 = vcmp.eq.s32.totalorder %v17001_v34, %v13773_v50  ;;  %vm17002_vm10 = vcmp.eq.s32.totalorder %v13193_v56, %v8857_v30  ;;  %v17007_v56 = vld [vmem:[#allocation34_spill] sm:$0xff] }
0x1c03   : > { %vm6421_vm12 = vmand %vm15792_vm3, %vm6357_vm7  ;;  %vm15794_vm3 = vcmp.eq.s32.totalorder %v17003_v45, %v8803_v12 }
0x1c04   : > { %vm8117_vm11 = vmpackc.low %vm6421_vm12, %vm6419_vm0  ;;  %vm6362_vm0 = vcmp.eq.s32.totalorder %v17004_v5, %v13773_v50  ;;  %v17036_v50 = vld [vmem:[#allocation43_spill] sm:$0xff] }
0x1c05   : > { %8118 = vmatpush1.bf16.msk.msra.mxu0 %vm8117_vm11, %v15855_v13  ;;  %vm6940_vm1 = vmand %vm16999_vm9, %vm6876_vm14  ;;  %vm6881_vm11 = vcmp.eq.s32.totalorder %v13243_v48, %v14094_v33 }
0x1c06   : > { %vm6942_vm7 = vmand %vm17002_vm10, %vm6878_vm5  ;;  %vm6883_vm5 = vcmp.eq.s32.totalorder %v13253_v42, %v14094_v33 }
0x1c07   : > { %vm8162_vm12 = vmpackc.low %vm6942_vm7, %vm6940_vm1  ;;  %vm17006_vm1 = vcmp.eq.s32.totalorder %v17005_v20, %v8803_v12 }
0x1c08   : > { %8163 = vmatpush1.bf16.msk.msra.mxu1 %vm8162_vm12, %v15855_v13  ;;  %vm6424_vm14 = vmand %vm15793_vm2, %vm6360_vm6  ;;  %vm15795_vm6 = vcmp.eq.s32.totalorder %v17000_v32, %v8857_v30  ;;  %vm6359_vm12 = vcmp.eq.s32.totalorder %v17001_v34, %v13780_v11  ;;  %vm17008_vm2 = vcmp.eq.s32.totalorder %v17007_v56, %v8803_v12 }
0x1c09   : > { %vm6426_vm10 = vmand %vm15794_vm3, %vm6362_vm0  ;;  %vm15796_vm3 = vcmp.eq.s32.totalorder %v17003_v45, %v8857_v30 }
0x1c0a   : > { %vm8119_vm9 = vmpackc.low %vm6426_vm10, %vm6424_vm14  ;;  %vm6361_vm14 = vcmp.eq.s32.totalorder %v17004_v5, %v13780_v11 }
0x1c0b   : > { %8120 = vmatprep.subr.msk.bf16.mxu0 %vm8119_vm9, %v15855_v13  ;;  %vm6945_vm7 = vmand %vm17006_vm1, %vm6881_vm11  ;;  %vm6880_vm9 = vcmp.eq.s32.totalorder %v13243_v48, %v14175_v25 }
0x1c0c   : > { %vm6947_vm0 = vmand %vm17008_vm2, %vm6883_vm5  ;;  %vm6882_vm5 = vcmp.eq.s32.totalorder %v13253_v42, %v14175_v25 }
0x1c0d   : > { %vm8164_vm10 = vmpackc.low %vm6947_vm0, %vm6945_vm7  ;;  %vm17009_vm7 = vcmp.eq.s32.totalorder %v17005_v20, %v8857_v30 }
0x1c0e   : > { %8165 = vmatprep.subr.msk.bf16.mxu1 %vm8164_vm10, %v15855_v13  ;;  %vm6423_vm11 = vmand %vm15795_vm6, %vm6359_vm12  ;;  %vm6885_vm12 = vcmp.eq.s32.totalorder %v16785_v16, %v14094_v33  ;;  %vm17010_vm10 = vcmp.eq.s32.totalorder %v17007_v56, %v8857_v30 }
0x1c0f   : > { %vm6425_vm2 = vmand %vm15796_vm3, %vm6361_vm14  ;;  %vm6887_vm14 = vcmp.eq.s32.totalorder %v16798_v19, %v14094_v33 }
0x1c10   : > { %vm8121_vm1 = vmpackc.low %vm6425_vm2, %vm6423_vm11  ;;  %vm17011_vm11 = vcmp.eq.s32.totalorder %v13317_v23, %v8803_v12 }
0x1c11   : > { %8122 = vmatpush1.bf16.msk.msra.mxu0 %vm8121_vm1, %v15855_v13  ;;  %vm6944_vm0 = vmand %vm17009_vm7, %vm6880_vm9  ;;  %vm6884_vm9 = vcmp.eq.s32.totalorder %v16785_v16, %v14175_v25  ;;  %vm17012_vm1 = vcmp.eq.s32.totalorder %v16797_v17, %v8803_v12 }
0x1c12   : > { %vm6946_vm6 = vmand %vm17010_vm10, %vm6882_vm5  ;;  %vm6886_vm5 = vcmp.eq.s32.totalorder %v16798_v19, %v14175_v25 }
0x1c13   : > { %vm8166_vm3 = vmpackc.low %vm6946_vm6, %vm6944_vm0  ;;  %vm6889_vm0 = vcmp.eq.s32.totalorder %v16847_v51, %v14094_v33 }
0x1c14   : > { %8167 = vmatpush1.bf16.msk.msra.mxu1 %vm8166_vm3, %v15855_v13  ;;  %vm6949_vm2 = vmand %vm17011_vm11, %vm6885_vm12  ;;  %vm17013_vm3 = vcmp.eq.s32.totalorder %v13317_v23, %v8857_v30  ;;  %vm17014_vm12 = vcmp.eq.s32.totalorder %v16797_v17, %v8857_v30 }
0x1c15   : > { %vm6951_vm7 = vmand %vm17012_vm1, %vm6887_vm14  ;;  %vm6891_vm14 = vcmp.eq.s32.totalorder %v16861_v63, %v14094_v33 }
0x1c16   : > { %vm8168_vm10 = vmpackc.low %vm6951_vm7, %vm6949_vm2  ;;  %vm17015_vm2 = vcmp.eq.s32.totalorder %v16846_v8, %v8803_v12 }
0x1c17   : > { %8169 = vmatprep.subr.msk.bf16.mxu1 %vm8168_vm10, %v15855_v13  ;;  %vm6948_vm6 = vmand %vm17013_vm3, %vm6884_vm9  ;;  %vm6888_vm9 = vcmp.eq.s32.totalorder %v16847_v51, %v14175_v25  ;;  %vm17016_vm10 = vcmp.eq.s32.totalorder %v16860_v57, %v8803_v12 }
0x1c18   : > { %vm6950_vm11 = vmand %vm17014_vm12, %vm6886_vm5  ;;  %vm6890_vm5 = vcmp.eq.s32.totalorder %v16861_v63, %v14175_v25 }
0x1c19   : > { %vm8170_vm1 = vmpackc.low %vm6950_vm11, %vm6948_vm6  ;;  %vm17017_vm6 = vcmp.eq.s32.totalorder %v16846_v8, %v8857_v30 }
0x1c1a   : > { %8171 = vmatpush1.bf16.msk.msra.mxu1 %vm8170_vm1, %v15855_v13  ;;  %vm6953_vm7 = vmand %vm17015_vm2, %vm6889_vm0  ;;  %vm6893_vm0 = vcmp.eq.s32.totalorder %v16900_v58, %v14094_v33  ;;  %vm17018_vm1 = vcmp.eq.s32.totalorder %v16860_v57, %v8857_v30 }
0x1c1b   : > { %vm6955_vm3 = vmand %vm17016_vm10, %vm6891_vm14  ;;  %vm6895_vm14 = vcmp.eq.s32.totalorder %v16907_v9, %v14094_v33 }
0x1c1c   : > { %vm8172_vm12 = vmpackc.low %vm6955_vm3, %vm6953_vm7  ;;  %vm17019_vm7 = vcmp.eq.s32.totalorder %v16899_v27, %v8803_v12 }
0x1c1d   : > { %8173 = vmatprep.subr.msk.bf16.mxu1 %vm8172_vm12, %v15855_v13  ;;  %vm6952_vm11 = vmand %vm17017_vm6, %vm6888_vm9  ;;  %vm6892_vm9 = vcmp.eq.s32.totalorder %v16900_v58, %v14175_v25  ;;  %vm17020_vm12 = vcmp.eq.s32.totalorder %v16906_v43, %v8803_v12 }
0x1c1e   : > { %vm6954_vm2 = vmand %vm17018_vm1, %vm6890_vm5  ;;  %vm6894_vm5 = vcmp.eq.s32.totalorder %v16907_v9, %v14175_v25 }
0x1c1f   : > { %vm8174_vm10 = vmpackc.low %vm6954_vm2, %vm6952_vm11  ;;  %vm17021_vm11 = vcmp.eq.s32.totalorder %v16899_v27, %v8857_v30 }
0x1c20   : > { %8175 = vmatpush1.bf16.msk.msra.mxu1 %vm8174_vm10, %v15855_v13  ;;  %vm6957_vm3 = vmand %vm17019_vm7, %vm6893_vm0  ;;  %vm6897_vm0 = vcmp.eq.s32.totalorder %v16976_v59, %v14094_v33  ;;  %vm17022_vm10 = vcmp.eq.s32.totalorder %v16906_v43, %v8857_v30 }
0x1c21   : > { %vm6959_vm6 = vmand %vm17020_vm12, %vm6895_vm14  ;;  %vm6899_vm14 = vcmp.eq.s32.totalorder %v16977_v54, %v14094_v33 }
0x1c22   : > { %vm8176_vm1 = vmpackc.low %vm6959_vm6, %vm6957_vm3 }
0x1c23   : > { %8177 = vmatprep.subr.msk.bf16.mxu1 %vm8176_vm1, %v15855_v13  ;;  %vm6956_vm2 = vmand %vm17021_vm11, %vm6892_vm9  ;;  %vm6896_vm9 = vcmp.eq.s32.totalorder %v16976_v59, %v14175_v25 }
0x1c24   : > { %vm6958_vm7 = vmand %vm17022_vm10, %vm6894_vm5  ;;  %vm6898_vm5 = vcmp.eq.s32.totalorder %v16977_v54, %v14175_v25  ;;  %vm17023_vm10 = vcmp.eq.s32.totalorder %v16984_v60, %v8803_v12 }
0x1c25   : > { %vm8178_vm12 = vmpackc.low %vm6958_vm7, %vm6956_vm2 }
0x1c26   : > { %8179 = vmatpush1.bf16.msk.msra.mxu1 %vm8178_vm12, %v15855_v13  ;;  %vm6961_vm3 = vmand %vm6282_vm13, %vm6897_vm0  ;;  %vm6901_vm13 = vcmp.eq.s32.totalorder %v16985_v40, %v14094_v33 }
0x1c27   : > { %vm6963_vm6 = vmand %vm6284_vm8, %vm6899_vm14  ;;  %vm6903_vm8 = vcmp.eq.s32.totalorder %v16988_v53, %v14094_v33  ;;  %vm17024_vm14 = vcmp.eq.s32.totalorder %v16987_v41, %v8803_v12 }
0x1c28   : > { %vm8180_vm1 = vmpackc.low %vm6963_vm6, %vm6961_vm3 }
0x1c29   : > { %8181 = vmatprep.subr.msk.bf16.mxu1 %vm8180_vm1, %v15855_v13  ;;  %vm6960_vm11 = vmand %vm6281_vm4, %vm6896_vm9  ;;  %vm6900_vm4 = vcmp.eq.s32.totalorder %v16985_v40, %v14175_v25  ;;  %vm17025_vm9 = vcmp.eq.s32.totalorder %v16984_v60, %v8857_v30  ;;  %vm17026_vm1 = vcmp.eq.s32.totalorder %v16987_v41, %v8857_v30 }
0x1c2a   : > { %vm6962_vm2 = vmand %vm6283_vm15, %vm6898_vm5  ;;  %vm6902_vm15 = vcmp.eq.s32.totalorder %v16988_v53, %v14175_v25  ;;  %vm6905_vm5 = vcmp.eq.s32.totalorder %v16993_v1, %v14094_v33 }
0x1c2b   : > { %vm8182_vm0 = vmpackc.low %vm6962_vm2, %vm6960_vm11 }
0x1c2c   : > { %8183 = vmatpush1.bf16.msk.msra.mxu1 %vm8182_vm0, %v15855_v13  ;;  %vm6965_vm7 = vmand %vm17023_vm10, %vm6901_vm13  ;;  %vm6907_vm13 = vcmp.eq.s32.totalorder %v16996_v10, %v14094_v33  ;;  %vm6904_vm10 = vcmp.eq.s32.totalorder %v16993_v1, %v14175_v25 }
0x1c2d   : > { %vm6967_vm12 = vmand %vm17024_vm14, %vm6903_vm8  ;;  %vm17027_vm8 = vcmp.eq.s32.totalorder %v16992_v46, %v8803_v12  ;;  %vm6906_vm14 = vcmp.eq.s32.totalorder %v16996_v10, %v14175_v25 }
0x1c2e   : > { %vm8184_vm3 = vmpackc.low %vm6967_vm12, %vm6965_vm7  ;;  %vm17028_vm7 = vcmp.eq.s32.totalorder %v16995_v38, %v8803_v12 }
0x1c2f   : > { %8185 = vmatprep.subr.msk.bf16.mxu1 %vm8184_vm3, %v15855_v13  ;;  %vm6964_vm6 = vmand %vm17025_vm9, %vm6900_vm4  ;;  %vm6909_vm9 = vcmp.eq.s32.totalorder %v17001_v34, %v14094_v33 }
0x1c30   : > { %vm6966_vm11 = vmand %vm17026_vm1, %vm6902_vm15  ;;  %vm17029_vm15 = vcmp.eq.s32.totalorder %v16992_v46, %v8857_v30  ;;  %vm6911_vm1 = vcmp.eq.s32.totalorder %v17004_v5, %v14094_v33 }
0x1c31   : > { %vm8186_vm2 = vmpackc.low %vm6966_vm11, %vm6964_vm6  ;;  %vm17030_vm6 = vcmp.eq.s32.totalorder %v16995_v38, %v8857_v30 }
0x1c32   : > { %8187 = vmatpush1.bf16.msk.msra.mxu1 %vm8186_vm2, %v15855_v13  ;;  %vm6969_vm0 = vmand %vm17027_vm8, %vm6905_vm5  ;;  %vm6908_vm8 = vcmp.eq.s32.totalorder %v17001_v34, %v14175_v25 }
0x1c33   : > { %vm6971_vm4 = vmand %vm17028_vm7, %vm6907_vm13  ;;  %vm17031_vm13 = vcmp.eq.s32.totalorder %v17000_v32, %v8803_v12  ;;  %vm6910_vm7 = vcmp.eq.s32.totalorder %v17004_v5, %v14175_v25  ;;  %v7143_v5 = vld [vmem:[%s15320_s19] sm:$0xf] }
0x1c34   : > { %vm8188_vm12 = vmpackc.low %vm6971_vm4, %vm6969_vm0  ;;  %vm17032_vm0 = vcmp.eq.s32.totalorder %v17003_v45, %v8803_v12  ;;  %v17035_v12 = vld [vmem:[#allocation31_spill] sm:$0xff] }
0x1c35   : > { %8189 = vmatprep.subr.msk.bf16.mxu1 %vm8188_vm12, %v15855_v13  ;;  %vm6968_vm3 = vmand %vm17029_vm15, %vm6904_vm10  ;;  %vm17034_vm15 = vcmp.eq.s32.totalorder %v17003_v45, %v8857_v30 }
0x1c36   : > { %vm6970_vm5 = vmand %vm17030_vm6, %vm6906_vm14  ;;  %vm17033_vm14 = vcmp.eq.s32.totalorder %v17000_v32, %v8857_v30  ;;  %vm17037_vm6 = vcmask 1043456  }
0x1c37   : > { %vm8190_vm11 = vmpackc.low %vm6970_vm5, %vm6968_vm3 }
0x1c38   : > { %8191 = vmatpush1.bf16.msk.msra.mxu1 %vm8190_vm11, %v15855_v13  ;;  %vm6973_vm2 = vmand %vm17031_vm13, %vm6909_vm9 }
0x1c39   : > { %vm6975_vm10 = vmand %vm17032_vm0, %vm6911_vm1  ;;  %vm17039_vm1 = vcmask 64512  }
0x1c3a   : > { %vm8192_vm4 = vmpackc.low %vm6975_vm10, %vm6973_vm2 }
0x1c3b   : > { %8193 = vmatprep.subr.msk.bf16.mxu1 %vm8192_vm4, %v15855_v13  ;;  %vm6972_vm12 = vmand %vm17033_vm14, %vm6908_vm8 }
0x1c3c   : > { %vm6974_vm3 = vmand %vm17034_vm15, %vm6910_vm7 }
0x1c3d   : > { %vm8194_vm9 = vmpackc.low %vm6974_vm3, %vm6972_vm12 }
0x1c3e   : > { %8195 = vmatpush1.bf16.msk.msra.mxu1 %vm8194_vm9, %v15855_v13  ;;  %vm17038_vm5 = vmmov %vm17037_vm6 }
0x1c5a   : > { %v6610_v48 = vpop.f32.mrb[156].mxu1 }
0x1c5b   : > { %v6611_v42 = vadd.f32 %v6610_v48, %v17035_v12  ;;  %v6612_v23 = vpop.f32.mrb[157].mxu1 }
0x1c5c   : > { %v6613_v11 = vadd.f32 %v6612_v23, %v17036_v50  ;;  %v6614_v33 = vpop.f32.mrb[158].mxu1  ;;  %v17040_v50 = vld [vmem:[#allocation7_spill] sm:$0xff] }
0x1c5d   : > { %v6615_v25 = vpop.f32.mrb[159].mxu1 }
0x1c5e   : > { %v17041_v25 = vld [vmem:[#allocation8_spill] sm:$0xff] }
0x1c62   : > { %v6656_v16 = vpop.f32.mrb[160].mxu1 }
0x1c63   : > { %v6663_v17 = vadd.f32 %v6656_v16, %v6611_v42  ;;  %v6658_v19 = vpop.f32.mrb[161].mxu1 }
0x1c64   : > { %v6664_v6 = vadd.f32 %v6658_v19, %v6613_v11  ;;  %v6660_v18 = vpop.f32.mrb[162].mxu1 }
0x1c65   : > { %v6661_v22 = vpop.f32.mrb[163].mxu1 }
0x1c68   : > { %v6224_v8 = vpop.f32.mrb[160].mxu0 }
0x1c69   : > { %v6523_v30 = vpack.c.bf16 %v6224_v8, %v6224_v8  ;;  %v6226_v51 = vpop.f32.mrb[161].mxu0 }
0x1c6a   : > { %v6524_v15 = vpack.c.bf16 %v6226_v51, %v6226_v51  ;;  %v6228_v49 = vpop.f32.mrb[162].mxu0 }
0x1c6b   : > { %v6229_v13 = vpop.f32.mrb[163].mxu0 }
0x1c6c   : > { %6697 = vmatprep.mubr.bf16.mxu0 %v6524_v15 }
0x1c6d   : > { %6698 = vmatmul.mubr.bf16.vlgmr.msra.gmra.mrb[164].mxu0 %v6523_v30 }
0x1c6e   : > { %7193 = vmatprep.mubr.bf16.mxu0 %v15856_v35 }
0x1c9b   : > { %v6837_v57 = vpop.f32.mrb[164].mxu1 }
0x1c9c   : > { %v6839_v63 = vpop.f32.mrb[165].mxu1  ;;  %v7072_v0 = vpack.c.bf16 %v6837_v57, %v6837_v57 }
0x1c9d   : > { %v7073_v36 = vpack.c.bf16 %v6839_v63, %v6839_v63  ;;  %v6841_v44 = vpop.f32.mrb[166].mxu1 }
0x1c9e   : > { %v6842_v29 = vpop.f32.mrb[167].mxu1 }
0x1c9f   : > { %7106 = vmatprep.mubr.bf16.mxu1 %v7073_v36 }
0x1ca0   : > { %7107 = vmatmul.mubr.bf16.vlgmr.msra.gmra.mrb[168].mxu1 %v7072_v0 }
0x1d40   : > { %v6699_v52 = vpop.f32.mrb[164].mxu0 }
0x1d41   : > { %v6700_v61 = vadd.f32 %v6699_v52, %v6663_v17  ;;  %v6701_v28 = vpop.f32.mrb[165].mxu0 }
0x1d42   : > { %v6702_v4 = vadd.f32 %v6701_v28, %v6664_v6  ;;  %v6703_v27 = vpop.f32.mrb[166].mxu0 }
0x1d43   : > { %v6704_v58 = vpop.f32.mrb[167].mxu0 }
0x1d73   : > { %v7108_v55 = vpop.f32.mrb[168].mxu1 }
0x1d74   : > { %v7115_v43 = vadd.f32 %v7108_v55, %v6700_v61  ;;  %v7110_v9 = vpop.f32.mrb[169].mxu1 }
0x1d75   : > { %v7116_v14 = vadd.f32 %v7110_v9, %v6702_v4  ;;  %v7112_v35 = vpop.f32.mrb[170].mxu1 }
0x1d76   : > { %v7123_v62 = vadd.f32 %v7121_v47, %v7115_v43  ;;  %v7113_v31 = vpop.f32.mrb[171].mxu1 }
0x1d77   : > { %v7124_v21 = vadd.f32 %v7121_v47, %v7116_v14 }
0x1d79   : > { %v7125_v24 = vadd.f32 %v7124_v21, %v7123_v62 }
0x1d7b   : > { %7126 = vadd.xlane.f32.xlu1 %v7125_v24 }
0x1e08   : > { %v7127_v7 = vpop.xlane.xlu1 %7126 }
0x1e09   : > { %v7128_v37 = vmul.f32 0.00390625, %v7127_v7 }
0x1e0b   : > { %v7129_v3 = vsub.f32 %v7123_v62, %v7128_v37  ;;  %v7130_v59 = vsub.f32 %v7124_v21, %v7128_v37 }
0x1e0d   : > { %v7131_v54 = vmul.f32 %v7129_v3, %v7129_v3  ;;  %v7132_v39 = vmul.f32 %v7130_v59, %v7130_v59 }
0x1e0f   : > { %v7133_v26 = vadd.f32 %v7132_v39, %v7131_v54 }
0x1e11   : > { %7134 = vadd.xlane.f32.xlu1 %v7133_v26 }
0x1e22   : > { %7149 = vperm.xlu1 %8503, %v7146_v2  }
0x1e9e   : > { %v7135_v60 = vpop.xlane.xlu1 %7134 }
0x1e9f   : > { %v7136_v40 = vmul.f32 0.00390625, %v7135_v60 }
0x1ea1   : > { %v7137_v41 = vadd.f32 1e-05, %v7136_v40 }
0x1ea2   : > { %v7150_v20 = vpop.permute.xlu1 %7149 }
0x1ea3   : > { %8635 = vrsqrt.f32 %v7137_v41 }
0x1ead   : > { %v8636_v53 = vpop.eup %8635 }
0x1eae   : > { %v7140_v46 = vmul.f32 %v8636_v53, %v7130_v59  ;;  %v7139_v1 = vmul.f32 %v8636_v53, %v7129_v3 }
0x1eb0   : > { %v7142_v38 = vmax.f32 %v7140_v46, 0.0  ;;  %v7141_v10 = vmax.f32 %v7139_v1, 0.0 }
0x1eb2   : > { %v7145_v32 = vpack.c.bf16 %v7142_v38, %v7142_v38  ;;  %v7144_v34 = vpack.c.bf16 %v7141_v10, %v7141_v10 }
0x1eb4   : > { %8196 = vmatprep.subr.msk.bf16.mxu0 %vm17037_vm6, %v7145_v32  ;;  %v7156_v45 = vsel %vm17038_vm5, %v7144_v34, 0 }
0x1eb5   : > { %7162 = vmatpush1.bf16.msra.mxu0 %v7156_v45 }
0x1eb8   : > { %8197 = vmatmul.mubr.msk.bf16.vlgmr.msra.gmra.mrb[168].mxu0 %vm17039_vm1, %v7143_v5 }
0x1f8b   : > { %v7195_v56 = vpop.f32.mrb[168].mxu0 }
0x1f8c   : > { %v7196_v48 = vadd.f32 %v7195_v56, %v7150_v20  ;;  %v7197_v12 = vpop.f32.mrb[169].mxu0 }
0x1f8d   : > { %v7198_v42 = vadd.f32 %v7197_v12, %v7150_v20  ;;  %v7199_v23 = vpop.f32.mrb[170].mxu0 }
0x1f8e   : > { %v7202_v11 = vadd.f32 %v7196_v48, %v17040_v50  ;;  %v7200_v33 = vpop.f32.mrb[171].mxu0 }
0x1f8f   : > { %v7203_v16 = vadd.f32 %v7198_v42, %v17041_v25 }
0x1f91   : > { %v7204_v17 = vadd.f32 %v7203_v16, %v7202_v11 }
0x1f93   : > { %7205 = vadd.xlane.f32.xlu0 %v7204_v17 }
0x2020   : > { %v7206_v19 = vpop.xlane.xlu0 %7205 }
0x2021   : > { %v7207_v6 = vmul.f32 0.00390625, %v7206_v19 }
0x2023   : > { %v7208_v18 = vsub.f32 %v7202_v11, %v7207_v6  ;;  %v7209_v22 = vsub.f32 %v7203_v16, %v7207_v6 }
0x2025   : > { %v7210_v8 = vmul.f32 %v7208_v18, %v7208_v18  ;;  %v7211_v30 = vmul.f32 %v7209_v22, %v7209_v22 }
0x2027   : > { %v7212_v51 = vadd.f32 %v7211_v30, %v7210_v8 }
0x2029   : > { %7213 = vadd.xlane.f32.xlu1 %v7212_v51 }
0x20b6   : > { %v7214_v15 = vpop.xlane.xlu1 %7213 }
0x20b7   : > { %v7215_v49 = vmul.f32 0.00390625, %v7214_v15 }
0x20b9   : > { %v7216_v13 = vadd.f32 1e-05, %v7215_v49 }
0x20bb   : > { %8637 = vrsqrt.f32 %v7216_v13 }
0x20c5   : > { %v8638_v57 = vpop.eup %8637 }
0x20c6   : > { %v7218_v63 = vmul.f32 %v8638_v57, %v7208_v18  ;;  %v7219_v36 = vmul.f32 %v8638_v57, %v7209_v22 }
0x20c8   : > { %v7220_v44 = vmax.f32 %v7218_v63, 0.0  ;;  %v7221_v0 = vmax.f32 %v7219_v36, 0.0 }
0x20ca   : > { %7222 = vst [vmem:[%s673_s4] sm:$0xff] %v7220_v44  ;;  %7223 = vst [vmem:[%s673_s4 + $0x8] sm:$0xff] %v7221_v0 }
0x20cb PF: > { %s31_s2 = sadd.s32 1, %s8645_s2  }
0x20cc   : > { %p28_p4 = scmp.ge.s32.totalorder %s31_s2, 4  }
0x20ce   :  { %30 = sbr.rel (!%p28_p4) target bundleno = 7 (0x7), region = 160 }

</bundles_post_ra>
